<compile_context>
chip_gen: v7x
topology: tpu7x:2x2x1
jax: 0.10.0
libtpu: 0.0.40
codegen_flags: <defaults>
</compile_context>

<pallas_src>
import math

import jax
import jax.numpy as jnp
import numpy as np
from jax.experimental import pallas as pl
from jax.experimental.pallas import tpu as pltpu

# ----------------------------------------------------------------------------
# Hyper-parameters (small, consistent with the module constructor)
# ----------------------------------------------------------------------------
N_DIMS = 3
IN_NODE_NF = 6            # node feature width fed to EGNN (includes appended time)
H_DIMS = IN_NODE_NF - 1   # node features stored in xh (excluding coordinates)
CONTEXT_NF = 0            # context=None
HIDDEN_NF = 32
N_LAYERS = 2              # EquivariantBlocks
INV_SUBLAYERS = 2         # GCLs per block
EDGE_FEAT_NF = 2          # [block-local d^2, global d^2]
NORMALIZATION_FACTOR = 100.0
NORM_CONSTANT = 0.0

PACK_COLS = HIDDEN_NF     # packed-parameter buffer width (all params have <= 32 cols)


def _mm(a, b):
    # DEFAULT precision: one-pass bf16 MXU with f32 accumulation.
    return jnp.dot(a, b, preferred_element_type=jnp.float32)


def _silu(z):
    return z * jax.nn.sigmoid(z)


# ----------------------------------------------------------------------------
# Deterministic parameter initialization (shapes follow the torch module;
# linear layers whose input is a concat are stored pre-split by input segment).
# ----------------------------------------------------------------------------
def init_params(key):
    params = []
    keys = list(jax.random.split(key, 64))
    kidx = [0]

    def next_key():
        k = keys[kidx[0]]
        kidx[0] += 1
        return k

    def linear(fin, fout, bias=True, xavier_gain=None):
        kw, kb = jax.random.split(next_key())
        if xavier_gain is not None:
            bound = xavier_gain * math.sqrt(6.0 / (fin + fout))
        else:
            bound = 1.0 / math.sqrt(fin)
        W = jax.random.uniform(kw, (fin, fout), jnp.float32, -bound, bound)
        if not bias:
            return W, None
        b = jax.random.uniform(kb, (1, fout), jnp.float32, -bound, bound)
        return W, b

    # EGNN.embedding
    W, b = linear(IN_NODE_NF + CONTEXT_NF, HIDDEN_NF)
    params += [W, b]
    for _l in range(N_LAYERS):
        for _s in range(INV_SUBLAYERS):
            # GCL.edge_mlp
            W1, b1 = linear(2 * HIDDEN_NF + EDGE_FEAT_NF, HIDDEN_NF)
            params += [W1[:HIDDEN_NF], W1[HIDDEN_NF:2 * HIDDEN_NF], W1[2 * HIDDEN_NF:], b1]
            W2, b2 = linear(HIDDEN_NF, HIDDEN_NF)
            params += [W2, b2]
            # GCL.node_mlp
            Wn1, bn1 = linear(2 * HIDDEN_NF, HIDDEN_NF)
            params += [Wn1[:HIDDEN_NF], Wn1[HIDDEN_NF:], bn1]
            Wn2, bn2 = linear(HIDDEN_NF, HIDDEN_NF)
            params += [Wn2, bn2]
        # EquivariantUpdate.coord_mlp
        cW1, cb1 = linear(2 * HIDDEN_NF + EDGE_FEAT_NF, HIDDEN_NF)
        params += [cW1[:HIDDEN_NF], cW1[HIDDEN_NF:2 * HIDDEN_NF], cW1[2 * HIDDEN_NF:], cb1]
        cW2, cb2 = linear(HIDDEN_NF, HIDDEN_NF)
        params += [cW2, cb2]
        cW3, _ = linear(HIDDEN_NF, 1, bias=False, xavier_gain=0.001)  # last layer, no bias
        params += [cW3]
    # EGNN.embedding_out
    Wo, bo = linear(HIDDEN_NF, IN_NODE_NF + CONTEXT_NF)
    params += [Wo, bo]
    return params


# ----------------------------------------------------------------------------
# Host-side parameter packing: one (rows, 32) f32 buffer, each param padded to
# an 8-row boundary, with 1/normalization_factor folded into n_Wa and c_W3.
# ----------------------------------------------------------------------------
def _param_scales(num_params):
    inv = 1.0 / NORMALIZATION_FACTOR
    scales = [1.0, 1.0]                                 # embedding W, b
    for _ in range(N_LAYERS):
        for _ in range(INV_SUBLAYERS):
            scales += [1.0] * 7 + [inv] + [1.0] * 3     # ... n_Wa scaled
        scales += [1.0] * 6 + [inv]                     # ... c_W3 scaled
    scales += [1.0, 1.0]                                # embedding_out W, b
    assert len(scales) == num_params
    return scales


def pack_params(flat_params):
    scales = _param_scales(len(flat_params))
    blocks, offsets, off = [], [], 0
    for p, s in zip(flat_params, scales):
        p = jnp.asarray(p, jnp.float32)
        if s != 1.0:
            p = p * s
        r, c = p.shape
        rp = ((r + 7) // 8) * 8
        blk = jnp.zeros((rp, PACK_COLS), jnp.float32).at[:r, :c].set(p)
        blocks.append(blk)
        offsets.append((off, r, c))
        off += rp
    return jnp.concatenate(blocks, axis=0), tuple(offsets)


# ----------------------------------------------------------------------------
# Pallas kernel: full EGNN dynamics for b_tile batch samples per grid step.
# Edge tensors use column-major (j outer, i inner) order so that the
# per-row-i aggregation is a leading-axis reduction.
# ----------------------------------------------------------------------------
def _make_kernel(n, b_tile, offsets):
    nn_e = n * n

    def kernel(xh_ref, nm_ref, em_ref, w_ref, out_ref):
        # 0/1 gather matrix for the outer (j) edge index, built from iota:
        # rout[e, a] == 1  iff  e // n == a   (expressed without integer division).
        e_id = jax.lax.broadcasted_iota(jnp.int32, (nn_e, n), 0)
        a_lo = jax.lax.broadcasted_iota(jnp.int32, (nn_e, n), 1) * n
        rout = jnp.logical_and(e_id >= a_lo, e_id < a_lo + n).astype(jnp.float32)

        def pslice(idx):
            off, r, c = offsets[idx]
            return w_ref[off:off + r, 0:c]

        def run_sample(b):
            k = [0]

            def nxt():
                w = pslice(k[0])
                k[0] += 1
                return w

            xh = xh_ref[b]                     # (n, N_DIMS + IN_NODE_NF)
            nmask = nm_ref[b]                  # (n, 1)
            emask = em_ref[b]                  # (n*n, 1), column-major (j outer, i inner)
            x0 = xh[:, 0:N_DIMS]
            h = xh[:, N_DIMS:]

            # EGNN.forward: global squared distances from the initial coordinates.
            x0j = _mm(rout, x0)                                    # (n*n, 3) -> x0[j]
            d0 = x0[None, :, :] - x0j.reshape(n, n, N_DIMS)        # d0[j, i] = x0_i - x0_j
            radial0 = jnp.sum(d0 * d0, axis=-1, keepdims=True).reshape(nn_e, 1)

            # node embedding
            h = _mm(h, nxt()) + nxt()
            x = x0

            for _layer in range(N_LAYERS):
                # EquivariantBlock: coord2diff(x) (norm_constant == 0 -> rsqrt)
                xj = _mm(rout, x)                                  # (n*n, 3) -> x[j]
                d3 = x[None, :, :] - xj.reshape(n, n, N_DIMS)      # (n, n, 3)
                radial3 = jnp.sum(d3 * d3, axis=-1, keepdims=True) # (n, n, 1)
                coord_diff3 = d3 * jax.lax.rsqrt(radial3 + 1e-8)
                radial2 = radial3.reshape(nn_e, 1)

                for _s in range(INV_SUBLAYERS):                    # GCL sublayers
                    e_Ws, e_Wt, e_We, e_b1 = nxt(), nxt(), nxt(), nxt()
                    e_W2, e_b2 = nxt(), nxt()
                    n_Wh, n_Wa, n_b1 = nxt(), nxt(), nxt()
                    n_W2, n_b2 = nxt(), nxt()

                    # edge model: mlp([h_i, h_j, edge_attr])
                    hi = _mm(h, e_Ws)                              # (n, hid)   h_i side
                    hj = _mm(rout, _mm(h, e_Wt))                   # (n*n, hid) h_j side
                    e_attr = radial2 * e_We[0:1, :] + radial0 * e_We[1:2, :]
                    rest = (hj + e_attr + e_b1).reshape(n, n, HIDDEN_NF)
                    m = _silu(hi[None, :, :] + rest).reshape(nn_e, HIDDEN_NF)
                    m = _silu(_mm(m, e_W2) + e_b2)
                    m = m * emask                                  # edge_mask
                    # segment-sum over j == reduction over the leading (outer) axis.
                    agg = jnp.sum(m.reshape(n, n, HIDDEN_NF), axis=0)     # (n, hid)

                    # node model (1/normalization_factor folded into n_Wa)
                    upd = _silu(_mm(h, n_Wh) + _mm(agg, n_Wa) + n_b1)
                    upd = _mm(upd, n_W2) + n_b2
                    h = (h + upd) * nmask

                # EquivariantUpdate (tanh=False)
                c_Ws, c_Wt, c_We, c_b1 = nxt(), nxt(), nxt(), nxt()
                c_W2, c_b2 = nxt(), nxt()
                c_W3 = nxt()

                hi = _mm(h, c_Ws)
                hj = _mm(rout, _mm(h, c_Wt))
                e_attr = radial2 * c_We[0:1, :] + radial0 * c_We[1:2, :]
                rest = (hj + e_attr + c_b1).reshape(n, n, HIDDEN_NF)
                m = _silu(hi[None, :, :] + rest).reshape(nn_e, HIDDEN_NF)
                m = _silu(_mm(m, c_W2) + c_b2)
                phi = _mm(m, c_W3)                                 # (n*n, 1); /100 folded in
                trans3 = coord_diff3 * (phi * emask).reshape(n, n, 1)
                x = (x + jnp.sum(trans3, axis=0)) * nmask
                h = h * nmask                                      # block-end masking

            # EGNN.embedding_out + node mask
            hf = (_mm(h, nxt()) + nxt()) * nmask                   # (n, IN_NODE_NF)

            # dynamics epilogue: vel = (x_final - x0) * mask, remove_mean_with_mask
            vel = (x - x0) * nmask
            n_active = jnp.sum(nmask)
            mean = jnp.sum(vel, axis=0, keepdims=True) / n_active
            vel = vel - mean * nmask

            out_ref[b, :, 0:N_DIMS] = vel
            out_ref[b, :, N_DIMS:N_DIMS + H_DIMS] = hf[:, 0:H_DIMS]

        for b in range(b_tile):                # statically unrolled batch tile
            run_sample(b)

    return kernel


# ----------------------------------------------------------------------------
# Wrapper (glue: masking, time conditioning, padding, packing, final concat)
# ----------------------------------------------------------------------------
def _round_up(v, m):
    return ((v + m - 1) // m) * m


def _pad_axis(a, axis, size):
    if a.shape[axis] == size:
        return a
    widths = [(0, 0)] * a.ndim
    widths[axis] = (0, size - a.shape[axis])
    return jnp.pad(a, widths)


def egnn_dynamics_forward(flat_params, t, xh, node_mask, edge_mask, b_tile=None):
    bs, n, dims = xh.shape
    assert dims == N_DIMS + H_DIMS
    if b_tile is None:
        # amortize per-grid-step overhead over up to 4 samples while keeping >= 2
        # grid steps when possible (so v7x's two TensorCores can split the batch).
        b_tile = max(1, min(4, bs // 2))
    n_pad = _round_up(n, 8)        # keeps in-kernel (n*n, C) <-> (n, n, C) reshapes tile-aligned
    bs_pad = _round_up(bs, b_tile)
    nn_p = n_pad * n_pad

    nmask = node_mask.reshape(bs, n, 1).astype(jnp.float32)
    em = edge_mask.reshape(bs, n, n).astype(jnp.float32)

    xh = xh.astype(jnp.float32) * nmask
    # condition_time with scalar t (appended unmasked, as in the torch module)
    t_col = jnp.full((bs, n, 1), t, dtype=jnp.float32)
    xh9 = jnp.concatenate([xh, t_col], axis=-1)          # (bs, n, N_DIMS + IN_NODE_NF)
    # TODO(synk): context conditioning (context_node_nf > 0) not wired in (context=None here).

    # pad nodes to a multiple of 8 and batch to a multiple of b_tile (fully masked)
    xh9 = _pad_axis(_pad_axis(xh9, 1, n_pad), 0, bs_pad)
    nmask_p = _pad_axis(_pad_axis(nmask, 1, n_pad), 0, bs_pad)
    em = _pad_axis(_pad_axis(_pad_axis(em, 2, n_pad), 1, n_pad), 0, bs_pad)
    # kernel uses column-major (j outer, i inner) edge order
    em_t = jnp.transpose(em, (0, 2, 1)).reshape(bs_pad, nn_p, 1)

    packed, offsets = pack_params(flat_params)
    kernel = _make_kernel(n_pad, b_tile, offsets)

    grid = (bs_pad // b_tile,)
    in_specs = [
        pl.BlockSpec((b_tile, n_pad, N_DIMS + IN_NODE_NF), lambda g: (g, 0, 0)),
        pl.BlockSpec((b_tile, n_pad, 1), lambda g: (g, 0, 0)),
        pl.BlockSpec((b_tile, nn_p, 1), lambda g: (g, 0, 0)),
        pl.BlockSpec(packed.shape, lambda g: (0, 0)),
    ]
    out_specs = pl.BlockSpec((b_tile, n_pad, N_DIMS + H_DIMS), lambda g: (g, 0, 0))
    out_shape = jax.ShapeDtypeStruct((bs_pad, n_pad, N_DIMS + H_DIMS), jnp.float32)

    out = pl.pallas_call(
        kernel,
        grid=grid,
        in_specs=in_specs,
        out_specs=out_specs,
        out_shape=out_shape,
        compiler_params=pltpu.CompilerParams(dimension_semantics=("parallel",)),
    )(xh9, nmask_p, em_t, packed)

    out = out[:bs, :n, :]
    vel = out[..., :N_DIMS]
    hf = out[..., N_DIMS:]

    # NaN guard (torch applies it just before remove_mean; equivalent unless a
    # sample is entirely masked out).
    vel = jnp.where(jnp.any(jnp.isnan(vel)), jnp.zeros_like(vel), vel)
    return jnp.concatenate([vel, hf], axis=-1)


# ----------------------------------------------------------------------------
# Pure-JAX reference (mirrors the torch code: flat batch, edge lists, scatter)
# ----------------------------------------------------------------------------
def egnn_dynamics_ref(flat_params, t, xh, node_mask, edge_mask):
    bs, n, dims = xh.shape
    nm = node_mask.reshape(bs * n, 1).astype(jnp.float32)
    em = edge_mask.reshape(bs * n * n, 1).astype(jnp.float32)

    xh_f = xh.reshape(bs * n, dims).astype(jnp.float32) * nm
    x0 = xh_f[:, :N_DIMS]
    h = xh_f[:, N_DIMS:]
    h = jnp.concatenate([h, jnp.full((bs * n, 1), t, dtype=jnp.float32)], axis=1)

    base = np.repeat(np.arange(bs), n * n) * n
    ii = np.tile(np.repeat(np.arange(n), n), bs)
    jj = np.tile(np.tile(np.arange(n), n), bs)
    rows = jnp.asarray(base + ii)
    cols = jnp.asarray(base + jj)

    def seg_sum(data, num):
        return jnp.zeros((num, data.shape[1]), data.dtype).at[rows].add(data)

    def lin(a, W, b=None):
        y = jnp.dot(a, W, preferred_element_type=jnp.float32)
        return y if b is None else y + b

    it = iter(flat_params)
    nxt = lambda: next(it)

    d0 = x0[rows] - x0[cols]
    radial0 = jnp.sum(d0 ** 2, axis=1, keepdims=True)

    h = lin(h, nxt(), nxt())
    x = x0
    for _l in range(N_LAYERS):
        d = x[rows] - x[cols]
        radial = jnp.sum(d ** 2, axis=1, keepdims=True)
        coord_diff = d / (jnp.sqrt(radial + 1e-8) + NORM_CONSTANT)
        edge_attr = jnp.concatenate([radial, radial0], axis=1)
        for _s in range(INV_SUBLAYERS):
            e_Ws, e_Wt, e_We, e_b1 = nxt(), nxt(), nxt(), nxt()
            e_W2, e_b2 = nxt(), nxt()
            n_Wh, n_Wa, n_b1 = nxt(), nxt(), nxt()
            n_W2, n_b2 = nxt(), nxt()
            W1 = jnp.concatenate([e_Ws, e_Wt, e_We], axis=0)
            inp = jnp.concatenate([h[rows], h[cols], edge_attr], axis=1)
            mij = _silu(lin(_silu(lin(inp, W1, e_b1)), e_W2, e_b2)) * em
            agg = seg_sum(mij, bs * n) / NORMALIZATION_FACTOR
            Wn1 = jnp.concatenate([n_Wh, n_Wa], axis=0)
            node_in = jnp.concatenate([h, agg], axis=1)
            upd = lin(_silu(lin(node_in, Wn1, n_b1)), n_W2, n_b2)
            h = (h + upd) * nm
        c_Ws, c_Wt, c_We, c_b1 = nxt(), nxt(), nxt(), nxt()
        c_W2, c_b2 = nxt(), nxt()
        c_W3 = nxt()
        W1 = jnp.concatenate([c_Ws, c_Wt, c_We], axis=0)
        inp = jnp.concatenate([h[rows], h[cols], edge_attr], axis=1)
        m = _silu(lin(_silu(lin(inp, W1, c_b1)), c_W2, c_b2))
        phi = jnp.dot(m, c_W3, preferred_element_type=jnp.float32)
        trans = coord_diff * phi * em
        x = (x + seg_sum(trans, bs * n) / NORMALIZATION_FACTOR) * nm
        h = h * nm
    hf = lin(h, nxt(), nxt()) * nm

    vel = ((x - x0) * nm).reshape(bs, n, N_DIMS)
    nm3 = node_mask.reshape(bs, n, 1).astype(jnp.float32)
    n_active = jnp.sum(nm3, axis=1, keepdims=True)
    mean = jnp.sum(vel, axis=1, keepdims=True) / n_active
    vel = vel - mean * nm3
    vel = jnp.where(jnp.any(jnp.isnan(vel)), jnp.zeros_like(vel), vel)
    hf = hf[:, :H_DIMS].reshape(bs, n, H_DIMS)
    return jnp.concatenate([vel, hf], axis=2)


# ----------------------------------------------------------------------------
if __name__ == "__main__":
    key = jax.random.PRNGKey(0)
    k_xh, k_params = jax.random.split(key)

    bs, n = 4, 8
    xh = jax.random.normal(k_xh, (bs, n, N_DIMS + H_DIMS), jnp.float32)
    lens = jnp.array([8, 6, 7, 5])
    node_mask = (jnp.arange(n)[None, :] < lens[:, None]).astype(jnp.float32)[..., None]
    nm2 = node_mask[..., 0]
    edge_mask = (nm2[:, :, None] * nm2[:, None, :] * (1.0 - jnp.eye(n)[None, :, :]))
    edge_mask = edge_mask.reshape(bs, n * n, 1)
    t = jnp.float32(0.5)

    params = init_params(k_params)

    out = egnn_dynamics_forward(params, t, xh, node_mask, edge_mask)
    out = jax.block_until_ready(out)

    ref = egnn_dynamics_ref(params, t, xh, node_mask, edge_mask)
    # Both kernel and reference run the MXU at DEFAULT (bf16-class) precision with
    # f32 accumulation; tolerance accounts for the gather-by-matmul / weight-folding
    # rounding differences.
    np.testing.assert_allclose(np.asarray(out), np.asarray(ref), rtol=1e-2, atol=2e-3)
    assert out.shape == (bs, n, N_DIMS + H_DIMS)

    print("KERNEL_OK")
</pallas_src>

<mosaic_0001>
module attributes {stable_mosaic.version = 11 : i64} {
  func.func @kernel(%arg0: i32, %arg1: memref<2x8x9xf32, #tpu.memory_space<vmem>>, %arg2: memref<2x8x1xf32, #tpu.memory_space<vmem>>, %arg3: memref<2x64x1xf32, #tpu.memory_space<vmem>>, %arg4: memref<1288x32xf32, #tpu.memory_space<vmem>>, %arg5: memref<2x8x8xf32, #tpu.memory_space<vmem>>) attributes {dimension_semantics = [#tpu.dimension_semantics<parallel>], iteration_bounds = array<i64: 2>, scalar_prefetch = 0 : i64, scratch_operands = 0 : i64, tpu.core_type = #tpu.core_type<tc>, window_params = [{transform_indices = @transform_0, window_bounds = array<i64: 2, 8, 9>}, {transform_indices = @transform_1, window_bounds = array<i64: 2, 8, 1>}, {transform_indices = @transform_2, window_bounds = array<i64: 2, 64, 1>}, {pipeline_mode = #tpu.pipeline_mode<synchronous>, transform_indices = @transform_3, window_bounds = array<i64: 1288, 32>}, {transform_indices = @transform_4, window_bounds = array<i64: 2, 8, 8>}]} {
    %0 = tpu.iota {dimensions = array<i32: 0>} : vector<64x8xi32>
    %1 = tpu.iota {dimensions = array<i32: 1>} : vector<64x8xi32>
    %c8_i32 = arith.constant 8 : i32
    %2 = vector.broadcast %c8_i32 : i32 to vector<64x8xi32>
    %3 = arith.muli %1, %2 : vector<64x8xi32>
    %4 = arith.cmpi sge, %0, %3 : vector<64x8xi32>
    %c8_i32_0 = arith.constant 8 : i32
    %5 = vector.broadcast %c8_i32_0 : i32 to vector<64x8xi32>
    %6 = arith.addi %3, %5 : vector<64x8xi32>
    %7 = arith.cmpi slt, %0, %6 : vector<64x8xi32>
    %8 = arith.andi %4, %7 : vector<64x8xi1>
    %9 = arith.extui %8 : vector<64x8xi1> to vector<64x8xi32>
    %10 = arith.sitofp %9 : vector<64x8xi32> to vector<64x8xf32>
    %c0 = arith.constant 0 : index
    %c0_1 = arith.constant 0 : index
    %c0_2 = arith.constant 0 : index
    %11 = vector.load %arg1[%c0, %c0_1, %c0_2] : memref<2x8x9xf32, #tpu.memory_space<vmem>>, vector<1x8x9xf32>
    %12 = vector.shape_cast %11 : vector<1x8x9xf32> to vector<8x9xf32>
    %c0_3 = arith.constant 0 : index
    %c0_4 = arith.constant 0 : index
    %c0_5 = arith.constant 0 : index
    %13 = vector.load %arg2[%c0_3, %c0_4, %c0_5] : memref<2x8x1xf32, #tpu.memory_space<vmem>>, vector<1x8x1xf32>
    %14 = vector.shape_cast %13 : vector<1x8x1xf32> to vector<8x1xf32>
    %c0_6 = arith.constant 0 : index
    %c0_7 = arith.constant 0 : index
    %c0_8 = arith.constant 0 : index
    %15 = vector.load %arg3[%c0_6, %c0_7, %c0_8] : memref<2x64x1xf32, #tpu.memory_space<vmem>>, vector<1x64x1xf32>
    %16 = vector.shape_cast %15 : vector<1x64x1xf32> to vector<64x1xf32>
    %17 = vector.extract_strided_slice %12 {offsets = [0, 0], sizes = [8, 3], strides = [1, 1]} : vector<8x9xf32> to vector<8x3xf32>
    %18 = vector.extract_strided_slice %12 {offsets = [0, 3], sizes = [8, 6], strides = [1, 1]} : vector<8x9xf32> to vector<8x6xf32>
    %cst = arith.constant dense<0.000000e+00> : vector<64x3xf32>
    %19 = tpu.matmul %10, %17, %cst {dimension_numbers = #tpu.dot_dimension_numbers<[1], [0], [0], [1], [0, 0, 1, 1], [], []>} : vector<64x8xf32>, vector<8x3xf32>, vector<64x3xf32> -> vector<64x3xf32>
    %20 = vector.shape_cast %17 : vector<8x3xf32> to vector<1x8x3xf32>
    %21 = vector.shape_cast %19 : vector<64x3xf32> to vector<8x8x3xf32>
    %22 = vector.broadcast %20 : vector<1x8x3xf32> to vector<8x8x3xf32>
    %23 = arith.subf %22, %21 : vector<8x8x3xf32>
    %24 = arith.mulf %23, %23 : vector<8x8x3xf32>
    %cst_9 = arith.constant dense<0.000000e+00> : vector<8x8xf32>
    %25 = vector.multi_reduction <add>, %24, %cst_9 [2] : vector<8x8x3xf32> to vector<8x8xf32>
    %26 = vector.shape_cast %25 : vector<8x8xf32> to vector<8x8x1xf32>
    %27 = vector.shape_cast %26 : vector<8x8x1xf32> to vector<64x1xf32>
    %c0_10 = arith.constant 0 : index
    %c0_11 = arith.constant 0 : index
    %28 = vector.load %arg4[%c0_10, %c0_11] : memref<1288x32xf32, #tpu.memory_space<vmem>>, vector<6x32xf32>
    %cst_12 = arith.constant dense<0.000000e+00> : vector<8x32xf32>
    %29 = tpu.matmul %18, %28, %cst_12 {dimension_numbers = #tpu.dot_dimension_numbers<[1], [0], [0], [1], [0, 0, 1, 1], [], []>} : vector<8x6xf32>, vector<6x32xf32>, vector<8x32xf32> -> vector<8x32xf32>
    %c8 = arith.constant 8 : index
    %c0_13 = arith.constant 0 : index
    %30 = vector.load %arg4[%c8, %c0_13] : memref<1288x32xf32, #tpu.memory_space<vmem>>, vector<1x32xf32>
    %31 = vector.broadcast %30 : vector<1x32xf32> to vector<8x32xf32>
    %32 = arith.addf %29, %31 : vector<8x32xf32>
    %cst_14 = arith.constant dense<0.000000e+00> : vector<64x3xf32>
    %33 = tpu.matmul %10, %17, %cst_14 {dimension_numbers = #tpu.dot_dimension_numbers<[1], [0], [0], [1], [0, 0, 1, 1], [], []>} : vector<64x8xf32>, vector<8x3xf32>, vector<64x3xf32> -> vector<64x3xf32>
    %34 = vector.shape_cast %17 : vector<8x3xf32> to vector<1x8x3xf32>
    %35 = vector.shape_cast %33 : vector<64x3xf32> to vector<8x8x3xf32>
    %36 = vector.broadcast %34 : vector<1x8x3xf32> to vector<8x8x3xf32>
    %37 = arith.subf %36, %35 : vector<8x8x3xf32>
    %38 = arith.mulf %37, %37 : vector<8x8x3xf32>
    %cst_15 = arith.constant dense<0.000000e+00> : vector<8x8xf32>
    %39 = vector.multi_reduction <add>, %38, %cst_15 [2] : vector<8x8x3xf32> to vector<8x8xf32>
    %40 = vector.shape_cast %39 : vector<8x8xf32> to vector<8x8x1xf32>
    %cst_16 = arith.constant 9.99999993E-9 : f32
    %41 = vector.broadcast %cst_16 : f32 to vector<8x8x1xf32>
    %42 = arith.addf %40, %41 : vector<8x8x1xf32>
    %43 = math.rsqrt %42 : vector<8x8x1xf32>
    %44 = vector.broadcast %43 : vector<8x8x1xf32> to vector<8x8x3xf32>
    %45 = arith.mulf %37, %44 : vector<8x8x3xf32>
    %46 = vector.shape_cast %40 : vector<8x8x1xf32> to vector<64x1xf32>
    %c16 = arith.constant 16 : index
    %c0_17 = arith.constant 0 : index
    %47 = vector.load %arg4[%c16, %c0_17] : memref<1288x32xf32, #tpu.memory_space<vmem>>, vector<32x32xf32>
    %c48 = arith.constant 48 : index
    %c0_18 = arith.constant 0 : index
    %48 = vector.load %arg4[%c48, %c0_18] : memref<1288x32xf32, #tpu.memory_space<vmem>>, vector<32x32xf32>
    %c80 = arith.constant 80 : index
    %c0_19 = arith.constant 0 : index
    %49 = vector.load %arg4[%c80, %c0_19] : memref<1288x32xf32, #tpu.memory_space<vmem>>, vector<2x32xf32>
    %c88 = arith.constant 88 : index
    %c0_20 = arith.constant 0 : index
    %50 = vector.load %arg4[%c88, %c0_20] : memref<1288x32xf32, #tpu.memory_space<vmem>>, vector<1x32xf32>
    %c96 = arith.constant 96 : index
    %c0_21 = arith.constant 0 : index
    %51 = vector.load %arg4[%c96, %c0_21] : memref<1288x32xf32, #tpu.memory_space<vmem>>, vector<32x32xf32>
    %c128 = arith.constant 128 : index
    %c0_22 = arith.constant 0 : index
    %52 = vector.load %arg4[%c128, %c0_22] : memref<1288x32xf32, #tpu.memory_space<vmem>>, vector<1x32xf32>
    %c136 = arith.constant 136 : index
    %c0_23 = arith.constant 0 : index
    %53 = vector.load %arg4[%c136, %c0_23] : memref<1288x32xf32, #tpu.memory_space<vmem>>, vector<32x32xf32>
    %c168 = arith.constant 168 : index
    %c0_24 = arith.constant 0 : index
    %54 = vector.load %arg4[%c168, %c0_24] : memref<1288x32xf32, #tpu.memory_space<vmem>>, vector<32x32xf32>
    %c200 = arith.constant 200 : index
    %c0_25 = arith.constant 0 : index
    %55 = vector.load %arg4[%c200, %c0_25] : memref<1288x32xf32, #tpu.memory_space<vmem>>, vector<1x32xf32>
    %c208 = arith.constant 208 : index
    %c0_26 = arith.constant 0 : index
    %56 = vector.load %arg4[%c208, %c0_26] : memref<1288x32xf32, #tpu.memory_space<vmem>>, vector<32x32xf32>
    %c240 = arith.constant 240 : index
    %c0_27 = arith.constant 0 : index
    %57 = vector.load %arg4[%c240, %c0_27] : memref<1288x32xf32, #tpu.memory_space<vmem>>, vector<1x32xf32>
    %cst_28 = arith.constant dense<0.000000e+00> : vector<8x32xf32>
    %58 = tpu.matmul %32, %47, %cst_28 {dimension_numbers = #tpu.dot_dimension_numbers<[1], [0], [0], [1], [0, 0, 1, 1], [], []>} : vector<8x32xf32>, vector<32x32xf32>, vector<8x32xf32> -> vector<8x32xf32>
    %cst_29 = arith.constant dense<0.000000e+00> : vector<8x32xf32>
    %59 = tpu.matmul %32, %48, %cst_29 {dimension_numbers = #tpu.dot_dimension_numbers<[1], [0], [0], [1], [0, 0, 1, 1], [], []>} : vector<8x32xf32>, vector<32x32xf32>, vector<8x32xf32> -> vector<8x32xf32>
    %cst_30 = arith.constant dense<0.000000e+00> : vector<64x32xf32>
    %60 = tpu.matmul %10, %59, %cst_30 {dimension_numbers = #tpu.dot_dimension_numbers<[1], [0], [0], [1], [0, 0, 1, 1], [], []>} : vector<64x8xf32>, vector<8x32xf32>, vector<64x32xf32> -> vector<64x32xf32>
    %61 = vector.extract_strided_slice %49 {offsets = [0, 0], sizes = [1, 32], strides = [1, 1]} : vector<2x32xf32> to vector<1x32xf32>
    %62 = vector.broadcast %46 : vector<64x1xf32> to vector<64x32xf32>
    %63 = vector.broadcast %61 : vector<1x32xf32> to vector<64x32xf32>
    %64 = arith.mulf %62, %63 : vector<64x32xf32>
    %65 = vector.extract_strided_slice %49 {offsets = [1, 0], sizes = [1, 32], strides = [1, 1]} : vector<2x32xf32> to vector<1x32xf32>
    %66 = vector.broadcast %27 : vector<64x1xf32> to vector<64x32xf32>
    %67 = vector.broadcast %65 : vector<1x32xf32> to vector<64x32xf32>
    %68 = arith.mulf %66, %67 : vector<64x32xf32>
    %69 = arith.addf %64, %68 : vector<64x32xf32>
    %70 = arith.addf %60, %69 : vector<64x32xf32>
    %71 = vector.broadcast %50 : vector<1x32xf32> to vector<64x32xf32>
    %72 = arith.addf %70, %71 : vector<64x32xf32>
    %73 = vector.shape_cast %72 : vector<64x32xf32> to vector<8x8x32xf32>
    %74 = vector.shape_cast %58 : vector<8x32xf32> to vector<1x8x32xf32>
    %75 = vector.broadcast %74 : vector<1x8x32xf32> to vector<8x8x32xf32>
    %76 = arith.addf %75, %73 : vector<8x8x32xf32>
    %77 = arith.negf %76 : vector<8x8x32xf32>
    %78 = math.exp %77 : vector<8x8x32xf32>
    %cst_31 = arith.constant 1.000000e+00 : f32
    %79 = vector.broadcast %cst_31 : f32 to vector<8x8x32xf32>
    %80 = arith.addf %79, %78 : vector<8x8x32xf32>
    %81 = arith.divf %79, %80 : vector<8x8x32xf32>
    %82 = arith.mulf %76, %81 : vector<8x8x32xf32>
    %83 = vector.shape_cast %82 : vector<8x8x32xf32> to vector<64x32xf32>
    %cst_32 = arith.constant dense<0.000000e+00> : vector<64x32xf32>
    %84 = tpu.matmul %83, %51, %cst_32 {dimension_numbers = #tpu.dot_dimension_numbers<[1], [0], [0], [1], [0, 0, 1, 1], [], []>} : vector<64x32xf32>, vector<32x32xf32>, vector<64x32xf32> -> vector<64x32xf32>
    %85 = vector.broadcast %52 : vector<1x32xf32> to vector<64x32xf32>
    %86 = arith.addf %84, %85 : vector<64x32xf32>
    %87 = arith.negf %86 : vector<64x32xf32>
    %88 = math.exp %87 : vector<64x32xf32>
    %cst_33 = arith.constant 1.000000e+00 : f32
    %89 = vector.broadcast %cst_33 : f32 to vector<64x32xf32>
    %90 = arith.addf %89, %88 : vector<64x32xf32>
    %91 = arith.divf %89, %90 : vector<64x32xf32>
    %92 = arith.mulf %86, %91 : vector<64x32xf32>
    %93 = vector.broadcast %16 : vector<64x1xf32> to vector<64x32xf32>
    %94 = arith.mulf %92, %93 : vector<64x32xf32>
    %95 = vector.shape_cast %94 : vector<64x32xf32> to vector<8x8x32xf32>
    %cst_34 = arith.constant dense<0.000000e+00> : vector<8x32xf32>
    %96 = vector.multi_reduction <add>, %95, %cst_34 [0] : vector<8x8x32xf32> to vector<8x32xf32>
    %cst_35 = arith.constant dense<0.000000e+00> : vector<8x32xf32>
    %97 = tpu.matmul %32, %53, %cst_35 {dimension_numbers = #tpu.dot_dimension_numbers<[1], [0], [0], [1], [0, 0, 1, 1], [], []>} : vector<8x32xf32>, vector<32x32xf32>, vector<8x32xf32> -> vector<8x32xf32>
    %cst_36 = arith.constant dense<0.000000e+00> : vector<8x32xf32>
    %98 = tpu.matmul %96, %54, %cst_36 {dimension_numbers = #tpu.dot_dimension_numbers<[1], [0], [0], [1], [0, 0, 1, 1], [], []>} : vector<8x32xf32>, vector<32x32xf32>, vector<8x32xf32> -> vector<8x32xf32>
    %99 = arith.addf %97, %98 : vector<8x32xf32>
    %100 = vector.broadcast %55 : vector<1x32xf32> to vector<8x32xf32>
    %101 = arith.addf %99, %100 : vector<8x32xf32>
    %102 = arith.negf %101 : vector<8x32xf32>
    %103 = math.exp %102 : vector<8x32xf32>
    %cst_37 = arith.constant 1.000000e+00 : f32
    %104 = vector.broadcast %cst_37 : f32 to vector<8x32xf32>
    %105 = arith.addf %104, %103 : vector<8x32xf32>
    %106 = arith.divf %104, %105 : vector<8x32xf32>
    %107 = arith.mulf %101, %106 : vector<8x32xf32>
    %cst_38 = arith.constant dense<0.000000e+00> : vector<8x32xf32>
    %108 = tpu.matmul %107, %56, %cst_38 {dimension_numbers = #tpu.dot_dimension_numbers<[1], [0], [0], [1], [0, 0, 1, 1], [], []>} : vector<8x32xf32>, vector<32x32xf32>, vector<8x32xf32> -> vector<8x32xf32>
    %109 = vector.broadcast %57 : vector<1x32xf32> to vector<8x32xf32>
    %110 = arith.addf %108, %109 : vector<8x32xf32>
    %111 = arith.addf %32, %110 : vector<8x32xf32>
    %112 = vector.broadcast %14 : vector<8x1xf32> to vector<8x32xf32>
    %113 = arith.mulf %111, %112 : vector<8x32xf32>
    %c248 = arith.constant 248 : index
    %c0_39 = arith.constant 0 : index
    %114 = vector.load %arg4[%c248, %c0_39] : memref<1288x32xf32, #tpu.memory_space<vmem>>, vector<32x32xf32>
    %c280 = arith.constant 280 : index
    %c0_40 = arith.constant 0 : index
    %115 = vector.load %arg4[%c280, %c0_40] : memref<1288x32xf32, #tpu.memory_space<vmem>>, vector<32x32xf32>
    %c312 = arith.constant 312 : index
    %c0_41 = arith.constant 0 : index
    %116 = vector.load %arg4[%c312, %c0_41] : memref<1288x32xf32, #tpu.memory_space<vmem>>, vector<2x32xf32>
    %c320 = arith.constant 320 : index
    %c0_42 = arith.constant 0 : index
    %117 = vector.load %arg4[%c320, %c0_42] : memref<1288x32xf32, #tpu.memory_space<vmem>>, vector<1x32xf32>
    %c328 = arith.constant 328 : index
    %c0_43 = arith.constant 0 : index
    %118 = vector.load %arg4[%c328, %c0_43] : memref<1288x32xf32, #tpu.memory_space<vmem>>, vector<32x32xf32>
    %c360 = arith.constant 360 : index
    %c0_44 = arith.constant 0 : index
    %119 = vector.load %arg4[%c360, %c0_44] : memref<1288x32xf32, #tpu.memory_space<vmem>>, vector<1x32xf32>
    %c368 = arith.constant 368 : index
    %c0_45 = arith.constant 0 : index
    %120 = vector.load %arg4[%c368, %c0_45] : memref<1288x32xf32, #tpu.memory_space<vmem>>, vector<32x32xf32>
    %c400 = arith.constant 400 : index
    %c0_46 = arith.constant 0 : index
    %121 = vector.load %arg4[%c400, %c0_46] : memref<1288x32xf32, #tpu.memory_space<vmem>>, vector<32x32xf32>
    %c432 = arith.constant 432 : index
    %c0_47 = arith.constant 0 : index
    %122 = vector.load %arg4[%c432, %c0_47] : memref<1288x32xf32, #tpu.memory_space<vmem>>, vector<1x32xf32>
    %c440 = arith.constant 440 : index
    %c0_48 = arith.constant 0 : index
    %123 = vector.load %arg4[%c440, %c0_48] : memref<1288x32xf32, #tpu.memory_space<vmem>>, vector<32x32xf32>
    %c472 = arith.constant 472 : index
    %c0_49 = arith.constant 0 : index
    %124 = vector.load %arg4[%c472, %c0_49] : memref<1288x32xf32, #tpu.memory_space<vmem>>, vector<1x32xf32>
    %cst_50 = arith.constant dense<0.000000e+00> : vector<8x32xf32>
    %125 = tpu.matmul %113, %114, %cst_50 {dimension_numbers = #tpu.dot_dimension_numbers<[1], [0], [0], [1], [0, 0, 1, 1], [], []>} : vector<8x32xf32>, vector<32x32xf32>, vector<8x32xf32> -> vector<8x32xf32>
    %cst_51 = arith.constant dense<0.000000e+00> : vector<8x32xf32>
    %126 = tpu.matmul %113, %115, %cst_51 {dimension_numbers = #tpu.dot_dimension_numbers<[1], [0], [0], [1], [0, 0, 1, 1], [], []>} : vector<8x32xf32>, vector<32x32xf32>, vector<8x32xf32> -> vector<8x32xf32>
    %cst_52 = arith.constant dense<0.000000e+00> : vector<64x32xf32>
    %127 = tpu.matmul %10, %126, %cst_52 {dimension_numbers = #tpu.dot_dimension_numbers<[1], [0], [0], [1], [0, 0, 1, 1], [], []>} : vector<64x8xf32>, vector<8x32xf32>, vector<64x32xf32> -> vector<64x32xf32>
    %128 = vector.extract_strided_slice %116 {offsets = [0, 0], sizes = [1, 32], strides = [1, 1]} : vector<2x32xf32> to vector<1x32xf32>
    %129 = vector.broadcast %46 : vector<64x1xf32> to vector<64x32xf32>
    %130 = vector.broadcast %128 : vector<1x32xf32> to vector<64x32xf32>
    %131 = arith.mulf %129, %130 : vector<64x32xf32>
    %132 = vector.extract_strided_slice %116 {offsets = [1, 0], sizes = [1, 32], strides = [1, 1]} : vector<2x32xf32> to vector<1x32xf32>
    %133 = vector.broadcast %27 : vector<64x1xf32> to vector<64x32xf32>
    %134 = vector.broadcast %132 : vector<1x32xf32> to vector<64x32xf32>
    %135 = arith.mulf %133, %134 : vector<64x32xf32>
    %136 = arith.addf %131, %135 : vector<64x32xf32>
    %137 = arith.addf %127, %136 : vector<64x32xf32>
    %138 = vector.broadcast %117 : vector<1x32xf32> to vector<64x32xf32>
    %139 = arith.addf %137, %138 : vector<64x32xf32>
    %140 = vector.shape_cast %139 : vector<64x32xf32> to vector<8x8x32xf32>
    %141 = vector.shape_cast %125 : vector<8x32xf32> to vector<1x8x32xf32>
    %142 = vector.broadcast %141 : vector<1x8x32xf32> to vector<8x8x32xf32>
    %143 = arith.addf %142, %140 : vector<8x8x32xf32>
    %144 = arith.negf %143 : vector<8x8x32xf32>
    %145 = math.exp %144 : vector<8x8x32xf32>
    %cst_53 = arith.constant 1.000000e+00 : f32
    %146 = vector.broadcast %cst_53 : f32 to vector<8x8x32xf32>
    %147 = arith.addf %146, %145 : vector<8x8x32xf32>
    %148 = arith.divf %146, %147 : vector<8x8x32xf32>
    %149 = arith.mulf %143, %148 : vector<8x8x32xf32>
    %150 = vector.shape_cast %149 : vector<8x8x32xf32> to vector<64x32xf32>
    %cst_54 = arith.constant dense<0.000000e+00> : vector<64x32xf32>
    %151 = tpu.matmul %150, %118, %cst_54 {dimension_numbers = #tpu.dot_dimension_numbers<[1], [0], [0], [1], [0, 0, 1, 1], [], []>} : vector<64x32xf32>, vector<32x32xf32>, vector<64x32xf32> -> vector<64x32xf32>
    %152 = vector.broadcast %119 : vector<1x32xf32> to vector<64x32xf32>
    %153 = arith.addf %151, %152 : vector<64x32xf32>
    %154 = arith.negf %153 : vector<64x32xf32>
    %155 = math.exp %154 : vector<64x32xf32>
    %cst_55 = arith.constant 1.000000e+00 : f32
    %156 = vector.broadcast %cst_55 : f32 to vector<64x32xf32>
    %157 = arith.addf %156, %155 : vector<64x32xf32>
    %158 = arith.divf %156, %157 : vector<64x32xf32>
    %159 = arith.mulf %153, %158 : vector<64x32xf32>
    %160 = vector.broadcast %16 : vector<64x1xf32> to vector<64x32xf32>
    %161 = arith.mulf %159, %160 : vector<64x32xf32>
    %162 = vector.shape_cast %161 : vector<64x32xf32> to vector<8x8x32xf32>
    %cst_56 = arith.constant dense<0.000000e+00> : vector<8x32xf32>
    %163 = vector.multi_reduction <add>, %162, %cst_56 [0] : vector<8x8x32xf32> to vector<8x32xf32>
    %cst_57 = arith.constant dense<0.000000e+00> : vector<8x32xf32>
    %164 = tpu.matmul %113, %120, %cst_57 {dimension_numbers = #tpu.dot_dimension_numbers<[1], [0], [0], [1], [0, 0, 1, 1], [], []>} : vector<8x32xf32>, vector<32x32xf32>, vector<8x32xf32> -> vector<8x32xf32>
    %cst_58 = arith.constant dense<0.000000e+00> : vector<8x32xf32>
    %165 = tpu.matmul %163, %121, %cst_58 {dimension_numbers = #tpu.dot_dimension_numbers<[1], [0], [0], [1], [0, 0, 1, 1], [], []>} : vector<8x32xf32>, vector<32x32xf32>, vector<8x32xf32> -> vector<8x32xf32>
    %166 = arith.addf %164, %165 : vector<8x32xf32>
    %167 = vector.broadcast %122 : vector<1x32xf32> to vector<8x32xf32>
    %168 = arith.addf %166, %167 : vector<8x32xf32>
    %169 = arith.negf %168 : vector<8x32xf32>
    %170 = math.exp %169 : vector<8x32xf32>
    %cst_59 = arith.constant 1.000000e+00 : f32
    %171 = vector.broadcast %cst_59 : f32 to vector<8x32xf32>
    %172 = arith.addf %171, %170 : vector<8x32xf32>
    %173 = arith.divf %171, %172 : vector<8x32xf32>
    %174 = arith.mulf %168, %173 : vector<8x32xf32>
    %cst_60 = arith.constant dense<0.000000e+00> : vector<8x32xf32>
    %175 = tpu.matmul %174, %123, %cst_60 {dimension_numbers = #tpu.dot_dimension_numbers<[1], [0], [0], [1], [0, 0, 1, 1], [], []>} : vector<8x32xf32>, vector<32x32xf32>, vector<8x32xf32> -> vector<8x32xf32>
    %176 = vector.broadcast %124 : vector<1x32xf32> to vector<8x32xf32>
    %177 = arith.addf %175, %176 : vector<8x32xf32>
    %178 = arith.addf %113, %177 : vector<8x32xf32>
    %179 = vector.broadcast %14 : vector<8x1xf32> to vector<8x32xf32>
    %180 = arith.mulf %178, %179 : vector<8x32xf32>
    %c480 = arith.constant 480 : index
    %c0_61 = arith.constant 0 : index
    %181 = vector.load %arg4[%c480, %c0_61] : memref<1288x32xf32, #tpu.memory_space<vmem>>, vector<32x32xf32>
    %c512 = arith.constant 512 : index
    %c0_62 = arith.constant 0 : index
    %182 = vector.load %arg4[%c512, %c0_62] : memref<1288x32xf32, #tpu.memory_space<vmem>>, vector<32x32xf32>
    %c544 = arith.constant 544 : index
    %c0_63 = arith.constant 0 : index
    %183 = vector.load %arg4[%c544, %c0_63] : memref<1288x32xf32, #tpu.memory_space<vmem>>, vector<2x32xf32>
    %c552 = arith.constant 552 : index
    %c0_64 = arith.constant 0 : index
    %184 = vector.load %arg4[%c552, %c0_64] : memref<1288x32xf32, #tpu.memory_space<vmem>>, vector<1x32xf32>
    %c560 = arith.constant 560 : index
    %c0_65 = arith.constant 0 : index
    %185 = vector.load %arg4[%c560, %c0_65] : memref<1288x32xf32, #tpu.memory_space<vmem>>, vector<32x32xf32>
    %c592 = arith.constant 592 : index
    %c0_66 = arith.constant 0 : index
    %186 = vector.load %arg4[%c592, %c0_66] : memref<1288x32xf32, #tpu.memory_space<vmem>>, vector<1x32xf32>
    %c600 = arith.constant 600 : index
    %c0_67 = arith.constant 0 : index
    %187 = vector.load %arg4[%c600, %c0_67] : memref<1288x32xf32, #tpu.memory_space<vmem>>, vector<32x1xf32>
    %cst_68 = arith.constant dense<0.000000e+00> : vector<8x32xf32>
    %188 = tpu.matmul %180, %181, %cst_68 {dimension_numbers = #tpu.dot_dimension_numbers<[1], [0], [0], [1], [0, 0, 1, 1], [], []>} : vector<8x32xf32>, vector<32x32xf32>, vector<8x32xf32> -> vector<8x32xf32>
    %cst_69 = arith.constant dense<0.000000e+00> : vector<8x32xf32>
    %189 = tpu.matmul %180, %182, %cst_69 {dimension_numbers = #tpu.dot_dimension_numbers<[1], [0], [0], [1], [0, 0, 1, 1], [], []>} : vector<8x32xf32>, vector<32x32xf32>, vector<8x32xf32> -> vector<8x32xf32>
    %cst_70 = arith.constant dense<0.000000e+00> : vector<64x32xf32>
    %190 = tpu.matmul %10, %189, %cst_70 {dimension_numbers = #tpu.dot_dimension_numbers<[1], [0], [0], [1], [0, 0, 1, 1], [], []>} : vector<64x8xf32>, vector<8x32xf32>, vector<64x32xf32> -> vector<64x32xf32>
    %191 = vector.extract_strided_slice %183 {offsets = [0, 0], sizes = [1, 32], strides = [1, 1]} : vector<2x32xf32> to vector<1x32xf32>
    %192 = vector.broadcast %46 : vector<64x1xf32> to vector<64x32xf32>
    %193 = vector.broadcast %191 : vector<1x32xf32> to vector<64x32xf32>
    %194 = arith.mulf %192, %193 : vector<64x32xf32>
    %195 = vector.extract_strided_slice %183 {offsets = [1, 0], sizes = [1, 32], strides = [1, 1]} : vector<2x32xf32> to vector<1x32xf32>
    %196 = vector.broadcast %27 : vector<64x1xf32> to vector<64x32xf32>
    %197 = vector.broadcast %195 : vector<1x32xf32> to vector<64x32xf32>
    %198 = arith.mulf %196, %197 : vector<64x32xf32>
    %199 = arith.addf %194, %198 : vector<64x32xf32>
    %200 = arith.addf %190, %199 : vector<64x32xf32>
    %201 = vector.broadcast %184 : vector<1x32xf32> to vector<64x32xf32>
    %202 = arith.addf %200, %201 : vector<64x32xf32>
    %203 = vector.shape_cast %202 : vector<64x32xf32> to vector<8x8x32xf32>
    %204 = vector.shape_cast %188 : vector<8x32xf32> to vector<1x8x32xf32>
    %205 = vector.broadcast %204 : vector<1x8x32xf32> to vector<8x8x32xf32>
    %206 = arith.addf %205, %203 : vector<8x8x32xf32>
    %207 = arith.negf %206 : vector<8x8x32xf32>
    %208 = math.exp %207 : vector<8x8x32xf32>
    %cst_71 = arith.constant 1.000000e+00 : f32
    %209 = vector.broadcast %cst_71 : f32 to vector<8x8x32xf32>
    %210 = arith.addf %209, %208 : vector<8x8x32xf32>
    %211 = arith.divf %209, %210 : vector<8x8x32xf32>
    %212 = arith.mulf %206, %211 : vector<8x8x32xf32>
    %213 = vector.shape_cast %212 : vector<8x8x32xf32> to vector<64x32xf32>
    %cst_72 = arith.constant dense<0.000000e+00> : vector<64x32xf32>
    %214 = tpu.matmul %213, %185, %cst_72 {dimension_numbers = #tpu.dot_dimension_numbers<[1], [0], [0], [1], [0, 0, 1, 1], [], []>} : vector<64x32xf32>, vector<32x32xf32>, vector<64x32xf32> -> vector<64x32xf32>
    %215 = vector.broadcast %186 : vector<1x32xf32> to vector<64x32xf32>
    %216 = arith.addf %214, %215 : vector<64x32xf32>
    %217 = arith.negf %216 : vector<64x32xf32>
    %218 = math.exp %217 : vector<64x32xf32>
    %cst_73 = arith.constant 1.000000e+00 : f32
    %219 = vector.broadcast %cst_73 : f32 to vector<64x32xf32>
    %220 = arith.addf %219, %218 : vector<64x32xf32>
    %221 = arith.divf %219, %220 : vector<64x32xf32>
    %222 = arith.mulf %216, %221 : vector<64x32xf32>
    %cst_74 = arith.constant dense<0.000000e+00> : vector<64x1xf32>
    %223 = tpu.matmul %222, %187, %cst_74 {dimension_numbers = #tpu.dot_dimension_numbers<[1], [0], [0], [1], [0, 0, 1, 1], [], []>} : vector<64x32xf32>, vector<32x1xf32>, vector<64x1xf32> -> vector<64x1xf32>
    %224 = arith.mulf %223, %16 : vector<64x1xf32>
    %225 = vector.shape_cast %224 : vector<64x1xf32> to vector<8x8x1xf32>
    %226 = vector.broadcast %225 : vector<8x8x1xf32> to vector<8x8x3xf32>
    %227 = arith.mulf %45, %226 : vector<8x8x3xf32>
    %cst_75 = arith.constant dense<0.000000e+00> : vector<8x3xf32>
    %228 = vector.multi_reduction <add>, %227, %cst_75 [0] : vector<8x8x3xf32> to vector<8x3xf32>
    %229 = arith.addf %17, %228 : vector<8x3xf32>
    %230 = vector.broadcast %14 : vector<8x1xf32> to vector<8x3xf32>
    %231 = arith.mulf %229, %230 : vector<8x3xf32>
    %232 = vector.broadcast %14 : vector<8x1xf32> to vector<8x32xf32>
    %233 = arith.mulf %180, %232 : vector<8x32xf32>
    %cst_76 = arith.constant dense<0.000000e+00> : vector<64x3xf32>
    %234 = tpu.matmul %10, %231, %cst_76 {dimension_numbers = #tpu.dot_dimension_numbers<[1], [0], [0], [1], [0, 0, 1, 1], [], []>} : vector<64x8xf32>, vector<8x3xf32>, vector<64x3xf32> -> vector<64x3xf32>
    %235 = vector.shape_cast %231 : vector<8x3xf32> to vector<1x8x3xf32>
    %236 = vector.shape_cast %234 : vector<64x3xf32> to vector<8x8x3xf32>
    %237 = vector.broadcast %235 : vector<1x8x3xf32> to vector<8x8x3xf32>
    %238 = arith.subf %237, %236 : vector<8x8x3xf32>
    %239 = arith.mulf %238, %238 : vector<8x8x3xf32>
    %cst_77 = arith.constant dense<0.000000e+00> : vector<8x8xf32>
    %240 = vector.multi_reduction <add>, %239, %cst_77 [2] : vector<8x8x3xf32> to vector<8x8xf32>
    %241 = vector.shape_cast %240 : vector<8x8xf32> to vector<8x8x1xf32>
    %cst_78 = arith.constant 9.99999993E-9 : f32
    %242 = vector.broadcast %cst_78 : f32 to vector<8x8x1xf32>
    %243 = arith.addf %241, %242 : vector<8x8x1xf32>
    %244 = math.rsqrt %243 : vector<8x8x1xf32>
    %245 = vector.broadcast %244 : vector<8x8x1xf32> to vector<8x8x3xf32>
    %246 = arith.mulf %238, %245 : vector<8x8x3xf32>
    %247 = vector.shape_cast %241 : vector<8x8x1xf32> to vector<64x1xf32>
    %c632 = arith.constant 632 : index
    %c0_79 = arith.constant 0 : index
    %248 = vector.load %arg4[%c632, %c0_79] : memref<1288x32xf32, #tpu.memory_space<vmem>>, vector<32x32xf32>
    %c664 = arith.constant 664 : index
    %c0_80 = arith.constant 0 : index
    %249 = vector.load %arg4[%c664, %c0_80] : memref<1288x32xf32, #tpu.memory_space<vmem>>, vector<32x32xf32>
    %c696 = arith.constant 696 : index
    %c0_81 = arith.constant 0 : index
    %250 = vector.load %arg4[%c696, %c0_81] : memref<1288x32xf32, #tpu.memory_space<vmem>>, vector<2x32xf32>
    %c704 = arith.constant 704 : index
    %c0_82 = arith.constant 0 : index
    %251 = vector.load %arg4[%c704, %c0_82] : memref<1288x32xf32, #tpu.memory_space<vmem>>, vector<1x32xf32>
    %c712 = arith.constant 712 : index
    %c0_83 = arith.constant 0 : index
    %252 = vector.load %arg4[%c712, %c0_83] : memref<1288x32xf32, #tpu.memory_space<vmem>>, vector<32x32xf32>
    %c744 = arith.constant 744 : index
    %c0_84 = arith.constant 0 : index
    %253 = vector.load %arg4[%c744, %c0_84] : memref<1288x32xf32, #tpu.memory_space<vmem>>, vector<1x32xf32>
    %c752 = arith.constant 752 : index
    %c0_85 = arith.constant 0 : index
    %254 = vector.load %arg4[%c752, %c0_85] : memref<1288x32xf32, #tpu.memory_space<vmem>>, vector<32x32xf32>
    %c784 = arith.constant 784 : index
    %c0_86 = arith.constant 0 : index
    %255 = vector.load %arg4[%c784, %c0_86] : memref<1288x32xf32, #tpu.memory_space<vmem>>, vector<32x32xf32>
    %c816 = arith.constant 816 : index
    %c0_87 = arith.constant 0 : index
    %256 = vector.load %arg4[%c816, %c0_87] : memref<1288x32xf32, #tpu.memory_space<vmem>>, vector<1x32xf32>
    %c824 = arith.constant 824 : index
    %c0_88 = arith.constant 0 : index
    %257 = vector.load %arg4[%c824, %c0_88] : memref<1288x32xf32, #tpu.memory_space<vmem>>, vector<32x32xf32>
    %c856 = arith.constant 856 : index
    %c0_89 = arith.constant 0 : index
    %258 = vector.load %arg4[%c856, %c0_89] : memref<1288x32xf32, #tpu.memory_space<vmem>>, vector<1x32xf32>
    %cst_90 = arith.constant dense<0.000000e+00> : vector<8x32xf32>
    %259 = tpu.matmul %233, %248, %cst_90 {dimension_numbers = #tpu.dot_dimension_numbers<[1], [0], [0], [1], [0, 0, 1, 1], [], []>} : vector<8x32xf32>, vector<32x32xf32>, vector<8x32xf32> -> vector<8x32xf32>
    %cst_91 = arith.constant dense<0.000000e+00> : vector<8x32xf32>
    %260 = tpu.matmul %233, %249, %cst_91 {dimension_numbers = #tpu.dot_dimension_numbers<[1], [0], [0], [1], [0, 0, 1, 1], [], []>} : vector<8x32xf32>, vector<32x32xf32>, vector<8x32xf32> -> vector<8x32xf32>
    %cst_92 = arith.constant dense<0.000000e+00> : vector<64x32xf32>
    %261 = tpu.matmul %10, %260, %cst_92 {dimension_numbers = #tpu.dot_dimension_numbers<[1], [0], [0], [1], [0, 0, 1, 1], [], []>} : vector<64x8xf32>, vector<8x32xf32>, vector<64x32xf32> -> vector<64x32xf32>
    %262 = vector.extract_strided_slice %250 {offsets = [0, 0], sizes = [1, 32], strides = [1, 1]} : vector<2x32xf32> to vector<1x32xf32>
    %263 = vector.broadcast %247 : vector<64x1xf32> to vector<64x32xf32>
    %264 = vector.broadcast %262 : vector<1x32xf32> to vector<64x32xf32>
    %265 = arith.mulf %263, %264 : vector<64x32xf32>
    %266 = vector.extract_strided_slice %250 {offsets = [1, 0], sizes = [1, 32], strides = [1, 1]} : vector<2x32xf32> to vector<1x32xf32>
    %267 = vector.broadcast %27 : vector<64x1xf32> to vector<64x32xf32>
    %268 = vector.broadcast %266 : vector<1x32xf32> to vector<64x32xf32>
    %269 = arith.mulf %267, %268 : vector<64x32xf32>
    %270 = arith.addf %265, %269 : vector<64x32xf32>
    %271 = arith.addf %261, %270 : vector<64x32xf32>
    %272 = vector.broadcast %251 : vector<1x32xf32> to vector<64x32xf32>
    %273 = arith.addf %271, %272 : vector<64x32xf32>
    %274 = vector.shape_cast %273 : vector<64x32xf32> to vector<8x8x32xf32>
    %275 = vector.shape_cast %259 : vector<8x32xf32> to vector<1x8x32xf32>
    %276 = vector.broadcast %275 : vector<1x8x32xf32> to vector<8x8x32xf32>
    %277 = arith.addf %276, %274 : vector<8x8x32xf32>
    %278 = arith.negf %277 : vector<8x8x32xf32>
    %279 = math.exp %278 : vector<8x8x32xf32>
    %cst_93 = arith.constant 1.000000e+00 : f32
    %280 = vector.broadcast %cst_93 : f32 to vector<8x8x32xf32>
    %281 = arith.addf %280, %279 : vector<8x8x32xf32>
    %282 = arith.divf %280, %281 : vector<8x8x32xf32>
    %283 = arith.mulf %277, %282 : vector<8x8x32xf32>
    %284 = vector.shape_cast %283 : vector<8x8x32xf32> to vector<64x32xf32>
    %cst_94 = arith.constant dense<0.000000e+00> : vector<64x32xf32>
    %285 = tpu.matmul %284, %252, %cst_94 {dimension_numbers = #tpu.dot_dimension_numbers<[1], [0], [0], [1], [0, 0, 1, 1], [], []>} : vector<64x32xf32>, vector<32x32xf32>, vector<64x32xf32> -> vector<64x32xf32>
    %286 = vector.broadcast %253 : vector<1x32xf32> to vector<64x32xf32>
    %287 = arith.addf %285, %286 : vector<64x32xf32>
    %288 = arith.negf %287 : vector<64x32xf32>
    %289 = math.exp %288 : vector<64x32xf32>
    %cst_95 = arith.constant 1.000000e+00 : f32
    %290 = vector.broadcast %cst_95 : f32 to vector<64x32xf32>
    %291 = arith.addf %290, %289 : vector<64x32xf32>
    %292 = arith.divf %290, %291 : vector<64x32xf32>
    %293 = arith.mulf %287, %292 : vector<64x32xf32>
    %294 = vector.broadcast %16 : vector<64x1xf32> to vector<64x32xf32>
    %295 = arith.mulf %293, %294 : vector<64x32xf32>
    %296 = vector.shape_cast %295 : vector<64x32xf32> to vector<8x8x32xf32>
    %cst_96 = arith.constant dense<0.000000e+00> : vector<8x32xf32>
    %297 = vector.multi_reduction <add>, %296, %cst_96 [0] : vector<8x8x32xf32> to vector<8x32xf32>
    %cst_97 = arith.constant dense<0.000000e+00> : vector<8x32xf32>
    %298 = tpu.matmul %233, %254, %cst_97 {dimension_numbers = #tpu.dot_dimension_numbers<[1], [0], [0], [1], [0, 0, 1, 1], [], []>} : vector<8x32xf32>, vector<32x32xf32>, vector<8x32xf32> -> vector<8x32xf32>
    %cst_98 = arith.constant dense<0.000000e+00> : vector<8x32xf32>
    %299 = tpu.matmul %297, %255, %cst_98 {dimension_numbers = #tpu.dot_dimension_numbers<[1], [0], [0], [1], [0, 0, 1, 1], [], []>} : vector<8x32xf32>, vector<32x32xf32>, vector<8x32xf32> -> vector<8x32xf32>
    %300 = arith.addf %298, %299 : vector<8x32xf32>
    %301 = vector.broadcast %256 : vector<1x32xf32> to vector<8x32xf32>
    %302 = arith.addf %300, %301 : vector<8x32xf32>
    %303 = arith.negf %302 : vector<8x32xf32>
    %304 = math.exp %303 : vector<8x32xf32>
    %cst_99 = arith.constant 1.000000e+00 : f32
    %305 = vector.broadcast %cst_99 : f32 to vector<8x32xf32>
    %306 = arith.addf %305, %304 : vector<8x32xf32>
    %307 = arith.divf %305, %306 : vector<8x32xf32>
    %308 = arith.mulf %302, %307 : vector<8x32xf32>
    %cst_100 = arith.constant dense<0.000000e+00> : vector<8x32xf32>
    %309 = tpu.matmul %308, %257, %cst_100 {dimension_numbers = #tpu.dot_dimension_numbers<[1], [0], [0], [1], [0, 0, 1, 1], [], []>} : vector<8x32xf32>, vector<32x32xf32>, vector<8x32xf32> -> vector<8x32xf32>
    %310 = vector.broadcast %258 : vector<1x32xf32> to vector<8x32xf32>
    %311 = arith.addf %309, %310 : vector<8x32xf32>
    %312 = arith.addf %233, %311 : vector<8x32xf32>
    %313 = vector.broadcast %14 : vector<8x1xf32> to vector<8x32xf32>
    %314 = arith.mulf %312, %313 : vector<8x32xf32>
    %c864 = arith.constant 864 : index
    %c0_101 = arith.constant 0 : index
    %315 = vector.load %arg4[%c864, %c0_101] : memref<1288x32xf32, #tpu.memory_space<vmem>>, vector<32x32xf32>
    %c896 = arith.constant 896 : index
    %c0_102 = arith.constant 0 : index
    %316 = vector.load %arg4[%c896, %c0_102] : memref<1288x32xf32, #tpu.memory_space<vmem>>, vector<32x32xf32>
    %c928 = arith.constant 928 : index
    %c0_103 = arith.constant 0 : index
    %317 = vector.load %arg4[%c928, %c0_103] : memref<1288x32xf32, #tpu.memory_space<vmem>>, vector<2x32xf32>
    %c936 = arith.constant 936 : index
    %c0_104 = arith.constant 0 : index
    %318 = vector.load %arg4[%c936, %c0_104] : memref<1288x32xf32, #tpu.memory_space<vmem>>, vector<1x32xf32>
    %c944 = arith.constant 944 : index
    %c0_105 = arith.constant 0 : index
    %319 = vector.load %arg4[%c944, %c0_105] : memref<1288x32xf32, #tpu.memory_space<vmem>>, vector<32x32xf32>
    %c976 = arith.constant 976 : index
    %c0_106 = arith.constant 0 : index
    %320 = vector.load %arg4[%c976, %c0_106] : memref<1288x32xf32, #tpu.memory_space<vmem>>, vector<1x32xf32>
    %c984 = arith.constant 984 : index
    %c0_107 = arith.constant 0 : index
    %321 = vector.load %arg4[%c984, %c0_107] : memref<1288x32xf32, #tpu.memory_space<vmem>>, vector<32x32xf32>
    %c1016 = arith.constant 1016 : index
    %c0_108 = arith.constant 0 : index
    %322 = vector.load %arg4[%c1016, %c0_108] : memref<1288x32xf32, #tpu.memory_space<vmem>>, vector<32x32xf32>
    %c1048 = arith.constant 1048 : index
    %c0_109 = arith.constant 0 : index
    %323 = vector.load %arg4[%c1048, %c0_109] : memref<1288x32xf32, #tpu.memory_space<vmem>>, vector<1x32xf32>
    %c1056 = arith.constant 1056 : index
    %c0_110 = arith.constant 0 : index
    %324 = vector.load %arg4[%c1056, %c0_110] : memref<1288x32xf32, #tpu.memory_space<vmem>>, vector<32x32xf32>
    %c1088 = arith.constant 1088 : index
    %c0_111 = arith.constant 0 : index
    %325 = vector.load %arg4[%c1088, %c0_111] : memref<1288x32xf32, #tpu.memory_space<vmem>>, vector<1x32xf32>
    %cst_112 = arith.constant dense<0.000000e+00> : vector<8x32xf32>
    %326 = tpu.matmul %314, %315, %cst_112 {dimension_numbers = #tpu.dot_dimension_numbers<[1], [0], [0], [1], [0, 0, 1, 1], [], []>} : vector<8x32xf32>, vector<32x32xf32>, vector<8x32xf32> -> vector<8x32xf32>
    %cst_113 = arith.constant dense<0.000000e+00> : vector<8x32xf32>
    %327 = tpu.matmul %314, %316, %cst_113 {dimension_numbers = #tpu.dot_dimension_numbers<[1], [0], [0], [1], [0, 0, 1, 1], [], []>} : vector<8x32xf32>, vector<32x32xf32>, vector<8x32xf32> -> vector<8x32xf32>
    %cst_114 = arith.constant dense<0.000000e+00> : vector<64x32xf32>
    %328 = tpu.matmul %10, %327, %cst_114 {dimension_numbers = #tpu.dot_dimension_numbers<[1], [0], [0], [1], [0, 0, 1, 1], [], []>} : vector<64x8xf32>, vector<8x32xf32>, vector<64x32xf32> -> vector<64x32xf32>
    %329 = vector.extract_strided_slice %317 {offsets = [0, 0], sizes = [1, 32], strides = [1, 1]} : vector<2x32xf32> to vector<1x32xf32>
    %330 = vector.broadcast %247 : vector<64x1xf32> to vector<64x32xf32>
    %331 = vector.broadcast %329 : vector<1x32xf32> to vector<64x32xf32>
    %332 = arith.mulf %330, %331 : vector<64x32xf32>
    %333 = vector.extract_strided_slice %317 {offsets = [1, 0], sizes = [1, 32], strides = [1, 1]} : vector<2x32xf32> to vector<1x32xf32>
    %334 = vector.broadcast %27 : vector<64x1xf32> to vector<64x32xf32>
    %335 = vector.broadcast %333 : vector<1x32xf32> to vector<64x32xf32>
    %336 = arith.mulf %334, %335 : vector<64x32xf32>
    %337 = arith.addf %332, %336 : vector<64x32xf32>
    %338 = arith.addf %328, %337 : vector<64x32xf32>
    %339 = vector.broadcast %318 : vector<1x32xf32> to vector<64x32xf32>
    %340 = arith.addf %338, %339 : vector<64x32xf32>
    %341 = vector.shape_cast %340 : vector<64x32xf32> to vector<8x8x32xf32>
    %342 = vector.shape_cast %326 : vector<8x32xf32> to vector<1x8x32xf32>
    %343 = vector.broadcast %342 : vector<1x8x32xf32> to vector<8x8x32xf32>
    %344 = arith.addf %343, %341 : vector<8x8x32xf32>
    %345 = arith.negf %344 : vector<8x8x32xf32>
    %346 = math.exp %345 : vector<8x8x32xf32>
    %cst_115 = arith.constant 1.000000e+00 : f32
    %347 = vector.broadcast %cst_115 : f32 to vector<8x8x32xf32>
    %348 = arith.addf %347, %346 : vector<8x8x32xf32>
    %349 = arith.divf %347, %348 : vector<8x8x32xf32>
    %350 = arith.mulf %344, %349 : vector<8x8x32xf32>
    %351 = vector.shape_cast %350 : vector<8x8x32xf32> to vector<64x32xf32>
    %cst_116 = arith.constant dense<0.000000e+00> : vector<64x32xf32>
    %352 = tpu.matmul %351, %319, %cst_116 {dimension_numbers = #tpu.dot_dimension_numbers<[1], [0], [0], [1], [0, 0, 1, 1], [], []>} : vector<64x32xf32>, vector<32x32xf32>, vector<64x32xf32> -> vector<64x32xf32>
    %353 = vector.broadcast %320 : vector<1x32xf32> to vector<64x32xf32>
    %354 = arith.addf %352, %353 : vector<64x32xf32>
    %355 = arith.negf %354 : vector<64x32xf32>
    %356 = math.exp %355 : vector<64x32xf32>
    %cst_117 = arith.constant 1.000000e+00 : f32
    %357 = vector.broadcast %cst_117 : f32 to vector<64x32xf32>
    %358 = arith.addf %357, %356 : vector<64x32xf32>
    %359 = arith.divf %357, %358 : vector<64x32xf32>
    %360 = arith.mulf %354, %359 : vector<64x32xf32>
    %361 = vector.broadcast %16 : vector<64x1xf32> to vector<64x32xf32>
    %362 = arith.mulf %360, %361 : vector<64x32xf32>
    %363 = vector.shape_cast %362 : vector<64x32xf32> to vector<8x8x32xf32>
    %cst_118 = arith.constant dense<0.000000e+00> : vector<8x32xf32>
    %364 = vector.multi_reduction <add>, %363, %cst_118 [0] : vector<8x8x32xf32> to vector<8x32xf32>
    %cst_119 = arith.constant dense<0.000000e+00> : vector<8x32xf32>
    %365 = tpu.matmul %314, %321, %cst_119 {dimension_numbers = #tpu.dot_dimension_numbers<[1], [0], [0], [1], [0, 0, 1, 1], [], []>} : vector<8x32xf32>, vector<32x32xf32>, vector<8x32xf32> -> vector<8x32xf32>
    %cst_120 = arith.constant dense<0.000000e+00> : vector<8x32xf32>
    %366 = tpu.matmul %364, %322, %cst_120 {dimension_numbers = #tpu.dot_dimension_numbers<[1], [0], [0], [1], [0, 0, 1, 1], [], []>} : vector<8x32xf32>, vector<32x32xf32>, vector<8x32xf32> -> vector<8x32xf32>
    %367 = arith.addf %365, %366 : vector<8x32xf32>
    %368 = vector.broadcast %323 : vector<1x32xf32> to vector<8x32xf32>
    %369 = arith.addf %367, %368 : vector<8x32xf32>
    %370 = arith.negf %369 : vector<8x32xf32>
    %371 = math.exp %370 : vector<8x32xf32>
    %cst_121 = arith.constant 1.000000e+00 : f32
    %372 = vector.broadcast %cst_121 : f32 to vector<8x32xf32>
    %373 = arith.addf %372, %371 : vector<8x32xf32>
    %374 = arith.divf %372, %373 : vector<8x32xf32>
    %375 = arith.mulf %369, %374 : vector<8x32xf32>
    %cst_122 = arith.constant dense<0.000000e+00> : vector<8x32xf32>
    %376 = tpu.matmul %375, %324, %cst_122 {dimension_numbers = #tpu.dot_dimension_numbers<[1], [0], [0], [1], [0, 0, 1, 1], [], []>} : vector<8x32xf32>, vector<32x32xf32>, vector<8x32xf32> -> vector<8x32xf32>
    %377 = vector.broadcast %325 : vector<1x32xf32> to vector<8x32xf32>
    %378 = arith.addf %376, %377 : vector<8x32xf32>
    %379 = arith.addf %314, %378 : vector<8x32xf32>
    %380 = vector.broadcast %14 : vector<8x1xf32> to vector<8x32xf32>
    %381 = arith.mulf %379, %380 : vector<8x32xf32>
    %c1096 = arith.constant 1096 : index
    %c0_123 = arith.constant 0 : index
    %382 = vector.load %arg4[%c1096, %c0_123] : memref<1288x32xf32, #tpu.memory_space<vmem>>, vector<32x32xf32>
    %c1128 = arith.constant 1128 : index
    %c0_124 = arith.constant 0 : index
    %383 = vector.load %arg4[%c1128, %c0_124] : memref<1288x32xf32, #tpu.memory_space<vmem>>, vector<32x32xf32>
    %c1160 = arith.constant 1160 : index
    %c0_125 = arith.constant 0 : index
    %384 = vector.load %arg4[%c1160, %c0_125] : memref<1288x32xf32, #tpu.memory_space<vmem>>, vector<2x32xf32>
    %c1168 = arith.constant 1168 : index
    %c0_126 = arith.constant 0 : index
    %385 = vector.load %arg4[%c1168, %c0_126] : memref<1288x32xf32, #tpu.memory_space<vmem>>, vector<1x32xf32>
    %c1176 = arith.constant 1176 : index
    %c0_127 = arith.constant 0 : index
    %386 = vector.load %arg4[%c1176, %c0_127] : memref<1288x32xf32, #tpu.memory_space<vmem>>, vector<32x32xf32>
    %c1208 = arith.constant 1208 : index
    %c0_128 = arith.constant 0 : index
    %387 = vector.load %arg4[%c1208, %c0_128] : memref<1288x32xf32, #tpu.memory_space<vmem>>, vector<1x32xf32>
    %c1216 = arith.constant 1216 : index
    %c0_129 = arith.constant 0 : index
    %388 = vector.load %arg4[%c1216, %c0_129] : memref<1288x32xf32, #tpu.memory_space<vmem>>, vector<32x1xf32>
    %cst_130 = arith.constant dense<0.000000e+00> : vector<8x32xf32>
    %389 = tpu.matmul %381, %382, %cst_130 {dimension_numbers = #tpu.dot_dimension_numbers<[1], [0], [0], [1], [0, 0, 1, 1], [], []>} : vector<8x32xf32>, vector<32x32xf32>, vector<8x32xf32> -> vector<8x32xf32>
    %cst_131 = arith.constant dense<0.000000e+00> : vector<8x32xf32>
    %390 = tpu.matmul %381, %383, %cst_131 {dimension_numbers = #tpu.dot_dimension_numbers<[1], [0], [0], [1], [0, 0, 1, 1], [], []>} : vector<8x32xf32>, vector<32x32xf32>, vector<8x32xf32> -> vector<8x32xf32>
    %cst_132 = arith.constant dense<0.000000e+00> : vector<64x32xf32>
    %391 = tpu.matmul %10, %390, %cst_132 {dimension_numbers = #tpu.dot_dimension_numbers<[1], [0], [0], [1], [0, 0, 1, 1], [], []>} : vector<64x8xf32>, vector<8x32xf32>, vector<64x32xf32> -> vector<64x32xf32>
    %392 = vector.extract_strided_slice %384 {offsets = [0, 0], sizes = [1, 32], strides = [1, 1]} : vector<2x32xf32> to vector<1x32xf32>
    %393 = vector.broadcast %247 : vector<64x1xf32> to vector<64x32xf32>
    %394 = vector.broadcast %392 : vector<1x32xf32> to vector<64x32xf32>
    %395 = arith.mulf %393, %394 : vector<64x32xf32>
    %396 = vector.extract_strided_slice %384 {offsets = [1, 0], sizes = [1, 32], strides = [1, 1]} : vector<2x32xf32> to vector<1x32xf32>
    %397 = vector.broadcast %27 : vector<64x1xf32> to vector<64x32xf32>
    %398 = vector.broadcast %396 : vector<1x32xf32> to vector<64x32xf32>
    %399 = arith.mulf %397, %398 : vector<64x32xf32>
    %400 = arith.addf %395, %399 : vector<64x32xf32>
    %401 = arith.addf %391, %400 : vector<64x32xf32>
    %402 = vector.broadcast %385 : vector<1x32xf32> to vector<64x32xf32>
    %403 = arith.addf %401, %402 : vector<64x32xf32>
    %404 = vector.shape_cast %403 : vector<64x32xf32> to vector<8x8x32xf32>
    %405 = vector.shape_cast %389 : vector<8x32xf32> to vector<1x8x32xf32>
    %406 = vector.broadcast %405 : vector<1x8x32xf32> to vector<8x8x32xf32>
    %407 = arith.addf %406, %404 : vector<8x8x32xf32>
    %408 = arith.negf %407 : vector<8x8x32xf32>
    %409 = math.exp %408 : vector<8x8x32xf32>
    %cst_133 = arith.constant 1.000000e+00 : f32
    %410 = vector.broadcast %cst_133 : f32 to vector<8x8x32xf32>
    %411 = arith.addf %410, %409 : vector<8x8x32xf32>
    %412 = arith.divf %410, %411 : vector<8x8x32xf32>
    %413 = arith.mulf %407, %412 : vector<8x8x32xf32>
    %414 = vector.shape_cast %413 : vector<8x8x32xf32> to vector<64x32xf32>
    %cst_134 = arith.constant dense<0.000000e+00> : vector<64x32xf32>
    %415 = tpu.matmul %414, %386, %cst_134 {dimension_numbers = #tpu.dot_dimension_numbers<[1], [0], [0], [1], [0, 0, 1, 1], [], []>} : vector<64x32xf32>, vector<32x32xf32>, vector<64x32xf32> -> vector<64x32xf32>
    %416 = vector.broadcast %387 : vector<1x32xf32> to vector<64x32xf32>
    %417 = arith.addf %415, %416 : vector<64x32xf32>
    %418 = arith.negf %417 : vector<64x32xf32>
    %419 = math.exp %418 : vector<64x32xf32>
    %cst_135 = arith.constant 1.000000e+00 : f32
    %420 = vector.broadcast %cst_135 : f32 to vector<64x32xf32>
    %421 = arith.addf %420, %419 : vector<64x32xf32>
    %422 = arith.divf %420, %421 : vector<64x32xf32>
    %423 = arith.mulf %417, %422 : vector<64x32xf32>
    %cst_136 = arith.constant dense<0.000000e+00> : vector<64x1xf32>
    %424 = tpu.matmul %423, %388, %cst_136 {dimension_numbers = #tpu.dot_dimension_numbers<[1], [0], [0], [1], [0, 0, 1, 1], [], []>} : vector<64x32xf32>, vector<32x1xf32>, vector<64x1xf32> -> vector<64x1xf32>
    %425 = arith.mulf %424, %16 : vector<64x1xf32>
    %426 = vector.shape_cast %425 : vector<64x1xf32> to vector<8x8x1xf32>
    %427 = vector.broadcast %426 : vector<8x8x1xf32> to vector<8x8x3xf32>
    %428 = arith.mulf %246, %427 : vector<8x8x3xf32>
    %cst_137 = arith.constant dense<0.000000e+00> : vector<8x3xf32>
    %429 = vector.multi_reduction <add>, %428, %cst_137 [0] : vector<8x8x3xf32> to vector<8x3xf32>
    %430 = arith.addf %231, %429 : vector<8x3xf32>
    %431 = vector.broadcast %14 : vector<8x1xf32> to vector<8x3xf32>
    %432 = arith.mulf %430, %431 : vector<8x3xf32>
    %433 = vector.broadcast %14 : vector<8x1xf32> to vector<8x32xf32>
    %434 = arith.mulf %381, %433 : vector<8x32xf32>
    %c1248 = arith.constant 1248 : index
    %c0_138 = arith.constant 0 : index
    %435 = vector.load %arg4[%c1248, %c0_138] : memref<1288x32xf32, #tpu.memory_space<vmem>>, vector<32x6xf32>
    %cst_139 = arith.constant dense<0.000000e+00> : vector<8x6xf32>
    %436 = tpu.matmul %434, %435, %cst_139 {dimension_numbers = #tpu.dot_dimension_numbers<[1], [0], [0], [1], [0, 0, 1, 1], [], []>} : vector<8x32xf32>, vector<32x6xf32>, vector<8x6xf32> -> vector<8x6xf32>
    %c1280 = arith.constant 1280 : index
    %c0_140 = arith.constant 0 : index
    %437 = vector.load %arg4[%c1280, %c0_140] : memref<1288x32xf32, #tpu.memory_space<vmem>>, vector<1x6xf32>
    %438 = vector.broadcast %437 : vector<1x6xf32> to vector<8x6xf32>
    %439 = arith.addf %436, %438 : vector<8x6xf32>
    %440 = vector.broadcast %14 : vector<8x1xf32> to vector<8x6xf32>
    %441 = arith.mulf %439, %440 : vector<8x6xf32>
    %442 = arith.subf %432, %17 : vector<8x3xf32>
    %443 = vector.broadcast %14 : vector<8x1xf32> to vector<8x3xf32>
    %444 = arith.mulf %442, %443 : vector<8x3xf32>
    %445 = vector.shape_cast %14 : vector<8x1xf32> to vector<1x8x1xf32>
    %cst_141 = arith.constant dense<0.000000e+00> : vector<1xf32>
    %446 = vector.multi_reduction <add>, %445, %cst_141 [1, 2] : vector<1x8x1xf32> to vector<1xf32>
    %447 = vector.shape_cast %446 : vector<1xf32> to vector<1x1x1xf32>
    %448 = vector.extract %447[0, 0, 0] : f32 from vector<1x1x1xf32>
    %cst_142 = arith.constant dense<0.000000e+00> : vector<3xf32>
    %449 = vector.multi_reduction <add>, %444, %cst_142 [0] : vector<8x3xf32> to vector<3xf32>
    %450 = vector.shape_cast %449 : vector<3xf32> to vector<1x3xf32>
    %451 = vector.broadcast %448 : f32 to vector<1x3xf32>
    %452 = arith.divf %450, %451 : vector<1x3xf32>
    %453 = vector.broadcast %452 : vector<1x3xf32> to vector<8x3xf32>
    %454 = vector.broadcast %14 : vector<8x1xf32> to vector<8x3xf32>
    %455 = arith.mulf %453, %454 : vector<8x3xf32>
    %456 = arith.subf %444, %455 : vector<8x3xf32>
    %c0_143 = arith.constant 0 : index
    %c0_144 = arith.constant 0 : index
    %c0_145 = arith.constant 0 : index
    %457 = vector.load %arg5[%c0_143, %c0_144, %c0_145] : memref<2x8x8xf32, #tpu.memory_space<vmem>>, vector<1x8x3xf32>
    %458 = vector.shape_cast %457 : vector<1x8x3xf32> to vector<8x3xf32>
    %459 = vector.shape_cast %456 : vector<8x3xf32> to vector<1x8x3xf32>
    tpu.vector_store %arg5[%c0_143, %c0_144, %c0_145], %459 {strides = array<i32>} : memref<2x8x8xf32, #tpu.memory_space<vmem>>, vector<1x8x3xf32>,
    %460 = vector.extract_strided_slice %441 {offsets = [0, 0], sizes = [8, 5], strides = [1, 1]} : vector<8x6xf32> to vector<8x5xf32>
    %c0_146 = arith.constant 0 : index
    %c0_147 = arith.constant 0 : index
    %c3 = arith.constant 3 : index
    %461 = vector.load %arg5[%c0_146, %c0_147, %c3] : memref<2x8x8xf32, #tpu.memory_space<vmem>>, vector<1x8x5xf32>
    %462 = vector.shape_cast %461 : vector<1x8x5xf32> to vector<8x5xf32>
    %463 = vector.shape_cast %460 : vector<8x5xf32> to vector<1x8x5xf32>
    tpu.vector_store %arg5[%c0_146, %c0_147, %c3], %463 {strides = array<i32>} : memref<2x8x8xf32, #tpu.memory_space<vmem>>, vector<1x8x5xf32>,
    %c1 = arith.constant 1 : index
    %c0_148 = arith.constant 0 : index
    %c0_149 = arith.constant 0 : index
    %464 = vector.load %arg1[%c1, %c0_148, %c0_149] : memref<2x8x9xf32, #tpu.memory_space<vmem>>, vector<1x8x9xf32>
    %465 = vector.shape_cast %464 : vector<1x8x9xf32> to vector<8x9xf32>
    %c1_150 = arith.constant 1 : index
    %c0_151 = arith.constant 0 : index
    %c0_152 = arith.constant 0 : index
    %466 = vector.load %arg2[%c1_150, %c0_151, %c0_152] : memref<2x8x1xf32, #tpu.memory_space<vmem>>, vector<1x8x1xf32>
    %467 = vector.shape_cast %466 : vector<1x8x1xf32> to vector<8x1xf32>
    %c1_153 = arith.constant 1 : index
    %c0_154 = arith.constant 0 : index
    %c0_155 = arith.constant 0 : index
    %468 = vector.load %arg3[%c1_153, %c0_154, %c0_155] : memref<2x64x1xf32, #tpu.memory_space<vmem>>, vector<1x64x1xf32>
    %469 = vector.shape_cast %468 : vector<1x64x1xf32> to vector<64x1xf32>
    %470 = vector.extract_strided_slice %465 {offsets = [0, 0], sizes = [8, 3], strides = [1, 1]} : vector<8x9xf32> to vector<8x3xf32>
    %471 = vector.extract_strided_slice %465 {offsets = [0, 3], sizes = [8, 6], strides = [1, 1]} : vector<8x9xf32> to vector<8x6xf32>
    %cst_156 = arith.constant dense<0.000000e+00> : vector<64x3xf32>
    %472 = tpu.matmul %10, %470, %cst_156 {dimension_numbers = #tpu.dot_dimension_numbers<[1], [0], [0], [1], [0, 0, 1, 1], [], []>} : vector<64x8xf32>, vector<8x3xf32>, vector<64x3xf32> -> vector<64x3xf32>
    %473 = vector.shape_cast %470 : vector<8x3xf32> to vector<1x8x3xf32>
    %474 = vector.shape_cast %472 : vector<64x3xf32> to vector<8x8x3xf32>
    %475 = vector.broadcast %473 : vector<1x8x3xf32> to vector<8x8x3xf32>
    %476 = arith.subf %475, %474 : vector<8x8x3xf32>
    %477 = arith.mulf %476, %476 : vector<8x8x3xf32>
    %cst_157 = arith.constant dense<0.000000e+00> : vector<8x8xf32>
    %478 = vector.multi_reduction <add>, %477, %cst_157 [2] : vector<8x8x3xf32> to vector<8x8xf32>
    %479 = vector.shape_cast %478 : vector<8x8xf32> to vector<8x8x1xf32>
    %480 = vector.shape_cast %479 : vector<8x8x1xf32> to vector<64x1xf32>
    %c0_158 = arith.constant 0 : index
    %c0_159 = arith.constant 0 : index
    %481 = vector.load %arg4[%c0_158, %c0_159] : memref<1288x32xf32, #tpu.memory_space<vmem>>, vector<6x32xf32>
    %cst_160 = arith.constant dense<0.000000e+00> : vector<8x32xf32>
    %482 = tpu.matmul %471, %481, %cst_160 {dimension_numbers = #tpu.dot_dimension_numbers<[1], [0], [0], [1], [0, 0, 1, 1], [], []>} : vector<8x6xf32>, vector<6x32xf32>, vector<8x32xf32> -> vector<8x32xf32>
    %c8_161 = arith.constant 8 : index
    %c0_162 = arith.constant 0 : index
    %483 = vector.load %arg4[%c8_161, %c0_162] : memref<1288x32xf32, #tpu.memory_space<vmem>>, vector<1x32xf32>
    %484 = vector.broadcast %483 : vector<1x32xf32> to vector<8x32xf32>
    %485 = arith.addf %482, %484 : vector<8x32xf32>
    %cst_163 = arith.constant dense<0.000000e+00> : vector<64x3xf32>
    %486 = tpu.matmul %10, %470, %cst_163 {dimension_numbers = #tpu.dot_dimension_numbers<[1], [0], [0], [1], [0, 0, 1, 1], [], []>} : vector<64x8xf32>, vector<8x3xf32>, vector<64x3xf32> -> vector<64x3xf32>
    %487 = vector.shape_cast %470 : vector<8x3xf32> to vector<1x8x3xf32>
    %488 = vector.shape_cast %486 : vector<64x3xf32> to vector<8x8x3xf32>
    %489 = vector.broadcast %487 : vector<1x8x3xf32> to vector<8x8x3xf32>
    %490 = arith.subf %489, %488 : vector<8x8x3xf32>
    %491 = arith.mulf %490, %490 : vector<8x8x3xf32>
    %cst_164 = arith.constant dense<0.000000e+00> : vector<8x8xf32>
    %492 = vector.multi_reduction <add>, %491, %cst_164 [2] : vector<8x8x3xf32> to vector<8x8xf32>
    %493 = vector.shape_cast %492 : vector<8x8xf32> to vector<8x8x1xf32>
    %cst_165 = arith.constant 9.99999993E-9 : f32
    %494 = vector.broadcast %cst_165 : f32 to vector<8x8x1xf32>
    %495 = arith.addf %493, %494 : vector<8x8x1xf32>
    %496 = math.rsqrt %495 : vector<8x8x1xf32>
    %497 = vector.broadcast %496 : vector<8x8x1xf32> to vector<8x8x3xf32>
    %498 = arith.mulf %490, %497 : vector<8x8x3xf32>
    %499 = vector.shape_cast %493 : vector<8x8x1xf32> to vector<64x1xf32>
    %c16_166 = arith.constant 16 : index
    %c0_167 = arith.constant 0 : index
    %500 = vector.load %arg4[%c16_166, %c0_167] : memref<1288x32xf32, #tpu.memory_space<vmem>>, vector<32x32xf32>
    %c48_168 = arith.constant 48 : index
    %c0_169 = arith.constant 0 : index
    %501 = vector.load %arg4[%c48_168, %c0_169] : memref<1288x32xf32, #tpu.memory_space<vmem>>, vector<32x32xf32>
    %c80_170 = arith.constant 80 : index
    %c0_171 = arith.constant 0 : index
    %502 = vector.load %arg4[%c80_170, %c0_171] : memref<1288x32xf32, #tpu.memory_space<vmem>>, vector<2x32xf32>
    %c88_172 = arith.constant 88 : index
    %c0_173 = arith.constant 0 : index
    %503 = vector.load %arg4[%c88_172, %c0_173] : memref<1288x32xf32, #tpu.memory_space<vmem>>, vector<1x32xf32>
    %c96_174 = arith.constant 96 : index
    %c0_175 = arith.constant 0 : index
    %504 = vector.load %arg4[%c96_174, %c0_175] : memref<1288x32xf32, #tpu.memory_space<vmem>>, vector<32x32xf32>
    %c128_176 = arith.constant 128 : index
    %c0_177 = arith.constant 0 : index
    %505 = vector.load %arg4[%c128_176, %c0_177] : memref<1288x32xf32, #tpu.memory_space<vmem>>, vector<1x32xf32>
    %c136_178 = arith.constant 136 : index
    %c0_179 = arith.constant 0 : index
    %506 = vector.load %arg4[%c136_178, %c0_179] : memref<1288x32xf32, #tpu.memory_space<vmem>>, vector<32x32xf32>
    %c168_180 = arith.constant 168 : index
    %c0_181 = arith.constant 0 : index
    %507 = vector.load %arg4[%c168_180, %c0_181] : memref<1288x32xf32, #tpu.memory_space<vmem>>, vector<32x32xf32>
    %c200_182 = arith.constant 200 : index
    %c0_183 = arith.constant 0 : index
    %508 = vector.load %arg4[%c200_182, %c0_183] : memref<1288x32xf32, #tpu.memory_space<vmem>>, vector<1x32xf32>
    %c208_184 = arith.constant 208 : index
    %c0_185 = arith.constant 0 : index
    %509 = vector.load %arg4[%c208_184, %c0_185] : memref<1288x32xf32, #tpu.memory_space<vmem>>, vector<32x32xf32>
    %c240_186 = arith.constant 240 : index
    %c0_187 = arith.constant 0 : index
    %510 = vector.load %arg4[%c240_186, %c0_187] : memref<1288x32xf32, #tpu.memory_space<vmem>>, vector<1x32xf32>
    %cst_188 = arith.constant dense<0.000000e+00> : vector<8x32xf32>
    %511 = tpu.matmul %485, %500, %cst_188 {dimension_numbers = #tpu.dot_dimension_numbers<[1], [0], [0], [1], [0, 0, 1, 1], [], []>} : vector<8x32xf32>, vector<32x32xf32>, vector<8x32xf32> -> vector<8x32xf32>
    %cst_189 = arith.constant dense<0.000000e+00> : vector<8x32xf32>
    %512 = tpu.matmul %485, %501, %cst_189 {dimension_numbers = #tpu.dot_dimension_numbers<[1], [0], [0], [1], [0, 0, 1, 1], [], []>} : vector<8x32xf32>, vector<32x32xf32>, vector<8x32xf32> -> vector<8x32xf32>
    %cst_190 = arith.constant dense<0.000000e+00> : vector<64x32xf32>
    %513 = tpu.matmul %10, %512, %cst_190 {dimension_numbers = #tpu.dot_dimension_numbers<[1], [0], [0], [1], [0, 0, 1, 1], [], []>} : vector<64x8xf32>, vector<8x32xf32>, vector<64x32xf32> -> vector<64x32xf32>
    %514 = vector.extract_strided_slice %502 {offsets = [0, 0], sizes = [1, 32], strides = [1, 1]} : vector<2x32xf32> to vector<1x32xf32>
    %515 = vector.broadcast %499 : vector<64x1xf32> to vector<64x32xf32>
    %516 = vector.broadcast %514 : vector<1x32xf32> to vector<64x32xf32>
    %517 = arith.mulf %515, %516 : vector<64x32xf32>
    %518 = vector.extract_strided_slice %502 {offsets = [1, 0], sizes = [1, 32], strides = [1, 1]} : vector<2x32xf32> to vector<1x32xf32>
    %519 = vector.broadcast %480 : vector<64x1xf32> to vector<64x32xf32>
    %520 = vector.broadcast %518 : vector<1x32xf32> to vector<64x32xf32>
    %521 = arith.mulf %519, %520 : vector<64x32xf32>
    %522 = arith.addf %517, %521 : vector<64x32xf32>
    %523 = arith.addf %513, %522 : vector<64x32xf32>
    %524 = vector.broadcast %503 : vector<1x32xf32> to vector<64x32xf32>
    %525 = arith.addf %523, %524 : vector<64x32xf32>
    %526 = vector.shape_cast %525 : vector<64x32xf32> to vector<8x8x32xf32>
    %527 = vector.shape_cast %511 : vector<8x32xf32> to vector<1x8x32xf32>
    %528 = vector.broadcast %527 : vector<1x8x32xf32> to vector<8x8x32xf32>
    %529 = arith.addf %528, %526 : vector<8x8x32xf32>
    %530 = arith.negf %529 : vector<8x8x32xf32>
    %531 = math.exp %530 : vector<8x8x32xf32>
    %cst_191 = arith.constant 1.000000e+00 : f32
    %532 = vector.broadcast %cst_191 : f32 to vector<8x8x32xf32>
    %533 = arith.addf %532, %531 : vector<8x8x32xf32>
    %534 = arith.divf %532, %533 : vector<8x8x32xf32>
    %535 = arith.mulf %529, %534 : vector<8x8x32xf32>
    %536 = vector.shape_cast %535 : vector<8x8x32xf32> to vector<64x32xf32>
    %cst_192 = arith.constant dense<0.000000e+00> : vector<64x32xf32>
    %537 = tpu.matmul %536, %504, %cst_192 {dimension_numbers = #tpu.dot_dimension_numbers<[1], [0], [0], [1], [0, 0, 1, 1], [], []>} : vector<64x32xf32>, vector<32x32xf32>, vector<64x32xf32> -> vector<64x32xf32>
    %538 = vector.broadcast %505 : vector<1x32xf32> to vector<64x32xf32>
    %539 = arith.addf %537, %538 : vector<64x32xf32>
    %540 = arith.negf %539 : vector<64x32xf32>
    %541 = math.exp %540 : vector<64x32xf32>
    %cst_193 = arith.constant 1.000000e+00 : f32
    %542 = vector.broadcast %cst_193 : f32 to vector<64x32xf32>
    %543 = arith.addf %542, %541 : vector<64x32xf32>
    %544 = arith.divf %542, %543 : vector<64x32xf32>
    %545 = arith.mulf %539, %544 : vector<64x32xf32>
    %546 = vector.broadcast %469 : vector<64x1xf32> to vector<64x32xf32>
    %547 = arith.mulf %545, %546 : vector<64x32xf32>
    %548 = vector.shape_cast %547 : vector<64x32xf32> to vector<8x8x32xf32>
    %cst_194 = arith.constant dense<0.000000e+00> : vector<8x32xf32>
    %549 = vector.multi_reduction <add>, %548, %cst_194 [0] : vector<8x8x32xf32> to vector<8x32xf32>
    %cst_195 = arith.constant dense<0.000000e+00> : vector<8x32xf32>
    %550 = tpu.matmul %485, %506, %cst_195 {dimension_numbers = #tpu.dot_dimension_numbers<[1], [0], [0], [1], [0, 0, 1, 1], [], []>} : vector<8x32xf32>, vector<32x32xf32>, vector<8x32xf32> -> vector<8x32xf32>
    %cst_196 = arith.constant dense<0.000000e+00> : vector<8x32xf32>
    %551 = tpu.matmul %549, %507, %cst_196 {dimension_numbers = #tpu.dot_dimension_numbers<[1], [0], [0], [1], [0, 0, 1, 1], [], []>} : vector<8x32xf32>, vector<32x32xf32>, vector<8x32xf32> -> vector<8x32xf32>
    %552 = arith.addf %550, %551 : vector<8x32xf32>
    %553 = vector.broadcast %508 : vector<1x32xf32> to vector<8x32xf32>
    %554 = arith.addf %552, %553 : vector<8x32xf32>
    %555 = arith.negf %554 : vector<8x32xf32>
    %556 = math.exp %555 : vector<8x32xf32>
    %cst_197 = arith.constant 1.000000e+00 : f32
    %557 = vector.broadcast %cst_197 : f32 to vector<8x32xf32>
    %558 = arith.addf %557, %556 : vector<8x32xf32>
    %559 = arith.divf %557, %558 : vector<8x32xf32>
    %560 = arith.mulf %554, %559 : vector<8x32xf32>
    %cst_198 = arith.constant dense<0.000000e+00> : vector<8x32xf32>
    %561 = tpu.matmul %560, %509, %cst_198 {dimension_numbers = #tpu.dot_dimension_numbers<[1], [0], [0], [1], [0, 0, 1, 1], [], []>} : vector<8x32xf32>, vector<32x32xf32>, vector<8x32xf32> -> vector<8x32xf32>
    %562 = vector.broadcast %510 : vector<1x32xf32> to vector<8x32xf32>
    %563 = arith.addf %561, %562 : vector<8x32xf32>
    %564 = arith.addf %485, %563 : vector<8x32xf32>
    %565 = vector.broadcast %467 : vector<8x1xf32> to vector<8x32xf32>
    %566 = arith.mulf %564, %565 : vector<8x32xf32>
    %c248_199 = arith.constant 248 : index
    %c0_200 = arith.constant 0 : index
    %567 = vector.load %arg4[%c248_199, %c0_200] : memref<1288x32xf32, #tpu.memory_space<vmem>>, vector<32x32xf32>
    %c280_201 = arith.constant 280 : index
    %c0_202 = arith.constant 0 : index
    %568 = vector.load %arg4[%c280_201, %c0_202] : memref<1288x32xf32, #tpu.memory_space<vmem>>, vector<32x32xf32>
    %c312_203 = arith.constant 312 : index
    %c0_204 = arith.constant 0 : index
    %569 = vector.load %arg4[%c312_203, %c0_204] : memref<1288x32xf32, #tpu.memory_space<vmem>>, vector<2x32xf32>
    %c320_205 = arith.constant 320 : index
    %c0_206 = arith.constant 0 : index
    %570 = vector.load %arg4[%c320_205, %c0_206] : memref<1288x32xf32, #tpu.memory_space<vmem>>, vector<1x32xf32>
    %c328_207 = arith.constant 328 : index
    %c0_208 = arith.constant 0 : index
    %571 = vector.load %arg4[%c328_207, %c0_208] : memref<1288x32xf32, #tpu.memory_space<vmem>>, vector<32x32xf32>
    %c360_209 = arith.constant 360 : index
    %c0_210 = arith.constant 0 : index
    %572 = vector.load %arg4[%c360_209, %c0_210] : memref<1288x32xf32, #tpu.memory_space<vmem>>, vector<1x32xf32>
    %c368_211 = arith.constant 368 : index
    %c0_212 = arith.constant 0 : index
    %573 = vector.load %arg4[%c368_211, %c0_212] : memref<1288x32xf32, #tpu.memory_space<vmem>>, vector<32x32xf32>
    %c400_213 = arith.constant 400 : index
    %c0_214 = arith.constant 0 : index
    %574 = vector.load %arg4[%c400_213, %c0_214] : memref<1288x32xf32, #tpu.memory_space<vmem>>, vector<32x32xf32>
    %c432_215 = arith.constant 432 : index
    %c0_216 = arith.constant 0 : index
    %575 = vector.load %arg4[%c432_215, %c0_216] : memref<1288x32xf32, #tpu.memory_space<vmem>>, vector<1x32xf32>
    %c440_217 = arith.constant 440 : index
    %c0_218 = arith.constant 0 : index
    %576 = vector.load %arg4[%c440_217, %c0_218] : memref<1288x32xf32, #tpu.memory_space<vmem>>, vector<32x32xf32>
    %c472_219 = arith.constant 472 : index
    %c0_220 = arith.constant 0 : index
    %577 = vector.load %arg4[%c472_219, %c0_220] : memref<1288x32xf32, #tpu.memory_space<vmem>>, vector<1x32xf32>
    %cst_221 = arith.constant dense<0.000000e+00> : vector<8x32xf32>
    %578 = tpu.matmul %566, %567, %cst_221 {dimension_numbers = #tpu.dot_dimension_numbers<[1], [0], [0], [1], [0, 0, 1, 1], [], []>} : vector<8x32xf32>, vector<32x32xf32>, vector<8x32xf32> -> vector<8x32xf32>
    %cst_222 = arith.constant dense<0.000000e+00> : vector<8x32xf32>
    %579 = tpu.matmul %566, %568, %cst_222 {dimension_numbers = #tpu.dot_dimension_numbers<[1], [0], [0], [1], [0, 0, 1, 1], [], []>} : vector<8x32xf32>, vector<32x32xf32>, vector<8x32xf32> -> vector<8x32xf32>
    %cst_223 = arith.constant dense<0.000000e+00> : vector<64x32xf32>
    %580 = tpu.matmul %10, %579, %cst_223 {dimension_numbers = #tpu.dot_dimension_numbers<[1], [0], [0], [1], [0, 0, 1, 1], [], []>} : vector<64x8xf32>, vector<8x32xf32>, vector<64x32xf32> -> vector<64x32xf32>
    %581 = vector.extract_strided_slice %569 {offsets = [0, 0], sizes = [1, 32], strides = [1, 1]} : vector<2x32xf32> to vector<1x32xf32>
    %582 = vector.broadcast %499 : vector<64x1xf32> to vector<64x32xf32>
    %583 = vector.broadcast %581 : vector<1x32xf32> to vector<64x32xf32>
    %584 = arith.mulf %582, %583 : vector<64x32xf32>
    %585 = vector.extract_strided_slice %569 {offsets = [1, 0], sizes = [1, 32], strides = [1, 1]} : vector<2x32xf32> to vector<1x32xf32>
    %586 = vector.broadcast %480 : vector<64x1xf32> to vector<64x32xf32>
    %587 = vector.broadcast %585 : vector<1x32xf32> to vector<64x32xf32>
    %588 = arith.mulf %586, %587 : vector<64x32xf32>
    %589 = arith.addf %584, %588 : vector<64x32xf32>
    %590 = arith.addf %580, %589 : vector<64x32xf32>
    %591 = vector.broadcast %570 : vector<1x32xf32> to vector<64x32xf32>
    %592 = arith.addf %590, %591 : vector<64x32xf32>
    %593 = vector.shape_cast %592 : vector<64x32xf32> to vector<8x8x32xf32>
    %594 = vector.shape_cast %578 : vector<8x32xf32> to vector<1x8x32xf32>
    %595 = vector.broadcast %594 : vector<1x8x32xf32> to vector<8x8x32xf32>
    %596 = arith.addf %595, %593 : vector<8x8x32xf32>
    %597 = arith.negf %596 : vector<8x8x32xf32>
    %598 = math.exp %597 : vector<8x8x32xf32>
    %cst_224 = arith.constant 1.000000e+00 : f32
    %599 = vector.broadcast %cst_224 : f32 to vector<8x8x32xf32>
    %600 = arith.addf %599, %598 : vector<8x8x32xf32>
    %601 = arith.divf %599, %600 : vector<8x8x32xf32>
    %602 = arith.mulf %596, %601 : vector<8x8x32xf32>
    %603 = vector.shape_cast %602 : vector<8x8x32xf32> to vector<64x32xf32>
    %cst_225 = arith.constant dense<0.000000e+00> : vector<64x32xf32>
    %604 = tpu.matmul %603, %571, %cst_225 {dimension_numbers = #tpu.dot_dimension_numbers<[1], [0], [0], [1], [0, 0, 1, 1], [], []>} : vector<64x32xf32>, vector<32x32xf32>, vector<64x32xf32> -> vector<64x32xf32>
    %605 = vector.broadcast %572 : vector<1x32xf32> to vector<64x32xf32>
    %606 = arith.addf %604, %605 : vector<64x32xf32>
    %607 = arith.negf %606 : vector<64x32xf32>
    %608 = math.exp %607 : vector<64x32xf32>
    %cst_226 = arith.constant 1.000000e+00 : f32
    %609 = vector.broadcast %cst_226 : f32 to vector<64x32xf32>
    %610 = arith.addf %609, %608 : vector<64x32xf32>
    %611 = arith.divf %609, %610 : vector<64x32xf32>
    %612 = arith.mulf %606, %611 : vector<64x32xf32>
    %613 = vector.broadcast %469 : vector<64x1xf32> to vector<64x32xf32>
    %614 = arith.mulf %612, %613 : vector<64x32xf32>
    %615 = vector.shape_cast %614 : vector<64x32xf32> to vector<8x8x32xf32>
    %cst_227 = arith.constant dense<0.000000e+00> : vector<8x32xf32>
    %616 = vector.multi_reduction <add>, %615, %cst_227 [0] : vector<8x8x32xf32> to vector<8x32xf32>
    %cst_228 = arith.constant dense<0.000000e+00> : vector<8x32xf32>
    %617 = tpu.matmul %566, %573, %cst_228 {dimension_numbers = #tpu.dot_dimension_numbers<[1], [0], [0], [1], [0, 0, 1, 1], [], []>} : vector<8x32xf32>, vector<32x32xf32>, vector<8x32xf32> -> vector<8x32xf32>
    %cst_229 = arith.constant dense<0.000000e+00> : vector<8x32xf32>
    %618 = tpu.matmul %616, %574, %cst_229 {dimension_numbers = #tpu.dot_dimension_numbers<[1], [0], [0], [1], [0, 0, 1, 1], [], []>} : vector<8x32xf32>, vector<32x32xf32>, vector<8x32xf32> -> vector<8x32xf32>
    %619 = arith.addf %617, %618 : vector<8x32xf32>
    %620 = vector.broadcast %575 : vector<1x32xf32> to vector<8x32xf32>
    %621 = arith.addf %619, %620 : vector<8x32xf32>
    %622 = arith.negf %621 : vector<8x32xf32>
    %623 = math.exp %622 : vector<8x32xf32>
    %cst_230 = arith.constant 1.000000e+00 : f32
    %624 = vector.broadcast %cst_230 : f32 to vector<8x32xf32>
    %625 = arith.addf %624, %623 : vector<8x32xf32>
    %626 = arith.divf %624, %625 : vector<8x32xf32>
    %627 = arith.mulf %621, %626 : vector<8x32xf32>
    %cst_231 = arith.constant dense<0.000000e+00> : vector<8x32xf32>
    %628 = tpu.matmul %627, %576, %cst_231 {dimension_numbers = #tpu.dot_dimension_numbers<[1], [0], [0], [1], [0, 0, 1, 1], [], []>} : vector<8x32xf32>, vector<32x32xf32>, vector<8x32xf32> -> vector<8x32xf32>
    %629 = vector.broadcast %577 : vector<1x32xf32> to vector<8x32xf32>
    %630 = arith.addf %628, %629 : vector<8x32xf32>
    %631 = arith.addf %566, %630 : vector<8x32xf32>
    %632 = vector.broadcast %467 : vector<8x1xf32> to vector<8x32xf32>
    %633 = arith.mulf %631, %632 : vector<8x32xf32>
    %c480_232 = arith.constant 480 : index
    %c0_233 = arith.constant 0 : index
    %634 = vector.load %arg4[%c480_232, %c0_233] : memref<1288x32xf32, #tpu.memory_space<vmem>>, vector<32x32xf32>
    %c512_234 = arith.constant 512 : index
    %c0_235 = arith.constant 0 : index
    %635 = vector.load %arg4[%c512_234, %c0_235] : memref<1288x32xf32, #tpu.memory_space<vmem>>, vector<32x32xf32>
    %c544_236 = arith.constant 544 : index
    %c0_237 = arith.constant 0 : index
    %636 = vector.load %arg4[%c544_236, %c0_237] : memref<1288x32xf32, #tpu.memory_space<vmem>>, vector<2x32xf32>
    %c552_238 = arith.constant 552 : index
    %c0_239 = arith.constant 0 : index
    %637 = vector.load %arg4[%c552_238, %c0_239] : memref<1288x32xf32, #tpu.memory_space<vmem>>, vector<1x32xf32>
    %c560_240 = arith.constant 560 : index
    %c0_241 = arith.constant 0 : index
    %638 = vector.load %arg4[%c560_240, %c0_241] : memref<1288x32xf32, #tpu.memory_space<vmem>>, vector<32x32xf32>
    %c592_242 = arith.constant 592 : index
    %c0_243 = arith.constant 0 : index
    %639 = vector.load %arg4[%c592_242, %c0_243] : memref<1288x32xf32, #tpu.memory_space<vmem>>, vector<1x32xf32>
    %c600_244 = arith.constant 600 : index
    %c0_245 = arith.constant 0 : index
    %640 = vector.load %arg4[%c600_244, %c0_245] : memref<1288x32xf32, #tpu.memory_space<vmem>>, vector<32x1xf32>
    %cst_246 = arith.constant dense<0.000000e+00> : vector<8x32xf32>
    %641 = tpu.matmul %633, %634, %cst_246 {dimension_numbers = #tpu.dot_dimension_numbers<[1], [0], [0], [1], [0, 0, 1, 1], [], []>} : vector<8x32xf32>, vector<32x32xf32>, vector<8x32xf32> -> vector<8x32xf32>
    %cst_247 = arith.constant dense<0.000000e+00> : vector<8x32xf32>
    %642 = tpu.matmul %633, %635, %cst_247 {dimension_numbers = #tpu.dot_dimension_numbers<[1], [0], [0], [1], [0, 0, 1, 1], [], []>} : vector<8x32xf32>, vector<32x32xf32>, vector<8x32xf32> -> vector<8x32xf32>
    %cst_248 = arith.constant dense<0.000000e+00> : vector<64x32xf32>
    %643 = tpu.matmul %10, %642, %cst_248 {dimension_numbers = #tpu.dot_dimension_numbers<[1], [0], [0], [1], [0, 0, 1, 1], [], []>} : vector<64x8xf32>, vector<8x32xf32>, vector<64x32xf32> -> vector<64x32xf32>
    %644 = vector.extract_strided_slice %636 {offsets = [0, 0], sizes = [1, 32], strides = [1, 1]} : vector<2x32xf32> to vector<1x32xf32>
    %645 = vector.broadcast %499 : vector<64x1xf32> to vector<64x32xf32>
    %646 = vector.broadcast %644 : vector<1x32xf32> to vector<64x32xf32>
    %647 = arith.mulf %645, %646 : vector<64x32xf32>
    %648 = vector.extract_strided_slice %636 {offsets = [1, 0], sizes = [1, 32], strides = [1, 1]} : vector<2x32xf32> to vector<1x32xf32>
    %649 = vector.broadcast %480 : vector<64x1xf32> to vector<64x32xf32>
    %650 = vector.broadcast %648 : vector<1x32xf32> to vector<64x32xf32>
    %651 = arith.mulf %649, %650 : vector<64x32xf32>
    %652 = arith.addf %647, %651 : vector<64x32xf32>
    %653 = arith.addf %643, %652 : vector<64x32xf32>
    %654 = vector.broadcast %637 : vector<1x32xf32> to vector<64x32xf32>
    %655 = arith.addf %653, %654 : vector<64x32xf32>
    %656 = vector.shape_cast %655 : vector<64x32xf32> to vector<8x8x32xf32>
    %657 = vector.shape_cast %641 : vector<8x32xf32> to vector<1x8x32xf32>
    %658 = vector.broadcast %657 : vector<1x8x32xf32> to vector<8x8x32xf32>
    %659 = arith.addf %658, %656 : vector<8x8x32xf32>
    %660 = arith.negf %659 : vector<8x8x32xf32>
    %661 = math.exp %660 : vector<8x8x32xf32>
    %cst_249 = arith.constant 1.000000e+00 : f32
    %662 = vector.broadcast %cst_249 : f32 to vector<8x8x32xf32>
    %663 = arith.addf %662, %661 : vector<8x8x32xf32>
    %664 = arith.divf %662, %663 : vector<8x8x32xf32>
    %665 = arith.mulf %659, %664 : vector<8x8x32xf32>
    %666 = vector.shape_cast %665 : vector<8x8x32xf32> to vector<64x32xf32>
    %cst_250 = arith.constant dense<0.000000e+00> : vector<64x32xf32>
    %667 = tpu.matmul %666, %638, %cst_250 {dimension_numbers = #tpu.dot_dimension_numbers<[1], [0], [0], [1], [0, 0, 1, 1], [], []>} : vector<64x32xf32>, vector<32x32xf32>, vector<64x32xf32> -> vector<64x32xf32>
    %668 = vector.broadcast %639 : vector<1x32xf32> to vector<64x32xf32>
    %669 = arith.addf %667, %668 : vector<64x32xf32>
    %670 = arith.negf %669 : vector<64x32xf32>
    %671 = math.exp %670 : vector<64x32xf32>
    %cst_251 = arith.constant 1.000000e+00 : f32
    %672 = vector.broadcast %cst_251 : f32 to vector<64x32xf32>
    %673 = arith.addf %672, %671 : vector<64x32xf32>
    %674 = arith.divf %672, %673 : vector<64x32xf32>
    %675 = arith.mulf %669, %674 : vector<64x32xf32>
    %cst_252 = arith.constant dense<0.000000e+00> : vector<64x1xf32>
    %676 = tpu.matmul %675, %640, %cst_252 {dimension_numbers = #tpu.dot_dimension_numbers<[1], [0], [0], [1], [0, 0, 1, 1], [], []>} : vector<64x32xf32>, vector<32x1xf32>, vector<64x1xf32> -> vector<64x1xf32>
    %677 = arith.mulf %676, %469 : vector<64x1xf32>
    %678 = vector.shape_cast %677 : vector<64x1xf32> to vector<8x8x1xf32>
    %679 = vector.broadcast %678 : vector<8x8x1xf32> to vector<8x8x3xf32>
    %680 = arith.mulf %498, %679 : vector<8x8x3xf32>
    %cst_253 = arith.constant dense<0.000000e+00> : vector<8x3xf32>
    %681 = vector.multi_reduction <add>, %680, %cst_253 [0] : vector<8x8x3xf32> to vector<8x3xf32>
    %682 = arith.addf %470, %681 : vector<8x3xf32>
    %683 = vector.broadcast %467 : vector<8x1xf32> to vector<8x3xf32>
    %684 = arith.mulf %682, %683 : vector<8x3xf32>
    %685 = vector.broadcast %467 : vector<8x1xf32> to vector<8x32xf32>
    %686 = arith.mulf %633, %685 : vector<8x32xf32>
    %cst_254 = arith.constant dense<0.000000e+00> : vector<64x3xf32>
    %687 = tpu.matmul %10, %684, %cst_254 {dimension_numbers = #tpu.dot_dimension_numbers<[1], [0], [0], [1], [0, 0, 1, 1], [], []>} : vector<64x8xf32>, vector<8x3xf32>, vector<64x3xf32> -> vector<64x3xf32>
    %688 = vector.shape_cast %684 : vector<8x3xf32> to vector<1x8x3xf32>
    %689 = vector.shape_cast %687 : vector<64x3xf32> to vector<8x8x3xf32>
    %690 = vector.broadcast %688 : vector<1x8x3xf32> to vector<8x8x3xf32>
    %691 = arith.subf %690, %689 : vector<8x8x3xf32>
    %692 = arith.mulf %691, %691 : vector<8x8x3xf32>
    %cst_255 = arith.constant dense<0.000000e+00> : vector<8x8xf32>
    %693 = vector.multi_reduction <add>, %692, %cst_255 [2] : vector<8x8x3xf32> to vector<8x8xf32>
    %694 = vector.shape_cast %693 : vector<8x8xf32> to vector<8x8x1xf32>
    %cst_256 = arith.constant 9.99999993E-9 : f32
    %695 = vector.broadcast %cst_256 : f32 to vector<8x8x1xf32>
    %696 = arith.addf %694, %695 : vector<8x8x1xf32>
    %697 = math.rsqrt %696 : vector<8x8x1xf32>
    %698 = vector.broadcast %697 : vector<8x8x1xf32> to vector<8x8x3xf32>
    %699 = arith.mulf %691, %698 : vector<8x8x3xf32>
    %700 = vector.shape_cast %694 : vector<8x8x1xf32> to vector<64x1xf32>
    %c632_257 = arith.constant 632 : index
    %c0_258 = arith.constant 0 : index
    %701 = vector.load %arg4[%c632_257, %c0_258] : memref<1288x32xf32, #tpu.memory_space<vmem>>, vector<32x32xf32>
    %c664_259 = arith.constant 664 : index
    %c0_260 = arith.constant 0 : index
    %702 = vector.load %arg4[%c664_259, %c0_260] : memref<1288x32xf32, #tpu.memory_space<vmem>>, vector<32x32xf32>
    %c696_261 = arith.constant 696 : index
    %c0_262 = arith.constant 0 : index
    %703 = vector.load %arg4[%c696_261, %c0_262] : memref<1288x32xf32, #tpu.memory_space<vmem>>, vector<2x32xf32>
    %c704_263 = arith.constant 704 : index
    %c0_264 = arith.constant 0 : index
    %704 = vector.load %arg4[%c704_263, %c0_264] : memref<1288x32xf32, #tpu.memory_space<vmem>>, vector<1x32xf32>
    %c712_265 = arith.constant 712 : index
    %c0_266 = arith.constant 0 : index
    %705 = vector.load %arg4[%c712_265, %c0_266] : memref<1288x32xf32, #tpu.memory_space<vmem>>, vector<32x32xf32>
    %c744_267 = arith.constant 744 : index
    %c0_268 = arith.constant 0 : index
    %706 = vector.load %arg4[%c744_267, %c0_268] : memref<1288x32xf32, #tpu.memory_space<vmem>>, vector<1x32xf32>
    %c752_269 = arith.constant 752 : index
    %c0_270 = arith.constant 0 : index
    %707 = vector.load %arg4[%c752_269, %c0_270] : memref<1288x32xf32, #tpu.memory_space<vmem>>, vector<32x32xf32>
    %c784_271 = arith.constant 784 : index
    %c0_272 = arith.constant 0 : index
    %708 = vector.load %arg4[%c784_271, %c0_272] : memref<1288x32xf32, #tpu.memory_space<vmem>>, vector<32x32xf32>
    %c816_273 = arith.constant 816 : index
    %c0_274 = arith.constant 0 : index
    %709 = vector.load %arg4[%c816_273, %c0_274] : memref<1288x32xf32, #tpu.memory_space<vmem>>, vector<1x32xf32>
    %c824_275 = arith.constant 824 : index
    %c0_276 = arith.constant 0 : index
    %710 = vector.load %arg4[%c824_275, %c0_276] : memref<1288x32xf32, #tpu.memory_space<vmem>>, vector<32x32xf32>
    %c856_277 = arith.constant 856 : index
    %c0_278 = arith.constant 0 : index
    %711 = vector.load %arg4[%c856_277, %c0_278] : memref<1288x32xf32, #tpu.memory_space<vmem>>, vector<1x32xf32>
    %cst_279 = arith.constant dense<0.000000e+00> : vector<8x32xf32>
    %712 = tpu.matmul %686, %701, %cst_279 {dimension_numbers = #tpu.dot_dimension_numbers<[1], [0], [0], [1], [0, 0, 1, 1], [], []>} : vector<8x32xf32>, vector<32x32xf32>, vector<8x32xf32> -> vector<8x32xf32>
    %cst_280 = arith.constant dense<0.000000e+00> : vector<8x32xf32>
    %713 = tpu.matmul %686, %702, %cst_280 {dimension_numbers = #tpu.dot_dimension_numbers<[1], [0], [0], [1], [0, 0, 1, 1], [], []>} : vector<8x32xf32>, vector<32x32xf32>, vector<8x32xf32> -> vector<8x32xf32>
    %cst_281 = arith.constant dense<0.000000e+00> : vector<64x32xf32>
    %714 = tpu.matmul %10, %713, %cst_281 {dimension_numbers = #tpu.dot_dimension_numbers<[1], [0], [0], [1], [0, 0, 1, 1], [], []>} : vector<64x8xf32>, vector<8x32xf32>, vector<64x32xf32> -> vector<64x32xf32>
    %715 = vector.extract_strided_slice %703 {offsets = [0, 0], sizes = [1, 32], strides = [1, 1]} : vector<2x32xf32> to vector<1x32xf32>
    %716 = vector.broadcast %700 : vector<64x1xf32> to vector<64x32xf32>
    %717 = vector.broadcast %715 : vector<1x32xf32> to vector<64x32xf32>
    %718 = arith.mulf %716, %717 : vector<64x32xf32>
    %719 = vector.extract_strided_slice %703 {offsets = [1, 0], sizes = [1, 32], strides = [1, 1]} : vector<2x32xf32> to vector<1x32xf32>
    %720 = vector.broadcast %480 : vector<64x1xf32> to vector<64x32xf32>
    %721 = vector.broadcast %719 : vector<1x32xf32> to vector<64x32xf32>
    %722 = arith.mulf %720, %721 : vector<64x32xf32>
    %723 = arith.addf %718, %722 : vector<64x32xf32>
    %724 = arith.addf %714, %723 : vector<64x32xf32>
    %725 = vector.broadcast %704 : vector<1x32xf32> to vector<64x32xf32>
    %726 = arith.addf %724, %725 : vector<64x32xf32>
    %727 = vector.shape_cast %726 : vector<64x32xf32> to vector<8x8x32xf32>
    %728 = vector.shape_cast %712 : vector<8x32xf32> to vector<1x8x32xf32>
    %729 = vector.broadcast %728 : vector<1x8x32xf32> to vector<8x8x32xf32>
    %730 = arith.addf %729, %727 : vector<8x8x32xf32>
    %731 = arith.negf %730 : vector<8x8x32xf32>
    %732 = math.exp %731 : vector<8x8x32xf32>
    %cst_282 = arith.constant 1.000000e+00 : f32
    %733 = vector.broadcast %cst_282 : f32 to vector<8x8x32xf32>
    %734 = arith.addf %733, %732 : vector<8x8x32xf32>
    %735 = arith.divf %733, %734 : vector<8x8x32xf32>
    %736 = arith.mulf %730, %735 : vector<8x8x32xf32>
    %737 = vector.shape_cast %736 : vector<8x8x32xf32> to vector<64x32xf32>
    %cst_283 = arith.constant dense<0.000000e+00> : vector<64x32xf32>
    %738 = tpu.matmul %737, %705, %cst_283 {dimension_numbers = #tpu.dot_dimension_numbers<[1], [0], [0], [1], [0, 0, 1, 1], [], []>} : vector<64x32xf32>, vector<32x32xf32>, vector<64x32xf32> -> vector<64x32xf32>
    %739 = vector.broadcast %706 : vector<1x32xf32> to vector<64x32xf32>
    %740 = arith.addf %738, %739 : vector<64x32xf32>
    %741 = arith.negf %740 : vector<64x32xf32>
    %742 = math.exp %741 : vector<64x32xf32>
    %cst_284 = arith.constant 1.000000e+00 : f32
    %743 = vector.broadcast %cst_284 : f32 to vector<64x32xf32>
    %744 = arith.addf %743, %742 : vector<64x32xf32>
    %745 = arith.divf %743, %744 : vector<64x32xf32>
    %746 = arith.mulf %740, %745 : vector<64x32xf32>
    %747 = vector.broadcast %469 : vector<64x1xf32> to vector<64x32xf32>
    %748 = arith.mulf %746, %747 : vector<64x32xf32>
    %749 = vector.shape_cast %748 : vector<64x32xf32> to vector<8x8x32xf32>
    %cst_285 = arith.constant dense<0.000000e+00> : vector<8x32xf32>
    %750 = vector.multi_reduction <add>, %749, %cst_285 [0] : vector<8x8x32xf32> to vector<8x32xf32>
    %cst_286 = arith.constant dense<0.000000e+00> : vector<8x32xf32>
    %751 = tpu.matmul %686, %707, %cst_286 {dimension_numbers = #tpu.dot_dimension_numbers<[1], [0], [0], [1], [0, 0, 1, 1], [], []>} : vector<8x32xf32>, vector<32x32xf32>, vector<8x32xf32> -> vector<8x32xf32>
    %cst_287 = arith.constant dense<0.000000e+00> : vector<8x32xf32>
    %752 = tpu.matmul %750, %708, %cst_287 {dimension_numbers = #tpu.dot_dimension_numbers<[1], [0], [0], [1], [0, 0, 1, 1], [], []>} : vector<8x32xf32>, vector<32x32xf32>, vector<8x32xf32> -> vector<8x32xf32>
    %753 = arith.addf %751, %752 : vector<8x32xf32>
    %754 = vector.broadcast %709 : vector<1x32xf32> to vector<8x32xf32>
    %755 = arith.addf %753, %754 : vector<8x32xf32>
    %756 = arith.negf %755 : vector<8x32xf32>
    %757 = math.exp %756 : vector<8x32xf32>
    %cst_288 = arith.constant 1.000000e+00 : f32
    %758 = vector.broadcast %cst_288 : f32 to vector<8x32xf32>
    %759 = arith.addf %758, %757 : vector<8x32xf32>
    %760 = arith.divf %758, %759 : vector<8x32xf32>
    %761 = arith.mulf %755, %760 : vector<8x32xf32>
    %cst_289 = arith.constant dense<0.000000e+00> : vector<8x32xf32>
    %762 = tpu.matmul %761, %710, %cst_289 {dimension_numbers = #tpu.dot_dimension_numbers<[1], [0], [0], [1], [0, 0, 1, 1], [], []>} : vector<8x32xf32>, vector<32x32xf32>, vector<8x32xf32> -> vector<8x32xf32>
    %763 = vector.broadcast %711 : vector<1x32xf32> to vector<8x32xf32>
    %764 = arith.addf %762, %763 : vector<8x32xf32>
    %765 = arith.addf %686, %764 : vector<8x32xf32>
    %766 = vector.broadcast %467 : vector<8x1xf32> to vector<8x32xf32>
    %767 = arith.mulf %765, %766 : vector<8x32xf32>
    %c864_290 = arith.constant 864 : index
    %c0_291 = arith.constant 0 : index
    %768 = vector.load %arg4[%c864_290, %c0_291] : memref<1288x32xf32, #tpu.memory_space<vmem>>, vector<32x32xf32>
    %c896_292 = arith.constant 896 : index
    %c0_293 = arith.constant 0 : index
    %769 = vector.load %arg4[%c896_292, %c0_293] : memref<1288x32xf32, #tpu.memory_space<vmem>>, vector<32x32xf32>
    %c928_294 = arith.constant 928 : index
    %c0_295 = arith.constant 0 : index
    %770 = vector.load %arg4[%c928_294, %c0_295] : memref<1288x32xf32, #tpu.memory_space<vmem>>, vector<2x32xf32>
    %c936_296 = arith.constant 936 : index
    %c0_297 = arith.constant 0 : index
    %771 = vector.load %arg4[%c936_296, %c0_297] : memref<1288x32xf32, #tpu.memory_space<vmem>>, vector<1x32xf32>
    %c944_298 = arith.constant 944 : index
    %c0_299 = arith.constant 0 : index
    %772 = vector.load %arg4[%c944_298, %c0_299] : memref<1288x32xf32, #tpu.memory_space<vmem>>, vector<32x32xf32>
    %c976_300 = arith.constant 976 : index
    %c0_301 = arith.constant 0 : index
    %773 = vector.load %arg4[%c976_300, %c0_301] : memref<1288x32xf32, #tpu.memory_space<vmem>>, vector<1x32xf32>
    %c984_302 = arith.constant 984 : index
    %c0_303 = arith.constant 0 : index
    %774 = vector.load %arg4[%c984_302, %c0_303] : memref<1288x32xf32, #tpu.memory_space<vmem>>, vector<32x32xf32>
    %c1016_304 = arith.constant 1016 : index
    %c0_305 = arith.constant 0 : index
    %775 = vector.load %arg4[%c1016_304, %c0_305] : memref<1288x32xf32, #tpu.memory_space<vmem>>, vector<32x32xf32>
    %c1048_306 = arith.constant 1048 : index
    %c0_307 = arith.constant 0 : index
    %776 = vector.load %arg4[%c1048_306, %c0_307] : memref<1288x32xf32, #tpu.memory_space<vmem>>, vector<1x32xf32>
    %c1056_308 = arith.constant 1056 : index
    %c0_309 = arith.constant 0 : index
    %777 = vector.load %arg4[%c1056_308, %c0_309] : memref<1288x32xf32, #tpu.memory_space<vmem>>, vector<32x32xf32>
    %c1088_310 = arith.constant 1088 : index
    %c0_311 = arith.constant 0 : index
    %778 = vector.load %arg4[%c1088_310, %c0_311] : memref<1288x32xf32, #tpu.memory_space<vmem>>, vector<1x32xf32>
    %cst_312 = arith.constant dense<0.000000e+00> : vector<8x32xf32>
    %779 = tpu.matmul %767, %768, %cst_312 {dimension_numbers = #tpu.dot_dimension_numbers<[1], [0], [0], [1], [0, 0, 1, 1], [], []>} : vector<8x32xf32>, vector<32x32xf32>, vector<8x32xf32> -> vector<8x32xf32>
    %cst_313 = arith.constant dense<0.000000e+00> : vector<8x32xf32>
    %780 = tpu.matmul %767, %769, %cst_313 {dimension_numbers = #tpu.dot_dimension_numbers<[1], [0], [0], [1], [0, 0, 1, 1], [], []>} : vector<8x32xf32>, vector<32x32xf32>, vector<8x32xf32> -> vector<8x32xf32>
    %cst_314 = arith.constant dense<0.000000e+00> : vector<64x32xf32>
    %781 = tpu.matmul %10, %780, %cst_314 {dimension_numbers = #tpu.dot_dimension_numbers<[1], [0], [0], [1], [0, 0, 1, 1], [], []>} : vector<64x8xf32>, vector<8x32xf32>, vector<64x32xf32> -> vector<64x32xf32>
    %782 = vector.extract_strided_slice %770 {offsets = [0, 0], sizes = [1, 32], strides = [1, 1]} : vector<2x32xf32> to vector<1x32xf32>
    %783 = vector.broadcast %700 : vector<64x1xf32> to vector<64x32xf32>
    %784 = vector.broadcast %782 : vector<1x32xf32> to vector<64x32xf32>
    %785 = arith.mulf %783, %784 : vector<64x32xf32>
    %786 = vector.extract_strided_slice %770 {offsets = [1, 0], sizes = [1, 32], strides = [1, 1]} : vector<2x32xf32> to vector<1x32xf32>
    %787 = vector.broadcast %480 : vector<64x1xf32> to vector<64x32xf32>
    %788 = vector.broadcast %786 : vector<1x32xf32> to vector<64x32xf32>
    %789 = arith.mulf %787, %788 : vector<64x32xf32>
    %790 = arith.addf %785, %789 : vector<64x32xf32>
    %791 = arith.addf %781, %790 : vector<64x32xf32>
    %792 = vector.broadcast %771 : vector<1x32xf32> to vector<64x32xf32>
    %793 = arith.addf %791, %792 : vector<64x32xf32>
    %794 = vector.shape_cast %793 : vector<64x32xf32> to vector<8x8x32xf32>
    %795 = vector.shape_cast %779 : vector<8x32xf32> to vector<1x8x32xf32>
    %796 = vector.broadcast %795 : vector<1x8x32xf32> to vector<8x8x32xf32>
    %797 = arith.addf %796, %794 : vector<8x8x32xf32>
    %798 = arith.negf %797 : vector<8x8x32xf32>
    %799 = math.exp %798 : vector<8x8x32xf32>
    %cst_315 = arith.constant 1.000000e+00 : f32
    %800 = vector.broadcast %cst_315 : f32 to vector<8x8x32xf32>
    %801 = arith.addf %800, %799 : vector<8x8x32xf32>
    %802 = arith.divf %800, %801 : vector<8x8x32xf32>
    %803 = arith.mulf %797, %802 : vector<8x8x32xf32>
    %804 = vector.shape_cast %803 : vector<8x8x32xf32> to vector<64x32xf32>
    %cst_316 = arith.constant dense<0.000000e+00> : vector<64x32xf32>
    %805 = tpu.matmul %804, %772, %cst_316 {dimension_numbers = #tpu.dot_dimension_numbers<[1], [0], [0], [1], [0, 0, 1, 1], [], []>} : vector<64x32xf32>, vector<32x32xf32>, vector<64x32xf32> -> vector<64x32xf32>
    %806 = vector.broadcast %773 : vector<1x32xf32> to vector<64x32xf32>
    %807 = arith.addf %805, %806 : vector<64x32xf32>
    %808 = arith.negf %807 : vector<64x32xf32>
    %809 = math.exp %808 : vector<64x32xf32>
    %cst_317 = arith.constant 1.000000e+00 : f32
    %810 = vector.broadcast %cst_317 : f32 to vector<64x32xf32>
    %811 = arith.addf %810, %809 : vector<64x32xf32>
    %812 = arith.divf %810, %811 : vector<64x32xf32>
    %813 = arith.mulf %807, %812 : vector<64x32xf32>
    %814 = vector.broadcast %469 : vector<64x1xf32> to vector<64x32xf32>
    %815 = arith.mulf %813, %814 : vector<64x32xf32>
    %816 = vector.shape_cast %815 : vector<64x32xf32> to vector<8x8x32xf32>
    %cst_318 = arith.constant dense<0.000000e+00> : vector<8x32xf32>
    %817 = vector.multi_reduction <add>, %816, %cst_318 [0] : vector<8x8x32xf32> to vector<8x32xf32>
    %cst_319 = arith.constant dense<0.000000e+00> : vector<8x32xf32>
    %818 = tpu.matmul %767, %774, %cst_319 {dimension_numbers = #tpu.dot_dimension_numbers<[1], [0], [0], [1], [0, 0, 1, 1], [], []>} : vector<8x32xf32>, vector<32x32xf32>, vector<8x32xf32> -> vector<8x32xf32>
    %cst_320 = arith.constant dense<0.000000e+00> : vector<8x32xf32>
    %819 = tpu.matmul %817, %775, %cst_320 {dimension_numbers = #tpu.dot_dimension_numbers<[1], [0], [0], [1], [0, 0, 1, 1], [], []>} : vector<8x32xf32>, vector<32x32xf32>, vector<8x32xf32> -> vector<8x32xf32>
    %820 = arith.addf %818, %819 : vector<8x32xf32>
    %821 = vector.broadcast %776 : vector<1x32xf32> to vector<8x32xf32>
    %822 = arith.addf %820, %821 : vector<8x32xf32>
    %823 = arith.negf %822 : vector<8x32xf32>
    %824 = math.exp %823 : vector<8x32xf32>
    %cst_321 = arith.constant 1.000000e+00 : f32
    %825 = vector.broadcast %cst_321 : f32 to vector<8x32xf32>
    %826 = arith.addf %825, %824 : vector<8x32xf32>
    %827 = arith.divf %825, %826 : vector<8x32xf32>
    %828 = arith.mulf %822, %827 : vector<8x32xf32>
    %cst_322 = arith.constant dense<0.000000e+00> : vector<8x32xf32>
    %829 = tpu.matmul %828, %777, %cst_322 {dimension_numbers = #tpu.dot_dimension_numbers<[1], [0], [0], [1], [0, 0, 1, 1], [], []>} : vector<8x32xf32>, vector<32x32xf32>, vector<8x32xf32> -> vector<8x32xf32>
    %830 = vector.broadcast %778 : vector<1x32xf32> to vector<8x32xf32>
    %831 = arith.addf %829, %830 : vector<8x32xf32>
    %832 = arith.addf %767, %831 : vector<8x32xf32>
    %833 = vector.broadcast %467 : vector<8x1xf32> to vector<8x32xf32>
    %834 = arith.mulf %832, %833 : vector<8x32xf32>
    %c1096_323 = arith.constant 1096 : index
    %c0_324 = arith.constant 0 : index
    %835 = vector.load %arg4[%c1096_323, %c0_324] : memref<1288x32xf32, #tpu.memory_space<vmem>>, vector<32x32xf32>
    %c1128_325 = arith.constant 1128 : index
    %c0_326 = arith.constant 0 : index
    %836 = vector.load %arg4[%c1128_325, %c0_326] : memref<1288x32xf32, #tpu.memory_space<vmem>>, vector<32x32xf32>
    %c1160_327 = arith.constant 1160 : index
    %c0_328 = arith.constant 0 : index
    %837 = vector.load %arg4[%c1160_327, %c0_328] : memref<1288x32xf32, #tpu.memory_space<vmem>>, vector<2x32xf32>
    %c1168_329 = arith.constant 1168 : index
    %c0_330 = arith.constant 0 : index
    %838 = vector.load %arg4[%c1168_329, %c0_330] : memref<1288x32xf32, #tpu.memory_space<vmem>>, vector<1x32xf32>
    %c1176_331 = arith.constant 1176 : index
    %c0_332 = arith.constant 0 : index
    %839 = vector.load %arg4[%c1176_331, %c0_332] : memref<1288x32xf32, #tpu.memory_space<vmem>>, vector<32x32xf32>
    %c1208_333 = arith.constant 1208 : index
    %c0_334 = arith.constant 0 : index
    %840 = vector.load %arg4[%c1208_333, %c0_334] : memref<1288x32xf32, #tpu.memory_space<vmem>>, vector<1x32xf32>
    %c1216_335 = arith.constant 1216 : index
    %c0_336 = arith.constant 0 : index
    %841 = vector.load %arg4[%c1216_335, %c0_336] : memref<1288x32xf32, #tpu.memory_space<vmem>>, vector<32x1xf32>
    %cst_337 = arith.constant dense<0.000000e+00> : vector<8x32xf32>
    %842 = tpu.matmul %834, %835, %cst_337 {dimension_numbers = #tpu.dot_dimension_numbers<[1], [0], [0], [1], [0, 0, 1, 1], [], []>} : vector<8x32xf32>, vector<32x32xf32>, vector<8x32xf32> -> vector<8x32xf32>
    %cst_338 = arith.constant dense<0.000000e+00> : vector<8x32xf32>
    %843 = tpu.matmul %834, %836, %cst_338 {dimension_numbers = #tpu.dot_dimension_numbers<[1], [0], [0], [1], [0, 0, 1, 1], [], []>} : vector<8x32xf32>, vector<32x32xf32>, vector<8x32xf32> -> vector<8x32xf32>
    %cst_339 = arith.constant dense<0.000000e+00> : vector<64x32xf32>
    %844 = tpu.matmul %10, %843, %cst_339 {dimension_numbers = #tpu.dot_dimension_numbers<[1], [0], [0], [1], [0, 0, 1, 1], [], []>} : vector<64x8xf32>, vector<8x32xf32>, vector<64x32xf32> -> vector<64x32xf32>
    %845 = vector.extract_strided_slice %837 {offsets = [0, 0], sizes = [1, 32], strides = [1, 1]} : vector<2x32xf32> to vector<1x32xf32>
    %846 = vector.broadcast %700 : vector<64x1xf32> to vector<64x32xf32>
    %847 = vector.broadcast %845 : vector<1x32xf32> to vector<64x32xf32>
    %848 = arith.mulf %846, %847 : vector<64x32xf32>
    %849 = vector.extract_strided_slice %837 {offsets = [1, 0], sizes = [1, 32], strides = [1, 1]} : vector<2x32xf32> to vector<1x32xf32>
    %850 = vector.broadcast %480 : vector<64x1xf32> to vector<64x32xf32>
    %851 = vector.broadcast %849 : vector<1x32xf32> to vector<64x32xf32>
    %852 = arith.mulf %850, %851 : vector<64x32xf32>
    %853 = arith.addf %848, %852 : vector<64x32xf32>
    %854 = arith.addf %844, %853 : vector<64x32xf32>
    %855 = vector.broadcast %838 : vector<1x32xf32> to vector<64x32xf32>
    %856 = arith.addf %854, %855 : vector<64x32xf32>
    %857 = vector.shape_cast %856 : vector<64x32xf32> to vector<8x8x32xf32>
    %858 = vector.shape_cast %842 : vector<8x32xf32> to vector<1x8x32xf32>
    %859 = vector.broadcast %858 : vector<1x8x32xf32> to vector<8x8x32xf32>
    %860 = arith.addf %859, %857 : vector<8x8x32xf32>
    %861 = arith.negf %860 : vector<8x8x32xf32>
    %862 = math.exp %861 : vector<8x8x32xf32>
    %cst_340 = arith.constant 1.000000e+00 : f32
    %863 = vector.broadcast %cst_340 : f32 to vector<8x8x32xf32>
    %864 = arith.addf %863, %862 : vector<8x8x32xf32>
    %865 = arith.divf %863, %864 : vector<8x8x32xf32>
    %866 = arith.mulf %860, %865 : vector<8x8x32xf32>
    %867 = vector.shape_cast %866 : vector<8x8x32xf32> to vector<64x32xf32>
    %cst_341 = arith.constant dense<0.000000e+00> : vector<64x32xf32>
    %868 = tpu.matmul %867, %839, %cst_341 {dimension_numbers = #tpu.dot_dimension_numbers<[1], [0], [0], [1], [0, 0, 1, 1], [], []>} : vector<64x32xf32>, vector<32x32xf32>, vector<64x32xf32> -> vector<64x32xf32>
    %869 = vector.broadcast %840 : vector<1x32xf32> to vector<64x32xf32>
    %870 = arith.addf %868, %869 : vector<64x32xf32>
    %871 = arith.negf %870 : vector<64x32xf32>
    %872 = math.exp %871 : vector<64x32xf32>
    %cst_342 = arith.constant 1.000000e+00 : f32
    %873 = vector.broadcast %cst_342 : f32 to vector<64x32xf32>
    %874 = arith.addf %873, %872 : vector<64x32xf32>
    %875 = arith.divf %873, %874 : vector<64x32xf32>
    %876 = arith.mulf %870, %875 : vector<64x32xf32>
    %cst_343 = arith.constant dense<0.000000e+00> : vector<64x1xf32>
    %877 = tpu.matmul %876, %841, %cst_343 {dimension_numbers = #tpu.dot_dimension_numbers<[1], [0], [0], [1], [0, 0, 1, 1], [], []>} : vector<64x32xf32>, vector<32x1xf32>, vector<64x1xf32> -> vector<64x1xf32>
    %878 = arith.mulf %877, %469 : vector<64x1xf32>
    %879 = vector.shape_cast %878 : vector<64x1xf32> to vector<8x8x1xf32>
    %880 = vector.broadcast %879 : vector<8x8x1xf32> to vector<8x8x3xf32>
    %881 = arith.mulf %699, %880 : vector<8x8x3xf32>
    %cst_344 = arith.constant dense<0.000000e+00> : vector<8x3xf32>
    %882 = vector.multi_reduction <add>, %881, %cst_344 [0] : vector<8x8x3xf32> to vector<8x3xf32>
    %883 = arith.addf %684, %882 : vector<8x3xf32>
    %884 = vector.broadcast %467 : vector<8x1xf32> to vector<8x3xf32>
    %885 = arith.mulf %883, %884 : vector<8x3xf32>
    %886 = vector.broadcast %467 : vector<8x1xf32> to vector<8x32xf32>
    %887 = arith.mulf %834, %886 : vector<8x32xf32>
    %c1248_345 = arith.constant 1248 : index
    %c0_346 = arith.constant 0 : index
    %888 = vector.load %arg4[%c1248_345, %c0_346] : memref<1288x32xf32, #tpu.memory_space<vmem>>, vector<32x6xf32>
    %cst_347 = arith.constant dense<0.000000e+00> : vector<8x6xf32>
    %889 = tpu.matmul %887, %888, %cst_347 {dimension_numbers = #tpu.dot_dimension_numbers<[1], [0], [0], [1], [0, 0, 1, 1], [], []>} : vector<8x32xf32>, vector<32x6xf32>, vector<8x6xf32> -> vector<8x6xf32>
    %c1280_348 = arith.constant 1280 : index
    %c0_349 = arith.constant 0 : index
    %890 = vector.load %arg4[%c1280_348, %c0_349] : memref<1288x32xf32, #tpu.memory_space<vmem>>, vector<1x6xf32>
    %891 = vector.broadcast %890 : vector<1x6xf32> to vector<8x6xf32>
    %892 = arith.addf %889, %891 : vector<8x6xf32>
    %893 = vector.broadcast %467 : vector<8x1xf32> to vector<8x6xf32>
    %894 = arith.mulf %892, %893 : vector<8x6xf32>
    %895 = arith.subf %885, %470 : vector<8x3xf32>
    %896 = vector.broadcast %467 : vector<8x1xf32> to vector<8x3xf32>
    %897 = arith.mulf %895, %896 : vector<8x3xf32>
    %898 = vector.shape_cast %467 : vector<8x1xf32> to vector<1x8x1xf32>
    %cst_350 = arith.constant dense<0.000000e+00> : vector<1xf32>
    %899 = vector.multi_reduction <add>, %898, %cst_350 [1, 2] : vector<1x8x1xf32> to vector<1xf32>
    %900 = vector.shape_cast %899 : vector<1xf32> to vector<1x1x1xf32>
    %901 = vector.extract %900[0, 0, 0] : f32 from vector<1x1x1xf32>
    %cst_351 = arith.constant dense<0.000000e+00> : vector<3xf32>
    %902 = vector.multi_reduction <add>, %897, %cst_351 [0] : vector<8x3xf32> to vector<3xf32>
    %903 = vector.shape_cast %902 : vector<3xf32> to vector<1x3xf32>
    %904 = vector.broadcast %901 : f32 to vector<1x3xf32>
    %905 = arith.divf %903, %904 : vector<1x3xf32>
    %906 = vector.broadcast %905 : vector<1x3xf32> to vector<8x3xf32>
    %907 = vector.broadcast %467 : vector<8x1xf32> to vector<8x3xf32>
    %908 = arith.mulf %906, %907 : vector<8x3xf32>
    %909 = arith.subf %897, %908 : vector<8x3xf32>
    %c1_352 = arith.constant 1 : index
    %c0_353 = arith.constant 0 : index
    %c0_354 = arith.constant 0 : index
    %910 = vector.load %arg5[%c1_352, %c0_353, %c0_354] : memref<2x8x8xf32, #tpu.memory_space<vmem>>, vector<1x8x3xf32>
    %911 = vector.shape_cast %910 : vector<1x8x3xf32> to vector<8x3xf32>
    %912 = vector.shape_cast %909 : vector<8x3xf32> to vector<1x8x3xf32>
    tpu.vector_store %arg5[%c1_352, %c0_353, %c0_354], %912 {strides = array<i32>} : memref<2x8x8xf32, #tpu.memory_space<vmem>>, vector<1x8x3xf32>,
    %913 = vector.extract_strided_slice %894 {offsets = [0, 0], sizes = [8, 5], strides = [1, 1]} : vector<8x6xf32> to vector<8x5xf32>
    %c1_355 = arith.constant 1 : index
    %c0_356 = arith.constant 0 : index
    %c3_357 = arith.constant 3 : index
    %914 = vector.load %arg5[%c1_355, %c0_356, %c3_357] : memref<2x8x8xf32, #tpu.memory_space<vmem>>, vector<1x8x5xf32>
    %915 = vector.shape_cast %914 : vector<1x8x5xf32> to vector<8x5xf32>
    %916 = vector.shape_cast %913 : vector<8x5xf32> to vector<1x8x5xf32>
    tpu.vector_store %arg5[%c1_355, %c0_356, %c3_357], %916 {strides = array<i32>} : memref<2x8x8xf32, #tpu.memory_space<vmem>>, vector<1x8x5xf32>,
    return
  }
  func.func @transform_0(%arg0: i32) -> (i32, i32, i32) {
    %c0_i32 = arith.constant 0 : i32
    %c0_i32_0 = arith.constant 0 : i32
    %c0_i32_1 = arith.constant 0 : i32
    return %arg0, %c0_i32, %c0_i32_0 : i32, i32, i32
  }
  func.func @transform_1(%arg0: i32) -> (i32, i32, i32) {
    %c0_i32 = arith.constant 0 : i32
    %c0_i32_0 = arith.constant 0 : i32
    %c0_i32_1 = arith.constant 0 : i32
    return %arg0, %c0_i32, %c0_i32_0 : i32, i32, i32
  }
  func.func @transform_2(%arg0: i32) -> (i32, i32, i32) {
    %c0_i32 = arith.constant 0 : i32
    %c0_i32_0 = arith.constant 0 : i32
    %c0_i32_1 = arith.constant 0 : i32
    return %arg0, %c0_i32, %c0_i32_0 : i32, i32, i32
  }
  func.func @transform_3(%arg0: i32) -> (i32, i32) {
    %c0_i32 = arith.constant 0 : i32
    %c0_i32_0 = arith.constant 0 : i32
    %c0_i32_1 = arith.constant 0 : i32
    return %c0_i32, %c0_i32_0 : i32, i32
  }
  func.func @transform_4(%arg0: i32) -> (i32, i32, i32) {
    %c0_i32 = arith.constant 0 : i32
    %c0_i32_0 = arith.constant 0 : i32
    %c0_i32_1 = arith.constant 0 : i32
    return %arg0, %c0_i32, %c0_i32_0 : i32, i32, i32
  }
}

</mosaic_0001>

<bundles_post_ra>
// kernel: tpu_custom_call.1
= control target key start
LH: loop header
LB: loop body
LE: loop exit
PB: predicated region body
PF: predicated region fallthrough
CT: control target
= control target key end

     0   :  { %9 = vsyncpa [#allocation3], 0  ;;  %s18244_s0 = inlined_call_operand.vmem [shape: f32[4,8,9], index: 0, kind: input, shape index: {}]   ;;  %s18245_s1 = inlined_call_operand.vmem [shape: f32[4,8,1], index: 1, kind: input, shape index: {}]   ;;  %s18246_s2 = inlined_call_operand.vmem [shape: f32[4,64,1], index: 2, kind: input, shape index: {}]   ;;  %s18247_s3 = inlined_call_operand.vmem [shape: f32[1288,32], index: 3, kind: input, shape index: {}]   ;;  %s18248_s4 = inlined_call_operand.hbm [shape: f32[4,8,8], index: 4, kind: output, shape index: {}]  }
   0x1   :  { %11 = vsyncpa [#allocation3 + $0x1], 0  ;;  %s15104_s15 = smov 0   ;;  %s15106_s16 = smov 0  }
   0x2   :  { %s15108_s17 = smov 0   ;;  %s15110_s18 = smov 0  }
   0x3 LB: > { %s15125_s19 = sadd.s32 4294967295, %s15068_s18   ;;  %s11330_s20 = sadd.s32 4294967294, %s15068_s18   ;;  %s15068_s18 = sphi %s15110_s18, %s18390_s18   ;;  %s15064_s17 = sphi %s15108_s17, %s18389_s17   ;;  %s15060_s16 = sphi %s15106_s16, %s18388_s16   ;;  %s15056_s15 = sphi %s15104_s15, %s18387_s15  }
   0x4   : > { %s15129_s21 = sadd.s32 1, %s15068_s18   ;;  %s123_s22 = sadd.s32 1, %s15064_s17 }
   0x5   : > { %s120_s23 = ssub.s32 %s15068_s18, %s15129_s21  ;;  %p133_p0 = scmp.ne.s32.totalorder %s15064_s17, %s15060_s16 }
   0x6   : > { %p121_p1 = scmp.eq.s32.totalorder %s120_s23, 0  ;;  %p134_p2 = scmp.eq.s32.totalorder %s15125_s19, 1 }
   0x7   : > { %p139_p3 = scmp.ne.s32.totalorder %s15060_s16, %s15056_s15  ;;  %p140_p4 = scmp.eq.s32.totalorder %s11330_s20, 1 }
   0x8   : > { %s15140_s24 = scalar_select %p121_p1, %s15064_s17, %s123_s22  }
   0x9   : > { %p15142_p5 = por %p134_p2, %p133_p0  ;;  %p15146_p6 = por %p140_p4, %p139_p3 }
   0xa   : > { %p11333_p7 = scmp.ge.s32.totalorder %s15068_s18, 1  ;;  %p189_p8 = scmp.lt.s32.totalorder %s15068_s18, 3 }
   0xc   : > { %p190_p9 = pnand %p11333_p7, %p189_p8 }
   0xe   : > { %193 = sbr.rel (%p190_p9) target bundleno = 14138 (0x373a), region = 36 }
  0x15   : > { %s11335_s27 = sshll.u32 %s15125_s19, 1  ;;  %v246_v0 = vlaneseq  ;;  %vm309_vm1 = vcmask 64512   ;;  %s15070_s6 = smov 125   ;;  %v18249_v13 = vmov 0.0   ;;  %v480_v20 = vld [vmem:[%s18247_s3] sm:$0x3f] }
  0x16   : > { %p227_p10 = scmp.lt.s32.totalorder %s11335_s27, 3  ;;  %v590_v24 = vld [vmem:[%s18247_s3 + $0x10] sm:$0xff]  ;;  %v591_v25 = vld [vmem:[%s18247_s3 + $0x18] sm:$0xff]  ;;  %v18251_v27 = vmov 0.0|0.0   ;;  %v592_v31 = vld [vmem:[%s18247_s3 + $0x20] sm:$0xff]  ;;  %s223_s13 = sand.u32 1, %s15060_s16  }
  0x17   : > { %v15153_v1 = vshrl.u32 %v246_v0, 7  ;;  %v256_v2 = vand.u32 127, %v246_v0  ;;  %v594_v26 = vld [vmem:[%s18247_s3 + $0x30] sm:$0xff]  ;;  %v13618_v28 = vpack.c.bf16 %v591_v25, %v590_v24  ;;  %v595_v29 = vld [vmem:[%s18247_s3 + $0x38] sm:$0xff]  ;;  %v593_v32 = vld [vmem:[%s18247_s3 + $0x28] sm:$0xff]  ;;  %s11922_s14 = sshll.u32 %s15125_s19, 8 }
  0x18   : > { %s18392_s27 = smov (!%p227_p10, %s11335_s27), 3  ;;  %v13624_v30 = vpack.c.bf16 %v595_v29, %v594_v26  ;;  %v596_v33 = vld [vmem:[%s18247_s3 + $0x40] sm:$0xff]  ;;  %v13621_v34 = vpack.c.bf16 %v593_v32, %v592_v31  ;;  %v597_v35 = vld [vmem:[%s18247_s3 + $0x48] sm:$0xff]  ;;  %v602_v26 = vld [vmem:[%s18247_s3 + $0x70] sm:$0xff]  ;;  %v15074_v31 = vmov 0   ;;  %s18197_s23 = scalar_lea.hbm %s18248_s4, %s11922_s14 }
  0x19   : > { %v257_v3 = vmul.u32 8, %v256_v2  ;;  %v248_v4 = vadd.s32 8, %v15153_v1  ;;  %v249_v5 = vadd.s32 16, %v15153_v1  ;;  %s11336_s28 = sshll.u32 %s18392_s27, 3  ;;  %v250_v6 = vadd.s32 24, %v15153_v1  ;;  %v601_v24 = vld [vmem:[%s18247_s3 + $0x68] sm:$0xff]  ;;  %14098 = vset.pattern.permute.xlu1 %v15074_v31  ;;  %14099 = vset.pattern.permute.xlu0 %v15074_v31 }
  0x1a   : > { %s15166_s5 = scalar_lea.vmem %s18244_s0, %s11336_s28  ;;  %v251_v8 = vadd.s32 32, %v15153_v1  ;;  %v252_v10 = vadd.s32 40, %v15153_v1  ;;  %v253_v11 = vadd.s32 48, %v15153_v1  ;;  %v254_v12 = vadd.s32 56, %v15153_v1  ;;  %s11921_s9 = sshll.u32 %s18392_s27, 6 }
  0x1b   : > { %vm258_vm0 = vcmp.ge.s32.totalorder %v15153_v1, %v257_v3  ;;  %v266_v7 = vadd.s32 8, %v257_v3  ;;  %v15171_v9 = vld [vmem:[%s15166_s5] sm:$0xff]  ;;  %vm259_vm2 = vcmp.ge.s32.totalorder %v248_v4, %v257_v3  ;;  %vm260_vm3 = vcmp.ge.s32.totalorder %v249_v5, %v257_v3  ;;  %s15367_s12 = scalar_lea.vmem %s18246_s2, %s11921_s9  ;;  %s15382_s20 = scalar_lea.vmem %s18245_s1, %s11336_s28 }
  0x1c   : > { %487 = vrot.lane.b32.xlu0 %v15171_v9, %s15070_s6  ;;  %12513 = vmatprep.subr.mxu0 %v15171_v9  ;;  %vm261_vm8 = vcmp.ge.s32.totalorder %v250_v6, %v257_v3  ;;  %vm262_vm11 = vcmp.ge.s32.totalorder %v251_v8, %v257_v3  ;;  %vm263_vm14 = vcmp.ge.s32.totalorder %v252_v10, %v257_v3  ;;  %v302_v32 = vld [vmem:[%s15367_s12 + $0x8] sm:$0xff]  ;;  %s18203_s19 = scalar_lea.sflag [#allocation3], %s223_s13  ;;  %s15076_s30 = smov [#allocation2]  }
  0x1d   : > { %vm267_vm4 = vcmp.lt.s32.totalorder %v15153_v1, %v266_v7  ;;  %vm268_vm5 = vcmp.lt.s32.totalorder %v248_v4, %v266_v7  ;;  %vm269_vm6 = vcmp.lt.s32.totalorder %v249_v5, %v266_v7  ;;  %12514 = vmatpush3.msra.mxu0 %v15171_v9  ;;  %vm270_vm9 = vcmp.lt.s32.totalorder %v250_v6, %v266_v7  ;;  %v11358_v6 = vld [vmem:[%s18247_s3 + $0x8] ss:$0 sm:$0xff]  ;;  %s15010_s7 = sshll.u32 %s15076_s30, 4  ;;  %s15011_s7 = int_to_ptr.vmem [resolvable:$false] %s15010_s7 }
  0x1e   : > { %vm275_vm7 = vmand %vm258_vm0, %vm267_vm4  ;;  %14045 = vmatprep.subr.mxu1 %v15171_v9  ;;  %vm271_vm12 = vcmp.lt.s32.totalorder %v251_v8, %v266_v7  ;;  %vm272_vm15 = vcmp.lt.s32.totalorder %v252_v10, %v266_v7  ;;  %vm273_vm4 = vcmp.lt.s32.totalorder %v253_v11, %v266_v7  ;;  %13623 = vmatprep.subr.bf16.mxu0 %v18251_v27  ;;  %s15012_s8 = scalar_lea.vmem %s15011_s7, 512 }
  0x1f   : > { %v15185_v14 = vsel %vm275_vm7, 1.0, %v18249_v13  ;;  %vm276_vm10 = vmand %vm259_vm2, %vm268_vm5  ;;  %14046 = vmatpush3.msra.mxu1 %v15171_v9  ;;  %vm264_vm2 = vcmp.ge.s32.totalorder %v253_v11, %v257_v3  ;;  %vm265_vm5 = vcmp.ge.s32.totalorder %v254_v12, %v257_v3  ;;  %v13627_v36 = vpack.c.bf16 %v597_v35, %v596_v33  ;;  %v303_v33 = vld [vmem:[%s15367_s12 + $0x10] sm:$0xff]  ;;  %v305_v35 = vld [vmem:[%s15367_s12 + $0x20] sm:$0xff] }
  0x20   : > { %12515 = vmatprep.mubr.msk.f32.mxu0 %vm309_vm1, %v15185_v14  ;;  %v15192_v15 = vsel %vm276_vm10, 1.0, %v18249_v13  ;;  %vm277_vm13 = vmand %vm260_vm3, %vm269_vm6  ;;  %12527 = vmatprep.subr.mxu1 %v18249_v13  ;;  %vm274_vm6 = vcmp.lt.s32.totalorder %v254_v12, %v266_v7 }
  0x21   : > { %12516 = vmatmul.mubr.msk.f32.vlgmr.msra.gmra.mrb[0].mxu0 %vm309_vm1, %v15192_v15  ;;  %v15200_v16 = vsel %vm277_vm13, 1.0, %v18249_v13  ;;  %vm278_vm0 = vmand %vm261_vm8, %vm270_vm9  ;;  %vm492_vm9 = vcmask 1045504   ;;  %vm455_vm13 = vcmask 23552  }
  0x22   : > { %12518 = vmatprep.mubr.msk.f32.mxu0 %vm309_vm1, %v15200_v16  ;;  %v15207_v17 = vsel %vm278_vm0, 1.0, %v18249_v13  ;;  %vm279_vm3 = vmand %vm262_vm11, %vm271_vm12  ;;  %vm15072_vm11 = vmmov 0   ;;  %vm489_vm12 = vcmask 48128   ;;  %13625 = vmatpush3.bf16.msra.mxu0 %v13624_v30  ;;  %v301_v30 = vld [vmem:[%s15367_s12] sm:$0xff] }
  0x23   : > { %v15212_v18 = vsel %vm279_vm3, 1.0, %v18249_v13  ;;  %vm280_vm7 = vmand %vm263_vm14, %vm272_vm15  ;;  %13626 = vmatprep.subr.bf16.mxu0 %v18251_v27  ;;  %vm619_vm14 = vcmask 261120   ;;  %vm5748_vm15 = vcmask 7168  }
  0x24   : > { %vm281_vm10 = vmand %vm264_vm2, %vm273_vm4  ;;  %v15225_v21 = vsel %vm280_vm7, 1.0, %v18249_v13 }
  0x25   : > { %12519 = vmatmul.mubr.msk.f32.gmra.mrb[2].mxu0 %vm309_vm1, %v15207_v17  ;;  %v15217_v19 = vsel %vm281_vm10, 1.0, %v18249_v13  ;;  %vm282_vm8 = vmand %vm265_vm5, %vm274_vm6 }
  0x26   : > { %12521 = vmatprep.mubr.msk.f32.mxu0 %vm309_vm1, %v15212_v18  ;;  %12524 = vmatprep.mubr.msk.f32.mxu1 %vm309_vm1, %v15217_v19  ;;  %v15230_v22 = vsel %vm282_vm8, 1.0, %v18249_v13 }
  0x27   : > { %12525 = vmatmul.mubr.msk.f32.vlgmr.msra.gmra.mrb[0].mxu1 %vm309_vm1, %v15230_v22  ;;  %13628 = vmatpush3.bf16.msra.mxu0 %v13627_v36  ;;  %v306_v36 = vld [vmem:[%s15367_s12 + $0x28] sm:$0xff] }
  0x28   : > { %12528 = vmatpush3.msk.msra.mxu1 %vm492_vm9, %v480_v20  ;;  %12529 = vmatprep.mubr.msk.f32.mxu1 %vm15072_vm11, %v18249_v13 }
  0x29   : > { %12522 = vmatmul.mubr.msk.f32.gmra.mrb[4].mxu0 %vm309_vm1, %v15225_v21  ;;  %13617 = vmatprep.subr.bf16.mxu1 %v18251_v27 }
  0x2a   : > { %12551 = vmatprep.mubr.msk.f32.mxu0 %vm15072_vm11, %v18249_v13 }
  0x8e   : > { %v488_v23 = vpop.permute.xlu0 %487 }
  0x8f   : > { %12530 = vmatmul.mubr.msk.f32.vlgmr.msra.gmra.mrb[2].mxu1 %vm489_vm12, %v488_v23  ;;  %v600_v23 = vld [vmem:[%s18247_s3 + $0x60] sm:$0xff] }
  0x90   : > { %12540 = vmatprep.mubr.msk.f32.mxu1 %vm15072_vm11, %v18249_v13  ;;  %13619 = vmatpush3.bf16.msra.mxu1 %v13618_v28  ;;  %v13629_v25 = vpack.c.bf16 %v601_v24, %v600_v23  ;;  %v603_v28 = vld [vmem:[%s18247_s3 + $0x78] sm:$0xff] }
  0x91   : > { %13620 = vmatprep.subr.bf16.mxu1 %v18251_v27  ;;  %v13633_v29 = vpack.c.bf16 %v603_v28, %v602_v26 }
  0x92   : > { %13630 = vmatprep.subr.bf16.mxu0 %v13629_v25 }
  0x94   : > { %13622 = vmatpush3.bf16.msra.mxu1 %v13621_v34  ;;  %v304_v34 = vld [vmem:[%s15367_s12 + $0x18] sm:$0xff] }
  0xf4   : > { %v12517_v37 = vpop.f32.mrb[0].mxu0 }
  0xf5   : > { %v15273_v38 = vsub.f32 %v15171_v9, %v12517_v37  ;;  %v400_v39 = vpop.f32.mrb[1].mxu0  ;;  %v307_v37 = vld [vmem:[%s15367_s12 + $0x30] sm:$0xff] }
  0xf6   : > { %v15314_v2 = vsub.f32 %v15171_v9, %v400_v39  ;;  %v308_v39 = vld [vmem:[%s15367_s12 + $0x38] sm:$0xff] }
  0xf7   : > { %v448_v40 = vmul.f32 %v15273_v38, %v15273_v38 }
  0xf8   : > { %v12520_v41 = vpop.f32.mrb[2].mxu0  ;;  %v447_v4 = vmul.f32 %v15314_v2, %v15314_v2 }
  0xf9   : > { %v15278_v42 = vsub.f32 %v15171_v9, %v12520_v41  ;;  %v459_v43 = vsel %vm455_vm13, %v448_v40, 0.0  ;;  %v410_v44 = vpop.f32.mrb[3].mxu0  ;;  %v300_v40 = vld [vmem:[%s15382_s20] sm:$0xff] }
  0xfa   : > { %460 = vadd.xlane.f32.xlu1 %v459_v43  ;;  %v15282_v45 = vsub.f32 %v15171_v9, %v410_v44  ;;  %v12526_v46 = vpop.f32.mrb[0].mxu1  ;;  %v456_v5 = vsel %vm455_vm13, %v447_v4, 0.0 }
  0xfb   : > { %v450_v47 = vmul.f32 %v15278_v42, %v15278_v42  ;;  %v430_v48 = vpop.f32.mrb[1].mxu1  ;;  %v15305_v60 = vsub.f32 %v15171_v9, %v12526_v46  ;;  %457 = vadd.xlane.f32.xlu0 %v456_v5 }
  0xfc   : > { %v12523_v49 = vpop.f32.mrb[4].mxu0  ;;  %v449_v50 = vmul.f32 %v15282_v45, %v15282_v45  ;;  %v15300_v58 = vsub.f32 %v15171_v9, %v430_v48  ;;  %v15397_v48 = vsub.s32 1, %v15153_v1 }
  0xfd   : > { %v465_v51 = vsel %vm455_vm13, %v450_v47, 0.0  ;;  %v15290_v52 = vsub.f32 %v15171_v9, %v12523_v49  ;;  %v420_v53 = vpop.f32.mrb[5].mxu0  ;;  %v454_v0 = vmul.f32 %v15305_v60, %v15305_v60  ;;  %v15394_v47 = vsub.s32 0, %v15153_v1  ;;  %v598_v49 = vld [vmem:[%s18247_s3 + $0x50] sm:$0x3] }
  0xfe   : > { %466 = vadd.xlane.f32.xlu1 %v465_v51  ;;  %v462_v54 = vsel %vm455_vm13, %v449_v50, 0.0  ;;  %v15294_v55 = vsub.f32 %v15171_v9, %v420_v53  ;;  %v453_v62 = vmul.f32 %v15300_v58, %v15300_v58  ;;  %v778_v53 = vrot.slane %v598_v49, %v15397_v48 }
  0xff   : > { %v452_v56 = vmul.f32 %v15290_v52, %v15290_v52  ;;  %v477_v3 = vsel %vm455_vm13, %v454_v0, 0.0  ;;  %v766_v51 = vrot.slane %v598_v49, %v15394_v47 }
 0x100   : > { %v451_v59 = vmul.f32 %v15294_v55, %v15294_v55  ;;  %v474_v63 = vsel %vm455_vm13, %v453_v62, 0.0 }
 0x101   : > { %v471_v57 = vsel %vm455_vm13, %v452_v56, 0.0 }
 0x102   : > { %463 = vadd.xlane.f32.xlu1 %v462_v54  ;;  %v468_v61 = vsel %vm455_vm13, %v451_v59, 0.0 }
 0x106   : > { %472 = vadd.xlane.f32.xlu1 %v471_v57 }
 0x10a   : > { %469 = vadd.xlane.f32.xlu1 %v468_v61 }
 0x10e   : > { %475 = vadd.xlane.f32.xlu1 %v474_v63 }
 0x111   : > { %1172 = vperm.xlu0 %14099, %v302_v32  }
 0x112   : > { %478 = vadd.xlane.f32.xlu1 %v477_v3  ;;  %v11371_v3 = vld [vmem:[%s18247_s3 + $0x58] ss:$0 sm:$0xff] }
 0x123   : > { %1167 = vperm.xlu1 %14098, %v301_v30  }
 0x127   : > { %1177 = vperm.xlu1 %14098, %v303_v33  }
 0x12b   : > { %1182 = vperm.xlu1 %14098, %v304_v34  }
 0x12f   : > { %1187 = vperm.xlu1 %14098, %v305_v35  }
 0x133   : > { %1192 = vperm.xlu1 %14098, %v306_v36  }
 0x137   : > { %1197 = vperm.xlu1 %14098, %v307_v37  }
 0x13b   : > { %1202 = vperm.xlu1 %14098, %v308_v39  }
 0x13f   : > { %1463 = vperm.xlu1 %14098, %v300_v40  }
 0x162   : > { %v562_v7 = vpop.f32.mrb[2].mxu1 }
 0x163   : > { %v15323_v8 = vadd.f32 %v11358_v6, %v562_v7  ;;  %v12531_v9 = vpop.f32.mrb[3].mxu1 }
 0x165   : > { %12541 = vmatmul.mubr.msk.f32.vlgmr.msra.gmra.mrb[4].mxu1 %vm619_vm14, %v15323_v8  ;;  %12552 = vmatmul.mubr.msk.f32.vlgmr.msra.gmra.mrb[6].mxu0 %vm619_vm14, %v15323_v8 }
 0x166   : > { %12556 = vmatprep.mubr.msk.f32.mxu1 %vm309_vm1, %v15185_v14  ;;  %13632 = vmatpush3.bf16.msra.mxu0 %v13629_v25 }
 0x167   : > { %13634 = vmatprep.subr.bf16.mxu0 %v13633_v29 }
 0x16a   : > { %13636 = vmatpush3.bf16.msra.mxu0 %v13633_v29 }
 0x16b   : > { %13649 = vmatprep.subr.bf16.mxu0 %v18251_v27 }
 0x187   : > { %v15385_v41 = vpop.xlane.xlu1 %460 }
 0x188   : > { %v15406_v54 = vpop.xlane.xlu0 %457  ;;  %v768_v56 = vmul.f32 %v766_v51, %v15385_v41  ;;  %v780_v57 = vmul.f32 %v778_v53, %v15385_v41 }
 0x189   : > { %v767_v59 = vmul.f32 %v766_v51, %v15406_v54  ;;  %v779_v1 = vmul.f32 %v778_v53, %v15406_v54 }
 0x18a   : > { %v788_v62 = vadd.f32 %v780_v57, %v768_v56 }
 0x18b   : > { %v15387_v43 = vpop.xlane.xlu1 %466  ;;  %v787_v5 = vadd.f32 %v779_v1, %v767_v59 }
 0x18c   : > { %v770_v63 = vmul.f32 %v766_v51, %v15387_v43  ;;  %v782_v0 = vmul.f32 %v778_v53, %v15387_v43 }
 0x18e   : > { %v790_v23 = vadd.f32 %v782_v0, %v770_v63 }
 0x18f   : > { %v15389_v44 = vpop.xlane.xlu1 %463 }
 0x190   : > { %v769_v6 = vmul.f32 %v766_v51, %v15389_v44  ;;  %v781_v7 = vmul.f32 %v778_v53, %v15389_v44 }
 0x192   : > { %v789_v29 = vadd.f32 %v781_v7, %v769_v6 }
 0x193   : > { %v15391_v46 = vpop.xlane.xlu1 %472 }
 0x194   : > { %v772_v24 = vmul.f32 %v766_v51, %v15391_v46  ;;  %v784_v25 = vmul.f32 %v778_v53, %v15391_v46 }
 0x196   : > { %v792_v57 = vadd.f32 %v784_v25, %v772_v24 }
 0x197   : > { %v15402_v50 = vpop.xlane.xlu1 %469 }
 0x198   : > { %v771_v30 = vmul.f32 %v766_v51, %v15402_v50  ;;  %v783_v31 = vmul.f32 %v778_v53, %v15402_v50 }
 0x19a   : > { %v791_v0 = vadd.f32 %v783_v31, %v771_v30 }
 0x19b   : > { %v15412_v61 = vpop.xlane.xlu1 %475 }
 0x19c   : > { %v773_v40 = vmul.f32 %v766_v51, %v15412_v61 }
 0x19f   : > { %v15425_v32 = vpop.xlane.xlu1 %478 }
 0x1a0   : > { %v774_v39 = vmul.f32 %v766_v51, %v15425_v32  ;;  %v786_v59 = vmul.f32 %v778_v53, %v15425_v32 }
 0x238   : > { %v15331_v10 = vpop.f32.mrb[4].mxu1  ;;  %v759_v11 = vpop.f32.mrb[6].mxu0 }
 0x239   : > { %v12542_v12 = vpop.f32.mrb[5].mxu1  ;;  %v12553_v20 = vpop.f32.mrb[7].mxu0  ;;  %12554 = vmatprep.subr.mxu1 %v759_v11 }
 0x23a   : > { %12555 = vmatpush3.msra.mxu1 %v759_v11 }
 0x23b   : > { %12557 = vmatmul.mubr.msk.f32.vlgmr.msra.gmra.mrb[6].mxu1 %vm309_vm1, %v15192_v15  ;;  %13637 = vmatprep.subr.bf16.mxu1 %v18251_v27 }
 0x23c   : > { %12559 = vmatprep.mubr.msk.f32.mxu1 %vm309_vm1, %v15200_v16 }
 0x23f   : > { %12560 = vmatmul.mubr.msk.f32.gmra.mrb[8].mxu1 %vm309_vm1, %v15207_v17 }
 0x240   : > { %12562 = vmatprep.mubr.msk.f32.mxu1 %vm309_vm1, %v15212_v18 }
 0x243   : > { %12563 = vmatmul.mubr.msk.f32.gmra.mrb[10].mxu1 %vm309_vm1, %v15225_v21 }
 0x244   : > { %12565 = vmatprep.mubr.msk.f32.mxu1 %vm309_vm1, %v15217_v19 }
 0x247   : > { %12566 = vmatmul.mubr.msk.f32.gmra.mrb[12].mxu1 %vm309_vm1, %v15230_v22 }
 0x248   : > { %12596 = vmatprep.mubr.msk.f32.mxu1 %vm15072_vm11, %v18249_v13 }
 0x30e   : > { %v12558_v4 = vpop.f32.mrb[6].mxu1 }
 0x30f   : > { %v867_v9 = vadd.f32 %v12558_v4, %v788_v62  ;;  %v861_v11 = vpop.f32.mrb[7].mxu1  ;;  %v785_v4 = vmul.f32 %v778_v53, %v15412_v61 }
 0x310   : > { %v862_v12 = vadd.f32 %v861_v11, %v787_v5 }
 0x311   : > { %v905_v20 = vadd.f32 %v11371_v3, %v867_v9 }
 0x312   : > { %v904_v26 = vadd.f32 %v11371_v3, %v862_v12  ;;  %v12561_v28 = vpop.f32.mrb[8].mxu1 }
 0x313   : > { %v15428_v33 = vadd.f32 %v905_v20, %v15331_v10  ;;  %v877_v34 = vadd.f32 %v12561_v28, %v790_v23  ;;  %v871_v35 = vpop.f32.mrb[9].mxu1  ;;  %v794_v20 = vadd.f32 %v786_v59, %v774_v39 }
 0x314   : > { %v15431_v36 = vadd.f32 %v904_v26, %v15331_v10  ;;  %v872_v37 = vadd.f32 %v871_v35, %v789_v29  ;;  %v793_v26 = vadd.f32 %v785_v4, %v773_v40 }
 0x315   : > { %v11373_v49 = vmul.f32 -1.442695, %v15428_v33  ;;  %v907_v56 = vadd.f32 %v11371_v3, %v877_v34 }
 0x316   : > { %v11372_v1 = vmul.f32 -1.442695, %v15431_v36  ;;  %v906_v62 = vadd.f32 %v11371_v3, %v872_v37  ;;  %v12564_v63 = vpop.f32.mrb[10].mxu1 }
 0x317   : > { %14100 = vpow2.f32 %v11373_v49  ;;  %v15440_v5 = vadd.f32 %v907_v56, %v15331_v10  ;;  %v887_v6 = vadd.f32 %v12564_v63, %v792_v57  ;;  %v881_v7 = vpop.f32.mrb[11].mxu1 }
 0x318   : > { %14102 = vpow2.f32 %v11372_v1  ;;  %v914_v51 = vadd.f32 %v906_v62, %v15331_v10  ;;  %v882_v9 = vadd.f32 %v881_v7, %v791_v0 }
 0x319   : > { %v11375_v11 = vmul.f32 -1.442695, %v15440_v5  ;;  %v909_v12 = vadd.f32 %v11371_v3, %v887_v6 }
 0x31a   : > { %v11374_v23 = vmul.f32 -1.442695, %v914_v51  ;;  %v908_v24 = vadd.f32 %v11371_v3, %v882_v9  ;;  %v12567_v25 = vpop.f32.mrb[12].mxu1 }
 0x31b   : > { %14104 = vpow2.f32 %v11375_v11  ;;  %v917_v53 = vadd.f32 %v909_v12, %v15331_v10  ;;  %v897_v28 = vadd.f32 %v12567_v25, %v794_v20  ;;  %v891_v29 = vpop.f32.mrb[13].mxu1 }
 0x31c   : > { %14106 = vpow2.f32 %v11374_v23  ;;  %v916_v30 = vadd.f32 %v908_v24, %v15331_v10  ;;  %v892_v31 = vadd.f32 %v891_v29, %v793_v26 }
 0x31d   : > { %v11377_v34 = vmul.f32 -1.442695, %v917_v53  ;;  %v911_v35 = vadd.f32 %v11371_v3, %v897_v28 }
 0x31e   : > { %v11376_v37 = vmul.f32 -1.442695, %v916_v30  ;;  %v910_v49 = vadd.f32 %v11371_v3, %v892_v31 }
 0x31f   : > { %14108 = vpow2.f32 %v11377_v34  ;;  %v919_v39 = vadd.f32 %v911_v35, %v15331_v10 }
 0x320   : > { %14110 = vpow2.f32 %v11376_v37  ;;  %v918_v56 = vadd.f32 %v910_v49, %v15331_v10 }
 0x321   : > { %v14101_v40 = vpop.eup %14100  ;;  %v11379_v57 = vmul.f32 -1.442695, %v919_v39 }
 0x322   : > { %v14103_v59 = vpop.eup %14102  ;;  %v945_v1 = vadd.f32 1.0, %v14101_v40  ;;  %v11378_v62 = vmul.f32 -1.442695, %v918_v56 }
 0x323   : > { %v944_v63 = vadd.f32 1.0, %v14103_v59  ;;  %14112 = vpow2.f32 %v11379_v57 }
 0x324   : > { %14114 = vrcp.f32 %v945_v1 }
 0x325   : > { %v14105_v0 = vpop.eup %14104  ;;  %14116 = vrcp.f32 %v944_v63  ;;  %v11380_v63 = vld [vmem:[%s18247_s3 + $0x80] ss:$0 sm:$0xff] }
 0x326   : > { %v14107_v4 = vpop.eup %14106  ;;  %v947_v6 = vadd.f32 1.0, %v14105_v0  ;;  %14118 = vpow2.f32 %v11378_v62 }
 0x327   : > { %v946_v3 = vadd.f32 1.0, %v14107_v4 }
 0x328   : > { %14120 = vrcp.f32 %v947_v6 }
 0x329   : > { %v14109_v7 = vpop.eup %14108  ;;  %14122 = vrcp.f32 %v946_v3 }
 0x32a   : > { %v14111_v9 = vpop.eup %14110  ;;  %v949_v11 = vadd.f32 1.0, %v14109_v7 }
 0x32b   : > { %v948_v10 = vadd.f32 1.0, %v14111_v9 }
 0x32c   : > { %14124 = vrcp.f32 %v949_v11 }
 0x32d   : > { %v14113_v12 = vpop.eup %14112  ;;  %14126 = vrcp.f32 %v948_v10 }
 0x32e   : > { %v14115_v20 = vpop.eup %14114  ;;  %v951_v23 = vadd.f32 1.0, %v14113_v12 }
 0x32f   : > { %v14117_v24 = vpop.eup %14116  ;;  %v969_v28 = vmul.f32 %v14115_v20, %v15428_v33 }
 0x330   : > { %v14119_v25 = vpop.eup %14118  ;;  %v968_v26 = vmul.f32 %v14117_v24, %v15431_v36  ;;  %14128 = vrcp.f32 %v951_v23 }
 0x331   : > { %v950_v29 = vadd.f32 1.0, %v14119_v25 }
 0x332   : > { %v14121_v31 = vpop.eup %14120  ;;  %12576 = vmatprep.mubr.msk.f32.mxu0 %vm619_vm14, %v968_v26 }
 0x333   : > { %v14123_v34 = vpop.eup %14122  ;;  %14130 = vrcp.f32 %v950_v29  ;;  %12577 = vmatmul.mubr.msk.f32.vlgmr.msra.gmra.mrb[8].mxu0 %vm619_vm14, %v969_v28  ;;  %v971_v37 = vmul.f32 %v14121_v31, %v15440_v5  ;;  %v609_v5 = vld [vmem:[%s18247_s3 + $0xa8] sm:$0xff]  ;;  %v15480_v29 = vpop.permute.xlu1 %1167 }
 0x334   : > { %v970_v35 = vmul.f32 %v14123_v34, %v914_v51  ;;  %v610_v51 = vld [vmem:[%s18247_s3 + $0xb0] sm:$0xff] }
 0x336   : > { %v14125_v49 = vpop.eup %14124  ;;  %12579 = vmatprep.mubr.msk.f32.mxu0 %vm619_vm14, %v970_v35 }
 0x337   : > { %v14127_v40 = vpop.eup %14126  ;;  %12580 = vmatmul.mubr.msk.f32.gmra.mrb[10].mxu0 %vm619_vm14, %v971_v37  ;;  %v973_v33 = vmul.f32 %v14125_v49, %v917_v53  ;;  %v13638_v53 = vpack.c.bf16 %v610_v51, %v609_v5 }
 0x338   : > { %v972_v36 = vmul.f32 %v14127_v40, %v916_v30  ;;  %v611_v30 = vld [vmem:[%s18247_s3 + $0xb8] sm:$0xff] }
 0x339   : > { %13639 = vmatpush3.bf16.msra.mxu1 %v13638_v53 }
 0x33a   : > { %12582 = vmatprep.mubr.msk.f32.mxu0 %vm619_vm14, %v972_v36  ;;  %v14129_v57 = vpop.eup %14128  ;;  %13640 = vmatprep.subr.bf16.mxu1 %v18251_v27 }
 0x33b   : > { %12583 = vmatmul.mubr.msk.f32.gmra.mrb[12].mxu0 %vm619_vm14, %v973_v33  ;;  %v975_v62 = vmul.f32 %v14129_v57, %v919_v39  ;;  %v612_v39 = vld [vmem:[%s18247_s3 + $0xc0] sm:$0xff]  ;;  %v15485_v57 = vpop.permute.xlu1 %1177 }
 0x33d   : > { %v14131_v59 = vpop.eup %14130 }
 0x33e   : > { %v974_v1 = vmul.f32 %v14131_v59, %v918_v56  ;;  %v13641_v56 = vpack.c.bf16 %v612_v39, %v611_v30 }
 0x340   : > { %12585 = vmatprep.mubr.msk.f32.mxu0 %vm619_vm14, %v974_v1  ;;  %13642 = vmatpush3.bf16.msra.mxu1 %v13641_v56 }
 0x341   : > { %12586 = vmatmul.mubr.msk.f32.gmra.mrb[14].mxu0 %vm619_vm14, %v975_v62  ;;  %13643 = vmatprep.subr.bf16.mxu1 %v18251_v27 }
 0x342   : > { %12618 = vmatprep.mubr.msk.f32.mxu0 %vm15072_vm11, %v18249_v13 }
 0x406   : > { %v12578_v0 = vpop.f32.mrb[8].mxu0 }
 0x407   : > { %v1076_v4 = vadd.f32 %v12578_v0, %v11380_v63  ;;  %v1070_v6 = vpop.f32.mrb[9].mxu0  ;;  %v15488_v0 = vpop.permute.xlu1 %1182 }
 0x408   : > { %v1071_v3 = vadd.f32 %v11380_v63, %v1070_v6 }
 0x409   : > { %v11390_v7 = vmul.f32 -1.442695, %v1076_v4 }
 0x40a   : > { %v11389_v9 = vmul.f32 -1.442695, %v1071_v3  ;;  %v12581_v11 = vpop.f32.mrb[10].mxu0 }
 0x40b   : > { %14132 = vpow2.f32 %v11390_v7  ;;  %v1086_v10 = vadd.f32 %v12581_v11, %v11380_v63  ;;  %v1080_v12 = vpop.f32.mrb[11].mxu0 }
 0x40c   : > { %14134 = vpow2.f32 %v11389_v9  ;;  %v1081_v20 = vadd.f32 %v11380_v63, %v1080_v12  ;;  %v15490_v12 = vpop.permute.xlu1 %1187 }
 0x40d   : > { %v11392_v23 = vmul.f32 -1.442695, %v1086_v10 }
 0x40e   : > { %v11391_v24 = vmul.f32 -1.442695, %v1081_v20  ;;  %v12584_v25 = vpop.f32.mrb[12].mxu0 }
 0x40f   : > { %14136 = vpow2.f32 %v11392_v23  ;;  %v15478_v26 = vadd.f32 %v12584_v25, %v11380_v63  ;;  %v1090_v28 = vpop.f32.mrb[13].mxu0  ;;  %v15492_v23 = vpop.permute.xlu0 %1172 }
 0x410   : > { %14138 = vpow2.f32 %v11391_v24  ;;  %v1091_v31 = vadd.f32 %v11380_v63, %v1090_v28 }
 0x411   : > { %v11394_v34 = vmul.f32 -1.442695, %v15478_v26 }
 0x412   : > { %v11393_v35 = vmul.f32 -1.442695, %v1091_v31 }
 0x413   : > { %14140 = vpow2.f32 %v11394_v34 }
 0x414   : > { %14142 = vpow2.f32 %v11393_v35  ;;  %v12587_v37 = vpop.f32.mrb[14].mxu0 }
 0x415   : > { %v14133_v49 = vpop.eup %14132  ;;  %v15483_v40 = vadd.f32 %v12587_v37, %v11380_v63  ;;  %v1100_v36 = vpop.f32.mrb[15].mxu0 }
 0x416   : > { %v14135_v33 = vpop.eup %14134  ;;  %v1134_v59 = vadd.f32 1.0, %v14133_v49  ;;  %v1101_v1 = vadd.f32 %v11380_v63, %v1100_v36 }
 0x417   : > { %v1133_v62 = vadd.f32 1.0, %v14135_v33  ;;  %v11396_v5 = vmul.f32 -1.442695, %v15483_v40 }
 0x418   : > { %14144 = vrcp.f32 %v1134_v59  ;;  %v11395_v51 = vmul.f32 -1.442695, %v1101_v1 }
 0x419   : > { %v14137_v53 = vpop.eup %14136  ;;  %14146 = vrcp.f32 %v1133_v62 }
 0x41a   : > { %v14139_v30 = vpop.eup %14138  ;;  %v1136_v39 = vadd.f32 1.0, %v14137_v53  ;;  %14148 = vpow2.f32 %v11396_v5 }
 0x41b   : > { %v1135_v56 = vadd.f32 1.0, %v14139_v30  ;;  %14150 = vpow2.f32 %v11395_v51 }
 0x41c   : > { %14152 = vrcp.f32 %v1136_v39  ;;  %v15498_v39 = vpop.permute.xlu1 %1192 }
 0x41d   : > { %v14141_v6 = vpop.eup %14140  ;;  %14154 = vrcp.f32 %v1135_v56 }
 0x41e   : > { %v14143_v7 = vpop.eup %14142  ;;  %v1138_v9 = vadd.f32 1.0, %v14141_v6 }
 0x41f   : > { %v1137_v63 = vadd.f32 1.0, %v14143_v7 }
 0x420   : > { %14156 = vrcp.f32 %v1138_v9 }
 0x421   : > { %14158 = vrcp.f32 %v1137_v63 }
 0x422   : > { %v14145_v11 = vpop.eup %14144 }
 0x423   : > { %v14147_v24 = vpop.eup %14146  ;;  %v1158_v25 = vmul.f32 %v14145_v11, %v1076_v4 }
 0x424   : > { %v14149_v28 = vpop.eup %14148  ;;  %v1157_v34 = vmul.f32 %v14147_v24, %v1071_v3 }
 0x425   : > { %v14151_v35 = vpop.eup %14150  ;;  %v1140_v37 = vadd.f32 1.0, %v14149_v28  ;;  %v1206_v49 = vmul.f32 %v15492_v23, %v1158_v25  ;;  %v15507_v28 = vpop.permute.xlu1 %1197 }
 0x426   : > { %v14153_v36 = vpop.eup %14152  ;;  %v1205_v33 = vmul.f32 %v15480_v29, %v1157_v34  ;;  %v1139_v59 = vadd.f32 1.0, %v14151_v35  ;;  %18295 = vst [vmem:[#allocation5_spill] sm:$0xff] %v15507_v28 }
 0x427   : > { %v14155_v62 = vpop.eup %14154  ;;  %v1160_v5 = vmul.f32 %v14153_v36, %v1086_v10  ;;  %14160 = vrcp.f32 %v1140_v37  ;;  %v1214_v51 = vsel %vm619_vm14, %v1206_v49, 0.0 }
 0x428   : > { %v1213_v53 = vsel %vm619_vm14, %v1205_v33, 0.0  ;;  %v1159_v30 = vmul.f32 %v14155_v62, %v1081_v20  ;;  %14162 = vrcp.f32 %v1139_v59 }
 0x429   : > { %v1215_v4 = vadd.f32 %v1214_v51, %v1213_v53  ;;  %v1208_v56 = vmul.f32 %v15488_v0, %v1160_v5  ;;  %v15512_v62 = vpop.permute.xlu1 %1202  ;;  %v605_v53 = vld [vmem:[%s18247_s3 + $0x88] sm:$0xff] }
 0x42a   : > { %v14157_v3 = vpop.eup %14156  ;;  %v1207_v6 = vmul.f32 %v15485_v57, %v1159_v30  ;;  %18296 = vst [vmem:[#allocation6_spill] sm:$0xff] %v15512_v62  ;;  %v606_v30 = vld [vmem:[%s18247_s3 + $0x90] sm:$0xff] }
 0x42b   : > { %v14159_v7 = vpop.eup %14158  ;;  %v1162_v9 = vmul.f32 %v14157_v3, %v15478_v26  ;;  %v1218_v24 = vsel %vm619_vm14, %v1208_v56, 0.0 }
 0x42c   : > { %v1216_v10 = vsel %vm619_vm14, %v1207_v6, 0.0  ;;  %v1161_v63 = vmul.f32 %v14159_v7, %v1091_v31  ;;  %v607_v6 = vld [vmem:[%s18247_s3 + $0x98] sm:$0xff]  ;;  %v608_v7 = vld [vmem:[%s18247_s3 + $0xa0] sm:$0xff] }
 0x42d   : > { %v1217_v11 = vadd.f32 %v1216_v10, %v1215_v4  ;;  %v1210_v25 = vmul.f32 %v15498_v39, %v1162_v9  ;;  %v13647_v9 = vpack.c.bf16 %v608_v7, %v607_v6  ;;  %v614_v10 = vld [vmem:[%s18247_s3 + $0xd0] sm:$0xff]  ;;  %v1469_v6 = vld [vmem:[%s18247_s3 + $0x108] sm:$0xff] }
 0x42e   : > { %v1209_v20 = vmul.f32 %v15490_v12, %v1161_v63  ;;  %v615_v63 = vld [vmem:[%s18247_s3 + $0xd8] sm:$0xff]  ;;  %v1470_v7 = vld [vmem:[%s18247_s3 + $0x110] sm:$0xff] }
 0x42f   : > { %v1219_v34 = vadd.f32 %v1218_v24, %v1217_v11  ;;  %v1222_v26 = vsel %vm619_vm14, %v1210_v25, 0.0  ;;  %v13650_v11 = vpack.c.bf16 %v615_v63, %v614_v10  ;;  %v616_v24 = vld [vmem:[%s18247_s3 + $0xe0] sm:$0xff]  ;;  %v13659_v10 = vpack.c.bf16 %v1470_v7, %v1469_v6  ;;  %v1474_v63 = vld [vmem:[%s18247_s3 + $0x130] sm:$0xff] }
 0x430   : > { %v1220_v35 = vsel %vm619_vm14, %v1209_v20, 0.0  ;;  %v617_v20 = vld [vmem:[%s18247_s3 + $0xe8] sm:$0xff] }
 0x431   : > { %v14161_v37 = vpop.eup %14160  ;;  %v1221_v49 = vadd.f32 %v1220_v35, %v1219_v34  ;;  %13651 = vmatpush3.bf16.msra.mxu0 %v13650_v11  ;;  %v13653_v25 = vpack.c.bf16 %v617_v20, %v616_v24  ;;  %v11401_v24 = vld [vmem:[%s18247_s3 + $0xf0] ss:$0 sm:$0xff] }
 0x432   : > { %v14163_v36 = vpop.eup %14162  ;;  %v1164_v33 = vmul.f32 %v14161_v37, %v15483_v40  ;;  %13652 = vmatprep.subr.bf16.mxu0 %v18251_v27  ;;  %v11399_v37 = vld [vmem:[%s18247_s3 + $0xc8] ss:$0 sm:$0xff] }
 0x433   : > { %v1163_v31 = vmul.f32 %v14163_v36, %v1101_v1  ;;  %v1223_v59 = vadd.f32 %v1222_v26, %v1221_v49  ;;  %v13644_v1 = vpack.c.bf16 %v606_v30, %v605_v53  ;;  %v1467_v30 = vld [vmem:[%s18247_s3 + $0xf8] sm:$0xff] }
 0x434   : > { %v1212_v51 = vmul.f32 %v15512_v62, %v1164_v33 }
 0x435   : > { %v1211_v5 = vmul.f32 %v15507_v28, %v1163_v31  ;;  %13654 = vmatpush3.bf16.msra.mxu0 %v13653_v25 }
 0x436   : > { %v1226_v40 = vsel %vm619_vm14, %v1212_v51, 0.0  ;;  %13661 = vmatprep.subr.bf16.mxu0 %v18251_v27 }
 0x437   : > { %v1224_v4 = vsel %vm619_vm14, %v1211_v5, 0.0 }
 0x438   : > { %v1225_v3 = vadd.f32 %v1224_v4, %v1223_v59  ;;  %v1468_v4 = vld [vmem:[%s18247_s3 + $0x100] sm:$0xff] }
 0x43a   : > { %v1227_v56 = vadd.f32 %v1226_v40, %v1225_v3  ;;  %v1471_v3 = vld [vmem:[%s18247_s3 + $0x118] sm:$0xff]  ;;  %v13656_v40 = vpack.c.bf16 %v1468_v4, %v1467_v30 }
 0x43b   : > { %v1475_v4 = vld [vmem:[%s18247_s3 + $0x138] sm:$0x3] }
 0x43c   : > { %12597 = vmatmul.mubr.msk.f32.vlgmr.msra.gmra.mrb[14].mxu1 %vm619_vm14, %v1227_v56 }
 0x43d   : > { %13645 = vmatpush3.bf16.msra.mxu1 %v13644_v1  ;;  %12607 = vmatprep.mubr.msk.f32.mxu1 %vm15072_vm11, %v18249_v13  ;;  %v1472_v1 = vld [vmem:[%s18247_s3 + $0x120] sm:$0xff] }
 0x43e   : > { %13646 = vmatprep.subr.bf16.mxu1 %v18251_v27  ;;  %v13662_v56 = vpack.c.bf16 %v1472_v1, %v1471_v3  ;;  %v1642_v3 = vrot.slane %v1475_v4, %v15394_v47 }
 0x440   : > { %v1644_v1 = vmul.f32 %v1642_v3, %v15385_v41  ;;  %v1643_v6 = vmul.f32 %v1642_v3, %v15406_v54 }
 0x441   : > { %13648 = vmatpush3.bf16.msra.mxu1 %v13647_v9  ;;  %v1473_v9 = vld [vmem:[%s18247_s3 + $0x128] sm:$0xff] }
 0x442   : > { %13655 = vmatprep.subr.bf16.mxu1 %v18251_v27  ;;  %v13665_v11 = vpack.c.bf16 %v1474_v63, %v1473_v9 }
 0x444   : > { %12608 = vmatmul.mubr.msk.f32.vlgmr.msra.gmra.mrb[16].mxu1 %vm619_vm14, %v15323_v8 }
 0x445   : > { %12629 = vmatprep.mubr.msk.f32.mxu1 %vm15072_vm11, %v18249_v13  ;;  %13657 = vmatpush3.bf16.msra.mxu1 %v13656_v40  ;;  %v1654_v40 = vrot.slane %v1475_v4, %v15397_v48  ;;  %v1647_v4 = vmul.f32 %v1642_v3, %v15402_v50 }
 0x446   : > { %13658 = vmatprep.subr.bf16.mxu1 %v18251_v27 }
 0x447   : > { %v1655_v7 = vmul.f32 %v1654_v40, %v15406_v54  ;;  %v1658_v63 = vmul.f32 %v1654_v40, %v15387_v43 }
 0x449   : > { %13660 = vmatpush3.bf16.msra.mxu1 %v13659_v10  ;;  %v1646_v10 = vmul.f32 %v1642_v3, %v15387_v43 }
 0x50f   : > { %v1297_v34 = vpop.f32.mrb[14].mxu1 }
 0x510   : > { %v12598_v35 = vpop.f32.mrb[15].mxu1 }
 0x517   : > { %v1367_v49 = vpop.f32.mrb[16].mxu1 }
 0x518   : > { %v1368_v36 = vadd.f32 %v1367_v49, %v1297_v34  ;;  %v12609_v26 = vpop.f32.mrb[17].mxu1 }
 0x51a   : > { %v1375_v33 = vadd.f32 %v11399_v37, %v1368_v36  ;;  %v15589_v37 = vpop.permute.xlu1 %1463 }
 0x51b   : > { %18297 = vst [vmem:[#allocation7_spill] sm:$0xff] %v15589_v37 }
 0x51c   : > { %v11400_v31 = vmul.f32 -1.442695, %v1375_v33 }
 0x51e   : > { %14164 = vpow2.f32 %v11400_v31 }
 0x528   : > { %v14165_v59 = vpop.eup %14164 }
 0x529   : > { %v1379_v5 = vadd.f32 1.0, %v14165_v59  ;;  %v1478_v59 = vld [vmem:[%s18247_s3 + $0x150] sm:$0xff] }
 0x52b   : > { %14166 = vrcp.f32 %v1379_v5 }
 0x535   : > { %v14167_v51 = vpop.eup %14166 }
 0x536   : > { %v1382_v53 = vmul.f32 %v14167_v51, %v1375_v33  ;;  %v1479_v51 = vld [vmem:[%s18247_s3 + $0x158] sm:$0xff] }
 0x538   : > { %12619 = vmatmul.mubr.msk.f32.vlgmr.msra.gmra.mrb[16].mxu0 %vm619_vm14, %v1382_v53  ;;  %v1480_v53 = vld [vmem:[%s18247_s3 + $0x160] sm:$0xff] }
 0x539   : > { %12640 = vmatprep.mubr.msk.f32.mxu0 %vm15072_vm11, %v18249_v13  ;;  %13663 = vmatpush3.bf16.msra.mxu0 %v13662_v56  ;;  %v13671_v30 = vpack.c.bf16 %v1480_v53, %v1479_v51  ;;  %v1656_v56 = vmul.f32 %v1654_v40, %v15385_v41 }
 0x53a   : > { %13664 = vmatprep.subr.bf16.mxu0 %v18251_v27 }
 0x53b   : > { %v1664_v9 = vadd.f32 %v1656_v56, %v1644_v1  ;;  %v1659_v1 = vmul.f32 %v1654_v40, %v15402_v50 }
 0x53d   : > { %13666 = vmatpush3.bf16.msra.mxu0 %v13665_v11  ;;  %v11413_v11 = vld [vmem:[%s18247_s3 + $0x140] ss:$0 sm:$0xff] }
 0x60b   : > { %v1456_v20 = vpop.f32.mrb[16].mxu0 }
 0x60c   : > { %v1457_v25 = vadd.f32 %v11401_v24, %v1456_v20  ;;  %v12620_v34 = vpop.f32.mrb[17].mxu0  ;;  %v1663_v20 = vadd.f32 %v1655_v7, %v1643_v6 }
 0x60d   : > { %v1657_v34 = vmul.f32 %v1654_v40, %v15389_v44 }
 0x60e   : > { %v1460_v35 = vadd.f32 %v1457_v25, %v15323_v8  ;;  %v1477_v8 = vld [vmem:[%s18247_s3 + $0x148] sm:$0xff]  ;;  %v1645_v25 = vmul.f32 %v1642_v3, %v15389_v44 }
 0x60f   : > { %v13667_v5 = vpack.c.bf16 %v1478_v59, %v1477_v8  ;;  %v1666_v8 = vadd.f32 %v1658_v63, %v1646_v10  ;;  %v1648_v59 = vmul.f32 %v1642_v3, %v15391_v46  ;;  %v1650_v63 = vmul.f32 %v1642_v3, %v15425_v32 }
 0x610   : > { %v15592_v49 = vmul.f32 %v15589_v37, %v1460_v35 }
 0x611   : > { %13668 = vmatprep.subr.bf16.mxu0 %v13667_v5 }
 0x612   : > { %12630 = vmatmul.mubr.msk.f32.vlgmr.msra.gmra.mrb[18].mxu1 %vm619_vm14, %v15592_v49  ;;  %12641 = vmatmul.mubr.msk.f32.vlgmr.msra.gmra.mrb[18].mxu0 %vm619_vm14, %v15592_v49 }
 0x613   : > { %12645 = vmatprep.mubr.msk.f32.mxu1 %vm309_vm1, %v15185_v14  ;;  %13670 = vmatpush3.bf16.msra.mxu0 %v13667_v5  ;;  %v1660_v5 = vmul.f32 %v1654_v40, %v15391_v46 }
 0x614   : > { %13672 = vmatprep.subr.bf16.mxu0 %v13671_v30 }
 0x617   : > { %13674 = vmatpush3.bf16.msra.mxu0 %v13671_v30  ;;  %v1665_v30 = vadd.f32 %v1657_v34, %v1645_v25  ;;  %v1668_v34 = vadd.f32 %v1660_v5, %v1648_v59 }
 0x618   : > { %13681 = vmatprep.subr.bf16.mxu0 %v18251_v27 }
 0x6e5   : > { %v15600_v36 = vpop.f32.mrb[18].mxu1  ;;  %v1635_v26 = vpop.f32.mrb[18].mxu0 }
 0x6e6   : > { %v12631_v33 = vpop.f32.mrb[19].mxu1  ;;  %v12642_v31 = vpop.f32.mrb[19].mxu0  ;;  %12643 = vmatprep.subr.mxu1 %v1635_v26 }
 0x6e7   : > { %12644 = vmatpush3.msra.mxu1 %v1635_v26 }
 0x6e8   : > { %12646 = vmatmul.mubr.msk.f32.vlgmr.msra.gmra.mrb[20].mxu1 %vm309_vm1, %v15192_v15  ;;  %13675 = vmatprep.subr.bf16.mxu1 %v18251_v27 }
 0x6e9   : > { %12648 = vmatprep.mubr.msk.f32.mxu1 %vm309_vm1, %v15200_v16 }
 0x6ec   : > { %12649 = vmatmul.mubr.msk.f32.gmra.mrb[22].mxu1 %vm309_vm1, %v15207_v17 }
 0x6ed   : > { %12651 = vmatprep.mubr.msk.f32.mxu1 %vm309_vm1, %v15212_v18 }
 0x6f0   : > { %12652 = vmatmul.mubr.msk.f32.gmra.mrb[24].mxu1 %vm309_vm1, %v15225_v21 }
 0x6f1   : > { %12654 = vmatprep.mubr.msk.f32.mxu1 %vm309_vm1, %v15217_v19 }
 0x6f4   : > { %12655 = vmatmul.mubr.msk.f32.gmra.mrb[26].mxu1 %vm309_vm1, %v15230_v22 }
 0x6f5   : > { %12685 = vmatprep.mubr.msk.f32.mxu1 %vm15072_vm11, %v18249_v13 }
 0x7bb   : > { %v12647_v24 = vpop.f32.mrb[20].mxu1 }
 0x7bc   : > { %v1743_v35 = vadd.f32 %v12647_v24, %v1664_v9  ;;  %v1737_v26 = vpop.f32.mrb[21].mxu1  ;;  %v1649_v24 = vmul.f32 %v1642_v3, %v15412_v61 }
 0x7bd   : > { %v1738_v33 = vadd.f32 %v1737_v26, %v1663_v20 }
 0x7be   : > { %v1781_v31 = vadd.f32 %v11413_v11, %v1743_v35  ;;  %v1662_v35 = vmul.f32 %v1654_v40, %v15425_v32 }
 0x7bf   : > { %v1780_v51 = vadd.f32 %v11413_v11, %v1738_v33  ;;  %v12650_v53 = vpop.f32.mrb[22].mxu1 }
 0x7c0   : > { %v15653_v56 = vadd.f32 %v1781_v31, %v15600_v36  ;;  %v1753_v6 = vadd.f32 %v12650_v53, %v1666_v8  ;;  %v1747_v7 = vpop.f32.mrb[23].mxu1  ;;  %v1667_v8 = vadd.f32 %v1659_v1, %v1647_v4  ;;  %v1661_v53 = vmul.f32 %v1654_v40, %v15412_v61 }
 0x7c1   : > { %v15656_v9 = vadd.f32 %v1780_v51, %v15600_v36  ;;  %v1748_v10 = vadd.f32 %v1747_v7, %v1665_v30  ;;  %v1670_v13 = vadd.f32 %v1662_v35, %v1650_v63 }
 0x7c2   : > { %v11415_v20 = vmul.f32 -1.442695, %v15653_v56  ;;  %v1783_v25 = vadd.f32 %v11413_v11, %v1753_v6  ;;  %v1669_v40 = vadd.f32 %v1661_v53, %v1649_v24 }
 0x7c3   : > { %v11414_v26 = vmul.f32 -1.442695, %v15656_v9  ;;  %v1782_v33 = vadd.f32 %v11413_v11, %v1748_v10  ;;  %v12653_v31 = vpop.f32.mrb[24].mxu1 }
 0x7c4   : > { %14168 = vpow2.f32 %v11415_v20  ;;  %v15665_v51 = vadd.f32 %v1783_v25, %v15600_v36  ;;  %v1763_v30 = vadd.f32 %v12653_v31, %v1668_v34  ;;  %v1757_v7 = vpop.f32.mrb[25].mxu1 }
 0x7c5   : > { %14170 = vpow2.f32 %v11414_v26  ;;  %v15668_v3 = vadd.f32 %v1782_v33, %v15600_v36  ;;  %v1758_v59 = vadd.f32 %v1757_v7, %v1667_v8 }
 0x7c6   : > { %v11417_v5 = vmul.f32 -1.442695, %v15665_v51  ;;  %v1785_v6 = vadd.f32 %v11413_v11, %v1763_v30 }
 0x7c7   : > { %v11416_v10 = vmul.f32 -1.442695, %v15668_v3  ;;  %v1784_v4 = vadd.f32 %v11413_v11, %v1758_v59  ;;  %v12656_v1 = vpop.f32.mrb[26].mxu1 }
 0x7c8   : > { %14172 = vpow2.f32 %v11417_v5  ;;  %v15673_v20 = vadd.f32 %v1785_v6, %v15600_v36  ;;  %v1773_v25 = vadd.f32 %v12656_v1, %v1670_v13  ;;  %v1767_v34 = vpop.f32.mrb[27].mxu1 }
 0x7c9   : > { %14174 = vpow2.f32 %v11416_v10  ;;  %v1792_v26 = vadd.f32 %v1784_v4, %v15600_v36  ;;  %v1768_v33 = vadd.f32 %v1767_v34, %v1669_v40 }
 0x7ca   : > { %v11419_v31 = vmul.f32 -1.442695, %v15673_v20  ;;  %v1787_v8 = vadd.f32 %v11413_v11, %v1773_v25 }
 0x7cb   : > { %v11418_v30 = vmul.f32 -1.442695, %v1792_v26  ;;  %v1786_v63 = vadd.f32 %v11413_v11, %v1768_v33 }
 0x7cc   : > { %14176 = vpow2.f32 %v11419_v31  ;;  %v1795_v35 = vadd.f32 %v1787_v8, %v15600_v36  ;;  %v1482_v31 = vld [vmem:[%s18247_s3 + $0x170] sm:$0xff]  ;;  %v1483_v8 = vld [vmem:[%s18247_s3 + $0x178] sm:$0xff] }
 0x7cd   : > { %14178 = vpow2.f32 %v11418_v30  ;;  %v1794_v24 = vadd.f32 %v1786_v63, %v15600_v36 }
 0x7ce   : > { %v14169_v53 = vpop.eup %14168  ;;  %v11421_v7 = vmul.f32 -1.442695, %v1795_v35 }
 0x7cf   : > { %v14171_v59 = vpop.eup %14170  ;;  %v1821_v13 = vadd.f32 1.0, %v14169_v53  ;;  %v11420_v5 = vmul.f32 -1.442695, %v1794_v24 }
 0x7d0   : > { %v1820_v6 = vadd.f32 1.0, %v14171_v59  ;;  %14180 = vpow2.f32 %v11421_v7 }
 0x7d1   : > { %14182 = vrcp.f32 %v1821_v13  ;;  %v13682_v13 = vpack.c.bf16 %v1483_v8, %v1482_v31 }
 0x7d2   : > { %v14173_v10 = vpop.eup %14172  ;;  %14184 = vrcp.f32 %v1820_v6 }
 0x7d3   : > { %v14175_v4 = vpop.eup %14174  ;;  %v1823_v1 = vadd.f32 1.0, %v14173_v10  ;;  %14186 = vpow2.f32 %v11420_v5  ;;  %v1484_v10 = vld [vmem:[%s18247_s3 + $0x180] sm:$0xff] }
 0x7d4   : > { %v1822_v11 = vadd.f32 1.0, %v14175_v4  ;;  %v1485_v4 = vld [vmem:[%s18247_s3 + $0x188] sm:$0xff] }
 0x7d5   : > { %14188 = vrcp.f32 %v1823_v1 }
 0x7d6   : > { %v14177_v40 = vpop.eup %14176  ;;  %14190 = vrcp.f32 %v1822_v11 }
 0x7d7   : > { %v14179_v25 = vpop.eup %14178  ;;  %v1825_v34 = vadd.f32 1.0, %v14177_v40 }
 0x7d8   : > { %v1824_v36 = vadd.f32 1.0, %v14179_v25 }
 0x7d9   : > { %14192 = vrcp.f32 %v1825_v34 }
 0x7da   : > { %v14181_v33 = vpop.eup %14180  ;;  %14194 = vrcp.f32 %v1824_v36 }
 0x7db   : > { %v14183_v30 = vpop.eup %14182  ;;  %v1827_v63 = vadd.f32 1.0, %v14181_v33 }
 0x7dc   : > { %v14185_v53 = vpop.eup %14184  ;;  %v1845_v5 = vmul.f32 %v14183_v30, %v15653_v56  ;;  %v13685_v56 = vpack.c.bf16 %v1485_v4, %v1484_v10  ;;  %v18298_v30 = vmov 0.0  }
 0x7dd   : > { %v14187_v7 = vpop.eup %14186  ;;  %v1844_v59 = vmul.f32 %v14185_v53, %v15656_v9  ;;  %14196 = vrcp.f32 %v1827_v63  ;;  %v1489_v63 = vld [vmem:[%s18247_s3 + $0x1a8] sm:$0xff] }
 0x7de   : > { %v1826_v6 = vadd.f32 1.0, %v14187_v7  ;;  %v11422_v7 = vld [vmem:[%s18247_s3 + $0x168] ss:$0 sm:$0xff] }
 0x7df   : > { %v14189_v1 = vpop.eup %14188  ;;  %12665 = vmatprep.mubr.msk.f32.mxu0 %vm619_vm14, %v1844_v59 }
 0x7e0   : > { %v14191_v11 = vpop.eup %14190  ;;  %14198 = vrcp.f32 %v1826_v6  ;;  %12666 = vmatmul.mubr.msk.f32.vlgmr.msra.gmra.mrb[20].mxu0 %vm619_vm14, %v1845_v5  ;;  %v1847_v40 = vmul.f32 %v14189_v1, %v15665_v51 }
 0x7e1   : > { %v1846_v9 = vmul.f32 %v14191_v11, %v15668_v3  ;;  %13683 = vmatpush3.bf16.msra.mxu0 %v13682_v13 }
 0x7e2   : > { %13684 = vmatprep.subr.bf16.mxu0 %v18251_v27 }
 0x7e3   : > { %v14193_v25 = vpop.eup %14192  ;;  %12668 = vmatprep.mubr.msk.f32.mxu0 %vm619_vm14, %v1846_v9 }
 0x7e4   : > { %v14195_v34 = vpop.eup %14194  ;;  %12669 = vmatmul.mubr.msk.f32.gmra.mrb[22].mxu0 %vm619_vm14, %v1847_v40  ;;  %v1849_v33 = vmul.f32 %v14193_v25, %v15673_v20  ;;  %v1486_v20 = vld [vmem:[%s18247_s3 + $0x190] sm:$0xff] }
 0x7e5   : > { %v1848_v36 = vmul.f32 %v14195_v34, %v1792_v26  ;;  %13686 = vmatpush3.bf16.msra.mxu0 %v13685_v56  ;;  %v1487_v26 = vld [vmem:[%s18247_s3 + $0x198] sm:$0xff] }
 0x7e6   : > { %13693 = vmatprep.subr.bf16.mxu0 %v18251_v27 }
 0x7e7   : > { %12671 = vmatprep.mubr.msk.f32.mxu0 %vm619_vm14, %v1848_v36  ;;  %v14197_v3 = vpop.eup %14196 }
 0x7e8   : > { %12672 = vmatmul.mubr.msk.f32.gmra.mrb[24].mxu0 %vm619_vm14, %v1849_v33  ;;  %v1851_v8 = vmul.f32 %v14197_v3, %v1795_v35  ;;  %v13676_v35 = vpack.c.bf16 %v1487_v26, %v1486_v20 }
 0x7ea   : > { %v14199_v51 = vpop.eup %14198  ;;  %13677 = vmatpush3.bf16.msra.mxu1 %v13676_v35 }
 0x7eb   : > { %v1850_v31 = vmul.f32 %v14199_v51, %v1794_v24  ;;  %13678 = vmatprep.subr.bf16.mxu1 %v18251_v27  ;;  %v1488_v24 = vld [vmem:[%s18247_s3 + $0x1a0] sm:$0xff] }
 0x7ec   : > { %v13679_v53 = vpack.c.bf16 %v1489_v63, %v1488_v24 }
 0x7ed   : > { %12674 = vmatprep.mubr.msk.f32.mxu0 %vm619_vm14, %v1850_v31 }
 0x7ee   : > { %12675 = vmatmul.mubr.msk.f32.gmra.mrb[26].mxu0 %vm619_vm14, %v1851_v8  ;;  %13680 = vmatpush3.bf16.msra.mxu1 %v13679_v53 }
 0x7ef   : > { %12696 = vmatprep.mubr.msk.f32.mxu0 %vm15072_vm11, %v18298_v30  ;;  %13687 = vmatprep.subr.bf16.mxu1 %v18251_v27 }
 0x7f2   : > { %12697 = vmatmul.mubr.msk.f32.vlgmr.msra.gmra.mrb[28].mxu0 %vm619_vm14, %v15592_v49 }
 0x7f3   : > { %12718 = vmatprep.mubr.msk.f32.mxu0 %vm15072_vm11, %v18298_v30 }
 0x8b3   : > { %v12667_v59 = vpop.f32.mrb[20].mxu0 }
 0x8b4   : > { %v1952_v13 = vadd.f32 %v12667_v59, %v11422_v7  ;;  %v1946_v5 = vpop.f32.mrb[21].mxu0 }
 0x8b5   : > { %v1947_v6 = vadd.f32 %v11422_v7, %v1946_v5 }
 0x8b6   : > { %v11432_v10 = vmul.f32 -1.442695, %v1952_v13 }
 0x8b7   : > { %v11431_v4 = vmul.f32 -1.442695, %v1947_v6  ;;  %v12670_v1 = vpop.f32.mrb[22].mxu0 }
 0x8b8   : > { %14200 = vpow2.f32 %v11432_v10  ;;  %v1962_v11 = vadd.f32 %v12670_v1, %v11422_v7  ;;  %v1956_v9 = vpop.f32.mrb[23].mxu0 }
 0x8b9   : > { %14202 = vpow2.f32 %v11431_v4  ;;  %v1957_v56 = vadd.f32 %v11422_v7, %v1956_v9 }
 0x8ba   : > { %v11434_v40 = vmul.f32 -1.442695, %v1962_v11 }
 0x8bb   : > { %v11433_v25 = vmul.f32 -1.442695, %v1957_v56  ;;  %v12673_v34 = vpop.f32.mrb[24].mxu0 }
 0x8bc   : > { %14204 = vpow2.f32 %v11434_v40  ;;  %v1972_v36 = vadd.f32 %v12673_v34, %v11422_v7  ;;  %v1966_v33 = vpop.f32.mrb[25].mxu0 }
 0x8bd   : > { %14206 = vpow2.f32 %v11433_v25  ;;  %v1967_v3 = vadd.f32 %v11422_v7, %v1966_v33 }
 0x8be   : > { %v11436_v51 = vmul.f32 -1.442695, %v1972_v36 }
 0x8bf   : > { %v11435_v31 = vmul.f32 -1.442695, %v1967_v3 }
 0x8c0   : > { %14208 = vpow2.f32 %v11436_v51 }
 0x8c1   : > { %14210 = vpow2.f32 %v11435_v31  ;;  %v12676_v8 = vpop.f32.mrb[26].mxu0 }
 0x8c2   : > { %v14201_v20 = vpop.eup %14200  ;;  %v1982_v26 = vadd.f32 %v12676_v8, %v11422_v7  ;;  %v1976_v35 = vpop.f32.mrb[27].mxu0 }
 0x8c3   : > { %v14203_v24 = vpop.eup %14202  ;;  %v2010_v63 = vadd.f32 1.0, %v14201_v20  ;;  %v1977_v53 = vadd.f32 %v11422_v7, %v1976_v35 }
 0x8c4   : > { %v2009_v59 = vadd.f32 1.0, %v14203_v24  ;;  %v11438_v5 = vmul.f32 -1.442695, %v1982_v26 }
 0x8c5   : > { %14212 = vrcp.f32 %v2010_v63  ;;  %v11437_v10 = vmul.f32 -1.442695, %v1977_v53  ;;  %v15729_v4 = vpop.f32.mrb[28].mxu0 }
 0x8c6   : > { %v14205_v1 = vpop.eup %14204  ;;  %14214 = vrcp.f32 %v2009_v59  ;;  %v12698_v9 = vpop.f32.mrb[29].mxu0 }
 0x8c7   : > { %v14207_v40 = vpop.eup %14206  ;;  %v2012_v25 = vadd.f32 1.0, %v14205_v1  ;;  %14216 = vpow2.f32 %v11438_v5 }
 0x8c8   : > { %v2011_v34 = vadd.f32 1.0, %v14207_v40  ;;  %14218 = vpow2.f32 %v11437_v10 }
 0x8c9   : > { %14220 = vrcp.f32 %v2012_v25 }
 0x8ca   : > { %v14209_v33 = vpop.eup %14208  ;;  %14222 = vrcp.f32 %v2011_v34 }
 0x8cb   : > { %v14211_v51 = vpop.eup %14210  ;;  %v2014_v31 = vadd.f32 1.0, %v14209_v33 }
 0x8cc   : > { %v2013_v7 = vadd.f32 1.0, %v14211_v51 }
 0x8cd   : > { %14224 = vrcp.f32 %v2014_v31 }
 0x8ce   : > { %14226 = vrcp.f32 %v2013_v7 }
 0x8cf   : > { %v14213_v8 = vpop.eup %14212 }
 0x8d0   : > { %v14215_v20 = vpop.eup %14214  ;;  %v2034_v35 = vmul.f32 %v14213_v8, %v1952_v13 }
 0x8d1   : > { %v14217_v24 = vpop.eup %14216  ;;  %v2033_v63 = vmul.f32 %v14215_v20, %v1947_v6 }
 0x8d2   : > { %v14219_v59 = vpop.eup %14218  ;;  %v2042_v9 = vmul.f32 %v2034_v35, %v15492_v23  ;;  %v2016_v1 = vadd.f32 1.0, %v14217_v24 }
 0x8d3   : > { %v14221_v5 = vpop.eup %14220  ;;  %v2041_v10 = vmul.f32 %v2033_v63, %v15480_v29  ;;  %v2015_v40 = vadd.f32 1.0, %v14219_v59 }
 0x8d4   : > { %v14223_v25 = vpop.eup %14222  ;;  %v2050_v34 = vsel %vm619_vm14, %v2042_v9, 0.0  ;;  %v2036_v33 = vmul.f32 %v14221_v5, %v1962_v11  ;;  %14228 = vrcp.f32 %v2016_v1 }
 0x8d5   : > { %v2049_v51 = vsel %vm619_vm14, %v2041_v10, 0.0  ;;  %v2035_v31 = vmul.f32 %v14223_v25, %v1957_v56  ;;  %14230 = vrcp.f32 %v2015_v40 }
 0x8d6   : > { %v2051_v13 = vadd.f32 %v2050_v34, %v2049_v51  ;;  %v2044_v6 = vmul.f32 %v2036_v33, %v15488_v0 }
 0x8d7   : > { %v14225_v7 = vpop.eup %14224  ;;  %v2043_v8 = vmul.f32 %v2035_v31, %v15485_v57 }
 0x8d8   : > { %v14227_v20 = vpop.eup %14226  ;;  %v2038_v35 = vmul.f32 %v14225_v7, %v1972_v36  ;;  %v2054_v9 = vsel %vm619_vm14, %v2044_v6, 0.0 }
 0x8d9   : > { %v2052_v24 = vsel %vm619_vm14, %v2043_v8, 0.0  ;;  %v2037_v63 = vmul.f32 %v14227_v20, %v1967_v3 }
 0x8da   : > { %v2053_v59 = vadd.f32 %v2052_v24, %v2051_v13  ;;  %v2046_v11 = vmul.f32 %v2038_v35, %v15498_v39  ;;  %v1493_v35 = vld [vmem:[%s18247_s3 + $0x1c8] sm:$0xff]  ;;  %v1494_v24 = vld [vmem:[%s18247_s3 + $0x1d0] sm:$0xff] }
 0x8db   : > { %v2045_v1 = vmul.f32 %v2037_v63, %v15490_v12  ;;  %v13691_v63 = vpack.c.bf16 %v1494_v24, %v1493_v35 }
 0x8dc   : > { %v2055_v56 = vadd.f32 %v2054_v9, %v2053_v59  ;;  %v2058_v34 = vsel %vm619_vm14, %v2046_v11, 0.0  ;;  %v11441_v59 = vld [vmem:[%s18247_s3 + $0x1b0] ss:$0 sm:$0xff] }
 0x8dd   : > { %v2056_v5 = vsel %vm619_vm14, %v2045_v1, 0.0 }
 0x8de   : > { %v14229_v10 = vpop.eup %14228  ;;  %v2057_v40 = vadd.f32 %v2056_v5, %v2055_v56 }
 0x8df   : > { %v14231_v25 = vpop.eup %14230  ;;  %v2040_v33 = vmul.f32 %v14229_v10, %v1982_v26  ;;  %v1491_v26 = vld [vmem:[%s18247_s3 + $0x1b8] sm:$0xff] }
 0x8e0   : > { %v2039_v36 = vmul.f32 %v14231_v25, %v1977_v53  ;;  %v2059_v51 = vadd.f32 %v2058_v34, %v2057_v40  ;;  %v1492_v53 = vld [vmem:[%s18247_s3 + $0x1c0] sm:$0xff] }
 0x8e1   : > { %v2048_v3 = vmul.f32 %v2040_v33, %v15512_v62  ;;  %v13688_v20 = vpack.c.bf16 %v1492_v53, %v1491_v26  ;;  %v2298_v33 = vld [vmem:[%s18247_s3 + $0x1e0] sm:$0xff]  ;;  %v2305_v26 = vld [vmem:[%s18247_s3 + $0x218] sm:$0xff] }
 0x8e2   : > { %v2047_v31 = vmul.f32 %v2039_v36, %v15507_v28  ;;  %v2302_v36 = vld [vmem:[%s18247_s3 + $0x200] sm:$0xff] }
 0x8e3   : > { %v2062_v6 = vsel %vm619_vm14, %v2048_v3, 0.0  ;;  %v2303_v3 = vld [vmem:[%s18247_s3 + $0x208] sm:$0xff] }
 0x8e4   : > { %v2060_v13 = vsel %vm619_vm14, %v2047_v31, 0.0  ;;  %v13700_v31 = vpack.c.bf16 %v2303_v3, %v2302_v36 }
 0x8e5   : > { %v2061_v7 = vadd.f32 %v2060_v13, %v2059_v51  ;;  %v2300_v13 = vld [vmem:[%s18247_s3 + $0x1f0] sm:$0xff] }
 0x8e7   : > { %v2063_v8 = vadd.f32 %v2062_v6, %v2061_v7  ;;  %v2301_v7 = vld [vmem:[%s18247_s3 + $0x1f8] sm:$0xff]  ;;  %v2304_v6 = vld [vmem:[%s18247_s3 + $0x210] sm:$0xff] }
 0x8e8   : > { %v13703_v53 = vpack.c.bf16 %v2305_v26, %v2304_v6 }
 0x8e9   : > { %12686 = vmatmul.mubr.msk.f32.vlgmr.msra.gmra.mrb[28].mxu1 %vm619_vm14, %v2063_v8  ;;  %v13697_v8 = vpack.c.bf16 %v2301_v7, %v2300_v13 }
 0x8ea   : > { %12707 = vmatprep.mubr.msk.f32.mxu1 %vm15072_vm11, %v18298_v30  ;;  %13689 = vmatpush3.bf16.msra.mxu1 %v13688_v20  ;;  %v11443_v20 = vld [vmem:[%s18247_s3 + $0x1d8] ss:$0 sm:$0xff] }
 0x8eb   : > { %13690 = vmatprep.subr.bf16.mxu1 %v18251_v27 }
 0x8ee   : > { %13692 = vmatpush3.bf16.msra.mxu1 %v13691_v63 }
 0x8ef   : > { %13699 = vmatprep.subr.bf16.mxu1 %v18251_v27 }
 0x9bc   : > { %v2133_v9 = vpop.f32.mrb[28].mxu1 }
 0x9bd   : > { %v2204_v11 = vadd.f32 %v15729_v4, %v2133_v9  ;;  %v12687_v1 = vpop.f32.mrb[29].mxu1  ;;  %v2299_v4 = vld [vmem:[%s18247_s3 + $0x1e8] sm:$0xff] }
 0x9be   : > { %v13694_v51 = vpack.c.bf16 %v2299_v4, %v2298_v33  ;;  %v2306_v4 = vld [vmem:[%s18247_s3 + $0x220] sm:$0x3] }
 0x9bf   : > { %v2211_v56 = vadd.f32 %v11441_v59, %v2204_v11  ;;  %v2463_v36 = vrot.slane %v2306_v4, %v15394_v47 }
 0x9c0   : > { %13695 = vmatpush3.bf16.msra.mxu0 %v13694_v51  ;;  %v2475_v51 = vrot.slane %v2306_v4, %v15397_v48 }
 0x9c1   : > { %v11442_v5 = vmul.f32 -1.442695, %v2211_v56  ;;  %13696 = vmatprep.subr.bf16.mxu0 %v18251_v27  ;;  %v2465_v3 = vmul.f32 %v2463_v36, %v15385_v41  ;;  %v2464_v13 = vmul.f32 %v2463_v36, %v15406_v54  ;;  %v2468_v4 = vmul.f32 %v2463_v36, %v15402_v50 }
 0x9c2   : > { %v2476_v7 = vmul.f32 %v2475_v51, %v15406_v54  ;;  %v2479_v26 = vmul.f32 %v2475_v51, %v15387_v43 }
 0x9c3   : > { %14232 = vpow2.f32 %v11442_v5 }
 0x9c4   : > { %13698 = vmatpush3.bf16.msra.mxu0 %v13697_v8  ;;  %v2467_v8 = vmul.f32 %v2463_v36, %v15387_v43 }
 0x9cd   : > { %v14233_v10 = vpop.eup %14232 }
 0x9ce   : > { %v2215_v40 = vadd.f32 1.0, %v14233_v10  ;;  %v2309_v10 = vld [vmem:[%s18247_s3 + $0x238] sm:$0xff] }
 0x9d0   : > { %14234 = vrcp.f32 %v2215_v40 }
 0x9da   : > { %v14235_v25 = vpop.eup %14234 }
 0x9db   : > { %v2218_v34 = vmul.f32 %v14235_v25, %v2211_v56  ;;  %v2310_v25 = vld [vmem:[%s18247_s3 + $0x240] sm:$0xff] }
 0x9dd   : > { %12708 = vmatmul.mubr.msk.f32.vlgmr.msra.gmra.mrb[30].mxu1 %vm619_vm14, %v2218_v34  ;;  %v2311_v34 = vld [vmem:[%s18247_s3 + $0x248] sm:$0xff] }
 0x9de   : > { %12729 = vmatprep.mubr.msk.f32.mxu1 %vm15072_vm11, %v18298_v30  ;;  %13701 = vmatpush3.bf16.msra.mxu1 %v13700_v31  ;;  %v13709_v33 = vpack.c.bf16 %v2311_v34, %v2310_v25  ;;  %v2477_v31 = vmul.f32 %v2475_v51, %v15385_v41 }
 0x9df   : > { %13702 = vmatprep.subr.bf16.mxu1 %v18251_v27 }
 0x9e0   : > { %v2485_v6 = vadd.f32 %v2477_v31, %v2465_v3  ;;  %v2480_v3 = vmul.f32 %v2475_v51, %v15402_v50 }
 0x9e2   : > { %13704 = vmatpush3.bf16.msra.mxu1 %v13703_v53  ;;  %v11455_v53 = vld [vmem:[%s18247_s3 + $0x228] ss:$0 sm:$0xff] }
 0xab0   : > { %v2292_v35 = vpop.f32.mrb[30].mxu1 }
 0xab1   : > { %v2293_v24 = vadd.f32 %v11443_v20, %v2292_v35  ;;  %v12709_v63 = vpop.f32.mrb[31].mxu1  ;;  %v2484_v35 = vadd.f32 %v2476_v7, %v2464_v13 }
 0xab2   : > { %v2478_v63 = vmul.f32 %v2475_v51, %v15389_v44 }
 0xab3   : > { %v2296_v59 = vadd.f32 %v2293_v24, %v15592_v49  ;;  %v2308_v49 = vld [vmem:[%s18247_s3 + $0x230] sm:$0xff]  ;;  %v2466_v24 = vmul.f32 %v2463_v36, %v15389_v44 }
 0xab4   : > { %v13705_v40 = vpack.c.bf16 %v2309_v10, %v2308_v49  ;;  %v2487_v49 = vadd.f32 %v2479_v26, %v2467_v8  ;;  %v2469_v10 = vmul.f32 %v2463_v36, %v15391_v46  ;;  %v2471_v26 = vmul.f32 %v2463_v36, %v15425_v32 }
 0xab5   : > { %v15802_v9 = vmul.f32 %v2296_v59, %v15589_v37 }
 0xab6   : > { %13706 = vmatprep.subr.bf16.mxu1 %v13705_v40 }
 0xab7   : > { %12719 = vmatmul.mubr.msk.f32.vlgmr.msra.gmra.mrb[30].mxu0 %vm619_vm14, %v15802_v9  ;;  %12730 = vmatmul.mubr.msk.f32.vlgmr.msra.gmra.mrb[32].mxu1 %vm619_vm14, %v15802_v9 }
 0xab8   : > { %12734 = vmatprep.mubr.msk.f32.mxu0 %vm309_vm1, %v15185_v14  ;;  %13708 = vmatpush3.bf16.msra.mxu1 %v13705_v40  ;;  %v2481_v40 = vmul.f32 %v2475_v51, %v15391_v46 }
 0xab9   : > { %13710 = vmatprep.subr.bf16.mxu1 %v13709_v33 }
 0xabc   : > { %13712 = vmatpush3.bf16.msra.mxu1 %v13709_v33  ;;  %v2486_v33 = vadd.f32 %v2478_v63, %v2466_v24  ;;  %v2489_v63 = vadd.f32 %v2481_v40, %v2469_v10 }
 0xb8a   : > { %v15810_v11 = vpop.f32.mrb[30].mxu0  ;;  %v2456_v1 = vpop.f32.mrb[32].mxu1 }
 0xb8b   : > { %v12720_v56 = vpop.f32.mrb[31].mxu0  ;;  %v12731_v5 = vpop.f32.mrb[33].mxu1  ;;  %12732 = vmatprep.subr.mxu0 %v2456_v1 }
 0xb8c   : > { %12733 = vmatpush3.msra.mxu0 %v2456_v1 }
 0xb8d   : > { %12735 = vmatmul.mubr.msk.f32.vlgmr.msra.gmra.mrb[32].mxu0 %vm309_vm1, %v15192_v15 }
 0xb8e   : > { %12737 = vmatprep.mubr.msk.f32.mxu0 %vm309_vm1, %v15200_v16 }
 0xb91   : > { %12738 = vmatmul.mubr.msk.f32.gmra.mrb[34].mxu0 %vm309_vm1, %v15207_v17 }
 0xb92   : > { %12740 = vmatprep.mubr.msk.f32.mxu0 %vm309_vm1, %v15212_v18 }
 0xb95   : > { %12741 = vmatmul.mubr.msk.f32.gmra.mrb[36].mxu0 %vm309_vm1, %v15225_v21 }
 0xb96   : > { %12743 = vmatprep.mubr.msk.f32.mxu0 %vm309_vm1, %v15217_v19 }
 0xb99   : > { %12744 = vmatmul.mubr.msk.f32.gmra.mrb[38].mxu0 %vm309_vm1, %v15230_v22 }
 0xc60   : > { %v12736_v20 = vpop.f32.mrb[32].mxu0 }
 0xc61   : > { %v2564_v59 = vadd.f32 %v12736_v20, %v2485_v6  ;;  %v2558_v1 = vpop.f32.mrb[33].mxu0  ;;  %v2470_v20 = vmul.f32 %v2463_v36, %v15412_v61 }
 0xc62   : > { %v2559_v56 = vadd.f32 %v2558_v1, %v2484_v35 }
 0xc63   : > { %v2602_v5 = vadd.f32 %v11455_v53, %v2564_v59  ;;  %v2483_v59 = vmul.f32 %v2475_v51, %v15425_v32 }
 0xc64   : > { %v2601_v25 = vadd.f32 %v11455_v53, %v2559_v56  ;;  %v12739_v34 = vpop.f32.mrb[34].mxu0 }
 0xc65   : > { %v15859_v31 = vadd.f32 %v2602_v5, %v15810_v11  ;;  %v2574_v13 = vadd.f32 %v12739_v34, %v2487_v49  ;;  %v2568_v7 = vpop.f32.mrb[35].mxu0  ;;  %v2488_v49 = vadd.f32 %v2480_v3, %v2468_v4  ;;  %v2482_v34 = vmul.f32 %v2475_v51, %v15412_v61 }
 0xc66   : > { %v15862_v6 = vadd.f32 %v2601_v25, %v15810_v11  ;;  %v2569_v8 = vadd.f32 %v2568_v7, %v2486_v33  ;;  %v2491_v27 = vadd.f32 %v2483_v59, %v2471_v26 }
 0xc67   : > { %v11457_v35 = vmul.f32 -1.442695, %v15859_v31  ;;  %v2604_v24 = vadd.f32 %v11455_v53, %v2574_v13  ;;  %v2490_v4 = vadd.f32 %v2482_v34, %v2470_v20 }
 0xc68   : > { %v11456_v1 = vmul.f32 -1.442695, %v15862_v6  ;;  %v2603_v56 = vadd.f32 %v11455_v53, %v2569_v8  ;;  %v12742_v5 = vpop.f32.mrb[36].mxu0 }
 0xc69   : > { %14236 = vpow2.f32 %v11457_v35  ;;  %v15871_v25 = vadd.f32 %v2604_v24, %v15810_v11  ;;  %v2584_v33 = vadd.f32 %v12742_v5, %v2489_v63  ;;  %v2578_v7 = vpop.f32.mrb[37].mxu0 }
 0xc6a   : > { %14238 = vpow2.f32 %v11456_v1  ;;  %v2611_v36 = vadd.f32 %v2603_v56, %v15810_v11  ;;  %v2579_v13 = vadd.f32 %v2578_v7, %v2488_v49 }
 0xc6b   : > { %v11459_v10 = vmul.f32 -1.442695, %v15871_v25  ;;  %v2606_v40 = vadd.f32 %v11455_v53, %v2584_v33 }
 0xc6c   : > { %v11458_v28 = vmul.f32 -1.442695, %v2611_v36  ;;  %v2605_v8 = vadd.f32 %v11455_v53, %v2579_v13  ;;  %v12745_v62 = vpop.f32.mrb[38].mxu0 }
 0xc6d   : > { %14240 = vpow2.f32 %v11459_v10  ;;  %v2614_v51 = vadd.f32 %v2606_v40, %v15810_v11  ;;  %v2594_v3 = vadd.f32 %v12745_v62, %v2491_v27  ;;  %v2588_v35 = vpop.f32.mrb[39].mxu0 }
 0xc6e   : > { %14242 = vpow2.f32 %v11458_v28  ;;  %v2613_v24 = vadd.f32 %v2605_v8, %v15810_v11  ;;  %v2589_v63 = vadd.f32 %v2588_v35, %v2490_v4 }
 0xc6f   : > { %v11461_v1 = vmul.f32 -1.442695, %v2614_v51  ;;  %v2608_v56 = vadd.f32 %v11455_v53, %v2594_v3 }
 0xc70   : > { %v11460_v5 = vmul.f32 -1.442695, %v2613_v24  ;;  %v2607_v49 = vadd.f32 %v11455_v53, %v2589_v63 }
 0xc71   : > { %14244 = vpow2.f32 %v11461_v1  ;;  %v2616_v26 = vadd.f32 %v2608_v56, %v15810_v11 }
 0xc72   : > { %14246 = vpow2.f32 %v11460_v5  ;;  %v2615_v59 = vadd.f32 %v2607_v49, %v15810_v11 }
 0xc73   : > { %v14237_v20 = vpop.eup %14236  ;;  %v11463_v34 = vmul.f32 -1.442695, %v2616_v26 }
 0xc74   : > { %v14239_v33 = vpop.eup %14238  ;;  %v2642_v7 = vadd.f32 1.0, %v14237_v20  ;;  %v11462_v27 = vmul.f32 -1.442695, %v2615_v59 }
 0xc75   : > { %v2641_v62 = vadd.f32 1.0, %v14239_v33  ;;  %14248 = vpow2.f32 %v11463_v34 }
 0xc76   : > { %14250 = vrcp.f32 %v2642_v7 }
 0xc77   : > { %v14241_v28 = vpop.eup %14240  ;;  %14252 = vrcp.f32 %v2641_v62 }
 0xc78   : > { %v14243_v13 = vpop.eup %14242  ;;  %v2644_v10 = vadd.f32 1.0, %v14241_v28  ;;  %14254 = vpow2.f32 %v11462_v27 }
 0xc79   : > { %v2643_v53 = vadd.f32 1.0, %v14243_v13 }
 0xc7a   : > { %14256 = vrcp.f32 %v2644_v10 }
 0xc7b   : > { %v14245_v40 = vpop.eup %14244  ;;  %14258 = vrcp.f32 %v2643_v53 }
 0xc7c   : > { %v14247_v8 = vpop.eup %14246  ;;  %v2646_v4 = vadd.f32 1.0, %v14245_v40 }
 0xc7d   : > { %v2645_v11 = vadd.f32 1.0, %v14247_v8  ;;  %v18299_v8 = vmov 0.0|0.0  }
 0xc7e   : > { %14260 = vrcp.f32 %v2646_v4  ;;  %v11464_v4 = vld [vmem:[%s18247_s3 + $0x250] ss:$0 sm:$0xff] }
 0xc7f   : > { %v14249_v3 = vpop.eup %14248  ;;  %14262 = vrcp.f32 %v2645_v11 }
 0xc80   : > { %v14251_v35 = vpop.eup %14250  ;;  %v2648_v63 = vadd.f32 1.0, %v14249_v3 }
 0xc81   : > { %v14253_v1 = vpop.eup %14252  ;;  %v2666_v49 = vmul.f32 %v14251_v35, %v15859_v31 }
 0xc82   : > { %v14255_v56 = vpop.eup %14254  ;;  %v2665_v5 = vmul.f32 %v14253_v1, %v15862_v6  ;;  %14264 = vrcp.f32 %v2648_v63 }
 0xc83   : > { %v2647_v20 = vadd.f32 1.0, %v14255_v56 }
 0xc84   : > { %v14257_v34 = vpop.eup %14256  ;;  %12754 = vmatprep.mubr.msk.f32.mxu1 %vm619_vm14, %v2665_v5 }
 0xc85   : > { %v14259_v33 = vpop.eup %14258  ;;  %14266 = vrcp.f32 %v2647_v20  ;;  %12755 = vmatmul.mubr.msk.f32.vlgmr.msra.gmra.mrb[34].mxu1 %vm619_vm14, %v2666_v49  ;;  %v2668_v27 = vmul.f32 %v14257_v34, %v15871_v25  ;;  %v2313_v25 = vld [vmem:[%s18247_s3 + $0x258] sm:$0xff] }
 0xc86   : > { %v2667_v7 = vmul.f32 %v14259_v33, %v2611_v36  ;;  %v2314_v36 = vld [vmem:[%s18247_s3 + $0x260] sm:$0xff] }
 0xc88   : > { %v14261_v62 = vpop.eup %14260  ;;  %12757 = vmatprep.mubr.msk.f32.mxu1 %vm619_vm14, %v2667_v7 }
 0xc89   : > { %v14263_v28 = vpop.eup %14262  ;;  %12758 = vmatmul.mubr.msk.f32.gmra.mrb[36].mxu1 %vm619_vm14, %v2668_v27  ;;  %v2670_v31 = vmul.f32 %v14261_v62, %v2614_v51  ;;  %v13713_v51 = vpack.c.bf16 %v2314_v36, %v2313_v25 }
 0xc8a   : > { %v2669_v6 = vmul.f32 %v14263_v28, %v2613_v24  ;;  %v2315_v24 = vld [vmem:[%s18247_s3 + $0x268] sm:$0xff] }
 0xc8b   : > { %13714 = vmatprep.subr.bf16.mxu0 %v13713_v51 }
 0xc8c   : > { %12760 = vmatprep.mubr.msk.f32.mxu1 %vm619_vm14, %v2669_v6  ;;  %v14265_v13 = vpop.eup %14264  ;;  %13716 = vmatpush3.bf16.msra.mxu0 %v13713_v51 }
 0xc8d   : > { %12761 = vmatmul.mubr.msk.f32.gmra.mrb[38].mxu1 %vm619_vm14, %v2670_v31  ;;  %v2672_v40 = vmul.f32 %v14265_v13, %v2616_v26  ;;  %v2316_v26 = vld [vmem:[%s18247_s3 + $0x270] sm:$0xff] }
 0xc8f   : > { %v14267_v10 = vpop.eup %14266 }
 0xc90   : > { %v2671_v53 = vmul.f32 %v14267_v10, %v2615_v59  ;;  %v13717_v59 = vpack.c.bf16 %v2316_v26, %v2315_v24 }
 0xc92   : > { %12763 = vmatprep.mubr.msk.f32.mxu1 %vm619_vm14, %v2671_v53  ;;  %13718 = vmatprep.subr.bf16.mxu0 %v13717_v59 }
 0xc93   : > { %12764 = vmatmul.mubr.msk.f32.gmra.mrb[40].mxu1 %vm619_vm14, %v2672_v40  ;;  %13720 = vmatpush3.bf16.msra.mxu0 %v13717_v59 }
 0xc94   : > { %12788 = vmatprep.mubr.msk.f32.mxu1 %vm309_vm1, %v15185_v14  ;;  %13721 = vmatprep.subr.bf16.mxu0 %v18299_v8 }
 0xd58   : > { %v12756_v11 = vpop.f32.mrb[34].mxu1 }
 0xd59   : > { %v2773_v3 = vadd.f32 %v12756_v11, %v11464_v4  ;;  %v2767_v35 = vpop.f32.mrb[35].mxu1 }
 0xd5a   : > { %v2768_v63 = vadd.f32 %v11464_v4, %v2767_v35 }
 0xd5b   : > { %v11474_v1 = vmul.f32 -1.442695, %v2773_v3 }
 0xd5c   : > { %v11473_v56 = vmul.f32 -1.442695, %v2768_v63  ;;  %v12759_v5 = vpop.f32.mrb[36].mxu1 }
 0xd5d   : > { %14268 = vpow2.f32 %v11474_v1  ;;  %v15908_v49 = vadd.f32 %v12759_v5, %v11464_v4  ;;  %v2777_v20 = vpop.f32.mrb[37].mxu1 }
 0xd5e   : > { %14270 = vpow2.f32 %v11473_v56  ;;  %v2778_v34 = vadd.f32 %v11464_v4, %v2777_v20 }
 0xd5f   : > { %v11476_v33 = vmul.f32 -1.442695, %v15908_v49 }
 0xd60   : > { %v11475_v7 = vmul.f32 -1.442695, %v2778_v34  ;;  %v12762_v27 = vpop.f32.mrb[38].mxu1 }
 0xd61   : > { %14272 = vpow2.f32 %v11476_v33  ;;  %v15911_v62 = vadd.f32 %v12762_v27, %v11464_v4  ;;  %v2787_v28 = vpop.f32.mrb[39].mxu1 }
 0xd62   : > { %14274 = vpow2.f32 %v11475_v7  ;;  %v2788_v6 = vadd.f32 %v11464_v4, %v2787_v28  ;;  %v3235_v28 = vld [vmem:[%s18247_s3 + $0x280] sm:$0xff] }
 0xd63   : > { %v11478_v31 = vmul.f32 -1.442695, %v15911_v62 }
 0xd64   : > { %v11477_v13 = vmul.f32 -1.442695, %v2788_v6 }
 0xd65   : > { %14276 = vpow2.f32 %v11478_v31 }
 0xd66   : > { %14278 = vpow2.f32 %v11477_v13  ;;  %v12765_v10 = vpop.f32.mrb[40].mxu1 }
 0xd67   : > { %v14269_v53 = vpop.eup %14268  ;;  %v2803_v40 = vadd.f32 %v12765_v10, %v11464_v4  ;;  %v2797_v25 = vpop.f32.mrb[41].mxu1 }
 0xd68   : > { %v14271_v36 = vpop.eup %14270  ;;  %v2831_v51 = vadd.f32 1.0, %v14269_v53  ;;  %v2798_v24 = vadd.f32 %v11464_v4, %v2797_v25  ;;  %v3234_v4 = vld [vmem:[%s18247_s3 + $0x278] sm:$0xff] }
 0xd69   : > { %v2830_v26 = vadd.f32 1.0, %v14271_v36  ;;  %v11480_v59 = vmul.f32 -1.442695, %v2803_v40  ;;  %v13722_v25 = vpack.c.bf16 %v3235_v28, %v3234_v4 }
 0xd6a   : > { %14280 = vrcp.f32 %v2831_v51  ;;  %v11479_v11 = vmul.f32 -1.442695, %v2798_v24 }
 0xd6b   : > { %v14273_v35 = vpop.eup %14272  ;;  %14282 = vrcp.f32 %v2830_v26 }
 0xd6c   : > { %v14275_v1 = vpop.eup %14274  ;;  %v2833_v56 = vadd.f32 1.0, %v14273_v35  ;;  %14284 = vpow2.f32 %v11480_v59  ;;  %v3236_v59 = vld [vmem:[%s18247_s3 + $0x288] sm:$0xff] }
 0xd6d   : > { %v2832_v5 = vadd.f32 1.0, %v14275_v1  ;;  %14286 = vpow2.f32 %v11479_v11  ;;  %v3237_v11 = vld [vmem:[%s18247_s3 + $0x290] sm:$0xff] }
 0xd6e   : > { %14288 = vrcp.f32 %v2833_v56 }
 0xd6f   : > { %v14277_v20 = vpop.eup %14276  ;;  %14290 = vrcp.f32 %v2832_v5 }
 0xd70   : > { %v14279_v33 = vpop.eup %14278  ;;  %v2835_v7 = vadd.f32 1.0, %v14277_v20 }
 0xd71   : > { %v2834_v27 = vadd.f32 1.0, %v14279_v33 }
 0xd72   : > { %14292 = vrcp.f32 %v2835_v7 }
 0xd73   : > { %14294 = vrcp.f32 %v2834_v27 }
 0xd74   : > { %v14281_v31 = vpop.eup %14280 }
 0xd75   : > { %v14283_v13 = vpop.eup %14282  ;;  %v2855_v51 = vmul.f32 %v14281_v31, %v2773_v3  ;;  %v13725_v3 = vpack.c.bf16 %v3237_v11, %v3236_v59 }
 0xd76   : > { %v14285_v10 = vpop.eup %14284  ;;  %v2854_v53 = vmul.f32 %v14283_v13, %v2768_v63 }
 0xd77   : > { %v14287_v36 = vpop.eup %14286  ;;  %v2837_v26 = vadd.f32 1.0, %v14285_v10  ;;  %v14969_v10 = vld [vmem:[%s15367_s12] sm:$0xff] }
 0xd78   : > { %v14289_v35 = vpop.eup %14288  ;;  %v2836_v1 = vadd.f32 1.0, %v14287_v36  ;;  %12774 = vmatprep.mubr.msk.f32.mxu0 %vm619_vm14, %v2854_v53 }
 0xd79   : > { %v14291_v56 = vpop.eup %14290  ;;  %14296 = vrcp.f32 %v2837_v26  ;;  %12775 = vmatmul.mubr.msk.f32.vlgmr.msra.gmra.mrb[40].mxu0 %vm619_vm14, %v2855_v51  ;;  %v2857_v5 = vmul.f32 %v14289_v35, %v15908_v49  ;;  %v14971_v26 = vld [vmem:[%s15367_s12 + $0x18] sm:$0xff]  ;;  %v14972_v35 = vld [vmem:[%s15367_s12 + $0x20] sm:$0xff] }
 0xd7a   : > { %v2856_v63 = vmul.f32 %v14291_v56, %v2778_v34  ;;  %14298 = vrcp.f32 %v2836_v1  ;;  %13723 = vmatpush3.bf16.msra.mxu0 %v13722_v25  ;;  %v14973_v56 = vld [vmem:[%s15367_s12 + $0x28] sm:$0xff] }
 0xd7b   : > { %13724 = vmatprep.subr.bf16.mxu0 %v18299_v8 }
 0xd7c   : > { %v14293_v20 = vpop.eup %14292  ;;  %12777 = vmatprep.mubr.msk.f32.mxu0 %vm619_vm14, %v2856_v63 }
 0xd7d   : > { %v14295_v33 = vpop.eup %14294  ;;  %12778 = vmatmul.mubr.msk.f32.gmra.mrb[42].mxu0 %vm619_vm14, %v2857_v5  ;;  %v2859_v27 = vmul.f32 %v14293_v20, %v15911_v62  ;;  %v15941_v62 = vmul.f32 %v15802_v9, %v15589_v37  ;;  %v14970_v9 = vld [vmem:[%s15367_s12 + $0x10] sm:$0xff]  ;;  %v14974_v20 = vld [vmem:[%s15367_s12 + $0x38] sm:$0xff] }
 0xd7e   : > { %v2858_v7 = vmul.f32 %v14295_v33, %v2788_v6  ;;  %13726 = vmatpush3.bf16.msra.mxu0 %v13725_v3 }
 0xd80   : > { %12780 = vmatprep.mubr.msk.f32.mxu0 %vm619_vm14, %v2858_v7  ;;  %v14975_v7 = vld [vmem:[%s15367_s12 + $0x30] sm:$0xff] }
 0xd81   : > { %12781 = vmatmul.mubr.msk.f32.gmra.mrb[44].mxu0 %vm619_vm14, %v2859_v27 }
 0xd83   : > { %v14297_v34 = vpop.eup %14296 }
 0xd84   : > { %v14299_v49 = vpop.eup %14298  ;;  %v2861_v28 = vmul.f32 %v14297_v34, %v2803_v40  ;;  %v14968_v40 = vld [vmem:[%s15367_s12 + $0x8] sm:$0xff] }
 0xd85   : > { %v2860_v4 = vmul.f32 %v14299_v49, %v2798_v24 }
 0xd87   : > { %12783 = vmatprep.mubr.msk.f32.mxu0 %vm619_vm14, %v2860_v4  ;;  %v567_v4 = vadd.f32 1e-08, %v15385_v41 }
 0xd88   : > { %12784 = vmatmul.mubr.msk.f32.gmra.mrb[46].mxu0 %vm619_vm14, %v2861_v28  ;;  %v566_v28 = vadd.f32 1e-08, %v15406_v54 }
 0xd89   : > { %12808 = vmatprep.mubr.msk.f32.mxu0 %vm15072_vm11, %v18298_v30  ;;  %14300 = vrsqrt.f32 %v567_v4 }
 0xd8a   : > { %14302 = vrsqrt.f32 %v566_v28 }
 0xd8c   : > { %12809 = vmatmul.mubr.msk.f32.vlgmr.msra.gmra.mrb[48].mxu0 %vm619_vm14, %v15941_v62 }
 0xd8d   : > { %12824 = vmatprep.mubr.msk.f32.mxu0 %vm309_vm1, %v15185_v14 }
 0xe4c   : > { %v12776_v6 = vpop.f32.mrb[40].mxu0 }
 0xe4d   : > { %v2992_v24 = vmul.f32 %v14968_v40, %v12776_v6  ;;  %v2952_v31 = vpop.f32.mrb[41].mxu0  ;;  %v568_v6 = vadd.f32 1e-08, %v15389_v44  ;;  %v569_v40 = vadd.f32 1e-08, %v15387_v43 }
 0xe4e   : > { %v2991_v53 = vmul.f32 %v14969_v10, %v2952_v31  ;;  %v571_v31 = vadd.f32 1e-08, %v15391_v46  ;;  %v14301_v10 = vpop.eup %14300 }
 0xe4f   : > { %3006 = vperm.xlu1 %14098, %v2992_v24   ;;  %14304 = vrsqrt.f32 %v568_v6  ;;  %v570_v24 = vadd.f32 1e-08, %v15402_v50 }
 0xe50   : > { %v12779_v13 = vpop.f32.mrb[42].mxu0  ;;  %14306 = vrsqrt.f32 %v569_v40 }
 0xe51   : > { %v2962_v25 = vpop.f32.mrb[43].mxu0  ;;  %v2994_v59 = vmul.f32 %v14971_v26, %v12779_v13  ;;  %14308 = vrsqrt.f32 %v570_v24  ;;  %v572_v13 = vadd.f32 1e-08, %v15412_v61 }
 0xe52   : > { %v2993_v36 = vmul.f32 %v14970_v9, %v2962_v25  ;;  %14310 = vrsqrt.f32 %v571_v31  ;;  %v14303_v25 = vpop.eup %14302 }
 0xe53   : > { %3001 = vperm.xlu1 %14098, %v2991_v53   ;;  %v573_v53 = vadd.f32 1e-08, %v15425_v32  ;;  %14312 = vrsqrt.f32 %v572_v13 }
 0xe54   : > { %3011 = vperm.xlu0 %14099, %v2993_v36   ;;  %v12782_v51 = vpop.f32.mrb[44].mxu0 }
 0xe55   : > { %v2972_v11 = vpop.f32.mrb[45].mxu0  ;;  %v2996_v63 = vmul.f32 %v14973_v56, %v12782_v51  ;;  %v583_v51 = vmul.f32 %v14301_v10, %v15273_v38  ;;  %14314 = vrsqrt.f32 %v573_v53 }
 0xe56   : > { %v2995_v1 = vmul.f32 %v14972_v35, %v2972_v11 }
 0xe57   : > { %3016 = vperm.xlu1 %14098, %v2994_v59   ;;  %v582_v59 = vmul.f32 %v14303_v25, %v15314_v2 }
 0xe58   : > { %3021 = vperm.xlu0 %14099, %v2995_v1  }
 0xe59   : > { %v14305_v36 = vpop.eup %14304 }
 0xe5a   : > { %v14307_v11 = vpop.eup %14306  ;;  %v584_v1 = vmul.f32 %v14305_v36, %v15282_v45 }
 0xe5b   : > { %v12785_v3 = vpop.f32.mrb[46].mxu0  ;;  %3026 = vperm.xlu1 %14098, %v2996_v63   ;;  %v14309_v56 = vpop.eup %14308 }
 0xe5c   : > { %v2982_v5 = vpop.f32.mrb[47].mxu0  ;;  %v2998_v33 = vmul.f32 %v14974_v20, %v12785_v3  ;;  %v14311_v38 = vpop.eup %14310  ;;  %v586_v2 = vmul.f32 %v14309_v56, %v15294_v55 }
 0xe5d   : > { %v2997_v27 = vmul.f32 %v14975_v7, %v2982_v5  ;;  %v585_v7 = vmul.f32 %v14307_v11, %v15278_v42  ;;  %v14313_v24 = vpop.eup %14312  ;;  %v587_v13 = vmul.f32 %v14311_v38, %v15290_v52 }
 0xe5e   : > { %v588_v55 = vmul.f32 %v14313_v24, %v15300_v58  ;;  %v3239_v58 = vld [vmem:[%s18247_s3 + $0x2a0] sm:$0xff] }
 0xe5f   : > { %v15955_v34 = vpop.f32.mrb[48].mxu0  ;;  %3031 = vperm.xlu0 %14099, %v2997_v27   ;;  %3036 = vperm.xlu1 %14098, %v2998_v33   ;;  %v14315_v10 = vpop.eup %14314 }
 0xe60   : > { %v12810_v49 = vpop.f32.mrb[49].mxu0 }
 0xece   : > { %v3007_v9 = vpop.permute.xlu1 %3006 }
 0xecf   : > { %v3040_v26 = vmul.f32 %v3007_v9, %v583_v51 }
 0xed1   : > { %v3048_v20 = vsel %vm455_vm13, %v3040_v26, 0.0  ;;  %v589_v26 = vmul.f32 %v14315_v10, %v15305_v60 }
 0xed2   : > { %v3002_v35 = vpop.permute.xlu1 %3001 }
 0xed3   : > { %v3039_v63 = vmul.f32 %v3002_v35, %v582_v59  ;;  %v3012_v3 = vpop.permute.xlu0 %3011 }
 0xed4   : > { %v3041_v5 = vmul.f32 %v3012_v3, %v584_v1 }
 0xed5   : > { %v3047_v33 = vsel %vm455_vm13, %v3039_v63, 0.0 }
 0xed6   : > { %v3049_v27 = vadd.f32 %v3048_v20, %v3047_v33  ;;  %v3050_v49 = vsel %vm455_vm13, %v3041_v5, 0.0  ;;  %v3017_v4 = vpop.permute.xlu1 %3016  ;;  %v14976_v20 = vld [vmem:[%s15166_s5] sm:$0xff] }
 0xed7   : > { %v3042_v28 = vmul.f32 %v3017_v4, %v585_v7  ;;  %v3022_v6 = vpop.permute.xlu0 %3021  ;;  %v3238_v7 = vld [vmem:[%s18247_s3 + $0x298] sm:$0xff] }
 0xed8   : > { %v3051_v45 = vadd.f32 %v3050_v49, %v3049_v27  ;;  %v3043_v40 = vmul.f32 %v3022_v6, %v586_v2  ;;  %v13728_v38 = vpack.c.bf16 %v3239_v58, %v3238_v7  ;;  %v3240_v27 = vld [vmem:[%s18247_s3 + $0x2a8] sm:$0xff]  ;;  %v3241_v49 = vld [vmem:[%s18247_s3 + $0x2b0] sm:$0xff] }
 0xed9   : > { %v3052_v31 = vsel %vm455_vm13, %v3042_v28, 0.0  ;;  %v13731_v4 = vpack.c.bf16 %v3241_v49, %v3240_v27 }
 0xeda   : > { %v3053_v53 = vadd.f32 %v3052_v31, %v3051_v45  ;;  %v3054_v42 = vsel %vm455_vm13, %v3043_v40, 0.0  ;;  %v3027_v25 = vpop.permute.xlu1 %3026 }
 0xedb   : > { %v3044_v9 = vmul.f32 %v3027_v25, %v587_v13 }
 0xedc   : > { %v3055_v36 = vadd.f32 %v3054_v42, %v3053_v53 }
 0xedd   : > { %v3056_v51 = vsel %vm455_vm13, %v3044_v9, 0.0 }
 0xede   : > { %v3057_v59 = vadd.f32 %v3056_v51, %v3055_v36  ;;  %v3032_v11 = vpop.permute.xlu0 %3031  ;;  %v3037_v35 = vpop.permute.xlu1 %3036 }
 0xedf   : > { %v3045_v1 = vmul.f32 %v3032_v11, %v588_v55  ;;  %v3046_v56 = vmul.f32 %v3037_v35, %v589_v26 }
 0xee1   : > { %v3058_v52 = vsel %vm455_vm13, %v3045_v1, 0.0  ;;  %v3060_v63 = vsel %vm455_vm13, %v3046_v56, 0.0 }
 0xee2   : > { %v3059_v3 = vadd.f32 %v3058_v52, %v3057_v59 }
 0xee4   : > { %v3061_v5 = vadd.f32 %v3060_v63, %v3059_v3 }
 0xee6   : > { %v3062_v33 = vadd.f32 %v14976_v20, %v3061_v5 }
 0xee8   : > { %v15989_v60 = vmul.f32 %v3062_v33, %v15589_v37 }
 0xeea   : > { %18300 = vst [vmem:[#allocation8_spill] sm:$0xff] %v15989_v60  ;;  %12786 = vmatprep.subr.mxu1 %v15989_v60 }
 0xeeb   : > { %12787 = vmatpush3.msra.mxu1 %v15989_v60 }
 0xeec   : > { %12789 = vmatmul.mubr.msk.f32.vlgmr.msra.gmra.mrb[42].mxu1 %vm309_vm1, %v15192_v15  ;;  %13727 = vmatprep.subr.bf16.mxu1 %v18299_v8 }
 0xeed   : > { %12791 = vmatprep.mubr.msk.f32.mxu1 %vm309_vm1, %v15200_v16  ;;  %13729 = vmatpush3.bf16.msra.mxu1 %v13728_v38 }
 0xeee   : > { %13730 = vmatprep.subr.bf16.mxu1 %v18299_v8 }
 0xef0   : > { %12792 = vmatmul.mubr.msk.f32.gmra.mrb[44].mxu1 %vm309_vm1, %v15207_v17 }
 0xef1   : > { %12794 = vmatprep.mubr.msk.f32.mxu1 %vm309_vm1, %v15212_v18  ;;  %13732 = vmatpush3.bf16.msra.mxu1 %v13731_v4 }
 0xef4   : > { %12795 = vmatmul.mubr.msk.f32.gmra.mrb[46].mxu1 %vm309_vm1, %v15225_v21 }
 0xef5   : > { %12797 = vmatprep.mubr.msk.f32.mxu1 %vm309_vm1, %v15217_v19 }
 0xef8   : > { %12798 = vmatmul.mubr.msk.f32.gmra.mrb[48].mxu1 %vm309_vm1, %v15230_v22 }
 0xef9   : > { %12819 = vmatprep.mubr.msk.f32.mxu1 %vm15072_vm11, %v18298_v30 }
 0xefc   : > { %12820 = vmatmul.mubr.msk.f32.vlgmr.msra.gmra.mrb[50].mxu1 %vm619_vm14, %v15941_v62 }
 0xfbf   : > { %v12790_v2 = vpop.f32.mrb[42].mxu1 }
 0xfc0   : > { %v16020_v28 = vsub.f32 %v15989_v60, %v12790_v2  ;;  %v3131_v6 = vpop.f32.mrb[43].mxu1  ;;  %v3244_v2 = vld [vmem:[%s18247_s3 + $0x2c8] sm:$0xff] }
 0xfc1   : > { %v16023_v45 = vsub.f32 %v15989_v60, %v3131_v6  ;;  %v3245_v6 = vld [vmem:[%s18247_s3 + $0x2d0] sm:$0xff] }
 0xfc2   : > { %18301 = vst [vmem:[#allocation9_spill] sm:$0xff] %v16020_v28  ;;  %v3179_v40 = vmul.f32 %v16020_v28, %v16020_v28 }
 0xfc3   : > { %18302 = vst [vmem:[#allocation10_spill] sm:$0xff] %v16023_v45  ;;  %v12793_v24 = vpop.f32.mrb[44].mxu1  ;;  %v3178_v31 = vmul.f32 %v16023_v45, %v16023_v45 }
 0xfc4   : > { %v16030_v13 = vsub.f32 %v15989_v60, %v12793_v24  ;;  %v3141_v10 = vpop.f32.mrb[45].mxu1  ;;  %v3189_v53 = vsel %vm455_vm13, %v3179_v40, 0.0  ;;  %v13733_v40 = vpack.c.bf16 %v3245_v6, %v3244_v2  ;;  %v3246_v24 = vld [vmem:[%s18247_s3 + $0x2d8] sm:$0xff] }
 0xfc5   : > { %v16034_v42 = vsub.f32 %v15989_v60, %v3141_v10  ;;  %3190 = vadd.xlane.f32.xlu1 %v3189_v53  ;;  %v3186_v25 = vsel %vm455_vm13, %v3178_v31, 0.0  ;;  %v3247_v31 = vld [vmem:[%s18247_s3 + $0x2e0] sm:$0xff] }
 0xfc6   : > { %18303 = vst [vmem:[#allocation11_spill] sm:$0xff] %v16030_v13  ;;  %3187 = vadd.xlane.f32.xlu0 %v3186_v25  ;;  %v3181_v55 = vmul.f32 %v16030_v13, %v16030_v13  ;;  %13734 = vmatprep.subr.bf16.mxu1 %v13733_v40  ;;  %v13737_v10 = vpack.c.bf16 %v3247_v31, %v3246_v24 }
 0xfc7   : > { %18304 = vst [vmem:[#allocation12_spill] sm:$0xff] %v16034_v42  ;;  %v12796_v9 = vpop.f32.mrb[46].mxu1  ;;  %v3180_v36 = vmul.f32 %v16034_v42, %v16034_v42  ;;  %13736 = vmatpush3.bf16.msra.mxu1 %v13733_v40 }
 0xfc8   : > { %v3151_v51 = vpop.f32.mrb[47].mxu1  ;;  %v16042_v26 = vsub.f32 %v15989_v60, %v12796_v9  ;;  %v3195_v52 = vsel %vm455_vm13, %v3181_v55, 0.0  ;;  %13738 = vmatprep.subr.bf16.mxu1 %v13737_v10  ;;  %v3242_v9 = vld [vmem:[%s18247_s3 + $0x2b8] sm:$0x3] }
 0xfc9   : > { %v16045_v59 = vsub.f32 %v15989_v60, %v3151_v51  ;;  %v3192_v11 = vsel %vm455_vm13, %v3180_v36, 0.0  ;;  %v3409_v36 = vrot.slane %v3242_v9, %v15394_v47 }
 0xfca   : > { %18305 = vst [vmem:[#allocation13_spill] sm:$0xff] %v16042_v26  ;;  %3193 = vadd.xlane.f32.xlu0 %v3192_v11  ;;  %v3183_v20 = vmul.f32 %v16042_v26, %v16042_v26 }
 0xfcb   : > { %18306 = vst [vmem:[#allocation14_spill] sm:$0xff] %v16045_v59  ;;  %v12799_v35 = vpop.f32.mrb[48].mxu1  ;;  %v3182_v1 = vmul.f32 %v16045_v59, %v16045_v59  ;;  %13740 = vmatpush3.bf16.msra.mxu1 %v13737_v10 }
 0xfcc   : > { %v3161_v56 = vpop.f32.mrb[49].mxu1  ;;  %v16052_v63 = vsub.f32 %v15989_v60, %v12799_v35  ;;  %v3201_v38 = vsel %vm455_vm13, %v3183_v20, 0.0  ;;  %13753 = vmatprep.subr.bf16.mxu1 %v18299_v8  ;;  %v3421_v35 = vrot.slane %v3242_v9, %v15397_v48 }
 0xfcd   : > { %v16055_v3 = vsub.f32 %v15989_v60, %v3161_v56  ;;  %v3198_v5 = vsel %vm455_vm13, %v3182_v1, 0.0 }
 0xfce   : > { %18307 = vst [vmem:[#allocation15_spill] sm:$0xff] %v16052_v63  ;;  %3196 = vadd.xlane.f32.xlu0 %v3195_v52  ;;  %3199 = vadd.xlane.f32.xlu1 %v3198_v5  ;;  %v3185_v49 = vmul.f32 %v16052_v63, %v16052_v63  ;;  %v3423_v56 = vmul.f32 %v3421_v35, %v15385_v41 }
 0xfcf   : > { %18308 = vst [vmem:[#allocation16_spill] sm:$0xff] %v16055_v3  ;;  %v3402_v33 = vpop.f32.mrb[50].mxu1  ;;  %v3184_v7 = vmul.f32 %v16055_v3, %v16055_v3  ;;  %v3422_v5 = vmul.f32 %v3421_v35, %v15406_v54  ;;  %v3425_v6 = vmul.f32 %v3421_v35, %v15387_v43  ;;  %v3424_v24 = vmul.f32 %v3421_v35, %v15389_v44 }
 0xfd0   : > { %v12821_v58 = vpop.f32.mrb[51].mxu1  ;;  %12822 = vmatprep.subr.mxu0 %v3402_v33  ;;  %v3207_v4 = vsel %vm455_vm13, %v3185_v49, 0.0  ;;  %v3429_v13 = vmul.f32 %v3421_v35, %v15425_v32 }
 0xfd1   : > { %12823 = vmatpush3.msra.mxu0 %v3402_v33  ;;  %v3204_v27 = vsel %vm455_vm13, %v3184_v7, 0.0  ;;  %v11507_v58 = vld [vmem:[%s18247_s3 + $0x2c0] ss:$0 sm:$0xff] }
 0xfd2   : > { %3202 = vadd.xlane.f32.xlu0 %v3201_v38  ;;  %12825 = vmatmul.mubr.msk.f32.vlgmr.msra.gmra.mrb[50].mxu0 %vm309_vm1, %v15192_v15 }
 0xfd3   : > { %3205 = vadd.xlane.f32.xlu1 %v3204_v27  ;;  %12827 = vmatprep.mubr.msk.f32.mxu0 %vm309_vm1, %v15200_v16 }
 0xfd4   : > { %13741 = vmatprep.subr.bf16.mxu0 %v18299_v8 }
 0xfd6   : > { %3208 = vadd.xlane.f32.xlu0 %v3207_v4  ;;  %12828 = vmatmul.mubr.msk.f32.gmra.mrb[52].mxu0 %vm309_vm1, %v15207_v17 }
 0xfd7   : > { %12830 = vmatprep.mubr.msk.f32.mxu0 %vm309_vm1, %v15212_v18 }
 0xfda   : > { %12831 = vmatmul.mubr.msk.f32.gmra.mrb[54].mxu0 %vm309_vm1, %v15225_v21 }
 0xfdb   : > { %12833 = vmatprep.mubr.msk.f32.mxu0 %vm309_vm1, %v15217_v19 }
 0xfde   : > { %12834 = vmatmul.mubr.msk.f32.gmra.mrb[56].mxu0 %vm309_vm1, %v15230_v22 }
 0xfdf   : > { %12864 = vmatprep.mubr.msk.f32.mxu0 %vm15072_vm11, %v18298_v30 }
0x1052   : > { %v16105_v51 = vpop.xlane.xlu1 %3190 }
0x1053   : > { %v16097_v53 = vpop.xlane.xlu0 %3187  ;;  %18311 = vst [vmem:[#allocation19_spill] sm:$0xff] %v16105_v51  ;;  %v3411_v11 = vmul.f32 %v3409_v36, %v16105_v51 }
0x1054   : > { %18309 = vst [vmem:[#allocation17_spill] sm:$0xff] %v16097_v53  ;;  %v3410_v1 = vmul.f32 %v3409_v36, %v16097_v53 }
0x1055   : > { %v3431_v33 = vadd.f32 %v3423_v56, %v3411_v11 }
0x1056   : > { %v3430_v27 = vadd.f32 %v3422_v5, %v3410_v1 }
0x1057   : > { %v16099_v25 = vpop.xlane.xlu0 %3193 }
0x1058   : > { %18310 = vst [vmem:[#allocation18_spill] sm:$0xff] %v16099_v25  ;;  %v3412_v49 = vmul.f32 %v3409_v36, %v16099_v25 }
0x105a   : > { %v3432_v63 = vadd.f32 %v3424_v24, %v3412_v49 }
0x105b   : > { %v16107_v55 = vpop.xlane.xlu0 %3196  ;;  %v16116_v20 = vpop.xlane.xlu1 %3199 }
0x105c   : > { %18312 = vst [vmem:[#allocation20_spill] sm:$0xff] %v16107_v55  ;;  %18314 = vst [vmem:[#allocation22_spill] sm:$0xff] %v16116_v20  ;;  %v3413_v7 = vmul.f32 %v3409_v36, %v16107_v55  ;;  %v3414_v1 = vmul.f32 %v3409_v36, %v16116_v20 }
0x105e   : > { %v3433_v10 = vadd.f32 %v3425_v6, %v3413_v7  ;;  %v3426_v6 = vmul.f32 %v3421_v35, %v15402_v50 }
0x105f   : > { %v16113_v52 = vpop.xlane.xlu0 %3202 }
0x1060   : > { %18313 = vst [vmem:[#allocation21_spill] sm:$0xff] %v16113_v52  ;;  %v3415_v9 = vmul.f32 %v3409_v36, %v16113_v52  ;;  %v16129_v5 = vpop.xlane.xlu1 %3205 }
0x1061   : > { %18316 = vst [vmem:[#allocation24_spill] sm:$0xff] %v16129_v5 }
0x1063   : > { %v16126_v11 = vpop.xlane.xlu0 %3208 }
0x1064   : > { %18315 = vst [vmem:[#allocation23_spill] sm:$0xff] %v16126_v11  ;;  %v3417_v3 = vmul.f32 %v3409_v36, %v16126_v11 }
0x10a5   : > { %v12826_v38 = vpop.f32.mrb[50].mxu0 }
0x10a6   : > { %v3510_v4 = vadd.f32 %v12826_v38, %v3431_v33  ;;  %v3504_v2 = vpop.f32.mrb[51].mxu0 }
0x10a7   : > { %v3505_v40 = vadd.f32 %v3504_v2, %v3430_v27  ;;  %v3427_v2 = vmul.f32 %v3421_v35, %v15391_v46 }
0x10a8   : > { %v3548_v31 = vadd.f32 %v11507_v58, %v3510_v4 }
0x10a9   : > { %v3547_v56 = vadd.f32 %v11507_v58, %v3505_v40  ;;  %v12829_v60 = vpop.f32.mrb[52].mxu0  ;;  %v3435_v24 = vadd.f32 %v3427_v2, %v3415_v9  ;;  %v3428_v2 = vmul.f32 %v3421_v35, %v15412_v61 }
0x10aa   : > { %v16132_v33 = vadd.f32 %v3548_v31, %v15955_v34  ;;  %v3520_v38 = vadd.f32 %v12829_v60, %v3433_v10  ;;  %v3514_v27 = vpop.f32.mrb[53].mxu0  ;;  %v3434_v60 = vadd.f32 %v3426_v6, %v3414_v1  ;;  %v3416_v10 = vmul.f32 %v3409_v36, %v16129_v5 }
0x10ab   : > { %v16136_v7 = vadd.f32 %v3547_v56, %v15955_v34  ;;  %v3515_v4 = vadd.f32 %v3514_v27, %v3432_v63  ;;  %v3437_v1 = vadd.f32 %v3429_v13, %v3417_v3 }
0x10ac   : > { %v11509_v40 = vmul.f32 -1.442695, %v16132_v33  ;;  %v3550_v49 = vadd.f32 %v11507_v58, %v3520_v38  ;;  %v3436_v42 = vadd.f32 %v3428_v2, %v3416_v10 }
0x10ad   : > { %v11508_v26 = vmul.f32 -1.442695, %v16136_v7  ;;  %v3549_v31 = vadd.f32 %v11507_v58, %v3515_v4  ;;  %v12832_v59 = vpop.f32.mrb[54].mxu0 }
0x10ae   : > { %14316 = vpow2.f32 %v11509_v40  ;;  %v16144_v56 = vadd.f32 %v3550_v49, %v15955_v34  ;;  %v3530_v63 = vadd.f32 %v12832_v59, %v3435_v24  ;;  %v3524_v27 = vpop.f32.mrb[55].mxu0 }
0x10af   : > { %14318 = vpow2.f32 %v11508_v26  ;;  %v3557_v9 = vadd.f32 %v3549_v31, %v15955_v34  ;;  %v3525_v38 = vadd.f32 %v3524_v27, %v3434_v60 }
0x10b0   : > { %v11511_v4 = vmul.f32 -1.442695, %v16144_v56  ;;  %v3552_v28 = vadd.f32 %v11507_v58, %v3530_v63 }
0x10b1   : > { %v11510_v6 = vmul.f32 -1.442695, %v3557_v9  ;;  %v3551_v36 = vadd.f32 %v11507_v58, %v3525_v38  ;;  %v12835_v40 = vpop.f32.mrb[56].mxu0 }
0x10b2   : > { %14320 = vpow2.f32 %v11511_v4  ;;  %v3560_v59 = vadd.f32 %v3552_v28, %v15955_v34  ;;  %v3540_v49 = vadd.f32 %v12835_v40, %v3437_v1  ;;  %v3534_v24 = vpop.f32.mrb[57].mxu0 }
0x10b3   : > { %14322 = vpow2.f32 %v11510_v6  ;;  %v3559_v26 = vadd.f32 %v3551_v36, %v15955_v34  ;;  %v3535_v31 = vadd.f32 %v3534_v24, %v3436_v42 }
0x10b4   : > { %v11513_v60 = vmul.f32 -1.442695, %v3560_v59  ;;  %v3554_v27 = vadd.f32 %v11507_v58, %v3540_v49 }
0x10b5   : > { %v11512_v35 = vmul.f32 -1.442695, %v3559_v26  ;;  %v3553_v45 = vadd.f32 %v11507_v58, %v3535_v31 }
0x10b6   : > { %14324 = vpow2.f32 %v11513_v60  ;;  %v3562_v13 = vadd.f32 %v3554_v27, %v15955_v34 }
0x10b7   : > { %14326 = vpow2.f32 %v11512_v35  ;;  %v3561_v3 = vadd.f32 %v3553_v45, %v15955_v34 }
0x10b8   : > { %v14317_v10 = vpop.eup %14316  ;;  %v11515_v63 = vmul.f32 -1.442695, %v3562_v13 }
0x10b9   : > { %v14319_v38 = vpop.eup %14318  ;;  %v3588_v28 = vadd.f32 1.0, %v14317_v10  ;;  %v11514_v2 = vmul.f32 -1.442695, %v3561_v3 }
0x10ba   : > { %v3587_v4 = vadd.f32 1.0, %v14319_v38  ;;  %14328 = vpow2.f32 %v11515_v63 }
0x10bb   : > { %14330 = vrcp.f32 %v3588_v28 }
0x10bc   : > { %v14321_v1 = vpop.eup %14320  ;;  %14332 = vrcp.f32 %v3587_v4 }
0x10bd   : > { %v14323_v42 = vpop.eup %14322  ;;  %v3590_v6 = vadd.f32 1.0, %v14321_v1  ;;  %14334 = vpow2.f32 %v11514_v2 }
0x10be   : > { %v3589_v58 = vadd.f32 1.0, %v14323_v42 }
0x10bf   : > { %14336 = vrcp.f32 %v3590_v6 }
0x10c0   : > { %v14325_v36 = vpop.eup %14324  ;;  %14338 = vrcp.f32 %v3589_v58 }
0x10c1   : > { %v14327_v40 = vpop.eup %14326  ;;  %v3592_v49 = vadd.f32 1.0, %v14325_v36 }
0x10c2   : > { %v3591_v34 = vadd.f32 1.0, %v14327_v40 }
0x10c3   : > { %14340 = vrcp.f32 %v3592_v49  ;;  %v11516_v49 = vld [vmem:[%s18247_s3 + $0x2e8] ss:$0 sm:$0xff] }
0x10c4   : > { %v14329_v45 = vpop.eup %14328  ;;  %14342 = vrcp.f32 %v3591_v34 }
0x10c5   : > { %v14331_v24 = vpop.eup %14330  ;;  %v3594_v31 = vadd.f32 1.0, %v14329_v45 }
0x10c6   : > { %v14333_v60 = vpop.eup %14332  ;;  %v3612_v10 = vmul.f32 %v14331_v24, %v16132_v33 }
0x10c7   : > { %v14335_v27 = vpop.eup %14334  ;;  %v3611_v35 = vmul.f32 %v14333_v60, %v16136_v7  ;;  %14344 = vrcp.f32 %v3594_v31 }
0x10c8   : > { %v3593_v63 = vadd.f32 1.0, %v14335_v27 }
0x10c9   : > { %v14337_v38 = vpop.eup %14336  ;;  %12844 = vmatprep.mubr.msk.f32.mxu1 %vm619_vm14, %v3611_v35 }
0x10ca   : > { %v14339_v28 = vpop.eup %14338  ;;  %14346 = vrcp.f32 %v3593_v63  ;;  %12845 = vmatmul.mubr.msk.f32.vlgmr.msra.gmra.mrb[52].mxu1 %vm619_vm14, %v3612_v10  ;;  %v3614_v4 = vmul.f32 %v14337_v38, %v16144_v56  ;;  %v3253_v56 = vld [vmem:[%s18247_s3 + $0x310] sm:$0xff] }
0x10cb   : > { %v3613_v2 = vmul.f32 %v14339_v28, %v3557_v9  ;;  %v3254_v9 = vld [vmem:[%s18247_s3 + $0x318] sm:$0xff] }
0x10cd   : > { %v14341_v1 = vpop.eup %14340  ;;  %12847 = vmatprep.mubr.msk.f32.mxu1 %vm619_vm14, %v3613_v2 }
0x10ce   : > { %v14343_v42 = vpop.eup %14342  ;;  %12848 = vmatmul.mubr.msk.f32.gmra.mrb[54].mxu1 %vm619_vm14, %v3614_v4  ;;  %v3616_v33 = vmul.f32 %v14341_v1, %v3560_v59  ;;  %v13742_v59 = vpack.c.bf16 %v3254_v9, %v3253_v56 }
0x10cf   : > { %v3615_v7 = vmul.f32 %v14343_v42, %v3559_v26  ;;  %v3255_v26 = vld [vmem:[%s18247_s3 + $0x320] sm:$0xff] }
0x10d0   : > { %13743 = vmatpush3.bf16.msra.mxu0 %v13742_v59 }
0x10d1   : > { %12850 = vmatprep.mubr.msk.f32.mxu1 %vm619_vm14, %v3615_v7  ;;  %v14345_v6 = vpop.eup %14344  ;;  %13744 = vmatprep.subr.bf16.mxu0 %v18299_v8 }
0x10d2   : > { %12851 = vmatmul.mubr.msk.f32.gmra.mrb[56].mxu1 %vm619_vm14, %v3616_v33  ;;  %v3618_v40 = vmul.f32 %v14345_v6, %v3562_v13  ;;  %v3256_v13 = vld [vmem:[%s18247_s3 + $0x328] sm:$0xff] }
0x10d4   : > { %v14347_v58 = vpop.eup %14346 }
0x10d5   : > { %v3617_v36 = vmul.f32 %v14347_v58, %v3561_v3  ;;  %v13745_v3 = vpack.c.bf16 %v3256_v13, %v3255_v26 }
0x10d7   : > { %12853 = vmatprep.mubr.msk.f32.mxu1 %vm619_vm14, %v3617_v36  ;;  %13746 = vmatpush3.bf16.msra.mxu0 %v13745_v3 }
0x10d8   : > { %12854 = vmatmul.mubr.msk.f32.gmra.mrb[58].mxu1 %vm619_vm14, %v3618_v40  ;;  %13747 = vmatprep.subr.bf16.mxu0 %v18299_v8 }
0x10d9   : > { %12886 = vmatprep.mubr.msk.f32.mxu1 %vm15072_vm11, %v18298_v30 }
0x119d   : > { %v12846_v34 = vpop.f32.mrb[52].mxu1 }
0x119e   : > { %v3719_v45 = vadd.f32 %v12846_v34, %v11516_v49  ;;  %v3713_v24 = vpop.f32.mrb[53].mxu1 }
0x119f   : > { %v3714_v31 = vadd.f32 %v11516_v49, %v3713_v24 }
0x11a0   : > { %v11526_v60 = vmul.f32 -1.442695, %v3719_v45 }
0x11a1   : > { %v11525_v27 = vmul.f32 -1.442695, %v3714_v31  ;;  %v12849_v35 = vpop.f32.mrb[54].mxu1 }
0x11a2   : > { %14348 = vpow2.f32 %v11526_v60  ;;  %v3729_v10 = vadd.f32 %v12849_v35, %v11516_v49  ;;  %v3723_v63 = vpop.f32.mrb[55].mxu1 }
0x11a3   : > { %14350 = vpow2.f32 %v11525_v27  ;;  %v3724_v38 = vadd.f32 %v11516_v49, %v3723_v63 }
0x11a4   : > { %v11528_v28 = vmul.f32 -1.442695, %v3729_v10 }
0x11a5   : > { %v11527_v2 = vmul.f32 -1.442695, %v3724_v38  ;;  %v12852_v4 = vpop.f32.mrb[56].mxu1 }
0x11a6   : > { %14352 = vpow2.f32 %v11528_v28  ;;  %v3739_v1 = vadd.f32 %v12852_v4, %v11516_v49  ;;  %v3733_v42 = vpop.f32.mrb[57].mxu1 }
0x11a7   : > { %14354 = vpow2.f32 %v11527_v2  ;;  %v3734_v7 = vadd.f32 %v11516_v49, %v3733_v42 }
0x11a8   : > { %v11530_v33 = vmul.f32 -1.442695, %v3739_v1 }
0x11a9   : > { %v11529_v6 = vmul.f32 -1.442695, %v3734_v7 }
0x11aa   : > { %14356 = vpow2.f32 %v11530_v33 }
0x11ab   : > { %14358 = vpow2.f32 %v11529_v6  ;;  %v12855_v58 = vpop.f32.mrb[58].mxu1 }
0x11ac   : > { %v14349_v36 = vpop.eup %14348  ;;  %v3749_v40 = vadd.f32 %v12855_v58, %v11516_v49  ;;  %v3743_v56 = vpop.f32.mrb[59].mxu1 }
0x11ad   : > { %v14351_v9 = vpop.eup %14350  ;;  %v3777_v59 = vadd.f32 1.0, %v14349_v36  ;;  %v3744_v26 = vadd.f32 %v11516_v49, %v3743_v56 }
0x11ae   : > { %v3776_v13 = vadd.f32 1.0, %v14351_v9  ;;  %v11532_v3 = vmul.f32 -1.442695, %v3749_v40 }
0x11af   : > { %14360 = vrcp.f32 %v3777_v59  ;;  %v11531_v34 = vmul.f32 -1.442695, %v3744_v26 }
0x11b0   : > { %v14353_v24 = vpop.eup %14352  ;;  %14362 = vrcp.f32 %v3776_v13 }
0x11b1   : > { %v14355_v60 = vpop.eup %14354  ;;  %v3779_v27 = vadd.f32 1.0, %v14353_v24  ;;  %14364 = vpow2.f32 %v11532_v3 }
0x11b2   : > { %v3778_v35 = vadd.f32 1.0, %v14355_v60  ;;  %14366 = vpow2.f32 %v11531_v34 }
0x11b3   : > { %14368 = vrcp.f32 %v3779_v27 }
0x11b4   : > { %v14357_v63 = vpop.eup %14356  ;;  %14370 = vrcp.f32 %v3778_v35 }
0x11b5   : > { %v14359_v28 = vpop.eup %14358  ;;  %v3781_v2 = vadd.f32 1.0, %v14357_v63 }
0x11b6   : > { %v3780_v4 = vadd.f32 1.0, %v14359_v28 }
0x11b7   : > { %14372 = vrcp.f32 %v3781_v2 }
0x11b8   : > { %14374 = vrcp.f32 %v3780_v4 }
0x11b9   : > { %v14361_v49 = vpop.eup %14360 }
0x11ba   : > { %v14363_v42 = vpop.eup %14362  ;;  %v3801_v33 = vmul.f32 %v14361_v49, %v3719_v45 }
0x11bb   : > { %v14365_v6 = vpop.eup %14364  ;;  %v3800_v58 = vmul.f32 %v14363_v42, %v3714_v31 }
0x11bc   : > { %v14367_v36 = vpop.eup %14366  ;;  %v3809_v56 = vmul.f32 %v3801_v33, %v15492_v23  ;;  %v3783_v9 = vadd.f32 1.0, %v14365_v6 }
0x11bd   : > { %v14369_v59 = vpop.eup %14368  ;;  %v3808_v13 = vmul.f32 %v3800_v58, %v15480_v29  ;;  %v3782_v3 = vadd.f32 1.0, %v14367_v36 }
0x11be   : > { %v14371_v34 = vpop.eup %14370  ;;  %v3817_v24 = vsel %vm619_vm14, %v3809_v56, 0.0  ;;  %v3803_v60 = vmul.f32 %v14369_v59, %v3729_v10  ;;  %14376 = vrcp.f32 %v3783_v9 }
0x11bf   : > { %v3816_v27 = vsel %vm619_vm14, %v3808_v13, 0.0  ;;  %v3802_v35 = vmul.f32 %v14371_v34, %v3724_v38  ;;  %14378 = vrcp.f32 %v3782_v3 }
0x11c0   : > { %v3818_v45 = vadd.f32 %v3817_v24, %v3816_v27  ;;  %v3811_v31 = vmul.f32 %v3803_v60, %v15488_v0  ;;  %v18317_v24 = vld [vmem:[#allocation6_spill] sm:$0xff]  ;;  %v18318_v60 = vld [vmem:[#allocation5_spill] sm:$0xff] }
0x11c1   : > { %v14373_v63 = vpop.eup %14372  ;;  %v3810_v28 = vmul.f32 %v3802_v35, %v15485_v57  ;;  %v3249_v35 = vld [vmem:[%s18247_s3 + $0x2f0] sm:$0xff] }
0x11c2   : > { %v14375_v2 = vpop.eup %14374  ;;  %v3805_v4 = vmul.f32 %v14373_v63, %v3739_v1  ;;  %v3821_v6 = vsel %vm619_vm14, %v3811_v31, 0.0 }
0x11c3   : > { %v3819_v49 = vsel %vm619_vm14, %v3810_v28, 0.0  ;;  %v3804_v42 = vmul.f32 %v14375_v2, %v3734_v7  ;;  %v3251_v2 = vld [vmem:[%s18247_s3 + $0x300] sm:$0xff] }
0x11c4   : > { %v3820_v33 = vadd.f32 %v3819_v49, %v3818_v45  ;;  %v3813_v10 = vmul.f32 %v3805_v4, %v15498_v39  ;;  %v3250_v45 = vld [vmem:[%s18247_s3 + $0x2f8] sm:$0xff]  ;;  %v3252_v4 = vld [vmem:[%s18247_s3 + $0x308] sm:$0xff] }
0x11c5   : > { %v3812_v58 = vmul.f32 %v3804_v42, %v15490_v12  ;;  %v13751_v49 = vpack.c.bf16 %v3252_v4, %v3251_v2  ;;  %v3258_v42 = vld [vmem:[%s18247_s3 + $0x338] sm:$0xff]  ;;  %v4067_v4 = vld [vmem:[%s18247_s3 + $0x370] sm:$0xff] }
0x11c6   : > { %v3822_v38 = vadd.f32 %v3821_v6, %v3820_v33  ;;  %v3825_v13 = vsel %vm619_vm14, %v3813_v10, 0.0  ;;  %v3259_v33 = vld [vmem:[%s18247_s3 + $0x340] sm:$0xff]  ;;  %v3260_v10 = vld [vmem:[%s18247_s3 + $0x348] sm:$0xff] }
0x11c7   : > { %v3823_v36 = vsel %vm619_vm14, %v3812_v58, 0.0  ;;  %v13754_v6 = vpack.c.bf16 %v3259_v33, %v3258_v42  ;;  %v3261_v58 = vld [vmem:[%s18247_s3 + $0x350] sm:$0xff] }
0x11c8   : > { %v14377_v56 = vpop.eup %14376  ;;  %v3824_v9 = vadd.f32 %v3823_v36, %v3822_v38  ;;  %v13757_v38 = vpack.c.bf16 %v3261_v58, %v3260_v10  ;;  %v4071_v42 = vld [vmem:[%s18247_s3 + $0x390] sm:$0xff]  ;;  %v11537_v58 = vld [vmem:[%s18247_s3 + $0x358] ss:$0 sm:$0xff] }
0x11c9   : > { %v14379_v59 = vpop.eup %14378  ;;  %v3807_v3 = vmul.f32 %v14377_v56, %v3749_v40  ;;  %v13748_v40 = vpack.c.bf16 %v3250_v45, %v3249_v35  ;;  %13755 = vmatpush3.bf16.msra.mxu1 %v13754_v6  ;;  %v4072_v6 = vld [vmem:[%s18247_s3 + $0x398] sm:$0xff] }
0x11ca   : > { %v3806_v1 = vmul.f32 %v14379_v59, %v3744_v26  ;;  %v3826_v34 = vadd.f32 %v3825_v13, %v3824_v9  ;;  %13756 = vmatprep.subr.bf16.mxu1 %v18299_v8  ;;  %v11535_v9 = vld [vmem:[%s18247_s3 + $0x330] ss:$0 sm:$0xff]  ;;  %v13769_v10 = vpack.c.bf16 %v4072_v6, %v4071_v42  ;;  %v11549_v6 = vld [vmem:[%s18247_s3 + $0x3a8] ss:$0 sm:$0xff] }
0x11cb   : > { %v3815_v7 = vmul.f32 %v3807_v3, %v18317_v24 }
0x11cc   : > { %v3814_v27 = vmul.f32 %v3806_v1, %v18318_v60 }
0x11cd   : > { %v3829_v28 = vsel %vm619_vm14, %v3815_v7, 0.0  ;;  %13758 = vmatpush3.bf16.msra.mxu1 %v13757_v38 }
0x11ce   : > { %v3827_v63 = vsel %vm619_vm14, %v3814_v27, 0.0  ;;  %13765 = vmatprep.subr.bf16.mxu1 %v18299_v8 }
0x11cf   : > { %v3828_v31 = vadd.f32 %v3827_v63, %v3826_v34  ;;  %v4065_v63 = vld [vmem:[%s18247_s3 + $0x360] sm:$0xff] }
0x11d1   : > { %v3830_v26 = vadd.f32 %v3829_v28, %v3828_v31  ;;  %v4066_v31 = vld [vmem:[%s18247_s3 + $0x368] sm:$0xff]  ;;  %v4069_v28 = vld [vmem:[%s18247_s3 + $0x380] sm:$0xff] }
0x11d3   : > { %12865 = vmatmul.mubr.msk.f32.vlgmr.msra.gmra.mrb[58].mxu0 %vm619_vm14, %v3830_v26  ;;  %v4070_v26 = vld [vmem:[%s18247_s3 + $0x388] sm:$0xff] }
0x11d4   : > { %13749 = vmatpush3.bf16.msra.mxu0 %v13748_v40  ;;  %12875 = vmatprep.mubr.msk.f32.mxu0 %vm15072_vm11, %v18298_v30  ;;  %v13760_v40 = vpack.c.bf16 %v4066_v31, %v4065_v63  ;;  %v13766_v2 = vpack.c.bf16 %v4070_v26, %v4069_v28  ;;  %v4073_v31 = vld [vmem:[%s18247_s3 + $0x3a0] sm:$0x3] }
0x11d5   : > { %13750 = vmatprep.subr.bf16.mxu0 %v18299_v8  ;;  %v4240_v28 = vrot.slane %v4073_v31, %v15394_v47  ;;  %v4252_v26 = vrot.slane %v4073_v31, %v15397_v48 }
0x11d8   : > { %13752 = vmatpush3.bf16.msra.mxu0 %v13751_v49  ;;  %v4068_v49 = vld [vmem:[%s18247_s3 + $0x378] sm:$0xff] }
0x11d9   : > { %13759 = vmatprep.subr.bf16.mxu0 %v18299_v8  ;;  %v13763_v33 = vpack.c.bf16 %v4068_v49, %v4067_v4  ;;  %v4254_v4 = vmul.f32 %v4252_v26, %v15385_v41  ;;  %v4253_v49 = vmul.f32 %v4252_v26, %v15406_v54 }
0x11db   : > { %12876 = vmatmul.mubr.msk.f32.vlgmr.msra.gmra.mrb[60].mxu0 %vm619_vm14, %v15941_v62 }
0x11dc   : > { %12897 = vmatprep.mubr.msk.f32.mxu0 %vm15072_vm11, %v18298_v30  ;;  %13761 = vmatpush3.bf16.msra.mxu0 %v13760_v40  ;;  %v4242_v40 = vmul.f32 %v4240_v28, %v16105_v51 }
0x11dd   : > { %13762 = vmatprep.subr.bf16.mxu0 %v18299_v8 }
0x11de   : > { %v4262_v42 = vadd.f32 %v4254_v4, %v4242_v40  ;;  %v4258_v4 = vmul.f32 %v4252_v26, %v15391_v46 }
0x11e0   : > { %13764 = vmatpush3.bf16.msra.mxu0 %v13763_v33  ;;  %v4244_v33 = vmul.f32 %v4240_v28, %v16107_v55 }
0x12a6   : > { %v3900_v36 = vpop.f32.mrb[58].mxu0 }
0x12a7   : > { %v12866_v56 = vpop.f32.mrb[59].mxu0 }
0x12ae   : > { %v3970_v59 = vpop.f32.mrb[60].mxu0 }
0x12af   : > { %v3971_v13 = vadd.f32 %v3970_v59, %v3900_v36  ;;  %v12877_v3 = vpop.f32.mrb[61].mxu0 }
0x12b1   : > { %v3978_v1 = vadd.f32 %v11535_v9, %v3971_v13 }
0x12b3   : > { %v11536_v34 = vmul.f32 -1.442695, %v3978_v1 }
0x12b5   : > { %14380 = vpow2.f32 %v11536_v34 }
0x12bf   : > { %v14381_v7 = vpop.eup %14380 }
0x12c0   : > { %v3982_v27 = vadd.f32 1.0, %v14381_v7  ;;  %v4076_v7 = vld [vmem:[%s18247_s3 + $0x3b8] sm:$0xff] }
0x12c2   : > { %14382 = vrcp.f32 %v3982_v27 }
0x12cc   : > { %v14383_v35 = vpop.eup %14382 }
0x12cd   : > { %v3985_v45 = vmul.f32 %v14383_v35, %v3978_v1  ;;  %v4077_v35 = vld [vmem:[%s18247_s3 + $0x3c0] sm:$0xff] }
0x12cf   : > { %12887 = vmatmul.mubr.msk.f32.vlgmr.msra.gmra.mrb[60].mxu1 %vm619_vm14, %v3985_v45  ;;  %v4078_v45 = vld [vmem:[%s18247_s3 + $0x3c8] sm:$0xff] }
0x12d0   : > { %12908 = vmatprep.mubr.msk.f32.mxu1 %vm15072_vm11, %v18298_v30  ;;  %13767 = vmatpush3.bf16.msra.mxu1 %v13766_v2  ;;  %v13775_v63 = vpack.c.bf16 %v4078_v45, %v4077_v35  ;;  %v4241_v2 = vmul.f32 %v4240_v28, %v16097_v53 }
0x12d1   : > { %13768 = vmatprep.subr.bf16.mxu1 %v18299_v8 }
0x12d4   : > { %13770 = vmatpush3.bf16.msra.mxu1 %v13769_v10 }
0x13a2   : > { %v4059_v38 = vpop.f32.mrb[60].mxu1 }
0x13a3   : > { %v4060_v36 = vadd.f32 %v11537_v58, %v4059_v38  ;;  %v12888_v56 = vpop.f32.mrb[61].mxu1  ;;  %v4261_v58 = vadd.f32 %v4253_v49, %v4241_v2  ;;  %v4243_v38 = vmul.f32 %v4240_v28, %v16099_v25 }
0x13a5   : > { %v4063_v9 = vadd.f32 %v4060_v36, %v15941_v62  ;;  %v4075_v62 = vld [vmem:[%s18247_s3 + $0x3b0] sm:$0xff] }
0x13a6   : > { %v13771_v27 = vpack.c.bf16 %v4076_v7, %v4075_v62  ;;  %v4246_v7 = vmul.f32 %v4240_v28, %v16113_v52 }
0x13a7   : > { %v16272_v59 = vmul.f32 %v4063_v9, %v15589_v37  ;;  %v4256_v9 = vmul.f32 %v4252_v26, %v15387_v43 }
0x13a8   : > { %13772 = vmatprep.subr.bf16.mxu1 %v13771_v27 }
0x13a9   : > { %12898 = vmatmul.mubr.msk.f32.vlgmr.msra.gmra.mrb[62].mxu0 %vm619_vm14, %v16272_v59  ;;  %12909 = vmatmul.mubr.msk.f32.vlgmr.msra.gmra.mrb[62].mxu1 %vm619_vm14, %v16272_v59  ;;  %v4264_v62 = vadd.f32 %v4256_v9, %v4244_v33  ;;  %v4257_v33 = vmul.f32 %v4252_v26, %v15402_v50 }
0x13aa   : > { %12913 = vmatprep.mubr.msk.f32.mxu0 %vm309_vm1, %v15185_v14  ;;  %13774 = vmatpush3.bf16.msra.mxu1 %v13771_v27 }
0x13ab   : > { %13776 = vmatprep.subr.bf16.mxu1 %v13775_v63 }
0x13ae   : > { %13778 = vmatpush3.bf16.msra.mxu1 %v13775_v63  ;;  %v4245_v63 = vmul.f32 %v4240_v28, %v16116_v20 }
0x13af   : > { %13785 = vmatprep.subr.bf16.mxu1 %v18299_v8 }
0x147c   : > { %v16280_v13 = vpop.f32.mrb[62].mxu0  ;;  %v4233_v3 = vpop.f32.mrb[62].mxu1 }
0x147d   : > { %v12899_v1 = vpop.f32.mrb[63].mxu0  ;;  %v12910_v34 = vpop.f32.mrb[63].mxu1  ;;  %12911 = vmatprep.subr.mxu0 %v4233_v3 }
0x147e   : > { %12912 = vmatpush3.msra.mxu0 %v4233_v3  ;;  %v4255_v1 = vmul.f32 %v4252_v26, %v15389_v44 }
0x147f   : > { %12914 = vmatmul.mubr.msk.f32.vlgmr.msra.gmra.mrb[64].mxu0 %vm309_vm1, %v15192_v15  ;;  %13779 = vmatprep.subr.bf16.mxu0 %v18299_v8 }
0x1480   : > { %12916 = vmatprep.mubr.msk.f32.mxu0 %vm309_vm1, %v15200_v16  ;;  %v4263_v45 = vadd.f32 %v4255_v1, %v4243_v38  ;;  %v4248_v38 = vmul.f32 %v4240_v28, %v16126_v11  ;;  %v4265_v1 = vadd.f32 %v4257_v33, %v4245_v63 }
0x1483   : > { %12917 = vmatmul.mubr.msk.f32.gmra.mrb[66].mxu0 %vm309_vm1, %v15207_v17 }
0x1484   : > { %12919 = vmatprep.mubr.msk.f32.mxu0 %vm309_vm1, %v15212_v18 }
0x1487   : > { %12920 = vmatmul.mubr.msk.f32.gmra.mrb[68].mxu0 %vm309_vm1, %v15225_v21 }
0x1488   : > { %12922 = vmatprep.mubr.msk.f32.mxu0 %vm309_vm1, %v15217_v19 }
0x148b   : > { %12923 = vmatmul.mubr.msk.f32.gmra.mrb[70].mxu0 %vm309_vm1, %v15230_v22 }
0x148c   : > { %12953 = vmatprep.mubr.msk.f32.mxu0 %vm15072_vm11, %v18298_v30 }
0x1552   : > { %v12915_v10 = vpop.f32.mrb[64].mxu0 }
0x1553   : > { %v4341_v36 = vadd.f32 %v12915_v10, %v4262_v42  ;;  %v4335_v56 = vpop.f32.mrb[65].mxu0 }
0x1554   : > { %v4336_v3 = vadd.f32 %v4335_v56, %v4261_v58 }
0x1555   : > { %v4379_v34 = vadd.f32 %v11549_v6, %v4341_v36  ;;  %v4266_v36 = vadd.f32 %v4258_v4, %v4246_v7 }
0x1556   : > { %v4378_v27 = vadd.f32 %v11549_v6, %v4336_v3  ;;  %v12918_v35 = vpop.f32.mrb[66].mxu0 }
0x1557   : > { %v16331_v31 = vadd.f32 %v4379_v34, %v16280_v13  ;;  %v4351_v40 = vadd.f32 %v12918_v35, %v4264_v62  ;;  %v4345_v2 = vpop.f32.mrb[67].mxu0  ;;  %v4247_v34 = vmul.f32 %v4240_v28, %v16129_v5 }
0x1558   : > { %v16335_v49 = vadd.f32 %v4378_v27, %v16280_v13  ;;  %v4346_v42 = vadd.f32 %v4345_v2, %v4263_v45  ;;  %v4260_v45 = vmul.f32 %v4252_v26, %v15425_v32  ;;  %v4259_v2 = vmul.f32 %v4252_v26, %v15412_v61 }
0x1559   : > { %v11551_v10 = vmul.f32 -1.442695, %v16331_v31  ;;  %v4381_v58 = vadd.f32 %v11549_v6, %v4351_v40 }
0x155a   : > { %v11550_v56 = vmul.f32 -1.442695, %v16335_v49  ;;  %v4380_v9 = vadd.f32 %v11549_v6, %v4346_v42  ;;  %v12921_v3 = vpop.f32.mrb[68].mxu0  ;;  %v4268_v42 = vadd.f32 %v4260_v45, %v4248_v38 }
0x155b   : > { %14384 = vpow2.f32 %v11551_v10  ;;  %v16343_v62 = vadd.f32 %v4381_v58, %v16280_v13  ;;  %v4361_v27 = vadd.f32 %v12921_v3, %v4266_v36  ;;  %v4355_v35 = vpop.f32.mrb[69].mxu0  ;;  %v4267_v58 = vadd.f32 %v4259_v2, %v4247_v34 }
0x155c   : > { %14386 = vpow2.f32 %v11550_v56  ;;  %v16347_v7 = vadd.f32 %v4380_v9, %v16280_v13  ;;  %v4356_v40 = vadd.f32 %v4355_v35, %v4265_v1 }
0x155d   : > { %v11553_v4 = vmul.f32 -1.442695, %v16343_v62  ;;  %v4383_v63 = vadd.f32 %v11549_v6, %v4361_v27 }
0x155e   : > { %v11552_v28 = vmul.f32 -1.442695, %v16347_v7  ;;  %v4382_v33 = vadd.f32 %v11549_v6, %v4356_v40  ;;  %v12924_v10 = vpop.f32.mrb[70].mxu0 }
0x155f   : > { %14388 = vpow2.f32 %v11553_v4  ;;  %v16353_v36 = vadd.f32 %v4383_v63, %v16280_v13  ;;  %v4371_v56 = vadd.f32 %v12924_v10, %v4268_v42  ;;  %v4365_v3 = vpop.f32.mrb[71].mxu0 }
0x1560   : > { %14390 = vpow2.f32 %v11552_v28  ;;  %v4390_v9 = vadd.f32 %v4382_v33, %v16280_v13  ;;  %v4366_v1 = vadd.f32 %v4365_v3, %v4267_v58 }
0x1561   : > { %v11555_v26 = vmul.f32 -1.442695, %v16353_v36  ;;  %v4385_v35 = vadd.f32 %v11549_v6, %v4371_v56 }
0x1562   : > { %v11554_v27 = vmul.f32 -1.442695, %v4390_v9  ;;  %v4384_v38 = vadd.f32 %v11549_v6, %v4366_v1 }
0x1563   : > { %14392 = vpow2.f32 %v11555_v26  ;;  %v4393_v45 = vadd.f32 %v4385_v35, %v16280_v13  ;;  %v4080_v35 = vld [vmem:[%s18247_s3 + $0x3d8] sm:$0xff] }
0x1564   : > { %14394 = vpow2.f32 %v11554_v27  ;;  %v4392_v34 = vadd.f32 %v4384_v38, %v16280_v13  ;;  %v4081_v27 = vld [vmem:[%s18247_s3 + $0x3e0] sm:$0xff] }
0x1565   : > { %v14385_v40 = vpop.eup %14384  ;;  %v11557_v2 = vmul.f32 -1.442695, %v4393_v45 }
0x1566   : > { %v14387_v4 = vpop.eup %14386  ;;  %v4419_v63 = vadd.f32 1.0, %v14385_v40  ;;  %v11556_v42 = vmul.f32 -1.442695, %v4392_v34 }
0x1567   : > { %v4418_v28 = vadd.f32 1.0, %v14387_v4  ;;  %14396 = vpow2.f32 %v11557_v2 }
0x1568   : > { %14398 = vrcp.f32 %v4419_v63 }
0x1569   : > { %v14389_v33 = vpop.eup %14388  ;;  %14400 = vrcp.f32 %v4418_v28 }
0x156a   : > { %v14391_v10 = vpop.eup %14390  ;;  %v4421_v58 = vadd.f32 1.0, %v14389_v33  ;;  %14402 = vpow2.f32 %v11556_v42  ;;  %v13786_v42 = vpack.c.bf16 %v4081_v27, %v4080_v35 }
0x156b   : > { %v4420_v6 = vadd.f32 1.0, %v14391_v10  ;;  %v4082_v10 = vld [vmem:[%s18247_s3 + $0x3e8] sm:$0xff] }
0x156c   : > { %14404 = vrcp.f32 %v4421_v58  ;;  %v4083_v58 = vld [vmem:[%s18247_s3 + $0x3f0] sm:$0xff] }
0x156d   : > { %v14393_v56 = vpop.eup %14392  ;;  %14406 = vrcp.f32 %v4420_v6 }
0x156e   : > { %v14395_v3 = vpop.eup %14394  ;;  %v4423_v1 = vadd.f32 1.0, %v14393_v56 }
0x156f   : > { %v4422_v13 = vadd.f32 1.0, %v14395_v3 }
0x1570   : > { %14408 = vrcp.f32 %v4423_v1 }
0x1571   : > { %v14397_v26 = vpop.eup %14396  ;;  %14410 = vrcp.f32 %v4422_v13 }
0x1572   : > { %v14399_v38 = vpop.eup %14398  ;;  %v4425_v40 = vadd.f32 1.0, %v14397_v26 }
0x1573   : > { %v14401_v2 = vpop.eup %14400  ;;  %v4443_v28 = vmul.f32 %v14399_v38, %v16331_v31  ;;  %v13789_v31 = vpack.c.bf16 %v4083_v58, %v4082_v10 }
0x1574   : > { %v14403_v4 = vpop.eup %14402  ;;  %v4442_v63 = vmul.f32 %v14401_v2, %v16335_v49  ;;  %14412 = vrcp.f32 %v4425_v40  ;;  %v4087_v40 = vld [vmem:[%s18247_s3 + $0x410] sm:$0xff] }
0x1575   : > { %v4424_v33 = vadd.f32 1.0, %v14403_v4  ;;  %v11558_v4 = vld [vmem:[%s18247_s3 + $0x3d0] ss:$0 sm:$0xff] }
0x1576   : > { %v14405_v6 = vpop.eup %14404  ;;  %12933 = vmatprep.mubr.msk.f32.mxu1 %vm619_vm14, %v4442_v63 }
0x1577   : > { %v14407_v56 = vpop.eup %14406  ;;  %14414 = vrcp.f32 %v4424_v33  ;;  %12934 = vmatmul.mubr.msk.f32.vlgmr.msra.gmra.mrb[64].mxu1 %vm619_vm14, %v4443_v28  ;;  %v4445_v3 = vmul.f32 %v14405_v6, %v16343_v62 }
0x1578   : > { %v4444_v49 = vmul.f32 %v14407_v56, %v16347_v7  ;;  %13787 = vmatpush3.bf16.msra.mxu1 %v13786_v42 }
0x1579   : > { %13788 = vmatprep.subr.bf16.mxu1 %v18299_v8 }
0x157a   : > { %v14409_v1 = vpop.eup %14408  ;;  %12936 = vmatprep.mubr.msk.f32.mxu1 %vm619_vm14, %v4444_v49 }
0x157b   : > { %v14411_v13 = vpop.eup %14410  ;;  %12937 = vmatmul.mubr.msk.f32.gmra.mrb[66].mxu1 %vm619_vm14, %v4445_v3  ;;  %v4447_v35 = vmul.f32 %v14409_v1, %v16353_v36  ;;  %v4084_v36 = vld [vmem:[%s18247_s3 + $0x3f8] sm:$0xff] }
0x157c   : > { %v4446_v26 = vmul.f32 %v14411_v13, %v4390_v9  ;;  %13790 = vmatpush3.bf16.msra.mxu1 %v13789_v31  ;;  %v4085_v9 = vld [vmem:[%s18247_s3 + $0x400] sm:$0xff] }
0x157d   : > { %13797 = vmatprep.subr.bf16.mxu1 %v18299_v8 }
0x157e   : > { %12939 = vmatprep.mubr.msk.f32.mxu1 %vm619_vm14, %v4446_v26  ;;  %v14413_v7 = vpop.eup %14412 }
0x157f   : > { %12940 = vmatmul.mubr.msk.f32.gmra.mrb[68].mxu1 %vm619_vm14, %v4447_v35  ;;  %v4449_v38 = vmul.f32 %v14413_v7, %v4393_v45  ;;  %v13780_v45 = vpack.c.bf16 %v4085_v9, %v4084_v36 }
0x1581   : > { %v14415_v62 = vpop.eup %14414  ;;  %13781 = vmatpush3.bf16.msra.mxu0 %v13780_v45 }
0x1582   : > { %v4448_v27 = vmul.f32 %v14415_v62, %v4392_v34  ;;  %13782 = vmatprep.subr.bf16.mxu0 %v18299_v8  ;;  %v4086_v34 = vld [vmem:[%s18247_s3 + $0x408] sm:$0xff] }
0x1583   : > { %v13783_v2 = vpack.c.bf16 %v4087_v40, %v4086_v34 }
0x1584   : > { %12942 = vmatprep.mubr.msk.f32.mxu1 %vm619_vm14, %v4448_v27 }
0x1585   : > { %12943 = vmatmul.mubr.msk.f32.gmra.mrb[70].mxu1 %vm619_vm14, %v4449_v38  ;;  %13784 = vmatpush3.bf16.msra.mxu0 %v13783_v2 }
0x1586   : > { %12964 = vmatprep.mubr.msk.f32.mxu1 %vm15072_vm11, %v18298_v30  ;;  %13791 = vmatprep.subr.bf16.mxu0 %v18299_v8 }
0x1589   : > { %12965 = vmatmul.mubr.msk.f32.vlgmr.msra.gmra.mrb[72].mxu1 %vm619_vm14, %v16272_v59 }
0x158a   : > { %12986 = vmatprep.mubr.msk.f32.mxu1 %vm15072_vm11, %v18298_v30 }
0x164a   : > { %v12935_v63 = vpop.f32.mrb[64].mxu1 }
0x164b   : > { %v4550_v42 = vadd.f32 %v12935_v63, %v11558_v4  ;;  %v4544_v28 = vpop.f32.mrb[65].mxu1 }
0x164c   : > { %v4545_v33 = vadd.f32 %v11558_v4, %v4544_v28 }
0x164d   : > { %v11568_v10 = vmul.f32 -1.442695, %v4550_v42 }
0x164e   : > { %v11567_v58 = vmul.f32 -1.442695, %v4545_v33  ;;  %v12938_v6 = vpop.f32.mrb[66].mxu1 }
0x164f   : > { %14416 = vpow2.f32 %v11568_v10  ;;  %v4560_v56 = vadd.f32 %v12938_v6, %v11558_v4  ;;  %v4554_v49 = vpop.f32.mrb[67].mxu1 }
0x1650   : > { %14418 = vpow2.f32 %v11567_v58  ;;  %v4555_v31 = vadd.f32 %v11558_v4, %v4554_v49 }
0x1651   : > { %v11570_v3 = vmul.f32 -1.442695, %v4560_v56 }
0x1652   : > { %v11569_v1 = vmul.f32 -1.442695, %v4555_v31  ;;  %v12941_v13 = vpop.f32.mrb[68].mxu1 }
0x1653   : > { %14420 = vpow2.f32 %v11570_v3  ;;  %v4570_v26 = vadd.f32 %v12941_v13, %v11558_v4  ;;  %v4564_v35 = vpop.f32.mrb[69].mxu1 }
0x1654   : > { %14422 = vpow2.f32 %v11569_v1  ;;  %v4565_v7 = vadd.f32 %v11558_v4, %v4564_v35 }
0x1655   : > { %v11572_v62 = vmul.f32 -1.442695, %v4570_v26 }
0x1656   : > { %v11571_v27 = vmul.f32 -1.442695, %v4565_v7 }
0x1657   : > { %14424 = vpow2.f32 %v11572_v62 }
0x1658   : > { %14426 = vpow2.f32 %v11571_v27  ;;  %v12944_v38 = vpop.f32.mrb[70].mxu1 }
0x1659   : > { %v14417_v36 = vpop.eup %14416  ;;  %v4580_v9 = vadd.f32 %v12944_v38, %v11558_v4  ;;  %v4574_v45 = vpop.f32.mrb[71].mxu1 }
0x165a   : > { %v14419_v34 = vpop.eup %14418  ;;  %v4608_v40 = vadd.f32 1.0, %v14417_v36  ;;  %v4575_v2 = vadd.f32 %v11558_v4, %v4574_v45 }
0x165b   : > { %v4607_v63 = vadd.f32 1.0, %v14419_v34  ;;  %v11574_v28 = vmul.f32 -1.442695, %v4580_v9 }
0x165c   : > { %14428 = vrcp.f32 %v4608_v40  ;;  %v11573_v10 = vmul.f32 -1.442695, %v4575_v2  ;;  %v16409_v58 = vpop.f32.mrb[72].mxu1 }
0x165d   : > { %v14421_v6 = vpop.eup %14420  ;;  %14430 = vrcp.f32 %v4607_v63  ;;  %v12966_v49 = vpop.f32.mrb[73].mxu1 }
0x165e   : > { %v14423_v3 = vpop.eup %14422  ;;  %v4610_v1 = vadd.f32 1.0, %v14421_v6  ;;  %14432 = vpow2.f32 %v11574_v28 }
0x165f   : > { %v4609_v13 = vadd.f32 1.0, %v14423_v3  ;;  %14434 = vpow2.f32 %v11573_v10 }
0x1660   : > { %14436 = vrcp.f32 %v4610_v1 }
0x1661   : > { %v14425_v35 = vpop.eup %14424  ;;  %14438 = vrcp.f32 %v4609_v13 }
0x1662   : > { %v14427_v62 = vpop.eup %14426  ;;  %v4612_v27 = vadd.f32 1.0, %v14425_v35 }
0x1663   : > { %v4611_v4 = vadd.f32 1.0, %v14427_v62 }
0x1664   : > { %14440 = vrcp.f32 %v4612_v27 }
0x1665   : > { %14442 = vrcp.f32 %v4611_v4 }
0x1666   : > { %v14429_v38 = vpop.eup %14428 }
0x1667   : > { %v14431_v36 = vpop.eup %14430  ;;  %v4632_v45 = vmul.f32 %v14429_v38, %v4550_v42 }
0x1668   : > { %v14433_v34 = vpop.eup %14432  ;;  %v4631_v40 = vmul.f32 %v14431_v36, %v4545_v33 }
0x1669   : > { %v14435_v63 = vpop.eup %14434  ;;  %v4640_v49 = vmul.f32 %v4632_v45, %v15492_v23  ;;  %v4614_v6 = vadd.f32 1.0, %v14433_v34 }
0x166a   : > { %v14437_v28 = vpop.eup %14436  ;;  %v4639_v10 = vmul.f32 %v4631_v40, %v15480_v29  ;;  %v4613_v3 = vadd.f32 1.0, %v14435_v63 }
0x166b   : > { %v14439_v1 = vpop.eup %14438  ;;  %v4648_v13 = vsel %vm619_vm14, %v4640_v49, 0.0  ;;  %v4634_v35 = vmul.f32 %v14437_v28, %v4560_v56  ;;  %14444 = vrcp.f32 %v4614_v6 }
0x166c   : > { %v4647_v62 = vsel %vm619_vm14, %v4639_v10, 0.0  ;;  %v4633_v27 = vmul.f32 %v14439_v1, %v4555_v31  ;;  %14446 = vrcp.f32 %v4613_v3 }
0x166d   : > { %v4649_v42 = vadd.f32 %v4648_v13, %v4647_v62  ;;  %v4642_v33 = vmul.f32 %v4634_v35, %v15488_v0  ;;  %v4092_v62 = vld [vmem:[%s18247_s3 + $0x438] sm:$0xff] }
0x166e   : > { %v14441_v4 = vpop.eup %14440  ;;  %v4641_v23 = vmul.f32 %v4633_v27, %v15485_v57 }
0x166f   : > { %v14443_v38 = vpop.eup %14442  ;;  %v4636_v36 = vmul.f32 %v14441_v4, %v4570_v26  ;;  %v4652_v40 = vsel %vm619_vm14, %v4642_v33, 0.0 }
0x1670   : > { %v4650_v29 = vsel %vm619_vm14, %v4641_v23, 0.0  ;;  %v4635_v45 = vmul.f32 %v14443_v38, %v4565_v7 }
0x1671   : > { %v4651_v34 = vadd.f32 %v4650_v29, %v4649_v42  ;;  %v4644_v56 = vmul.f32 %v4636_v36, %v15498_v39  ;;  %v11577_v42 = vld [vmem:[%s18247_s3 + $0x418] ss:$0 sm:$0xff] }
0x1672   : > { %v4643_v63 = vmul.f32 %v4635_v45, %v15490_v12 }
0x1673   : > { %v4653_v31 = vadd.f32 %v4652_v40, %v4651_v34  ;;  %v4656_v57 = vsel %vm619_vm14, %v4644_v56, 0.0  ;;  %v4896_v56 = vld [vmem:[%s18247_s3 + $0x448] sm:$0xff] }
0x1674   : > { %v4654_v49 = vsel %vm619_vm14, %v4643_v63, 0.0  ;;  %v4900_v63 = vld [vmem:[%s18247_s3 + $0x468] sm:$0xff] }
0x1675   : > { %v14445_v6 = vpop.eup %14444  ;;  %v4655_v28 = vadd.f32 %v4654_v49, %v4653_v31  ;;  %v4901_v49 = vld [vmem:[%s18247_s3 + $0x470] sm:$0xff] }
0x1676   : > { %v14447_v0 = vpop.eup %14446  ;;  %v4638_v10 = vmul.f32 %v14445_v6, %v4580_v9  ;;  %v4089_v9 = vld [vmem:[%s18247_s3 + $0x420] sm:$0xff]  ;;  %v13804_v6 = vpack.c.bf16 %v4901_v49, %v4900_v63 }
0x1677   : > { %v4637_v26 = vmul.f32 %v14447_v0, %v4575_v2  ;;  %v4657_v3 = vadd.f32 %v4656_v57, %v4655_v28  ;;  %v4091_v2 = vld [vmem:[%s18247_s3 + $0x430] sm:$0xff]  ;;  %v4898_v28 = vld [vmem:[%s18247_s3 + $0x458] sm:$0xff]  ;;  %v4899_v0 = vld [vmem:[%s18247_s3 + $0x460] sm:$0xff] }
0x1678   : > { %v4646_v7 = vmul.f32 %v4638_v10, %v18317_v24  ;;  %v4090_v24 = vld [vmem:[%s18247_s3 + $0x428] sm:$0xff]  ;;  %v13795_v27 = vpack.c.bf16 %v4092_v62, %v4091_v2  ;;  %v4902_v57 = vld [vmem:[%s18247_s3 + $0x478] sm:$0xff]  ;;  %v13801_v10 = vpack.c.bf16 %v4899_v0, %v4898_v28  ;;  %v4907_v62 = vld [vmem:[%s18247_s3 + $0x4a0] sm:$0xff] }
0x1679   : > { %v4645_v1 = vmul.f32 %v4637_v26, %v18318_v60  ;;  %v13792_v60 = vpack.c.bf16 %v4090_v24, %v4089_v9  ;;  %v4903_v26 = vld [vmem:[%s18247_s3 + $0x480] sm:$0xff] }
0x167a   : > { %v4660_v12 = vsel %vm619_vm14, %v4646_v7, 0.0  ;;  %v11579_v7 = vld [vmem:[%s18247_s3 + $0x440] ss:$0 sm:$0xff] }
0x167b   : > { %v4658_v13 = vsel %vm619_vm14, %v4645_v1, 0.0 }
0x167c   : > { %v4659_v39 = vadd.f32 %v4658_v13, %v4657_v3  ;;  %v13807_v3 = vpack.c.bf16 %v4903_v26, %v4902_v57 }
0x167e   : > { %v4661_v35 = vadd.f32 %v4660_v12, %v4659_v39 }
0x1680   : > { %12954 = vmatmul.mubr.msk.f32.vlgmr.msra.gmra.mrb[72].mxu0 %vm619_vm14, %v4661_v35 }
0x1681   : > { %12975 = vmatprep.mubr.msk.f32.mxu0 %vm15072_vm11, %v18298_v30  ;;  %13793 = vmatpush3.bf16.msra.mxu0 %v13792_v60 }
0x1682   : > { %13794 = vmatprep.subr.bf16.mxu0 %v18299_v8 }
0x1685   : > { %13796 = vmatpush3.bf16.msra.mxu0 %v13795_v27 }
0x1686   : > { %13803 = vmatprep.subr.bf16.mxu0 %v18299_v8 }
0x1753   : > { %v4731_v4 = vpop.f32.mrb[72].mxu0 }
0x1754   : > { %v4802_v33 = vadd.f32 %v16409_v58, %v4731_v4  ;;  %v12955_v23 = vpop.f32.mrb[73].mxu0  ;;  %v4897_v58 = vld [vmem:[%s18247_s3 + $0x450] sm:$0xff] }
0x1755   : > { %v13798_v31 = vpack.c.bf16 %v4897_v58, %v4896_v56  ;;  %v4909_v4 = vld [vmem:[%s18247_s3 + $0x4b0] sm:$0xff]  ;;  %v16520_v23 = vld [vmem:[%s15166_s5 + $0x8] sm:$0xff] }
0x1756   : > { %v4809_v38 = vadd.f32 %v11577_v42, %v4802_v33  ;;  %v4908_v42 = vld [vmem:[%s18247_s3 + $0x4a8] sm:$0xff]  ;;  %5943 = vrot.lane.b32.xlu1 %v16520_v23, %s15070_s6 }
0x1757   : > { %13799 = vmatpush3.bf16.msra.mxu1 %v13798_v31  ;;  %v13813_v33 = vpack.c.bf16 %v4909_v4, %v4908_v42  ;;  %v11591_v31 = vld [vmem:[%s18247_s3 + $0x490] ss:$0 sm:$0xff] }
0x1758   : > { %v11578_v36 = vmul.f32 -1.442695, %v4809_v38  ;;  %13800 = vmatprep.subr.bf16.mxu1 %v18299_v8 }
0x175a   : > { %14448 = vpow2.f32 %v11578_v36 }
0x175b   : > { %13802 = vmatpush3.bf16.msra.mxu1 %v13801_v10 }
0x1764   : > { %v14449_v29 = vpop.eup %14448 }
0x1765   : > { %v4813_v45 = vadd.f32 1.0, %v14449_v29 }
0x1767   : > { %14450 = vrcp.f32 %v4813_v45 }
0x1771   : > { %v14451_v34 = vpop.eup %14450 }
0x1772   : > { %v4816_v40 = vmul.f32 %v14451_v34, %v4809_v38  ;;  %v4904_v38 = vld [vmem:[%s18247_s3 + $0x488] sm:$0x3] }
0x1773   : > { %v5061_v36 = vrot.slane %v4904_v38, %v15394_v47  ;;  %v5073_v45 = vrot.slane %v4904_v38, %v15397_v48 }
0x1774   : > { %12976 = vmatmul.mubr.msk.f32.vlgmr.msra.gmra.mrb[74].mxu0 %vm619_vm14, %v4816_v40 }
0x1775   : > { %12997 = vmatprep.mubr.msk.f32.mxu0 %vm15072_vm11, %v18298_v30  ;;  %13805 = vmatpush3.bf16.msra.mxu0 %v13804_v6  ;;  %v5063_v29 = vmul.f32 %v5061_v36, %v16105_v51  ;;  %v5062_v34 = vmul.f32 %v5061_v36, %v16097_v53  ;;  %v5075_v40 = vmul.f32 %v5073_v45, %v15385_v41 }
0x1776   : > { %13806 = vmatprep.subr.bf16.mxu0 %v18299_v8  ;;  %v5074_v56 = vmul.f32 %v5073_v45, %v15406_v54  ;;  %v5065_v63 = vmul.f32 %v5061_v36, %v16107_v55  ;;  %v5064_v28 = vmul.f32 %v5061_v36, %v16099_v25  ;;  %v5077_v10 = vmul.f32 %v5073_v45, %v15387_v43 }
0x1777   : > { %v5083_v58 = vadd.f32 %v5075_v40, %v5063_v29  ;;  %v5076_v41 = vmul.f32 %v5073_v45, %v15389_v44 }
0x1778   : > { %v5082_v6 = vadd.f32 %v5074_v56, %v5062_v34  ;;  %v5085_v54 = vadd.f32 %v5077_v10, %v5065_v63  ;;  %v5068_v56 = vmul.f32 %v5061_v36, %v16129_v5 }
0x1779   : > { %13808 = vmatpush3.bf16.msra.mxu0 %v13807_v3 }
0x1847   : > { %v4890_v1 = vpop.f32.mrb[74].mxu0 }
0x1848   : > { %v4891_v13 = vadd.f32 %v11579_v7, %v4890_v1  ;;  %v12977_v39 = vpop.f32.mrb[75].mxu0  ;;  %v5067_v7 = vmul.f32 %v5061_v36, %v16113_v52 }
0x1849   : > { %v5084_v39 = vadd.f32 %v5076_v41, %v5064_v28  ;;  %v5080_v28 = vmul.f32 %v5073_v45, %v15412_v61 }
0x184a   : > { %v4894_v12 = vadd.f32 %v4891_v13, %v16272_v59  ;;  %v4906_v59 = vld [vmem:[%s18247_s3 + $0x498] sm:$0xff] }
0x184b   : > { %v13809_v27 = vpack.c.bf16 %v4907_v62, %v4906_v59  ;;  %v5079_v59 = vmul.f32 %v5073_v45, %v15391_v46  ;;  %v5078_v62 = vmul.f32 %v5073_v45, %v15402_v50  ;;  %v5081_v50 = vmul.f32 %v5073_v45, %v15425_v32 }
0x184c   : > { %v16482_v35 = vmul.f32 %v4894_v12, %v15589_v37  ;;  %v5066_v12 = vmul.f32 %v5061_v36, %v16116_v20 }
0x184d   : > { %13810 = vmatprep.subr.bf16.mxu0 %v13809_v27  ;;  %v5087_v4 = vadd.f32 %v5079_v59, %v5067_v7 }
0x184e   : > { %12987 = vmatmul.mubr.msk.f32.vlgmr.msra.gmra.mrb[74].mxu1 %vm619_vm14, %v16482_v35  ;;  %12998 = vmatmul.mubr.msk.f32.vlgmr.msra.gmra.mrb[76].mxu0 %vm619_vm14, %v16482_v35  ;;  %v5086_v40 = vadd.f32 %v5078_v62, %v5066_v12 }
0x184f   : > { %13002 = vmatprep.mubr.msk.f32.mxu1 %vm309_vm1, %v15185_v14  ;;  %13812 = vmatpush3.bf16.msra.mxu0 %v13809_v27 }
0x1850   : > { %13814 = vmatprep.subr.bf16.mxu0 %v13813_v33 }
0x1853   : > { %13816 = vmatpush3.bf16.msra.mxu0 %v13813_v33  ;;  %v5069_v33 = vmul.f32 %v5061_v36, %v16126_v11 }
0x1854   : > { %13825 = vmatprep.subr.bf16.mxu0 %v18299_v8 }
0x1855   : > { %v5089_v10 = vadd.f32 %v5081_v50, %v5069_v33  ;;  %v5664_v50 = vld [vmem:[%s18247_s3 + $0x4e8] sm:$0xff] }
0x1921   : > { %v16490_v9 = vpop.f32.mrb[74].mxu1  ;;  %v5054_v24 = vpop.f32.mrb[76].mxu0 }
0x1922   : > { %v12988_v60 = vpop.f32.mrb[75].mxu1  ;;  %v12999_v2 = vpop.f32.mrb[77].mxu0  ;;  %13000 = vmatprep.subr.mxu1 %v5054_v24 }
0x1923   : > { %13001 = vmatpush3.msra.mxu1 %v5054_v24 }
0x1924   : > { %13003 = vmatmul.mubr.msk.f32.vlgmr.msra.gmra.mrb[76].mxu1 %vm309_vm1, %v15192_v15 }
0x1925   : > { %13005 = vmatprep.mubr.msk.f32.mxu1 %vm309_vm1, %v15200_v16 }
0x1928   : > { %13006 = vmatmul.mubr.msk.f32.gmra.mrb[78].mxu1 %vm309_vm1, %v15207_v17 }
0x1929   : > { %13008 = vmatprep.mubr.msk.f32.mxu1 %vm309_vm1, %v15212_v18 }
0x192c   : > { %13009 = vmatmul.mubr.msk.f32.gmra.mrb[80].mxu1 %vm309_vm1, %v15225_v21 }
0x192d   : > { %13011 = vmatprep.mubr.msk.f32.mxu1 %vm309_vm1, %v15217_v19 }
0x1930   : > { %13012 = vmatmul.mubr.msk.f32.gmra.mrb[82].mxu1 %vm309_vm1, %v15230_v22 }
0x19f7   : > { %v13004_v49 = vpop.f32.mrb[76].mxu1 }
0x19f8   : > { %v5162_v0 = vadd.f32 %v13004_v49, %v5083_v58  ;;  %v5156_v57 = vpop.f32.mrb[77].mxu1 }
0x19f9   : > { %v5157_v26 = vadd.f32 %v5156_v57, %v5082_v6 }
0x19fa   : > { %v5200_v3 = vadd.f32 %v11591_v31, %v5162_v0 }
0x19fb   : > { %v5199_v1 = vadd.f32 %v11591_v31, %v5157_v26  ;;  %v13007_v13 = vpop.f32.mrb[78].mxu1 }
0x19fc   : > { %v16543_v24 = vadd.f32 %v5200_v3, %v16490_v9  ;;  %v5172_v60 = vadd.f32 %v13007_v13, %v5085_v54  ;;  %v5166_v2 = vpop.f32.mrb[79].mxu1  ;;  %v5088_v3 = vadd.f32 %v5080_v28, %v5068_v56 }
0x19fd   : > { %v16547_v43 = vadd.f32 %v5199_v1, %v16490_v9  ;;  %v5167_v44 = vadd.f32 %v5166_v2, %v5084_v39 }
0x19fe   : > { %v11593_v27 = vmul.f32 -1.442695, %v16543_v24  ;;  %v5202_v42 = vadd.f32 %v11591_v31, %v5172_v60 }
0x19ff   : > { %v11592_v38 = vmul.f32 -1.442695, %v16547_v43  ;;  %v5201_v29 = vadd.f32 %v11591_v31, %v5167_v44  ;;  %v13010_v34 = vpop.f32.mrb[80].mxu1 }
0x1a00   : > { %14452 = vpow2.f32 %v11593_v27  ;;  %v16555_v46 = vadd.f32 %v5202_v42, %v16490_v9  ;;  %v5182_v58 = vadd.f32 %v13010_v34, %v5087_v4  ;;  %v5176_v63 = vpop.f32.mrb[81].mxu1 }
0x1a01   : > { %14454 = vpow2.f32 %v11592_v38  ;;  %v16559_v49 = vadd.f32 %v5201_v29, %v16490_v9  ;;  %v5177_v6 = vadd.f32 %v5176_v63, %v5086_v40  ;;  %v5663_v63 = vld [vmem:[%s18247_s3 + $0x4e0] sm:$0xff] }
0x1a02   : > { %v11595_v0 = vmul.f32 -1.442695, %v16555_v46  ;;  %v5204_v57 = vadd.f32 %v11591_v31, %v5182_v58 }
0x1a03   : > { %v11594_v36 = vmul.f32 -1.442695, %v16559_v49  ;;  %v5203_v26 = vadd.f32 %v11591_v31, %v5177_v6  ;;  %v13013_v41 = vpop.f32.mrb[82].mxu1 }
0x1a04   : > { %14456 = vpow2.f32 %v11595_v0  ;;  %v16565_v54 = vadd.f32 %v5204_v57, %v16490_v9  ;;  %v5192_v32 = vadd.f32 %v13013_v41, %v5089_v10  ;;  %v5186_v7 = vpop.f32.mrb[83].mxu1 }
0x1a05   : > { %14458 = vpow2.f32 %v11594_v36  ;;  %v5211_v1 = vadd.f32 %v5203_v26, %v16490_v9  ;;  %v5187_v13 = vadd.f32 %v5186_v7, %v5088_v3  ;;  %v13826_v36 = vpack.c.bf16 %v5664_v50, %v5663_v63  ;;  %v5665_v3 = vld [vmem:[%s18247_s3 + $0x4f0] sm:$0xff] }
0x1a06   : > { %v11597_v61 = vmul.f32 -1.442695, %v16565_v54  ;;  %v5206_v45 = vadd.f32 %v11591_v31, %v5192_v32  ;;  %v5666_v32 = vld [vmem:[%s18247_s3 + $0x4f8] sm:$0xff] }
0x1a07   : > { %v11596_v39 = vmul.f32 -1.442695, %v5211_v1  ;;  %v5205_v12 = vadd.f32 %v11591_v31, %v5187_v13 }
0x1a08   : > { %14460 = vpow2.f32 %v11597_v61  ;;  %v5214_v60 = vadd.f32 %v5206_v45, %v16490_v9 }
0x1a09   : > { %14462 = vpow2.f32 %v11596_v39  ;;  %v5213_v2 = vadd.f32 %v5205_v12, %v16490_v9 }
0x1a0a   : > { %v14453_v59 = vpop.eup %14452  ;;  %v11599_v44 = vmul.f32 -1.442695, %v5214_v60 }
0x1a0b   : > { %v14455_v62 = vpop.eup %14454  ;;  %v5240_v27 = vadd.f32 1.0, %v14453_v59  ;;  %v11598_v42 = vmul.f32 -1.442695, %v5213_v2 }
0x1a0c   : > { %v5239_v4 = vadd.f32 1.0, %v14455_v62  ;;  %14464 = vpow2.f32 %v11599_v44 }
0x1a0d   : > { %14466 = vrcp.f32 %v5240_v27  ;;  %v4914_v27 = vld [vmem:[%s18247_s3 + $0x4d8] sm:$0xff] }
0x1a0e   : > { %v14457_v33 = vpop.eup %14456  ;;  %14468 = vrcp.f32 %v5239_v4  ;;  %v11600_v4 = vld [vmem:[%s18247_s3 + $0x4b8] ss:$0 sm:$0xff] }
0x1a0f   : > { %v14459_v38 = vpop.eup %14458  ;;  %v5242_v29 = vadd.f32 1.0, %v14457_v33  ;;  %14470 = vpow2.f32 %v11598_v42 }
0x1a10   : > { %v5241_v31 = vadd.f32 1.0, %v14459_v38 }
0x1a11   : > { %14472 = vrcp.f32 %v5242_v29 }
0x1a12   : > { %v14461_v34 = vpop.eup %14460  ;;  %14474 = vrcp.f32 %v5241_v31 }
0x1a13   : > { %v14463_v40 = vpop.eup %14462  ;;  %v5244_v56 = vadd.f32 1.0, %v14461_v34 }
0x1a14   : > { %v5243_v9 = vadd.f32 1.0, %v14463_v40 }
0x1a15   : > { %14476 = vrcp.f32 %v5244_v56 }
0x1a16   : > { %v14465_v58 = vpop.eup %14464  ;;  %14478 = vrcp.f32 %v5243_v9 }
0x1a17   : > { %v14467_v6 = vpop.eup %14466  ;;  %v5246_v28 = vadd.f32 1.0, %v14465_v58 }
0x1a18   : > { %v14469_v0 = vpop.eup %14468  ;;  %v5264_v26 = vmul.f32 %v14467_v6, %v16543_v24  ;;  %v13829_v24 = vpack.c.bf16 %v5666_v32, %v5665_v3 }
0x1a19   : > { %v14471_v57 = vpop.eup %14470  ;;  %v5263_v10 = vmul.f32 %v14469_v0, %v16547_v43  ;;  %14480 = vrcp.f32 %v5246_v28 }
0x1a1a   : > { %v5245_v41 = vadd.f32 1.0, %v14471_v57 }
0x1a1b   : > { %v14473_v7 = vpop.eup %14472  ;;  %13022 = vmatprep.mubr.msk.f32.mxu0 %vm619_vm14, %v5263_v10 }
0x1a1c   : > { %v14475_v13 = vpop.eup %14474  ;;  %14482 = vrcp.f32 %v5245_v41  ;;  %13023 = vmatmul.mubr.msk.f32.vlgmr.msra.gmra.mrb[78].mxu0 %vm619_vm14, %v5264_v26  ;;  %v5266_v61 = vmul.f32 %v14473_v7, %v16555_v46 }
0x1a1d   : > { %v5265_v43 = vmul.f32 %v14475_v13, %v16559_v49  ;;  %13827 = vmatpush3.bf16.msra.mxu0 %v13826_v36 }
0x1a1e   : > { %13828 = vmatprep.subr.bf16.mxu0 %v18299_v8 }
0x1a1f   : > { %v14477_v45 = vpop.eup %14476  ;;  %13025 = vmatprep.mubr.msk.f32.mxu0 %vm619_vm14, %v5265_v43 }
0x1a20   : > { %v14479_v39 = vpop.eup %14478  ;;  %13026 = vmatmul.mubr.msk.f32.gmra.mrb[80].mxu0 %vm619_vm14, %v5266_v61  ;;  %v5268_v59 = vmul.f32 %v14477_v45, %v16565_v54  ;;  %v5662_v54 = vmul.f32 %v16482_v35, %v15589_v37  ;;  %v4911_v35 = vld [vmem:[%s18247_s3 + $0x4c0] sm:$0xff] }
0x1a21   : > { %v5267_v12 = vmul.f32 %v14479_v39, %v5211_v1  ;;  %13830 = vmatpush3.bf16.msra.mxu0 %v13829_v24  ;;  %v4912_v1 = vld [vmem:[%s18247_s3 + $0x4c8] sm:$0xff] }
0x1a22   : > { %13065 = vmatprep.subr.mxu0 %v16520_v23 }
0x1a23   : > { %13028 = vmatprep.mubr.msk.f32.mxu0 %vm619_vm14, %v5267_v12  ;;  %v14481_v49 = vpop.eup %14480 }
0x1a24   : > { %13029 = vmatmul.mubr.msk.f32.gmra.mrb[82].mxu0 %vm619_vm14, %v5268_v59  ;;  %v5270_v62 = vmul.f32 %v14481_v49, %v5214_v60  ;;  %v13817_v60 = vpack.c.bf16 %v4912_v1, %v4911_v35 }
0x1a26   : > { %v14483_v46 = vpop.eup %14482  ;;  %13818 = vmatprep.subr.bf16.mxu1 %v13817_v60 }
0x1a27   : > { %v5269_v44 = vmul.f32 %v14483_v46, %v5213_v2  ;;  %13820 = vmatpush3.bf16.msra.mxu1 %v13817_v60  ;;  %v4913_v2 = vld [vmem:[%s18247_s3 + $0x4d0] sm:$0xff] }
0x1a28   : > { %v13821_v42 = vpack.c.bf16 %v4914_v27, %v4913_v2 }
0x1a29   : > { %13031 = vmatprep.mubr.msk.f32.mxu0 %vm619_vm14, %v5269_v44 }
0x1a2a   : > { %13032 = vmatmul.mubr.msk.f32.gmra.mrb[84].mxu0 %vm619_vm14, %v5270_v62  ;;  %13822 = vmatprep.subr.bf16.mxu1 %v13821_v42 }
0x1a2b   : > { %13062 = vmatprep.mubr.msk.f32.mxu0 %vm15072_vm11, %v18298_v30  ;;  %13824 = vmatpush3.bf16.msra.mxu1 %v13821_v42 }
0x1a2c   : > { %13079 = vmatprep.subr.mxu1 %v18298_v30 }
0x1a2e   : > { %13063 = vmatmul.mubr.msk.f32.vlgmr.msra.gmra.mrb[86].mxu0 %vm619_vm14, %v5662_v54 }
0x1a2f   : > { %13066 = vmatpush3.msra.mxu0 %v16520_v23  ;;  %13067 = vmatprep.mubr.msk.f32.mxu0 %vm309_vm1, %v15185_v14 }
0x1a30   : > { %13837 = vmatprep.subr.bf16.mxu0 %v18299_v8 }
0x1a32   : > { %13068 = vmatmul.mubr.msk.f32.vlgmr.msra.gmra.mrb[88].mxu0 %vm309_vm1, %v15192_v15 }
0x1a33   : > { %13070 = vmatprep.mubr.msk.f32.mxu0 %vm309_vm1, %v15200_v16 }
0x1a36   : > { %13071 = vmatmul.mubr.msk.f32.gmra.mrb[90].mxu0 %vm309_vm1, %v15207_v17 }
0x1a37   : > { %13073 = vmatprep.mubr.msk.f32.mxu0 %vm309_vm1, %v15212_v18 }
0x1a3a   : > { %13074 = vmatmul.mubr.msk.f32.gmra.mrb[92].mxu0 %vm309_vm1, %v15225_v21 }
0x1a3b   : > { %13076 = vmatprep.mubr.msk.f32.mxu0 %vm309_vm1, %v15217_v19 }
0x1a3e   : > { %13077 = vmatmul.mubr.msk.f32.gmra.mrb[94].mxu0 %vm309_vm1, %v15230_v22 }
0x1a3f   : > { %13103 = vmatprep.mubr.msk.f32.mxu0 %vm15072_vm11, %v18298_v30 }
0x1aef   : > { %v13024_v33 = vpop.f32.mrb[78].mxu0 }
0x1af0   : > { %v16639_v38 = vadd.f32 %v13024_v33, %v11600_v4  ;;  %v5365_v29 = vpop.f32.mrb[79].mxu0 }
0x1af1   : > { %v16641_v31 = vadd.f32 %v11600_v4, %v5365_v29 }
0x1af2   : > { %v11610_v34 = vmul.f32 -1.442695, %v16639_v38 }
0x1af3   : > { %v11609_v40 = vmul.f32 -1.442695, %v16641_v31  ;;  %v13027_v56 = vpop.f32.mrb[80].mxu0 }
0x1af4   : > { %14484 = vpow2.f32 %v11610_v34  ;;  %v16645_v9 = vadd.f32 %v13027_v56, %v11600_v4  ;;  %v5375_v58 = vpop.f32.mrb[81].mxu0 }
0x1af5   : > { %14486 = vpow2.f32 %v11609_v40  ;;  %v16647_v63 = vadd.f32 %v11600_v4, %v5375_v58 }
0x1af6   : > { %v11612_v50 = vmul.f32 -1.442695, %v16645_v9 }
0x1af7   : > { %v11611_v6 = vmul.f32 -1.442695, %v16647_v63  ;;  %v13030_v28 = vpop.f32.mrb[82].mxu0 }
0x1af8   : > { %14488 = vpow2.f32 %v11612_v50  ;;  %v16651_v0 = vadd.f32 %v13030_v28, %v11600_v4  ;;  %v5385_v57 = vpop.f32.mrb[83].mxu0 }
0x1af9   : > { %14490 = vpow2.f32 %v11611_v6  ;;  %v16653_v10 = vadd.f32 %v11600_v4, %v5385_v57 }
0x1afa   : > { %v11614_v36 = vmul.f32 -1.442695, %v16651_v0 }
0x1afb   : > { %v11613_v26 = vmul.f32 -1.442695, %v16653_v10 }
0x1afc   : > { %14492 = vpow2.f32 %v11614_v36 }
0x1afd   : > { %14494 = vpow2.f32 %v11613_v26  ;;  %v13033_v41 = vpop.f32.mrb[84].mxu0 }
0x1afe   : > { %v14485_v3 = vpop.eup %14484  ;;  %v16657_v32 = vadd.f32 %v13033_v41, %v11600_v4  ;;  %v5395_v7 = vpop.f32.mrb[85].mxu0 }
0x1aff   : > { %v14487_v13 = vpop.eup %14486  ;;  %v5429_v43 = vadd.f32 1.0, %v14485_v3  ;;  %v16659_v24 = vadd.f32 %v11600_v4, %v5395_v7 }
0x1b00   : > { %v5428_v61 = vadd.f32 1.0, %v14487_v13  ;;  %v11616_v45 = vmul.f32 -1.442695, %v16657_v32 }
0x1b01   : > { %14496 = vrcp.f32 %v5429_v43  ;;  %v11615_v39 = vmul.f32 -1.442695, %v16659_v24  ;;  %v16663_v12 = vpop.f32.mrb[86].mxu0 }
0x1b02   : > { %18319 = vst [vmem:[#allocation6_spill] sm:$0xff] %v16663_v12  ;;  %v14489_v59 = vpop.eup %14488  ;;  %14498 = vrcp.f32 %v5428_v61  ;;  %v13064_v49 = vpop.f32.mrb[87].mxu0 }
0x1b03   : > { %v14491_v46 = vpop.eup %14490  ;;  %v5431_v44 = vadd.f32 1.0, %v14489_v59  ;;  %14500 = vpow2.f32 %v11616_v45 }
0x1b04   : > { %v5430_v62 = vadd.f32 1.0, %v14491_v46  ;;  %14502 = vpow2.f32 %v11615_v39  ;;  %v5936_v39 = vld [vmem:[%s18247_s3] sm:$0x3f] }
0x1b05   : > { %14504 = vrcp.f32 %v5431_v44  ;;  %v13069_v54 = vpop.f32.mrb[88].mxu0 }
0x1b06   : > { %v14493_v35 = vpop.eup %14492  ;;  %14506 = vrcp.f32 %v5430_v62  ;;  %v16666_v1 = vsub.f32 %v16520_v23, %v13069_v54  ;;  %v5857_v60 = vpop.f32.mrb[89].mxu0 }
0x1b07   : > { %v14495_v2 = vpop.eup %14494  ;;  %v5433_v27 = vadd.f32 1.0, %v14493_v35  ;;  %v16669_v42 = vsub.f32 %v16520_v23, %v5857_v60 }
0x1b08   : > { %v5432_v4 = vadd.f32 1.0, %v14495_v2  ;;  %v5905_v33 = vmul.f32 %v16666_v1, %v16666_v1 }
0x1b09   : > { %14508 = vrcp.f32 %v5433_v27  ;;  %v13072_v29 = vpop.f32.mrb[90].mxu0  ;;  %v5904_v34 = vmul.f32 %v16669_v42, %v16669_v42 }
0x1b0a   : > { %14510 = vrcp.f32 %v5432_v4  ;;  %v5915_v40 = vsel %vm455_vm13, %v5905_v33, 0.0  ;;  %v16677_v56 = vsub.f32 %v16520_v23, %v13072_v29  ;;  %v5867_v58 = vpop.f32.mrb[91].mxu0 }
0x1b0b   : > { %v14497_v50 = vpop.eup %14496  ;;  %5916 = vadd.xlane.f32.xlu0 %v5915_v40  ;;  %v16680_v6 = vsub.f32 %v16520_v23, %v5867_v58  ;;  %v5912_v57 = vsel %vm455_vm13, %v5904_v34, 0.0 }
0x1b0c   : > { %v14499_v28 = vpop.eup %14498  ;;  %v5907_v36 = vmul.f32 %v16677_v56, %v16677_v56  ;;  %v5453_v13 = vmul.f32 %v14497_v50, %v16639_v38 }
0x1b0d   : > { %v14501_v26 = vpop.eup %14500  ;;  %v5452_v41 = vmul.f32 %v14499_v28, %v16641_v31  ;;  %v13075_v3 = vpop.f32.mrb[92].mxu0  ;;  %v5906_v31 = vmul.f32 %v16680_v6, %v16680_v6 }
0x1b0e   : > { %v14503_v7 = vpop.eup %14502  ;;  %v5435_v43 = vadd.f32 1.0, %v14501_v26  ;;  %v16688_v61 = vsub.f32 %v16520_v23, %v13075_v3  ;;  %v5877_v45 = vpop.f32.mrb[93].mxu0  ;;  %v5921_v38 = vsel %vm455_vm13, %v5907_v36, 0.0  ;;  %v11631_v3 = vld [vmem:[%s15367_s12 + $0x50] sm:$0xff] }
0x1b0f   : > { %v14505_v59 = vpop.eup %14504  ;;  %v5434_v49 = vadd.f32 1.0, %v14503_v7  ;;  %5913 = vadd.xlane.f32.xlu0 %v5912_v57  ;;  %13042 = vmatprep.mubr.msk.f32.mxu1 %vm619_vm14, %v5452_v41  ;;  %v16701_v62 = vsub.f32 %v16520_v23, %v5877_v45  ;;  %v5918_v29 = vsel %vm455_vm13, %v5906_v31, 0.0  ;;  %v11629_v7 = vld [vmem:[%s15367_s12 + $0x40] sm:$0xff]  ;;  %v6044_v31 = vld [vmem:[%s18247_s3 + $0x10] sm:$0xff] }
0x1b10   : > { %v14507_v46 = vpop.eup %14506  ;;  %14512 = vrcp.f32 %v5435_v43  ;;  %13043 = vmatmul.mubr.msk.f32.vlgmr.msra.gmra.mrb[84].mxu1 %vm619_vm14, %v5453_v13  ;;  %v5909_v44 = vmul.f32 %v16688_v61, %v16688_v61  ;;  %v5455_v4 = vmul.f32 %v14505_v59, %v16645_v9  ;;  %v11630_v13 = vld [vmem:[%s15367_s12 + $0x48] sm:$0xff]  ;;  %v11632_v43 = vld [vmem:[%s15367_s12 + $0x58] sm:$0xff]  ;;  %v11633_v45 = vld [vmem:[%s15367_s12 + $0x60] sm:$0xff] }
0x1b11   : > { %v5454_v54 = vmul.f32 %v14507_v46, %v16647_v63  ;;  %14514 = vrcp.f32 %v5434_v49  ;;  %v13078_v35 = vpop.f32.mrb[94].mxu0  ;;  %13080 = vmatpush3.msk.msra.mxu1 %vm492_vm9, %v5936_v39  ;;  %v5908_v34 = vmul.f32 %v16701_v62, %v16701_v62  ;;  %v11634_v39 = vld [vmem:[%s15367_s12 + $0x68] sm:$0xff]  ;;  %v11635_v59 = vld [vmem:[%s15367_s12 + $0x70] sm:$0xff]  ;;  %v6045_v46 = vld [vmem:[%s18247_s3 + $0x18] sm:$0xff] }
0x1b12   : > { %v5927_v60 = vsel %vm455_vm13, %v5909_v44, 0.0  ;;  %v5887_v2 = vpop.f32.mrb[95].mxu0  ;;  %13831 = vmatprep.subr.bf16.mxu1 %v18299_v8  ;;  %v16720_v9 = vsub.f32 %v16520_v23, %v13078_v35  ;;  %v11628_v49 = vld [vmem:[%s15382_s20 + $0x8] sm:$0xff]  ;;  %v13832_v44 = vpack.c.bf16 %v6045_v46, %v6044_v31 }
0x1b13   : > { %v14509_v27 = vpop.eup %14508  ;;  %5922 = vadd.xlane.f32.xlu0 %v5921_v38  ;;  %5928 = vadd.xlane.f32.xlu1 %v5927_v60  ;;  %v16711_v63 = vsub.f32 %v16520_v23, %v5887_v2  ;;  %v5924_v50 = vsel %vm455_vm13, %v5908_v34, 0.0  ;;  %v6048_v38 = vld [vmem:[%s18247_s3 + $0x30] sm:$0xff]  ;;  %v6046_v60 = vld [vmem:[%s18247_s3 + $0x20] sm:$0xff]  ;;  %v6047_v2 = vld [vmem:[%s18247_s3 + $0x28] sm:$0xff] }
0x1b14   : > { %v14511_v33 = vpop.eup %14510  ;;  %13045 = vmatprep.mubr.msk.f32.mxu1 %vm619_vm14, %v5454_v54  ;;  %v5457_v58 = vmul.f32 %v14509_v27, %v16651_v0  ;;  %18321 = vst [vmem:[#allocation25_spill] sm:$0xff] %v16720_v9  ;;  %v5911_v23 = vmul.f32 %v16720_v9, %v16720_v9  ;;  %v6049_v54 = vld [vmem:[%s18247_s3 + $0x38] sm:$0xff]  ;;  %v6050_v27 = vld [vmem:[%s18247_s3 + $0x40] sm:$0xff] }
0x1b15   : > { %18320 = vst [vmem:[#allocation5_spill] sm:$0xff] %v16711_v63  ;;  %v5456_v40 = vmul.f32 %v14511_v33, %v16653_v10  ;;  %13046 = vmatmul.mubr.msk.f32.gmra.mrb[86].mxu1 %vm619_vm14, %v5455_v4  ;;  %v5910_v28 = vmul.f32 %v16711_v63, %v16711_v63  ;;  %v13838_v35 = vpack.c.bf16 %v6049_v54, %v6048_v38  ;;  %v6051_v33 = vld [vmem:[%s18247_s3 + $0x48] sm:$0xff]  ;;  %v6052_v54 = vld [vmem:[%s18247_s3 + $0x50] sm:$0x3] }
0x1b16   : > { %v5933_v41 = vsel %vm455_vm13, %v5911_v23, 0.0  ;;  %v13835_v4 = vpack.c.bf16 %v6047_v2, %v6046_v60  ;;  %v6231_v60 = vrot.slane %v6052_v54, %v15397_v48 }
0x1b17   : > { %5919 = vadd.xlane.f32.xlu0 %v5918_v29  ;;  %13048 = vmatprep.mubr.msk.f32.mxu1 %vm619_vm14, %v5456_v40  ;;  %v5930_v36 = vsel %vm455_vm13, %v5910_v28, 0.0  ;;  %v13841_v29 = vpack.c.bf16 %v6051_v33, %v6050_v27 }
0x1b18   : > { %13839 = vmatpush3.bf16.msra.mxu0 %v13838_v35  ;;  %v6219_v35 = vrot.slane %v6052_v54, %v15394_v47 }
0x1b19   : > { %13049 = vmatmul.mubr.msk.f32.gmra.mrb[88].mxu1 %vm619_vm14, %v5457_v58  ;;  %13840 = vmatprep.subr.bf16.mxu0 %v18299_v8 }
0x1b1a   : > { %v14513_v57 = vpop.eup %14512 }
0x1b1b   : > { %v14515_v10 = vpop.eup %14514  ;;  %5925 = vadd.xlane.f32.xlu0 %v5924_v50  ;;  %v5459_v26 = vmul.f32 %v14513_v57, %v16657_v32  ;;  %v11636_v32 = vld [vmem:[%s15367_s12 + $0x78] sm:$0xff] }
0x1b1c   : > { %v5458_v0 = vmul.f32 %v14515_v10, %v16659_v24  ;;  %v5944_v24 = vpop.permute.xlu1 %5943  ;;  %13842 = vmatpush3.bf16.msra.mxu0 %v13841_v29 }
0x1b1e   : > { %13051 = vmatprep.mubr.msk.f32.mxu1 %vm619_vm14, %v5458_v0 }
0x1b1f   : > { %13052 = vmatmul.mubr.msk.f32.gmra.mrb[90].mxu1 %vm619_vm14, %v5459_v26  ;;  %5931 = vadd.xlane.f32.xlu0 %v5930_v36  ;;  %v11645_v36 = vld [vmem:[%s18247_s3 + $0x8] ss:$0 sm:$0xff] }
0x1b20   : > { %13081 = vmatprep.mubr.msk.f32.mxu1 %vm15072_vm11, %v18298_v30 }
0x1b23   : > { %13082 = vmatmul.mubr.msk.f32.vlgmr.msra.gmra.mrb[92].mxu1 %vm489_vm12, %v5944_v24  ;;  %5934 = vadd.xlane.f32.xlu0 %v5933_v41 }
0x1b24   : > { %6630 = vperm.xlu1 %14098, %v11631_v3   ;;  %13092 = vmatprep.mubr.msk.f32.mxu1 %vm15072_vm11, %v18298_v30 }
0x1b25   : > { %13833 = vmatpush3.bf16.msra.mxu1 %v13832_v44 }
0x1b26   : > { %13834 = vmatprep.subr.bf16.mxu1 %v18299_v8 }
0x1b28   : > { %6655 = vperm.xlu1 %14098, %v11636_v32  }
0x1b29   : > { %13836 = vmatpush3.bf16.msra.mxu1 %v13835_v4 }
0x1b39   : > { %6620 = vperm.xlu0 %14099, %v11629_v7  }
0x1b3d   : > { %6625 = vperm.xlu0 %14099, %v11630_v13   ;;  %v6054_v13 = vld [vmem:[%s18247_s3 + $0x60] sm:$0xff] }
0x1b41   : > { %6635 = vperm.xlu0 %14099, %v11632_v43   ;;  %v6055_v43 = vld [vmem:[%s18247_s3 + $0x68] sm:$0xff] }
0x1b45   : > { %6640 = vperm.xlu0 %14099, %v11633_v45   ;;  %v13843_v45 = vpack.c.bf16 %v6055_v43, %v6054_v13 }
0x1b47   : > { %13844 = vmatprep.subr.bf16.mxu0 %v13843_v45 }
0x1b49   : > { %6645 = vperm.xlu0 %14099, %v11634_v39   ;;  %v6056_v39 = vld [vmem:[%s18247_s3 + $0x70] sm:$0xff] }
0x1b4d   : > { %6650 = vperm.xlu0 %14099, %v11635_v59   ;;  %v6057_v59 = vld [vmem:[%s18247_s3 + $0x78] sm:$0xff] }
0x1b51   : > { %6916 = vperm.xlu0 %14099, %v11628_v49   ;;  %v13847_v49 = vpack.c.bf16 %v6057_v59, %v6056_v39 }
0x1b98   : > { %v16833_v31 = vpop.xlane.xlu0 %5916 }
0x1b99   : > { %v6221_v27 = vmul.f32 %v6219_v35, %v16833_v31  ;;  %v6233_v4 = vmul.f32 %v6231_v60, %v16833_v31 }
0x1b9c   : > { %v16835_v46 = vpop.xlane.xlu0 %5913 }
0x1b9d   : > { %v6220_v33 = vmul.f32 %v6219_v35, %v16835_v46  ;;  %v6232_v29 = vmul.f32 %v6231_v60, %v16835_v46 }
0x1b9f   : > { %v6240_v43 = vadd.f32 %v6232_v29, %v6220_v33 }
0x1ba0   : > { %v16837_v38 = vpop.xlane.xlu0 %5922 }
0x1ba4   : > { %v16839_v44 = vpop.xlane.xlu0 %5919 }
0x1ba5   : > { %v6234_v39 = vmul.f32 %v6231_v60, %v16839_v44 }
0x1ba8   : > { %v16846_v2 = vpop.xlane.xlu0 %5925 }
0x1ba9   : > { %v6224_v11 = vmul.f32 %v6219_v35, %v16846_v2  ;;  %v6236_v5 = vmul.f32 %v6231_v60, %v16846_v2 }
0x1bab   : > { %v6244_v20 = vadd.f32 %v6236_v5, %v6224_v11 }
0x1be3   : > { %v16774_v34 = vpop.f32.mrb[84].mxu1 }
0x1be4   : > { %18322 = vst [vmem:[#allocation26_spill] sm:$0xff] %v16774_v34  ;;  %v16776_v40 = vpop.f32.mrb[85].mxu1 }
0x1be5   : > { %18323 = vst [vmem:[#allocation27_spill] sm:$0xff] %v16776_v40 }
0x1be8   : > { %v16778_v58 = vpop.f32.mrb[86].mxu1 }
0x1be9   : > { %18324 = vst [vmem:[#allocation28_spill] sm:$0xff] %v16778_v58  ;;  %v16780_v50 = vpop.f32.mrb[87].mxu1 }
0x1bea   : > { %18325 = vst [vmem:[#allocation29_spill] sm:$0xff] %v16780_v50 }
0x1bec   : > { %v16782_v28 = vpop.f32.mrb[88].mxu1 }
0x1bed   : > { %18326 = vst [vmem:[#allocation30_spill] sm:$0xff] %v16782_v28  ;;  %v16784_v57 = vpop.f32.mrb[89].mxu1 }
0x1bee   : > { %18327 = vst [vmem:[#allocation31_spill] sm:$0xff] %v16784_v57 }
0x1bf2   : > { %v16786_v10 = vpop.f32.mrb[90].mxu1 }
0x1bf3   : > { %18328 = vst [vmem:[#allocation32_spill] sm:$0xff] %v16786_v10  ;;  %v16788_v0 = vpop.f32.mrb[91].mxu1 }
0x1bf4   : > { %18329 = vst [vmem:[#allocation33_spill] sm:$0xff] %v16788_v0 }
0x1bf6   : > { %v6016_v23 = vpop.f32.mrb[92].mxu1 }
0x1bf7   : > { %v16793_v26 = vadd.f32 %v11645_v36, %v6016_v23  ;;  %v13083_v24 = vpop.f32.mrb[93].mxu1  ;;  %v16852_v36 = vpop.xlane.xlu1 %5928  ;;  %v6241_v23 = vadd.f32 %v6233_v4, %v6221_v27 }
0x1bf8   : > { %v6223_v24 = vmul.f32 %v6219_v35, %v16837_v38  ;;  %v6225_v54 = vmul.f32 %v6219_v35, %v16852_v36  ;;  %v6237_v4 = vmul.f32 %v6231_v60, %v16852_v36 }
0x1bf9   : > { %13093 = vmatmul.mubr.msk.f32.vlgmr.msra.gmra.mrb[94].mxu1 %vm619_vm14, %v16793_v26  ;;  %13104 = vmatmul.mubr.msk.f32.vlgmr.msra.gmra.mrb[96].mxu0 %vm619_vm14, %v16793_v26 }
0x1bfa   : > { %13108 = vmatprep.mubr.msk.f32.mxu1 %vm309_vm1, %v15185_v14  ;;  %13846 = vmatpush3.bf16.msra.mxu0 %v13843_v45  ;;  %v6222_v45 = vmul.f32 %v6219_v35, %v16839_v44  ;;  %v6245_v28 = vadd.f32 %v6237_v4, %v6225_v54 }
0x1bfb   : > { %13848 = vmatprep.subr.bf16.mxu0 %v13847_v49 }
0x1bfc   : > { %v6242_v33 = vadd.f32 %v6234_v39, %v6222_v45 }
0x1bfe   : > { %13850 = vmatpush3.bf16.msra.mxu0 %v13847_v49 }
0x1bff   : > { %13857 = vmatprep.subr.bf16.mxu0 %v18299_v8 }
0x1ccc   : > { %v16801_v41 = vpop.f32.mrb[94].mxu1  ;;  %v6212_v3 = vpop.f32.mrb[96].mxu0 }
0x1ccd   : > { %v13094_v32 = vpop.f32.mrb[95].mxu1  ;;  %v13105_v7 = vpop.f32.mrb[97].mxu0  ;;  %13106 = vmatprep.subr.mxu1 %v6212_v3 }
0x1cce   : > { %13107 = vmatpush3.msra.mxu1 %v6212_v3  ;;  %v6235_v3 = vmul.f32 %v6231_v60, %v16837_v38  ;;  %v16856_v32 = vpop.xlane.xlu0 %5931  ;;  %v11658_v7 = vld [vmem:[%s18247_s3 + $0x58] ss:$0 sm:$0xff] }
0x1ccf   : > { %13109 = vmatmul.mubr.msk.f32.vlgmr.msra.gmra.mrb[96].mxu1 %vm309_vm1, %v15192_v15  ;;  %13851 = vmatprep.subr.bf16.mxu1 %v18299_v8  ;;  %18330 = vst [vmem:[#allocation34_spill] sm:$0xff] %v16856_v32  ;;  %v6238_v39 = vmul.f32 %v6231_v60, %v16856_v32 }
0x1cd0   : > { %13111 = vmatprep.mubr.msk.f32.mxu1 %vm309_vm1, %v15200_v16  ;;  %v6243_v37 = vadd.f32 %v6235_v3, %v6223_v24 }
0x1cd3   : > { %13112 = vmatmul.mubr.msk.f32.gmra.mrb[98].mxu1 %vm309_vm1, %v15207_v17 }
0x1cd4   : > { %13114 = vmatprep.mubr.msk.f32.mxu1 %vm309_vm1, %v15212_v18 }
0x1cd7   : > { %13115 = vmatmul.mubr.msk.f32.gmra.mrb[100].mxu1 %vm309_vm1, %v15225_v21 }
0x1cd8   : > { %13117 = vmatprep.mubr.msk.f32.mxu1 %vm309_vm1, %v15217_v19 }
0x1cdb   : > { %13118 = vmatmul.mubr.msk.f32.gmra.mrb[102].mxu1 %vm309_vm1, %v15230_v22 }
0x1cdc   : > { %13148 = vmatprep.mubr.msk.f32.mxu1 %vm15072_vm11, %v18298_v30 }
0x1da2   : > { %v13110_v13 = vpop.f32.mrb[96].mxu1 }
0x1da3   : > { %v6320_v59 = vadd.f32 %v13110_v13, %v6241_v23  ;;  %v6314_v49 = vpop.f32.mrb[97].mxu1  ;;  %v16870_v13 = vpop.xlane.xlu0 %5934 }
0x1da4   : > { %v6315_v27 = vadd.f32 %v6314_v49, %v6240_v43  ;;  %v6227_v24 = vmul.f32 %v6219_v35, %v16870_v13  ;;  %v6239_v3 = vmul.f32 %v6231_v60, %v16870_v13 }
0x1da5   : > { %v6358_v52 = vadd.f32 %v11658_v7, %v6320_v59 }
0x1da6   : > { %v6357_v10 = vadd.f32 %v11658_v7, %v6315_v27  ;;  %v13113_v12 = vpop.f32.mrb[98].mxu1 }
0x1da7   : > { %v16868_v29 = vadd.f32 %v6358_v52, %v16801_v41  ;;  %v6330_v0 = vadd.f32 %v13113_v12, %v6243_v37  ;;  %v6324_v23 = vpop.f32.mrb[99].mxu1  ;;  %v6226_v12 = vmul.f32 %v6219_v35, %v16856_v32 }
0x1da8   : > { %v16873_v43 = vadd.f32 %v6357_v10, %v16801_v41  ;;  %v6325_v49 = vadd.f32 %v6324_v23, %v6242_v33  ;;  %v6247_v33 = vadd.f32 %v6239_v3, %v6227_v24 }
0x1da9   : > { %v11660_v55 = vmul.f32 -1.442695, %v16868_v29  ;;  %v6360_v59 = vadd.f32 %v11658_v7, %v6330_v0  ;;  %v6246_v60 = vadd.f32 %v6238_v39, %v6226_v12 }
0x1daa   : > { %v11659_v52 = vmul.f32 -1.442695, %v16873_v43  ;;  %v6359_v45 = vadd.f32 %v11658_v7, %v6325_v49  ;;  %v13116_v37 = vpop.f32.mrb[100].mxu1 }
0x1dab   : > { %14516 = vpow2.f32 %v11660_v55  ;;  %v16882_v10 = vadd.f32 %v6360_v59, %v16801_v41  ;;  %v6340_v11 = vadd.f32 %v13116_v37, %v6245_v28  ;;  %v6334_v5 = vpop.f32.mrb[101].mxu1 }
0x1dac   : > { %14518 = vpow2.f32 %v11659_v52  ;;  %v16885_v0 = vadd.f32 %v6359_v45, %v16801_v41  ;;  %v6335_v54 = vadd.f32 %v6334_v5, %v6244_v20 }
0x1dad   : > { %v11662_v27 = vmul.f32 -1.442695, %v16882_v10  ;;  %v6362_v4 = vadd.f32 %v11658_v7, %v6340_v11 }
0x1dae   : > { %v11661_v23 = vmul.f32 -1.442695, %v16885_v0  ;;  %v6361_v35 = vadd.f32 %v11658_v7, %v6335_v54  ;;  %v13119_v49 = vpop.f32.mrb[102].mxu1 }
0x1daf   : > { %14520 = vpow2.f32 %v11662_v27  ;;  %v16890_v55 = vadd.f32 %v6362_v4, %v16801_v41  ;;  %v6350_v28 = vadd.f32 %v13119_v49, %v6247_v33  ;;  %v6344_v59 = vpop.f32.mrb[103].mxu1 }
0x1db0   : > { %14522 = vpow2.f32 %v11661_v23  ;;  %v6369_v52 = vadd.f32 %v6361_v35, %v16801_v41  ;;  %v6345_v45 = vadd.f32 %v6344_v59, %v6246_v60 }
0x1db1   : > { %v11664_v20 = vmul.f32 -1.442695, %v16890_v55  ;;  %v6364_v37 = vadd.f32 %v11658_v7, %v6350_v28 }
0x1db2   : > { %v11663_v11 = vmul.f32 -1.442695, %v6369_v52  ;;  %v6363_v24 = vadd.f32 %v11658_v7, %v6345_v45 }
0x1db3   : > { %14524 = vpow2.f32 %v11664_v20  ;;  %v6372_v3 = vadd.f32 %v6364_v37, %v16801_v41  ;;  %v6059_v20 = vld [vmem:[%s18247_s3 + $0x88] sm:$0xff]  ;;  %v6060_v37 = vld [vmem:[%s18247_s3 + $0x90] sm:$0xff] }
0x1db4   : > { %14526 = vpow2.f32 %v11663_v11  ;;  %v6371_v12 = vadd.f32 %v6363_v24, %v16801_v41 }
0x1db5   : > { %v14517_v39 = vpop.eup %14516  ;;  %v11666_v5 = vmul.f32 -1.442695, %v6372_v3 }
0x1db6   : > { %v14519_v54 = vpop.eup %14518  ;;  %v6398_v27 = vadd.f32 1.0, %v14517_v39  ;;  %v11665_v4 = vmul.f32 -1.442695, %v6371_v12 }
0x1db7   : > { %v6397_v33 = vadd.f32 1.0, %v14519_v54  ;;  %14528 = vpow2.f32 %v11666_v5 }
0x1db8   : > { %14530 = vrcp.f32 %v6398_v27  ;;  %v13858_v27 = vpack.c.bf16 %v6060_v37, %v6059_v20 }
0x1db9   : > { %v14521_v23 = vpop.eup %14520  ;;  %14532 = vrcp.f32 %v6397_v33 }
0x1dba   : > { %v14523_v35 = vpop.eup %14522  ;;  %v6400_v49 = vadd.f32 1.0, %v14521_v23  ;;  %14534 = vpow2.f32 %v11665_v4  ;;  %v6061_v23 = vld [vmem:[%s18247_s3 + $0x98] sm:$0xff] }
0x1dbb   : > { %v6399_v7 = vadd.f32 1.0, %v14523_v35  ;;  %v6062_v35 = vld [vmem:[%s18247_s3 + $0xa0] sm:$0xff] }
0x1dbc   : > { %14536 = vrcp.f32 %v6400_v49 }
0x1dbd   : > { %v14525_v60 = vpop.eup %14524  ;;  %14538 = vrcp.f32 %v6399_v7 }
0x1dbe   : > { %v14527_v28 = vpop.eup %14526  ;;  %v6402_v59 = vadd.f32 1.0, %v14525_v60 }
0x1dbf   : > { %v6401_v41 = vadd.f32 1.0, %v14527_v28 }
0x1dc0   : > { %14540 = vrcp.f32 %v6402_v59 }
0x1dc1   : > { %v14529_v45 = vpop.eup %14528  ;;  %14542 = vrcp.f32 %v6401_v41 }
0x1dc2   : > { %v14531_v11 = vpop.eup %14530  ;;  %v6404_v24 = vadd.f32 1.0, %v14529_v45 }
0x1dc3   : > { %v14533_v39 = vpop.eup %14532  ;;  %v6422_v4 = vmul.f32 %v14531_v11, %v16868_v29  ;;  %v13861_v29 = vpack.c.bf16 %v6062_v35, %v6061_v23  ;;  %v6066_v11 = vld [vmem:[%s18247_s3 + $0xc0] sm:$0xff] }
0x1dc4   : > { %v14535_v5 = vpop.eup %14534  ;;  %v6421_v54 = vmul.f32 %v14533_v39, %v16873_v43  ;;  %14544 = vrcp.f32 %v6404_v24  ;;  %v11667_v39 = vld [vmem:[%s18247_s3 + $0x80] ss:$0 sm:$0xff] }
0x1dc5   : > { %v6403_v33 = vadd.f32 1.0, %v14535_v5 }
0x1dc6   : > { %v14537_v49 = vpop.eup %14536  ;;  %13128 = vmatprep.mubr.msk.f32.mxu0 %vm619_vm14, %v6421_v54 }
0x1dc7   : > { %v14539_v7 = vpop.eup %14538  ;;  %14546 = vrcp.f32 %v6403_v33  ;;  %13129 = vmatmul.mubr.msk.f32.vlgmr.msra.gmra.mrb[98].mxu0 %vm619_vm14, %v6422_v4  ;;  %v6424_v60 = vmul.f32 %v14537_v49, %v16882_v10 }
0x1dc8   : > { %v6423_v43 = vmul.f32 %v14539_v7, %v16885_v0  ;;  %13859 = vmatpush3.bf16.msra.mxu0 %v13858_v27 }
0x1dc9   : > { %13860 = vmatprep.subr.bf16.mxu0 %v18299_v8 }
0x1dca   : > { %v14541_v28 = vpop.eup %14540  ;;  %13131 = vmatprep.mubr.msk.f32.mxu0 %vm619_vm14, %v6423_v43 }
0x1dcb   : > { %v14543_v59 = vpop.eup %14542  ;;  %13132 = vmatmul.mubr.msk.f32.gmra.mrb[100].mxu0 %vm619_vm14, %v6424_v60  ;;  %v6426_v45 = vmul.f32 %v14541_v28, %v16890_v55  ;;  %v6063_v55 = vld [vmem:[%s18247_s3 + $0xa8] sm:$0xff] }
0x1dcc   : > { %v6425_v41 = vmul.f32 %v14543_v59, %v6369_v52  ;;  %13862 = vmatpush3.bf16.msra.mxu0 %v13861_v29  ;;  %v6064_v52 = vld [vmem:[%s18247_s3 + $0xb0] sm:$0xff] }
0x1dcd   : > { %13869 = vmatprep.subr.bf16.mxu0 %v18299_v8 }
0x1dce   : > { %13134 = vmatprep.mubr.msk.f32.mxu0 %vm619_vm14, %v6425_v41  ;;  %v14545_v0 = vpop.eup %14544 }
0x1dcf   : > { %13135 = vmatmul.mubr.msk.f32.gmra.mrb[102].mxu0 %vm619_vm14, %v6426_v45  ;;  %v6428_v37 = vmul.f32 %v14545_v0, %v6372_v3  ;;  %v13852_v3 = vpack.c.bf16 %v6064_v52, %v6063_v55  ;;  %v16952_v55 = vpop.permute.xlu0 %6620 }
0x1dd1   : > { %v14547_v10 = vpop.eup %14546  ;;  %13853 = vmatpush3.bf16.msra.mxu1 %v13852_v3 }
0x1dd2   : > { %v6427_v20 = vmul.f32 %v14547_v10, %v6371_v12  ;;  %13854 = vmatprep.subr.bf16.mxu1 %v18299_v8  ;;  %v6065_v12 = vld [vmem:[%s18247_s3 + $0xb8] sm:$0xff] }
0x1dd3   : > { %v13855_v24 = vpack.c.bf16 %v6066_v11, %v6065_v12 }
0x1dd4   : > { %13137 = vmatprep.mubr.msk.f32.mxu0 %vm619_vm14, %v6427_v20 }
0x1dd5   : > { %13138 = vmatmul.mubr.msk.f32.gmra.mrb[104].mxu0 %vm619_vm14, %v6428_v37  ;;  %13856 = vmatpush3.bf16.msra.mxu1 %v13855_v24 }
0x1dd6   : > { %13159 = vmatprep.mubr.msk.f32.mxu0 %vm15072_vm11, %v18298_v30  ;;  %13863 = vmatprep.subr.bf16.mxu1 %v18299_v8 }
0x1dd9   : > { %13160 = vmatmul.mubr.msk.f32.vlgmr.msra.gmra.mrb[106].mxu0 %vm619_vm14, %v16793_v26 }
0x1dda   : > { %13181 = vmatprep.mubr.msk.f32.mxu0 %vm15072_vm11, %v18298_v30 }
0x1e9a   : > { %v13130_v5 = vpop.f32.mrb[98].mxu0 }
0x1e9b   : > { %v6529_v54 = vadd.f32 %v13130_v5, %v11667_v39  ;;  %v6523_v27 = vpop.f32.mrb[99].mxu0 }
0x1e9c   : > { %v6524_v4 = vadd.f32 %v11667_v39, %v6523_v27 }
0x1e9d   : > { %v11677_v33 = vmul.f32 -1.442695, %v6529_v54 }
0x1e9e   : > { %v11676_v23 = vmul.f32 -1.442695, %v6524_v4  ;;  %v13133_v35 = vpop.f32.mrb[100].mxu0 }
0x1e9f   : > { %14548 = vpow2.f32 %v11677_v33  ;;  %v6539_v49 = vadd.f32 %v13133_v35, %v11667_v39  ;;  %v6533_v7 = vpop.f32.mrb[101].mxu0 }
0x1ea0   : > { %14550 = vpow2.f32 %v11676_v23  ;;  %v6534_v43 = vadd.f32 %v11667_v39, %v6533_v7 }
0x1ea1   : > { %v11679_v29 = vmul.f32 -1.442695, %v6539_v49 }
0x1ea2   : > { %v11678_v60 = vmul.f32 -1.442695, %v6534_v43  ;;  %v13136_v28 = vpop.f32.mrb[102].mxu0 }
0x1ea3   : > { %14552 = vpow2.f32 %v11679_v29  ;;  %v16946_v59 = vadd.f32 %v13136_v28, %v11667_v39  ;;  %v6543_v41 = vpop.f32.mrb[103].mxu0  ;;  %v16962_v28 = vpop.permute.xlu0 %6625 }
0x1ea4   : > { %14554 = vpow2.f32 %v11678_v60  ;;  %v16948_v45 = vadd.f32 %v11667_v39, %v6543_v41 }
0x1ea5   : > { %v11681_v0 = vmul.f32 -1.442695, %v16946_v59 }
0x1ea6   : > { %v11680_v10 = vmul.f32 -1.442695, %v16948_v45 }
0x1ea7   : > { %14556 = vpow2.f32 %v11681_v0 }
0x1ea8   : > { %14558 = vpow2.f32 %v11680_v10  ;;  %v13139_v20 = vpop.f32.mrb[104].mxu0 }
0x1ea9   : > { %v14549_v37 = vpop.eup %14548  ;;  %v16954_v52 = vadd.f32 %v13139_v20, %v11667_v39  ;;  %v6553_v3 = vpop.f32.mrb[105].mxu0 }
0x1eaa   : > { %v14551_v12 = vpop.eup %14550  ;;  %v6587_v11 = vadd.f32 1.0, %v14549_v37  ;;  %v16956_v24 = vadd.f32 %v11667_v39, %v6553_v3  ;;  %v16964_v37 = vpop.permute.xlu0 %6635 }
0x1eab   : > { %v6586_v5 = vadd.f32 1.0, %v14551_v12  ;;  %v11683_v27 = vmul.f32 -1.442695, %v16954_v52 }
0x1eac   : > { %14560 = vrcp.f32 %v6587_v11  ;;  %v11682_v33 = vmul.f32 -1.442695, %v16956_v24  ;;  %v16960_v23 = vpop.f32.mrb[106].mxu0 }
0x1ead   : > { %v14553_v35 = vpop.eup %14552  ;;  %14562 = vrcp.f32 %v6586_v5  ;;  %v13161_v7 = vpop.f32.mrb[107].mxu0 }
0x1eae   : > { %v14555_v29 = vpop.eup %14554  ;;  %v6589_v60 = vadd.f32 1.0, %v14553_v35  ;;  %14564 = vpow2.f32 %v11683_v27 }
0x1eaf   : > { %v6588_v41 = vadd.f32 1.0, %v14555_v29  ;;  %14566 = vpow2.f32 %v11682_v33 }
0x1eb0   : > { %14568 = vrcp.f32 %v6589_v60 }
0x1eb1   : > { %v14557_v39 = vpop.eup %14556  ;;  %14570 = vrcp.f32 %v6588_v41 }
0x1eb2   : > { %v14559_v0 = vpop.eup %14558  ;;  %v6591_v10 = vadd.f32 1.0, %v14557_v39  ;;  %v16968_v39 = vpop.permute.xlu0 %6640 }
0x1eb3   : > { %v6590_v20 = vadd.f32 1.0, %v14559_v0 }
0x1eb4   : > { %14572 = vrcp.f32 %v6591_v10 }
0x1eb5   : > { %14574 = vrcp.f32 %v6590_v20 }
0x1eb6   : > { %v14561_v3 = vpop.eup %14560 }
0x1eb7   : > { %v14563_v12 = vpop.eup %14562  ;;  %v6611_v11 = vmul.f32 %v14561_v3, %v6529_v54 }
0x1eb8   : > { %v14565_v5 = vpop.eup %14564  ;;  %v6610_v35 = vmul.f32 %v14563_v12, %v6524_v4  ;;  %v16972_v4 = vpop.permute.xlu1 %6630 }
0x1eb9   : > { %v14567_v27 = vpop.eup %14566  ;;  %v6659_v7 = vmul.f32 %v16962_v28, %v6611_v11  ;;  %v6593_v29 = vadd.f32 1.0, %v14565_v5 }
0x1eba   : > { %v14569_v33 = vpop.eup %14568  ;;  %v6658_v60 = vmul.f32 %v16952_v55, %v6610_v35  ;;  %v6592_v41 = vadd.f32 1.0, %v14567_v27 }
0x1ebb   : > { %v14571_v25 = vpop.eup %14570  ;;  %v6667_v0 = vsel %vm619_vm14, %v6659_v7, 0.0  ;;  %v6613_v10 = vmul.f32 %v14569_v33, %v6539_v49  ;;  %14576 = vrcp.f32 %v6593_v29  ;;  %v16979_v7 = vpop.permute.xlu0 %6645 }
0x1ebc   : > { %v6666_v20 = vsel %vm619_vm14, %v6658_v60, 0.0  ;;  %v6612_v54 = vmul.f32 %v14571_v25, %v6534_v43  ;;  %14578 = vrcp.f32 %v6592_v41 }
0x1ebd   : > { %v6668_v3 = vadd.f32 %v6667_v0, %v6666_v20  ;;  %v6661_v11 = vmul.f32 %v16964_v37, %v6613_v10 }
0x1ebe   : > { %v14573_v12 = vpop.eup %14572  ;;  %v6660_v5 = vmul.f32 %v16972_v4, %v6612_v54 }
0x1ebf   : > { %v14575_v35 = vpop.eup %14574  ;;  %v6615_v27 = vmul.f32 %v14573_v12, %v16946_v59  ;;  %v6671_v25 = vsel %vm619_vm14, %v6661_v11, 0.0 }
0x1ec0   : > { %v6669_v51 = vsel %vm619_vm14, %v6660_v5, 0.0  ;;  %v6614_v49 = vmul.f32 %v14575_v35, %v16948_v45 }
0x1ec1   : > { %v6670_v29 = vadd.f32 %v6669_v51, %v6668_v3  ;;  %v6663_v43 = vmul.f32 %v16979_v7, %v6615_v27  ;;  %v16988_v51 = vpop.permute.xlu1 %6655  ;;  %v16990_v3 = vpop.permute.xlu0 %6650 }
0x1ec2   : > { %v6662_v33 = vmul.f32 %v16968_v39, %v6614_v49  ;;  %18331 = vst [vmem:[#allocation35_spill] sm:$0xff] %v16990_v3 }
0x1ec3   : > { %v6672_v60 = vadd.f32 %v6671_v25, %v6670_v29  ;;  %v6675_v59 = vsel %vm619_vm14, %v6663_v43, 0.0  ;;  %v6070_v43 = vld [vmem:[%s18247_s3 + $0xe0] sm:$0xff] }
0x1ec4   : > { %v6673_v41 = vsel %vm619_vm14, %v6662_v33, 0.0  ;;  %v6071_v33 = vld [vmem:[%s18247_s3 + $0xe8] sm:$0xff] }
0x1ec5   : > { %v14577_v0 = vpop.eup %14576  ;;  %v6674_v10 = vadd.f32 %v6673_v41, %v6672_v60  ;;  %v13867_v60 = vpack.c.bf16 %v6071_v33, %v6070_v43  ;;  %v11686_v41 = vld [vmem:[%s18247_s3 + $0xc8] ss:$0 sm:$0xff] }
0x1ec6   : > { %v14579_v20 = vpop.eup %14578  ;;  %v6617_v54 = vmul.f32 %v14577_v0, %v16954_v52  ;;  %v6068_v52 = vld [vmem:[%s18247_s3 + $0xd0] sm:$0xff]  ;;  %v6926_v43 = vld [vmem:[%s18247_s3 + $0x128] sm:$0xff] }
0x1ec7   : > { %v6616_v45 = vmul.f32 %v14579_v20, %v16956_v24  ;;  %v6676_v12 = vadd.f32 %v6675_v59, %v6674_v10  ;;  %v6069_v24 = vld [vmem:[%s18247_s3 + $0xd8] sm:$0xff] }
0x1ec8   : > { %v6665_v11 = vmul.f32 %v16988_v51, %v6617_v54  ;;  %v13864_v25 = vpack.c.bf16 %v6069_v24, %v6068_v52  ;;  %v6922_v24 = vld [vmem:[%s18247_s3 + $0x108] sm:$0xff] }
0x1ec9   : > { %v6664_v5 = vmul.f32 %v16990_v3, %v6616_v45 }
0x1eca   : > { %v6679_v49 = vsel %vm619_vm14, %v6665_v11, 0.0 }
0x1ecb   : > { %v6677_v35 = vsel %vm619_vm14, %v6664_v5, 0.0 }
0x1ecc   : > { %v6678_v27 = vadd.f32 %v6677_v35, %v6676_v12  ;;  %v6920_v35 = vld [vmem:[%s18247_s3 + $0xf8] sm:$0xff] }
0x1ece   : > { %v6680_v29 = vadd.f32 %v6679_v49, %v6678_v27  ;;  %v6924_v27 = vld [vmem:[%s18247_s3 + $0x118] sm:$0xff] }
0x1ed0   : > { %13149 = vmatmul.mubr.msk.f32.vlgmr.msra.gmra.mrb[104].mxu1 %vm619_vm14, %v6680_v29  ;;  %v6925_v29 = vld [vmem:[%s18247_s3 + $0x120] sm:$0xff] }
0x1ed1   : > { %13170 = vmatprep.mubr.msk.f32.mxu1 %vm15072_vm11, %v18298_v30  ;;  %13865 = vmatpush3.bf16.msra.mxu1 %v13864_v25  ;;  %v13876_v52 = vpack.c.bf16 %v6925_v29, %v6924_v27  ;;  %v6923_v25 = vld [vmem:[%s18247_s3 + $0x110] sm:$0xff]  ;;  %v6932_v29 = vld [vmem:[%s18247_s3 + $0x158] sm:$0xff] }
0x1ed2   : > { %13866 = vmatprep.subr.bf16.mxu1 %v18299_v8  ;;  %v13873_v33 = vpack.c.bf16 %v6923_v25, %v6922_v24  ;;  %v6931_v27 = vld [vmem:[%s18247_s3 + $0x150] sm:$0xff]  ;;  %v6928_v25 = vld [vmem:[%s18247_s3 + $0x138] sm:$0x3] }
0x1ed5   : > { %13868 = vmatpush3.bf16.msra.mxu1 %v13867_v60  ;;  %v6927_v60 = vld [vmem:[%s18247_s3 + $0x130] sm:$0xff] }
0x1ed6   : > { %13875 = vmatprep.subr.bf16.mxu1 %v18299_v8 }
0x1fa3   : > { %v6750_v0 = vpop.f32.mrb[104].mxu1 }
0x1fa4   : > { %v6821_v10 = vadd.f32 %v16960_v23, %v6750_v0  ;;  %v13150_v20 = vpop.f32.mrb[105].mxu1  ;;  %v6921_v23 = vld [vmem:[%s18247_s3 + $0x100] sm:$0xff]  ;;  %v11688_v0 = vld [vmem:[%s18247_s3 + $0xf0] ss:$0 sm:$0xff] }
0x1fa5   : > { %v13870_v49 = vpack.c.bf16 %v6921_v23, %v6920_v35 }
0x1fa6   : > { %v6828_v59 = vadd.f32 %v11686_v41, %v6821_v10  ;;  %v13879_v41 = vpack.c.bf16 %v6927_v60, %v6926_v43  ;;  %v7095_v43 = vrot.slane %v6928_v25, %v15394_v47 }
0x1fa7   : > { %13871 = vmatpush3.bf16.msra.mxu0 %v13870_v49 }
0x1fa8   : > { %v11687_v54 = vmul.f32 -1.442695, %v6828_v59  ;;  %13872 = vmatprep.subr.bf16.mxu0 %v18299_v8  ;;  %v7097_v60 = vmul.f32 %v7095_v43, %v16833_v31 }
0x1faa   : > { %14580 = vpow2.f32 %v11687_v54 }
0x1fab   : > { %13874 = vmatpush3.bf16.msra.mxu0 %v13873_v33  ;;  %v7107_v33 = vrot.slane %v6928_v25, %v15397_v48 }
0x1fad   : > { %v7113_v25 = vmul.f32 %v7107_v33, %v16852_v36 }
0x1fb4   : > { %v14581_v45 = vpop.eup %14580 }
0x1fb5   : > { %v6832_v12 = vadd.f32 1.0, %v14581_v45  ;;  %v17050_v45 = vpop.permute.xlu0 %6916 }
0x1fb7   : > { %14582 = vrcp.f32 %v6832_v12 }
0x1fc1   : > { %v14583_v11 = vpop.eup %14582 }
0x1fc2   : > { %v6835_v5 = vmul.f32 %v14583_v11, %v6828_v59 }
0x1fc4   : > { %13171 = vmatmul.mubr.msk.f32.vlgmr.msra.gmra.mrb[106].mxu1 %vm619_vm14, %v6835_v5 }
0x1fc5   : > { %13192 = vmatprep.mubr.msk.f32.mxu1 %vm15072_vm11, %v18298_v30  ;;  %13877 = vmatpush3.bf16.msra.mxu1 %v13876_v52  ;;  %v6933_v52 = vld [vmem:[%s18247_s3 + $0x160] sm:$0xff] }
0x1fc6   : > { %13878 = vmatprep.subr.bf16.mxu1 %v18299_v8  ;;  %v13885_v24 = vpack.c.bf16 %v6933_v52, %v6932_v29  ;;  %v7101_v52 = vmul.f32 %v7095_v43, %v16852_v36 }
0x1fc9   : > { %13880 = vmatpush3.bf16.msra.mxu1 %v13879_v41  ;;  %v7109_v41 = vmul.f32 %v7107_v33, %v16833_v31 }
0x2097   : > { %v6909_v10 = vpop.f32.mrb[106].mxu1 }
0x2098   : > { %v6910_v20 = vadd.f32 %v11688_v0, %v6909_v10  ;;  %v13172_v59 = vpop.f32.mrb[107].mxu1  ;;  %v7096_v0 = vmul.f32 %v7095_v43, %v16835_v46  ;;  %v7108_v10 = vmul.f32 %v7107_v33, %v16835_v46 }
0x2099   : > { %v7099_v59 = vmul.f32 %v7095_v43, %v16837_v38 }
0x209a   : > { %v6913_v54 = vadd.f32 %v6910_v20, %v16793_v26  ;;  %v6930_v26 = vld [vmem:[%s18247_s3 + $0x148] sm:$0xff]  ;;  %v7117_v20 = vadd.f32 %v7109_v41, %v7097_v60  ;;  %v7100_v60 = vmul.f32 %v7095_v43, %v16846_v2  ;;  %v7112_v41 = vmul.f32 %v7107_v33, %v16846_v2 }
0x209b   : > { %v13881_v49 = vpack.c.bf16 %v6931_v27, %v6930_v26  ;;  %v7098_v26 = vmul.f32 %v7095_v43, %v16839_v44  ;;  %v7110_v27 = vmul.f32 %v7107_v33, %v16839_v44 }
0x209c   : > { %v17053_v12 = vmul.f32 %v17050_v45, %v6913_v54  ;;  %v7111_v54 = vmul.f32 %v7107_v33, %v16837_v38  ;;  %v7120_v40 = vadd.f32 %v7112_v41, %v7100_v60 }
0x209d   : > { %13882 = vmatprep.subr.bf16.mxu1 %v13881_v49 }
0x209e   : > { %13182 = vmatmul.mubr.msk.f32.vlgmr.msra.gmra.mrb[108].mxu0 %vm619_vm14, %v17053_v12  ;;  %13193 = vmatmul.mubr.msk.f32.vlgmr.msra.gmra.mrb[108].mxu1 %vm619_vm14, %v17053_v12  ;;  %v7119_v57 = vadd.f32 %v7111_v54, %v7099_v59  ;;  %v7115_v59 = vmul.f32 %v7107_v33, %v16870_v13 }
0x209f   : > { %13197 = vmatprep.mubr.msk.f32.mxu0 %vm309_vm1, %v15185_v14  ;;  %13884 = vmatpush3.bf16.msra.mxu1 %v13881_v49 }
0x20a0   : > { %13886 = vmatprep.subr.bf16.mxu1 %v13885_v24 }
0x20a3   : > { %13888 = vmatpush3.bf16.msra.mxu1 %v13885_v24 }
0x20a4   : > { %13895 = vmatprep.subr.bf16.mxu1 %v18299_v8 }
0x2171   : > { %v17061_v11 = vpop.f32.mrb[108].mxu0  ;;  %v7088_v5 = vpop.f32.mrb[108].mxu1 }
0x2172   : > { %v13183_v35 = vpop.f32.mrb[109].mxu0  ;;  %v13194_v23 = vpop.f32.mrb[109].mxu1  ;;  %13195 = vmatprep.subr.mxu0 %v7088_v5 }
0x2173   : > { %13196 = vmatpush3.msra.mxu0 %v7088_v5  ;;  %v11700_v5 = vld [vmem:[%s18247_s3 + $0x140] ss:$0 sm:$0xff]  ;;  %v7116_v23 = vadd.f32 %v7108_v10, %v7096_v0  ;;  %v7118_v0 = vadd.f32 %v7110_v27, %v7098_v26 }
0x2174   : > { %13198 = vmatmul.mubr.msk.f32.vlgmr.msra.gmra.mrb[110].mxu0 %vm309_vm1, %v15192_v15  ;;  %13889 = vmatprep.subr.bf16.mxu0 %v18299_v8 }
0x2175   : > { %13200 = vmatprep.mubr.msk.f32.mxu0 %vm309_vm1, %v15200_v16 }
0x2178   : > { %13201 = vmatmul.mubr.msk.f32.gmra.mrb[112].mxu0 %vm309_vm1, %v15207_v17 }
0x2179   : > { %13203 = vmatprep.mubr.msk.f32.mxu0 %vm309_vm1, %v15212_v18 }
0x217c   : > { %13204 = vmatmul.mubr.msk.f32.gmra.mrb[114].mxu0 %vm309_vm1, %v15225_v21 }
0x217d   : > { %13206 = vmatprep.mubr.msk.f32.mxu0 %vm309_vm1, %v15217_v19 }
0x2180   : > { %13207 = vmatmul.mubr.msk.f32.gmra.mrb[116].mxu0 %vm309_vm1, %v15230_v22 }
0x2181   : > { %13237 = vmatprep.mubr.msk.f32.mxu0 %vm15072_vm11, %v18298_v30 }
0x2247   : > { %v13199_v35 = vpop.f32.mrb[110].mxu0 }
0x2248   : > { %v7196_v49 = vadd.f32 %v13199_v35, %v7117_v20  ;;  %v7190_v29 = vpop.f32.mrb[111].mxu0 }
0x2249   : > { %v7191_v24 = vadd.f32 %v7190_v29, %v7116_v23  ;;  %v7121_v29 = vadd.f32 %v7113_v25, %v7101_v52 }
0x224a   : > { %v7234_v53 = vadd.f32 %v11700_v5, %v7196_v49  ;;  %v7103_v49 = vmul.f32 %v7095_v43, %v16870_v13 }
0x224b   : > { %v7233_v58 = vadd.f32 %v11700_v5, %v7191_v24  ;;  %v13202_v34 = vpop.f32.mrb[112].mxu0 }
0x224c   : > { %v17114_v10 = vadd.f32 %v7234_v53, %v17061_v11  ;;  %v7206_v50 = vadd.f32 %v13202_v34, %v7119_v57  ;;  %v7200_v20 = vpop.f32.mrb[113].mxu0  ;;  %v7102_v34 = vmul.f32 %v7095_v43, %v16856_v32  ;;  %v7114_v57 = vmul.f32 %v7107_v33, %v16856_v32 }
0x224d   : > { %v17117_v35 = vadd.f32 %v7233_v58, %v17061_v11  ;;  %v7201_v23 = vadd.f32 %v7200_v20, %v7118_v0  ;;  %v7123_v41 = vadd.f32 %v7115_v59, %v7103_v49 }
0x224e   : > { %v11702_v63 = vmul.f32 -1.442695, %v17114_v10  ;;  %v7236_v9 = vadd.f32 %v11700_v5, %v7206_v50  ;;  %v7122_v33 = vadd.f32 %v7114_v57, %v7102_v34 }
0x224f   : > { %v11701_v54 = vmul.f32 -1.442695, %v17117_v35  ;;  %v7235_v26 = vadd.f32 %v11700_v5, %v7201_v23  ;;  %v13205_v53 = vpop.f32.mrb[114].mxu0 }
0x2250   : > { %14584 = vpow2.f32 %v11702_v63  ;;  %v17126_v58 = vadd.f32 %v7236_v9, %v17061_v11  ;;  %v7216_v27 = vadd.f32 %v13205_v53, %v7121_v29  ;;  %v7210_v52 = vpop.f32.mrb[115].mxu0 }
0x2251   : > { %14586 = vpow2.f32 %v11701_v54  ;;  %v17129_v50 = vadd.f32 %v7235_v26, %v17061_v11  ;;  %v7211_v24 = vadd.f32 %v7210_v52, %v7120_v40 }
0x2252   : > { %v11704_v25 = vmul.f32 -1.442695, %v17126_v58  ;;  %v7238_v60 = vadd.f32 %v11700_v5, %v7216_v27 }
0x2253   : > { %v11703_v0 = vmul.f32 -1.442695, %v17129_v50  ;;  %v7237_v43 = vadd.f32 %v11700_v5, %v7211_v24  ;;  %v13208_v20 = vpop.f32.mrb[116].mxu0 }
0x2254   : > { %14588 = vpow2.f32 %v11704_v25  ;;  %v17134_v63 = vadd.f32 %v7238_v60, %v17061_v11  ;;  %v7226_v9 = vadd.f32 %v13208_v20, %v7123_v41  ;;  %v7220_v23 = vpop.f32.mrb[117].mxu0 }
0x2255   : > { %14590 = vpow2.f32 %v11703_v0  ;;  %v7245_v29 = vadd.f32 %v7237_v43, %v17061_v11  ;;  %v7221_v54 = vadd.f32 %v7220_v23, %v7122_v33 }
0x2256   : > { %v11706_v40 = vmul.f32 -1.442695, %v17134_v63  ;;  %v7240_v26 = vadd.f32 %v11700_v5, %v7226_v9 }
0x2257   : > { %v11705_v53 = vmul.f32 -1.442695, %v7245_v29  ;;  %v7239_v49 = vadd.f32 %v11700_v5, %v7221_v54  ;;  %v6935_v54 = vld [vmem:[%s18247_s3 + $0x170] sm:$0xff] }
0x2258   : > { %14592 = vpow2.f32 %v11706_v40  ;;  %v7248_v59 = vadd.f32 %v7240_v26, %v17061_v11  ;;  %v6936_v40 = vld [vmem:[%s18247_s3 + $0x178] sm:$0xff] }
0x2259   : > { %14594 = vpow2.f32 %v11705_v53  ;;  %v7247_v34 = vadd.f32 %v7239_v49, %v17061_v11 }
0x225a   : > { %v14585_v57 = vpop.eup %14584  ;;  %v11708_v27 = vmul.f32 -1.442695, %v7248_v59 }
0x225b   : > { %v14587_v52 = vpop.eup %14586  ;;  %v7274_v24 = vadd.f32 1.0, %v14585_v57  ;;  %v11707_v25 = vmul.f32 -1.442695, %v7247_v34 }
0x225c   : > { %v7273_v60 = vadd.f32 1.0, %v14587_v52  ;;  %14596 = vpow2.f32 %v11708_v27  ;;  %v13896_v52 = vpack.c.bf16 %v6936_v40, %v6935_v54  ;;  %v6942_v40 = vld [vmem:[%s18247_s3 + $0x1a8] sm:$0xff] }
0x225d   : > { %14598 = vrcp.f32 %v7274_v24 }
0x225e   : > { %v14589_v41 = vpop.eup %14588  ;;  %14600 = vrcp.f32 %v7273_v60  ;;  %v6937_v60 = vld [vmem:[%s18247_s3 + $0x180] sm:$0xff] }
0x225f   : > { %v14591_v0 = vpop.eup %14590  ;;  %v7276_v43 = vadd.f32 1.0, %v14589_v41  ;;  %14602 = vpow2.f32 %v11707_v25  ;;  %v6938_v41 = vld [vmem:[%s18247_s3 + $0x188] sm:$0xff] }
0x2260   : > { %v7275_v5 = vadd.f32 1.0, %v14591_v0 }
0x2261   : > { %14604 = vrcp.f32 %v7276_v43 }
0x2262   : > { %v14593_v20 = vpop.eup %14592  ;;  %14606 = vrcp.f32 %v7275_v5 }
0x2263   : > { %v14595_v33 = vpop.eup %14594  ;;  %v7278_v9 = vadd.f32 1.0, %v14593_v20 }
0x2264   : > { %v7277_v11 = vadd.f32 1.0, %v14595_v33 }
0x2265   : > { %14608 = vrcp.f32 %v7278_v9 }
0x2266   : > { %v14597_v23 = vpop.eup %14596  ;;  %14610 = vrcp.f32 %v7277_v11 }
0x2267   : > { %v14599_v26 = vpop.eup %14598  ;;  %v7280_v53 = vadd.f32 1.0, %v14597_v23 }
0x2268   : > { %v14601_v49 = vpop.eup %14600  ;;  %v7298_v24 = vmul.f32 %v14599_v26, %v17114_v10  ;;  %v13899_v10 = vpack.c.bf16 %v6938_v41, %v6937_v60 }
0x2269   : > { %v14603_v57 = vpop.eup %14602  ;;  %v7297_v27 = vmul.f32 %v14601_v49, %v17117_v35  ;;  %14612 = vrcp.f32 %v7280_v53  ;;  %v11709_v53 = vld [vmem:[%s18247_s3 + $0x168] ss:$0 sm:$0xff] }
0x226a   : > { %v7279_v25 = vadd.f32 1.0, %v14603_v57 }
0x226b   : > { %v14605_v0 = vpop.eup %14604  ;;  %13217 = vmatprep.mubr.msk.f32.mxu1 %vm619_vm14, %v7297_v27 }
0x226c   : > { %v14607_v43 = vpop.eup %14606  ;;  %14614 = vrcp.f32 %v7279_v25  ;;  %13218 = vmatmul.mubr.msk.f32.vlgmr.msra.gmra.mrb[110].mxu1 %vm619_vm14, %v7298_v24  ;;  %v7300_v5 = vmul.f32 %v14605_v0, %v17126_v58 }
0x226d   : > { %v7299_v35 = vmul.f32 %v14607_v43, %v17129_v50  ;;  %13897 = vmatpush3.bf16.msra.mxu1 %v13896_v52 }
0x226e   : > { %13898 = vmatprep.subr.bf16.mxu1 %v18299_v8 }
0x226f   : > { %v14609_v20 = vpop.eup %14608  ;;  %13220 = vmatprep.mubr.msk.f32.mxu1 %vm619_vm14, %v7299_v35 }
0x2270   : > { %v14611_v33 = vpop.eup %14610  ;;  %13221 = vmatmul.mubr.msk.f32.gmra.mrb[112].mxu1 %vm619_vm14, %v7300_v5  ;;  %v7302_v11 = vmul.f32 %v14609_v20, %v17134_v63  ;;  %v6939_v63 = vld [vmem:[%s18247_s3 + $0x190] sm:$0xff] }
0x2271   : > { %v7301_v9 = vmul.f32 %v14611_v33, %v7245_v29  ;;  %13900 = vmatpush3.bf16.msra.mxu1 %v13899_v10  ;;  %v6940_v29 = vld [vmem:[%s18247_s3 + $0x198] sm:$0xff] }
0x2272   : > { %13907 = vmatprep.subr.bf16.mxu1 %v18299_v8 }
0x2273   : > { %13223 = vmatprep.mubr.msk.f32.mxu1 %vm619_vm14, %v7301_v9  ;;  %v14613_v50 = vpop.eup %14612 }
0x2274   : > { %13224 = vmatmul.mubr.msk.f32.gmra.mrb[114].mxu1 %vm619_vm14, %v7302_v11  ;;  %v7304_v54 = vmul.f32 %v14613_v50, %v7248_v59  ;;  %v13890_v59 = vpack.c.bf16 %v6940_v29, %v6939_v63 }
0x2276   : > { %v14615_v58 = vpop.eup %14614  ;;  %13891 = vmatpush3.bf16.msra.mxu0 %v13890_v59 }
0x2277   : > { %v7303_v23 = vmul.f32 %v14615_v58, %v7247_v34  ;;  %13892 = vmatprep.subr.bf16.mxu0 %v18299_v8  ;;  %v6941_v34 = vld [vmem:[%s18247_s3 + $0x1a0] sm:$0xff] }
0x2278   : > { %v13893_v26 = vpack.c.bf16 %v6942_v40, %v6941_v34 }
0x2279   : > { %13226 = vmatprep.mubr.msk.f32.mxu1 %vm619_vm14, %v7303_v23 }
0x227a   : > { %13227 = vmatmul.mubr.msk.f32.gmra.mrb[116].mxu1 %vm619_vm14, %v7304_v54  ;;  %13894 = vmatpush3.bf16.msra.mxu0 %v13893_v26 }
0x227b   : > { %13248 = vmatprep.mubr.msk.f32.mxu1 %vm15072_vm11, %v18298_v30  ;;  %13901 = vmatprep.subr.bf16.mxu0 %v18299_v8 }
0x227e   : > { %13249 = vmatmul.mubr.msk.f32.vlgmr.msra.gmra.mrb[118].mxu1 %vm619_vm14, %v17053_v12 }
0x227f   : > { %13270 = vmatprep.mubr.msk.f32.mxu1 %vm15072_vm11, %v18298_v30 }
0x233f   : > { %v13219_v49 = vpop.f32.mrb[110].mxu1 }
0x2340   : > { %v7405_v57 = vadd.f32 %v13219_v49, %v11709_v53  ;;  %v7399_v27 = vpop.f32.mrb[111].mxu1 }
0x2341   : > { %v7400_v52 = vadd.f32 %v11709_v53, %v7399_v27 }
0x2342   : > { %v11719_v24 = vmul.f32 -1.442695, %v7405_v57 }
0x2343   : > { %v11718_v25 = vmul.f32 -1.442695, %v7400_v52  ;;  %v13222_v60 = vpop.f32.mrb[112].mxu1 }
0x2344   : > { %14616 = vpow2.f32 %v11719_v24  ;;  %v7415_v41 = vadd.f32 %v13222_v60, %v11709_v53  ;;  %v7409_v0 = vpop.f32.mrb[113].mxu1 }
0x2345   : > { %14618 = vpow2.f32 %v11718_v25  ;;  %v7410_v43 = vadd.f32 %v11709_v53, %v7409_v0 }
0x2346   : > { %v11721_v35 = vmul.f32 -1.442695, %v7415_v41 }
0x2347   : > { %v11720_v10 = vmul.f32 -1.442695, %v7410_v43  ;;  %v13225_v5 = vpop.f32.mrb[114].mxu1 }
0x2348   : > { %14620 = vpow2.f32 %v11721_v35  ;;  %v7425_v20 = vadd.f32 %v13225_v5, %v11709_v53  ;;  %v7419_v33 = vpop.f32.mrb[115].mxu1 }
0x2349   : > { %14622 = vpow2.f32 %v11720_v10  ;;  %v7420_v9 = vadd.f32 %v11709_v53, %v7419_v33 }
0x234a   : > { %v11723_v11 = vmul.f32 -1.442695, %v7425_v20 }
0x234b   : > { %v11722_v50 = vmul.f32 -1.442695, %v7420_v9 }
0x234c   : > { %14624 = vpow2.f32 %v11723_v11 }
0x234d   : > { %14626 = vpow2.f32 %v11722_v50  ;;  %v13228_v58 = vpop.f32.mrb[116].mxu1 }
0x234e   : > { %v14617_v23 = vpop.eup %14616  ;;  %v7435_v54 = vadd.f32 %v13228_v58, %v11709_v53  ;;  %v7429_v63 = vpop.f32.mrb[117].mxu1 }
0x234f   : > { %v14619_v29 = vpop.eup %14618  ;;  %v7463_v59 = vadd.f32 1.0, %v14617_v23  ;;  %v7430_v34 = vadd.f32 %v11709_v53, %v7429_v63 }
0x2350   : > { %v7462_v40 = vadd.f32 1.0, %v14619_v29  ;;  %v11725_v26 = vmul.f32 -1.442695, %v7435_v54 }
0x2351   : > { %14628 = vrcp.f32 %v7463_v59  ;;  %v11724_v49 = vmul.f32 -1.442695, %v7430_v34  ;;  %v17190_v27 = vpop.f32.mrb[118].mxu1 }
0x2352   : > { %v14621_v24 = vpop.eup %14620  ;;  %14630 = vrcp.f32 %v7462_v40  ;;  %v13250_v25 = vpop.f32.mrb[119].mxu1 }
0x2353   : > { %v14623_v60 = vpop.eup %14622  ;;  %v7465_v0 = vadd.f32 1.0, %v14621_v24  ;;  %14632 = vpow2.f32 %v11725_v26 }
0x2354   : > { %v7464_v35 = vadd.f32 1.0, %v14623_v60  ;;  %14634 = vpow2.f32 %v11724_v49 }
0x2355   : > { %14636 = vrcp.f32 %v7465_v0 }
0x2356   : > { %v14625_v10 = vpop.eup %14624  ;;  %14638 = vrcp.f32 %v7464_v35 }
0x2357   : > { %v14627_v5 = vpop.eup %14626  ;;  %v7467_v33 = vadd.f32 1.0, %v14625_v10 }
0x2358   : > { %v7466_v53 = vadd.f32 1.0, %v14627_v5 }
0x2359   : > { %14640 = vrcp.f32 %v7467_v33 }
0x235a   : > { %14642 = vrcp.f32 %v7466_v53 }
0x235b   : > { %v14629_v11 = vpop.eup %14628 }
0x235c   : > { %v14631_v50 = vpop.eup %14630  ;;  %v7487_v58 = vmul.f32 %v14629_v11, %v7405_v57 }
0x235d   : > { %v14633_v23 = vpop.eup %14632  ;;  %v7486_v63 = vmul.f32 %v14631_v50, %v7400_v52 }
0x235e   : > { %v14635_v29 = vpop.eup %14634  ;;  %v7495_v59 = vmul.f32 %v7487_v58, %v16962_v28  ;;  %v7469_v40 = vadd.f32 1.0, %v14633_v23 }
0x235f   : > { %v14637_v26 = vpop.eup %14636  ;;  %v7494_v49 = vmul.f32 %v7486_v63, %v16952_v55  ;;  %v7468_v24 = vadd.f32 1.0, %v14635_v29 }
0x2360   : > { %v14639_v25 = vpop.eup %14638  ;;  %v7503_v60 = vsel %vm619_vm14, %v7495_v59, 0.0  ;;  %v7489_v0 = vmul.f32 %v14637_v26, %v7415_v41  ;;  %14644 = vrcp.f32 %v7469_v40 }
0x2361   : > { %v7502_v35 = vsel %vm619_vm14, %v7494_v49, 0.0  ;;  %v7488_v10 = vmul.f32 %v14639_v25, %v7410_v43  ;;  %14646 = vrcp.f32 %v7468_v24 }
0x2362   : > { %v7504_v57 = vadd.f32 %v7503_v60, %v7502_v35  ;;  %v7497_v52 = vmul.f32 %v7489_v0, %v16964_v37 }
0x2363   : > { %v14641_v5 = vpop.eup %14640  ;;  %v7496_v33 = vmul.f32 %v7488_v10, %v16972_v4 }
0x2364   : > { %v14643_v53 = vpop.eup %14642  ;;  %v7491_v11 = vmul.f32 %v14641_v5, %v7425_v20  ;;  %v7507_v63 = vsel %vm619_vm14, %v7497_v52, 0.0 }
0x2365   : > { %v7505_v50 = vsel %vm619_vm14, %v7496_v33, 0.0  ;;  %v7490_v58 = vmul.f32 %v14643_v53, %v7420_v9  ;;  %v6946_v33 = vld [vmem:[%s18247_s3 + $0x1c8] sm:$0xff]  ;;  %v6947_v53 = vld [vmem:[%s18247_s3 + $0x1d0] sm:$0xff] }
0x2366   : > { %v7506_v23 = vadd.f32 %v7505_v50, %v7504_v57  ;;  %v7499_v41 = vmul.f32 %v7491_v11, %v16979_v7  ;;  %v13905_v11 = vpack.c.bf16 %v6947_v53, %v6946_v33  ;;  %v11728_v50 = vld [vmem:[%s18247_s3 + $0x1b0] ss:$0 sm:$0xff] }
0x2367   : > { %v7498_v29 = vmul.f32 %v7490_v58, %v16968_v39 }
0x2368   : > { %v7508_v43 = vadd.f32 %v7507_v63, %v7506_v23  ;;  %v7511_v24 = vsel %vm619_vm14, %v7499_v41, 0.0 }
0x2369   : > { %v7509_v59 = vsel %vm619_vm14, %v7498_v29, 0.0 }
0x236a   : > { %v14645_v40 = vpop.eup %14644  ;;  %v7510_v26 = vadd.f32 %v7509_v59, %v7508_v43 }
0x236b   : > { %v14647_v49 = vpop.eup %14646  ;;  %v7493_v25 = vmul.f32 %v14645_v40, %v7435_v54  ;;  %v6944_v54 = vld [vmem:[%s18247_s3 + $0x1b8] sm:$0xff] }
0x236c   : > { %v7492_v20 = vmul.f32 %v14647_v49, %v7430_v34  ;;  %v7512_v60 = vadd.f32 %v7511_v24, %v7510_v26  ;;  %v6945_v34 = vld [vmem:[%s18247_s3 + $0x1c0] sm:$0xff] }
0x236d   : > { %v7501_v9 = vmul.f32 %v7493_v25, %v16988_v51  ;;  %v13902_v52 = vpack.c.bf16 %v6945_v34, %v6944_v54  ;;  %v7751_v49 = vld [vmem:[%s18247_s3 + $0x1e0] sm:$0xff]  ;;  %v11730_v54 = vld [vmem:[%s18247_s3 + $0x1d8] ss:$0 sm:$0xff] }
0x236e   : > { %v7500_v0 = vmul.f32 %v7492_v20, %v16990_v3  ;;  %v7755_v24 = vld [vmem:[%s18247_s3 + $0x200] sm:$0xff]  ;;  %v7756_v20 = vld [vmem:[%s18247_s3 + $0x208] sm:$0xff] }
0x236f   : > { %v7515_v57 = vsel %vm619_vm14, %v7501_v9, 0.0  ;;  %v7753_v9 = vld [vmem:[%s18247_s3 + $0x1f0] sm:$0xff] }
0x2370   : > { %v7513_v35 = vsel %vm619_vm14, %v7500_v0, 0.0  ;;  %v7754_v0 = vld [vmem:[%s18247_s3 + $0x1f8] sm:$0xff] }
0x2371   : > { %v7514_v10 = vadd.f32 %v7513_v35, %v7512_v60  ;;  %v13914_v60 = vpack.c.bf16 %v7756_v20, %v7755_v24  ;;  %v7757_v35 = vld [vmem:[%s18247_s3 + $0x210] sm:$0xff] }
0x2373   : > { %v7516_v5 = vadd.f32 %v7515_v57, %v7514_v10  ;;  %v13911_v10 = vpack.c.bf16 %v7754_v0, %v7753_v9  ;;  %v7758_v57 = vld [vmem:[%s18247_s3 + $0x218] sm:$0xff] }
0x2375   : > { %13238 = vmatmul.mubr.msk.f32.vlgmr.msra.gmra.mrb[118].mxu0 %vm619_vm14, %v7516_v5  ;;  %v13917_v5 = vpack.c.bf16 %v7758_v57, %v7757_v35 }
0x2376   : > { %13259 = vmatprep.mubr.msk.f32.mxu0 %vm15072_vm11, %v18298_v30  ;;  %13903 = vmatpush3.bf16.msra.mxu0 %v13902_v52 }
0x2377   : > { %13904 = vmatprep.subr.bf16.mxu0 %v18299_v8 }
0x237a   : > { %13906 = vmatpush3.bf16.msra.mxu0 %v13905_v11 }
0x237b   : > { %13913 = vmatprep.subr.bf16.mxu0 %v18299_v8 }
0x2448   : > { %v7586_v58 = vpop.f32.mrb[118].mxu0 }
0x2449   : > { %v7657_v23 = vadd.f32 %v17190_v27, %v7586_v58  ;;  %v13239_v63 = vpop.f32.mrb[119].mxu0  ;;  %v7752_v27 = vld [vmem:[%s18247_s3 + $0x1e8] sm:$0xff] }
0x244a   : > { %v13908_v25 = vpack.c.bf16 %v7752_v27, %v7751_v49 }
0x244b   : > { %v7664_v41 = vadd.f32 %v11728_v50, %v7657_v23 }
0x244c   : > { %13909 = vmatpush3.bf16.msra.mxu1 %v13908_v25 }
0x244d   : > { %v11729_v29 = vmul.f32 -1.442695, %v7664_v41  ;;  %13910 = vmatprep.subr.bf16.mxu1 %v18299_v8 }
0x244f   : > { %14648 = vpow2.f32 %v11729_v29 }
0x2450   : > { %13912 = vmatpush3.bf16.msra.mxu1 %v13911_v10  ;;  %v11742_v10 = vld [vmem:[%s18247_s3 + $0x228] ss:$0 sm:$0xff] }
0x2459   : > { %v14649_v43 = vpop.eup %14648 }
0x245a   : > { %v7668_v59 = vadd.f32 1.0, %v14649_v43  ;;  %v7763_v43 = vld [vmem:[%s18247_s3 + $0x240] sm:$0xff] }
0x245c   : > { %14650 = vrcp.f32 %v7668_v59  ;;  %v7764_v59 = vld [vmem:[%s18247_s3 + $0x248] sm:$0xff] }
0x2466   : > { %v14651_v40 = vpop.eup %14650 }
0x2467   : > { %v7671_v26 = vmul.f32 %v14651_v40, %v7664_v41  ;;  %v7762_v41 = vld [vmem:[%s18247_s3 + $0x238] sm:$0xff]  ;;  %v13923_v40 = vpack.c.bf16 %v7764_v59, %v7763_v43 }
0x2469   : > { %13260 = vmatmul.mubr.msk.f32.vlgmr.msra.gmra.mrb[120].mxu0 %vm619_vm14, %v7671_v26  ;;  %v7759_v26 = vld [vmem:[%s18247_s3 + $0x220] sm:$0x3] }
0x246a   : > { %13281 = vmatprep.mubr.msk.f32.mxu0 %vm15072_vm11, %v18298_v30  ;;  %13915 = vmatpush3.bf16.msra.mxu0 %v13914_v60  ;;  %v7916_v49 = vrot.slane %v7759_v26, %v15394_v47  ;;  %v7928_v27 = vrot.slane %v7759_v26, %v15397_v48 }
0x246b   : > { %13916 = vmatprep.subr.bf16.mxu0 %v18299_v8 }
0x246c   : > { %v7918_v24 = vmul.f32 %v7916_v49, %v16833_v31  ;;  %v7930_v25 = vmul.f32 %v7928_v27, %v16833_v31  ;;  %v7917_v20 = vmul.f32 %v7916_v49, %v16835_v46  ;;  %v7929_v60 = vmul.f32 %v7928_v27, %v16835_v46 }
0x246d   : > { %v7920_v0 = vmul.f32 %v7916_v49, %v16837_v38  ;;  %v7932_v35 = vmul.f32 %v7928_v27, %v16837_v38  ;;  %v7921_v59 = vmul.f32 %v7916_v49, %v16846_v2 }
0x246e   : > { %13918 = vmatpush3.bf16.msra.mxu0 %v13917_v5  ;;  %v7938_v9 = vadd.f32 %v7930_v25, %v7918_v24  ;;  %v7937_v5 = vadd.f32 %v7929_v60, %v7917_v20 }
0x253c   : > { %v7745_v34 = vpop.f32.mrb[120].mxu0 }
0x253d   : > { %v7746_v52 = vadd.f32 %v11730_v54, %v7745_v34  ;;  %v13261_v33 = vpop.f32.mrb[121].mxu0  ;;  %v7919_v54 = vmul.f32 %v7916_v49, %v16839_v44  ;;  %v7931_v34 = vmul.f32 %v7928_v27, %v16839_v44 }
0x253f   : > { %v7749_v53 = vadd.f32 %v7746_v52, %v17053_v12  ;;  %v7761_v12 = vld [vmem:[%s18247_s3 + $0x230] sm:$0xff]  ;;  %v7939_v43 = vadd.f32 %v7931_v34, %v7919_v54  ;;  %v7923_v54 = vmul.f32 %v7916_v49, %v16856_v32 }
0x2540   : > { %v13919_v29 = vpack.c.bf16 %v7762_v41, %v7761_v12  ;;  %v7934_v12 = vmul.f32 %v7928_v27, %v16852_v36 }
0x2541   : > { %v17263_v11 = vmul.f32 %v7749_v53, %v17050_v45 }
0x2542   : > { %13920 = vmatprep.subr.bf16.mxu0 %v13919_v29 }
0x2543   : > { %13271 = vmatmul.mubr.msk.f32.vlgmr.msra.gmra.mrb[120].mxu1 %vm619_vm14, %v17263_v11  ;;  %13282 = vmatmul.mubr.msk.f32.vlgmr.msra.gmra.mrb[122].mxu0 %vm619_vm14, %v17263_v11 }
0x2544   : > { %13286 = vmatprep.mubr.msk.f32.mxu1 %vm309_vm1, %v15185_v14  ;;  %13922 = vmatpush3.bf16.msra.mxu0 %v13919_v29 }
0x2545   : > { %13924 = vmatprep.subr.bf16.mxu0 %v13923_v40 }
0x2548   : > { %13926 = vmatpush3.bf16.msra.mxu0 %v13923_v40  ;;  %v7933_v40 = vmul.f32 %v7928_v27, %v16846_v2 }
0x2616   : > { %v17271_v50 = vpop.f32.mrb[120].mxu1  ;;  %v7909_v58 = vpop.f32.mrb[122].mxu0 }
0x2617   : > { %v13272_v23 = vpop.f32.mrb[121].mxu1  ;;  %v13283_v63 = vpop.f32.mrb[123].mxu0  ;;  %13284 = vmatprep.subr.mxu1 %v7909_v58 }
0x2618   : > { %13285 = vmatpush3.msra.mxu1 %v7909_v58  ;;  %v7940_v23 = vadd.f32 %v7932_v35, %v7920_v0  ;;  %v7922_v63 = vmul.f32 %v7916_v49, %v16852_v36  ;;  %v7936_v0 = vmul.f32 %v7928_v27, %v16870_v13 }
0x2619   : > { %13287 = vmatmul.mubr.msk.f32.vlgmr.msra.gmra.mrb[122].mxu1 %vm309_vm1, %v15192_v15 }
0x261a   : > { %13289 = vmatprep.mubr.msk.f32.mxu1 %vm309_vm1, %v15200_v16 }
0x261d   : > { %13290 = vmatmul.mubr.msk.f32.gmra.mrb[124].mxu1 %vm309_vm1, %v15207_v17 }
0x261e   : > { %13292 = vmatprep.mubr.msk.f32.mxu1 %vm309_vm1, %v15212_v18 }
0x2621   : > { %13293 = vmatmul.mubr.msk.f32.gmra.mrb[126].mxu1 %vm309_vm1, %v15225_v21 }
0x2622   : > { %13295 = vmatprep.mubr.msk.f32.mxu1 %vm309_vm1, %v15217_v19 }
0x2625   : > { %13296 = vmatmul.mubr.msk.f32.gmra.mrb[128].mxu1 %vm309_vm1, %v15230_v22 }
0x26ec   : > { %v13288_v57 = vpop.f32.mrb[122].mxu1 }
0x26ed   : > { %v8017_v52 = vadd.f32 %v13288_v57, %v7938_v9  ;;  %v8011_v33 = vpop.f32.mrb[123].mxu1  ;;  %v7924_v9 = vmul.f32 %v7916_v49, %v16870_v13 }
0x26ee   : > { %v8012_v53 = vadd.f32 %v8011_v33, %v7937_v5  ;;  %v7942_v5 = vadd.f32 %v7934_v12, %v7922_v63 }
0x26ef   : > { %v8055_v58 = vadd.f32 %v11742_v10, %v8017_v52  ;;  %v7944_v12 = vadd.f32 %v7936_v0, %v7924_v9 }
0x26f0   : > { %v8054_v41 = vadd.f32 %v11742_v10, %v8012_v53  ;;  %v13291_v29 = vpop.f32.mrb[124].mxu1  ;;  %v7941_v53 = vadd.f32 %v7933_v40, %v7921_v59 }
0x26f1   : > { %v17320_v26 = vadd.f32 %v8055_v58, %v17271_v50  ;;  %v8027_v24 = vadd.f32 %v13291_v29, %v7940_v23  ;;  %v8021_v25 = vpop.f32.mrb[125].mxu1  ;;  %v7935_v58 = vmul.f32 %v7928_v27, %v16856_v32 }
0x26f2   : > { %v17323_v20 = vadd.f32 %v8054_v41, %v17271_v50  ;;  %v8022_v60 = vadd.f32 %v8021_v25, %v7939_v43 }
0x26f3   : > { %v11744_v35 = vmul.f32 -1.442695, %v17320_v26  ;;  %v8057_v57 = vadd.f32 %v11742_v10, %v8027_v24  ;;  %v7943_v59 = vadd.f32 %v7935_v58, %v7923_v54 }
0x26f4   : > { %v11743_v34 = vmul.f32 -1.442695, %v17323_v20  ;;  %v8056_v52 = vadd.f32 %v11742_v10, %v8022_v60  ;;  %v13294_v33 = vpop.f32.mrb[126].mxu1 }
0x26f5   : > { %14652 = vpow2.f32 %v11744_v35  ;;  %v17332_v23 = vadd.f32 %v8057_v57, %v17271_v50  ;;  %v8037_v41 = vadd.f32 %v13294_v33, %v7942_v5  ;;  %v8031_v29 = vpop.f32.mrb[127].mxu1 }
0x26f6   : > { %14654 = vpow2.f32 %v11743_v34  ;;  %v8064_v43 = vadd.f32 %v8056_v52, %v17271_v50  ;;  %v8032_v24 = vadd.f32 %v8031_v29, %v7941_v53 }
0x26f7   : > { %v11746_v63 = vmul.f32 -1.442695, %v17332_v23  ;;  %v8059_v49 = vadd.f32 %v11742_v10, %v8037_v41 }
0x26f8   : > { %v11745_v25 = vmul.f32 -1.442695, %v8064_v43  ;;  %v8058_v60 = vadd.f32 %v11742_v10, %v8032_v24  ;;  %v13297_v3 = vpop.f32.mrb[128].mxu1 }
0x26f9   : > { %14656 = vpow2.f32 %v11746_v63  ;;  %v8067_v27 = vadd.f32 %v8059_v49, %v17271_v50  ;;  %v8047_v40 = vadd.f32 %v13297_v3, %v7944_v12  ;;  %v8041_v35 = vpop.f32.mrb[129].mxu1 }
0x26fa   : > { %14658 = vpow2.f32 %v11745_v25  ;;  %v8066_v57 = vadd.f32 %v8058_v60, %v17271_v50  ;;  %v8042_v5 = vadd.f32 %v8041_v35, %v7943_v59 }
0x26fb   : > { %v11748_v34 = vmul.f32 -1.442695, %v8067_v27  ;;  %v8061_v52 = vadd.f32 %v11742_v10, %v8047_v40 }
0x26fc   : > { %v11747_v33 = vmul.f32 -1.442695, %v8066_v57  ;;  %v8060_v53 = vadd.f32 %v11742_v10, %v8042_v5 }
0x26fd   : > { %14660 = vpow2.f32 %v11748_v34  ;;  %v8069_v9 = vadd.f32 %v8061_v52, %v17271_v50 }
0x26fe   : > { %14662 = vpow2.f32 %v11747_v33  ;;  %v8068_v0 = vadd.f32 %v8060_v53, %v17271_v50 }
0x26ff   : > { %v14653_v54 = vpop.eup %14652  ;;  %v11750_v58 = vmul.f32 -1.442695, %v8069_v9 }
0x2700   : > { %v14655_v41 = vpop.eup %14654  ;;  %v8095_v29 = vadd.f32 1.0, %v14653_v54  ;;  %v11749_v3 = vmul.f32 -1.442695, %v8068_v0 }
0x2701   : > { %v8094_v24 = vadd.f32 1.0, %v14655_v41  ;;  %14664 = vpow2.f32 %v11750_v58 }
0x2702   : > { %14666 = vrcp.f32 %v8095_v29 }
0x2703   : > { %v14657_v63 = vpop.eup %14656  ;;  %14668 = vrcp.f32 %v8094_v24 }
0x2704   : > { %v14659_v49 = vpop.eup %14658  ;;  %v8097_v12 = vadd.f32 1.0, %v14657_v63  ;;  %14670 = vpow2.f32 %v11749_v3 }
0x2705   : > { %v8096_v10 = vadd.f32 1.0, %v14659_v49 }
0x2706   : > { %14672 = vrcp.f32 %v8097_v12 }
0x2707   : > { %v14661_v25 = vpop.eup %14660  ;;  %14674 = vrcp.f32 %v8096_v10 }
0x2708   : > { %v14663_v60 = vpop.eup %14662  ;;  %v8099_v59 = vadd.f32 1.0, %v14661_v25 }
0x2709   : > { %v8098_v50 = vadd.f32 1.0, %v14663_v60  ;;  %v11751_v60 = vld [vmem:[%s18247_s3 + $0x250] ss:$0 sm:$0xff] }
0x270a   : > { %14676 = vrcp.f32 %v8099_v59 }
0x270b   : > { %v14665_v40 = vpop.eup %14664  ;;  %14678 = vrcp.f32 %v8098_v50 }
0x270c   : > { %v14667_v35 = vpop.eup %14666  ;;  %v8101_v5 = vadd.f32 1.0, %v14665_v40 }
0x270d   : > { %v14669_v34 = vpop.eup %14668  ;;  %v8119_v53 = vmul.f32 %v14667_v35, %v17320_v26 }
0x270e   : > { %v14671_v52 = vpop.eup %14670  ;;  %v8118_v33 = vmul.f32 %v14669_v34, %v17323_v20  ;;  %14680 = vrcp.f32 %v8101_v5 }
0x270f   : > { %v8100_v54 = vadd.f32 1.0, %v14671_v52 }
0x2710   : > { %v14673_v58 = vpop.eup %14672  ;;  %13306 = vmatprep.mubr.msk.f32.mxu0 %vm619_vm14, %v8118_v33 }
0x2711   : > { %v14675_v41 = vpop.eup %14674  ;;  %14682 = vrcp.f32 %v8100_v54  ;;  %13307 = vmatmul.mubr.msk.f32.vlgmr.msra.gmra.mrb[124].mxu0 %vm619_vm14, %v8119_v53  ;;  %v8121_v3 = vmul.f32 %v14673_v58, %v17332_v23  ;;  %v7766_v23 = vld [vmem:[%s18247_s3 + $0x258] sm:$0xff] }
0x2712   : > { %v8120_v29 = vmul.f32 %v14675_v41, %v8064_v43  ;;  %v7767_v43 = vld [vmem:[%s18247_s3 + $0x260] sm:$0xff] }
0x2714   : > { %v14677_v24 = vpop.eup %14676  ;;  %13309 = vmatprep.mubr.msk.f32.mxu0 %vm619_vm14, %v8120_v29 }
0x2715   : > { %v14679_v63 = vpop.eup %14678  ;;  %13310 = vmatmul.mubr.msk.f32.gmra.mrb[126].mxu0 %vm619_vm14, %v8121_v3  ;;  %v8123_v26 = vmul.f32 %v14677_v24, %v8067_v27  ;;  %v13927_v27 = vpack.c.bf16 %v7767_v43, %v7766_v23 }
0x2716   : > { %v8122_v20 = vmul.f32 %v14679_v63, %v8066_v57  ;;  %v7768_v57 = vld [vmem:[%s18247_s3 + $0x268] sm:$0xff] }
0x2717   : > { %13928 = vmatprep.subr.bf16.mxu1 %v13927_v27 }
0x2718   : > { %13312 = vmatprep.mubr.msk.f32.mxu0 %vm619_vm14, %v8122_v20  ;;  %v14681_v49 = vpop.eup %14680  ;;  %13930 = vmatpush3.bf16.msra.mxu1 %v13927_v27 }
0x2719   : > { %13313 = vmatmul.mubr.msk.f32.gmra.mrb[128].mxu0 %vm619_vm14, %v8123_v26  ;;  %v8125_v25 = vmul.f32 %v14681_v49, %v8069_v9  ;;  %v7769_v9 = vld [vmem:[%s18247_s3 + $0x270] sm:$0xff] }
0x271b   : > { %v14683_v12 = vpop.eup %14682 }
0x271c   : > { %v8124_v10 = vmul.f32 %v14683_v12, %v8068_v0  ;;  %v13931_v0 = vpack.c.bf16 %v7769_v9, %v7768_v57 }
0x271e   : > { %13315 = vmatprep.mubr.msk.f32.mxu0 %vm619_vm14, %v8124_v10  ;;  %13932 = vmatprep.subr.bf16.mxu1 %v13931_v0 }
0x271f   : > { %13316 = vmatmul.mubr.msk.f32.gmra.mrb[130].mxu0 %vm619_vm14, %v8125_v25  ;;  %13934 = vmatpush3.bf16.msra.mxu1 %v13931_v0 }
0x2720   : > { %13340 = vmatprep.mubr.msk.f32.mxu0 %vm309_vm1, %v15185_v14  ;;  %13935 = vmatprep.subr.bf16.mxu1 %v18299_v8 }
0x27e4   : > { %v13308_v59 = vpop.f32.mrb[124].mxu0 }
0x27e5   : > { %v8226_v50 = vadd.f32 %v13308_v59, %v11751_v60  ;;  %v8220_v40 = vpop.f32.mrb[125].mxu0 }
0x27e6   : > { %v8221_v35 = vadd.f32 %v11751_v60, %v8220_v40 }
0x27e7   : > { %v11761_v5 = vmul.f32 -1.442695, %v8226_v50 }
0x27e8   : > { %v11760_v34 = vmul.f32 -1.442695, %v8221_v35  ;;  %v13311_v52 = vpop.f32.mrb[126].mxu0 }
0x27e9   : > { %14684 = vpow2.f32 %v11761_v5  ;;  %v17369_v33 = vadd.f32 %v13311_v52, %v11751_v60  ;;  %v8230_v53 = vpop.f32.mrb[127].mxu0 }
0x27ea   : > { %14686 = vpow2.f32 %v11760_v34  ;;  %v8231_v54 = vadd.f32 %v11751_v60, %v8230_v53 }
0x27eb   : > { %v11763_v58 = vmul.f32 -1.442695, %v17369_v33 }
0x27ec   : > { %v11762_v41 = vmul.f32 -1.442695, %v8231_v54  ;;  %v13314_v29 = vpop.f32.mrb[128].mxu0 }
0x27ed   : > { %14688 = vpow2.f32 %v11763_v58  ;;  %v17372_v3 = vadd.f32 %v13314_v29, %v11751_v60  ;;  %v8240_v24 = vpop.f32.mrb[129].mxu0  ;;  %v8688_v29 = vld [vmem:[%s18247_s3 + $0x280] sm:$0xff] }
0x27ee   : > { %14690 = vpow2.f32 %v11762_v41  ;;  %v8241_v63 = vadd.f32 %v11751_v60, %v8240_v24 }
0x27ef   : > { %v11765_v20 = vmul.f32 -1.442695, %v17372_v3 }
0x27f0   : > { %v11764_v26 = vmul.f32 -1.442695, %v8241_v63 }
0x27f1   : > { %14692 = vpow2.f32 %v11765_v20 }
0x27f2   : > { %14694 = vpow2.f32 %v11764_v26  ;;  %v13317_v49 = vpop.f32.mrb[130].mxu0 }
0x27f3   : > { %v14685_v12 = vpop.eup %14684  ;;  %v8256_v10 = vadd.f32 %v13317_v49, %v11751_v60  ;;  %v8250_v25 = vpop.f32.mrb[131].mxu0 }
0x27f4   : > { %v14687_v23 = vpop.eup %14686  ;;  %v8284_v43 = vadd.f32 1.0, %v14685_v12  ;;  %v8251_v27 = vadd.f32 %v11751_v60, %v8250_v25  ;;  %v8687_v60 = vld [vmem:[%s18247_s3 + $0x278] sm:$0xff] }
0x27f5   : > { %v8283_v57 = vadd.f32 1.0, %v14687_v23  ;;  %v11767_v9 = vmul.f32 -1.442695, %v8256_v10  ;;  %v13936_v12 = vpack.c.bf16 %v8688_v29, %v8687_v60 }
0x27f6   : > { %14696 = vrcp.f32 %v8284_v43  ;;  %v11766_v0 = vmul.f32 -1.442695, %v8251_v27 }
0x27f7   : > { %v14689_v59 = vpop.eup %14688  ;;  %14698 = vrcp.f32 %v8283_v57  ;;  %v8689_v57 = vld [vmem:[%s18247_s3 + $0x288] sm:$0xff] }
0x27f8   : > { %v14691_v40 = vpop.eup %14690  ;;  %v8286_v5 = vadd.f32 1.0, %v14689_v59  ;;  %14700 = vpow2.f32 %v11767_v9  ;;  %v8690_v9 = vld [vmem:[%s18247_s3 + $0x290] sm:$0xff] }
0x27f9   : > { %v8285_v34 = vadd.f32 1.0, %v14691_v40  ;;  %14702 = vpow2.f32 %v11766_v0 }
0x27fa   : > { %14704 = vrcp.f32 %v8286_v5 }
0x27fb   : > { %v14693_v52 = vpop.eup %14692  ;;  %14706 = vrcp.f32 %v8285_v34 }
0x27fc   : > { %v14695_v53 = vpop.eup %14694  ;;  %v8288_v58 = vadd.f32 1.0, %v14693_v52 }
0x27fd   : > { %v8287_v41 = vadd.f32 1.0, %v14695_v53 }
0x27fe   : > { %14708 = vrcp.f32 %v8288_v58 }
0x27ff   : > { %14710 = vrcp.f32 %v8287_v41 }
0x2800   : > { %v14697_v24 = vpop.eup %14696 }
0x2801   : > { %v14699_v20 = vpop.eup %14698  ;;  %v8308_v23 = vmul.f32 %v14697_v24, %v8226_v50  ;;  %v13939_v50 = vpack.c.bf16 %v8690_v9, %v8689_v57  ;;  %v14978_v24 = vld [vmem:[%s15367_s12 + $0x40] sm:$0xff]  ;;  %v14981_v57 = vld [vmem:[%s15367_s12 + $0x68] sm:$0xff] }
0x2802   : > { %v14701_v26 = vpop.eup %14700  ;;  %v8307_v49 = vmul.f32 %v14699_v20, %v8221_v35 }
0x2803   : > { %v14703_v25 = vpop.eup %14702  ;;  %v8290_v43 = vadd.f32 1.0, %v14701_v26 }
0x2804   : > { %v14705_v0 = vpop.eup %14704  ;;  %v8289_v59 = vadd.f32 1.0, %v14703_v25  ;;  %13326 = vmatprep.mubr.msk.f32.mxu1 %vm619_vm14, %v8307_v49  ;;  %v14979_v49 = vld [vmem:[%s15367_s12 + $0x58] sm:$0xff]  ;;  %v14980_v25 = vld [vmem:[%s15367_s12 + $0x50] sm:$0xff] }
0x2805   : > { %v14707_v40 = vpop.eup %14706  ;;  %14712 = vrcp.f32 %v8290_v43  ;;  %13327 = vmatmul.mubr.msk.f32.vlgmr.msra.gmra.mrb[130].mxu1 %vm619_vm14, %v8308_v23  ;;  %v8310_v5 = vmul.f32 %v14705_v0, %v17369_v33 }
0x2806   : > { %v8309_v35 = vmul.f32 %v14707_v40, %v8231_v54  ;;  %14714 = vrcp.f32 %v8289_v59  ;;  %13937 = vmatpush3.bf16.msra.mxu1 %v13936_v12  ;;  %v14982_v59 = vld [vmem:[%s15367_s12 + $0x60] sm:$0xff] }
0x2807   : > { %13938 = vmatprep.subr.bf16.mxu1 %v18299_v8 }
0x2808   : > { %v14709_v34 = vpop.eup %14708  ;;  %13329 = vmatprep.mubr.msk.f32.mxu1 %vm619_vm14, %v8309_v35 }
0x2809   : > { %v14711_v52 = vpop.eup %14710  ;;  %13330 = vmatmul.mubr.msk.f32.gmra.mrb[132].mxu1 %vm619_vm14, %v8310_v5  ;;  %v8312_v58 = vmul.f32 %v14709_v34, %v17372_v3  ;;  %v17402_v3 = vmul.f32 %v17263_v11, %v17050_v45 }
0x280a   : > { %v8311_v53 = vmul.f32 %v14711_v52, %v8241_v63  ;;  %13940 = vmatpush3.bf16.msra.mxu1 %v13939_v50  ;;  %v14983_v50 = vld [vmem:[%s15367_s12 + $0x78] sm:$0xff]  ;;  %v14984_v52 = vld [vmem:[%s15367_s12 + $0x70] sm:$0xff] }
0x280c   : > { %13332 = vmatprep.mubr.msk.f32.mxu1 %vm619_vm14, %v8311_v53 }
0x280d   : > { %13333 = vmatmul.mubr.msk.f32.gmra.mrb[134].mxu1 %vm619_vm14, %v8312_v58 }
0x280f   : > { %v14713_v54 = vpop.eup %14712 }
0x2810   : > { %v14715_v33 = vpop.eup %14714  ;;  %v8314_v60 = vmul.f32 %v14713_v54, %v8256_v10  ;;  %v14977_v10 = vld [vmem:[%s15367_s12 + $0x48] sm:$0xff] }
0x2811   : > { %v8313_v41 = vmul.f32 %v14715_v33, %v8251_v27  ;;  %v6021_v33 = vadd.f32 1e-08, %v16833_v31 }
0x2813   : > { %13335 = vmatprep.mubr.msk.f32.mxu1 %vm619_vm14, %v8313_v41  ;;  %v6020_v41 = vadd.f32 1e-08, %v16835_v46  ;;  %14716 = vrsqrt.f32 %v6021_v33 }
0x2814   : > { %13336 = vmatmul.mubr.msk.f32.gmra.mrb[136].mxu1 %vm619_vm14, %v8314_v60  ;;  %v6023_v60 = vadd.f32 1e-08, %v16837_v38 }
0x2815   : > { %13360 = vmatprep.mubr.msk.f32.mxu1 %vm15072_vm11, %v18298_v30  ;;  %14718 = vrsqrt.f32 %v6020_v41 }
0x2816   : > { %14720 = vrsqrt.f32 %v6023_v60 }
0x2818   : > { %13361 = vmatmul.mubr.msk.f32.vlgmr.msra.gmra.mrb[138].mxu1 %vm619_vm14, %v17402_v3 }
0x2819   : > { %13376 = vmatprep.mubr.msk.f32.mxu1 %vm309_vm1, %v15185_v14 }
0x28d8   : > { %v13328_v63 = vpop.f32.mrb[130].mxu1 }
0x28d9   : > { %v8445_v27 = vmul.f32 %v14977_v10, %v13328_v63  ;;  %v8405_v29 = vpop.f32.mrb[131].mxu1  ;;  %v6022_v63 = vadd.f32 1e-08, %v16839_v44  ;;  %v6024_v10 = vadd.f32 1e-08, %v16846_v2 }
0x28da   : > { %v8444_v20 = vmul.f32 %v14978_v24, %v8405_v29  ;;  %v14717_v29 = vpop.eup %14716 }
0x28db   : > { %8459 = vperm.xlu0 %14099, %v8445_v27   ;;  %14722 = vrsqrt.f32 %v6022_v63  ;;  %v6025_v27 = vadd.f32 1e-08, %v16852_v36  ;;  %v14719_v24 = vpop.eup %14718 }
0x28dc   : > { %8454 = vperm.xlu1 %14098, %v8444_v20   ;;  %v13331_v26 = vpop.f32.mrb[132].mxu1  ;;  %14724 = vrsqrt.f32 %v6024_v10  ;;  %v6027_v20 = vadd.f32 1e-08, %v16870_v13 }
0x28dd   : > { %v8447_v11 = vmul.f32 %v14979_v49, %v13331_v26  ;;  %v8415_v12 = vpop.f32.mrb[133].mxu1  ;;  %14726 = vrsqrt.f32 %v6025_v27  ;;  %v6026_v26 = vadd.f32 1e-08, %v16856_v32  ;;  %v6037_v49 = vmul.f32 %v14717_v29, %v16666_v1 }
0x28de   : > { %v8446_v23 = vmul.f32 %v14980_v25, %v8415_v12  ;;  %v6036_v25 = vmul.f32 %v14719_v24, %v16669_v42  ;;  %14728 = vrsqrt.f32 %v6027_v20 }
0x28df   : > { %8469 = vperm.xlu0 %14099, %v8447_v11   ;;  %v14721_v11 = vpop.eup %14720  ;;  %14730 = vrsqrt.f32 %v6026_v26 }
0x28e0   : > { %8464 = vperm.xlu1 %14098, %v8446_v23   ;;  %v13334_v43 = vpop.f32.mrb[134].mxu1 }
0x28e1   : > { %v8449_v9 = vmul.f32 %v14981_v57, %v13334_v43  ;;  %v8425_v0 = vpop.f32.mrb[135].mxu1 }
0x28e2   : > { %v8448_v40 = vmul.f32 %v14982_v59, %v8425_v0 }
0x28e3   : > { %8479 = vperm.xlu0 %14099, %v8449_v9  }
0x28e4   : > { %8474 = vperm.xlu1 %14098, %v8448_v40   ;;  %v6039_v40 = vmul.f32 %v14721_v11, %v16677_v56 }
0x28e5   : > { %v14723_v23 = vpop.eup %14722 }
0x28e6   : > { %v14725_v1 = vpop.eup %14724 }
0x28e7   : > { %v13337_v35 = vpop.f32.mrb[136].mxu1  ;;  %v6040_v41 = vmul.f32 %v14725_v1, %v16701_v62  ;;  %v14985_v1 = vld [vmem:[%s15166_s5 + $0x8] sm:$0xff] }
0x28e8   : > { %v8451_v5 = vmul.f32 %v14983_v50, %v13337_v35  ;;  %v8435_v34 = vpop.f32.mrb[137].mxu1  ;;  %v6038_v50 = vmul.f32 %v14723_v23, %v16680_v6  ;;  %v18333_v23 = vld [vmem:[#allocation5_spill] sm:$0xff] }
0x28e9   : > { %v8450_v53 = vmul.f32 %v14984_v52, %v8435_v34  ;;  %v14727_v34 = vpop.eup %14726 }
0x28ea   : > { %8489 = vperm.xlu0 %14099, %v8451_v5   ;;  %v6041_v63 = vmul.f32 %v14727_v34, %v16688_v61  ;;  %v14729_v29 = vpop.eup %14728  ;;  %v8691_v34 = vld [vmem:[%s18247_s3 + $0x298] sm:$0xff] }
0x28eb   : > { %v17416_v58 = vpop.f32.mrb[138].mxu1  ;;  %8484 = vperm.xlu1 %14098, %v8450_v53   ;;  %v14731_v20 = vpop.eup %14730 }
0x28ec   : > { %v13362_v54 = vpop.f32.mrb[139].mxu1 }
0x295a   : > { %v8460_v12 = vpop.permute.xlu0 %8459 }
0x295b   : > { %v8493_v43 = vmul.f32 %v8460_v12, %v6037_v49  ;;  %v8455_v57 = vpop.permute.xlu1 %8454  ;;  %v18332_v12 = vld [vmem:[#allocation25_spill] sm:$0xff] }
0x295c   : > { %v8492_v9 = vmul.f32 %v8455_v57, %v6036_v25  ;;  %v6043_v25 = vmul.f32 %v14729_v29, %v18332_v12 }
0x295d   : > { %v8501_v0 = vsel %vm455_vm13, %v8493_v43, 0.0  ;;  %v6042_v43 = vmul.f32 %v14731_v20, %v18333_v23 }
0x295e   : > { %v8500_v59 = vsel %vm455_vm13, %v8492_v9, 0.0  ;;  %v8470_v35 = vpop.permute.xlu0 %8469 }
0x295f   : > { %v8465_v5 = vpop.permute.xlu1 %8464  ;;  %v8495_v52 = vmul.f32 %v8470_v35, %v6039_v40  ;;  %v8502_v53 = vadd.f32 %v8501_v0, %v8500_v59 }
0x2960   : > { %v8494_v42 = vmul.f32 %v8465_v5, %v6038_v50 }
0x2961   : > { %v8505_v56 = vsel %vm455_vm13, %v8495_v52, 0.0  ;;  %v8692_v52 = vld [vmem:[%s18247_s3 + $0x2a0] sm:$0xff] }
0x2962   : > { %v8503_v54 = vsel %vm455_vm13, %v8494_v42, 0.0  ;;  %v8480_v33 = vpop.permute.xlu0 %8479 }
0x2963   : > { %v8504_v60 = vadd.f32 %v8503_v54, %v8502_v53  ;;  %v8475_v10 = vpop.permute.xlu1 %8474  ;;  %v8497_v6 = vmul.f32 %v8480_v33, %v6041_v63  ;;  %v13942_v53 = vpack.c.bf16 %v8692_v52, %v8691_v34  ;;  %v8693_v54 = vld [vmem:[%s18247_s3 + $0x2a8] sm:$0xff]  ;;  %v8694_v33 = vld [vmem:[%s18247_s3 + $0x2b0] sm:$0xff] }
0x2964   : > { %v8496_v27 = vmul.f32 %v8475_v10, %v6040_v41  ;;  %v13945_v41 = vpack.c.bf16 %v8694_v33, %v8693_v54 }
0x2965   : > { %v8506_v24 = vadd.f32 %v8505_v56, %v8504_v60  ;;  %v8509_v11 = vsel %vm455_vm13, %v8497_v6, 0.0 }
0x2966   : > { %v8507_v26 = vsel %vm455_vm13, %v8496_v27, 0.0 }
0x2967   : > { %v8508_v49 = vadd.f32 %v8507_v26, %v8506_v24 }
0x2969   : > { %v8490_v62 = vpop.permute.xlu0 %8489  ;;  %v8510_v61 = vadd.f32 %v8509_v11, %v8508_v49 }
0x296a   : > { %v8485_v57 = vpop.permute.xlu1 %8484  ;;  %v8499_v9 = vmul.f32 %v8490_v62, %v6043_v25 }
0x296b   : > { %v8498_v0 = vmul.f32 %v8485_v57, %v6042_v43 }
0x296c   : > { %v8513_v35 = vsel %vm455_vm13, %v8499_v9, 0.0 }
0x296d   : > { %v8511_v59 = vsel %vm455_vm13, %v8498_v0, 0.0 }
0x296e   : > { %v8512_v40 = vadd.f32 %v8511_v59, %v8510_v61 }
0x2970   : > { %v8514_v50 = vadd.f32 %v8513_v35, %v8512_v40 }
0x2972   : > { %v8515_v5 = vadd.f32 %v14985_v1, %v8514_v50 }
0x2974   : > { %v17450_v42 = vmul.f32 %v8515_v5, %v17050_v45 }
0x2976   : > { %18334 = vst [vmem:[#allocation25_spill] sm:$0xff] %v17450_v42  ;;  %13338 = vmatprep.subr.mxu0 %v17450_v42 }
0x2977   : > { %13339 = vmatpush3.msra.mxu0 %v17450_v42 }
0x2978   : > { %13341 = vmatmul.mubr.msk.f32.vlgmr.msra.gmra.mrb[132].mxu0 %vm309_vm1, %v15192_v15  ;;  %13941 = vmatprep.subr.bf16.mxu0 %v18299_v8 }
0x2979   : > { %13343 = vmatprep.mubr.msk.f32.mxu0 %vm309_vm1, %v15200_v16  ;;  %13943 = vmatpush3.bf16.msra.mxu0 %v13942_v53 }
0x297a   : > { %13944 = vmatprep.subr.bf16.mxu0 %v18299_v8 }
0x297c   : > { %13344 = vmatmul.mubr.msk.f32.gmra.mrb[134].mxu0 %vm309_vm1, %v15207_v17 }
0x297d   : > { %13346 = vmatprep.mubr.msk.f32.mxu0 %vm309_vm1, %v15212_v18  ;;  %13946 = vmatpush3.bf16.msra.mxu0 %v13945_v41 }
0x2980   : > { %13347 = vmatmul.mubr.msk.f32.gmra.mrb[136].mxu0 %vm309_vm1, %v15225_v21 }
0x2981   : > { %13349 = vmatprep.mubr.msk.f32.mxu0 %vm309_vm1, %v15217_v19 }
0x2984   : > { %13350 = vmatmul.mubr.msk.f32.gmra.mrb[138].mxu0 %vm309_vm1, %v15230_v22 }
0x2985   : > { %13371 = vmatprep.mubr.msk.f32.mxu0 %vm15072_vm11, %v18298_v30 }
0x2988   : > { %13372 = vmatmul.mubr.msk.f32.vlgmr.msra.gmra.mrb[140].mxu0 %vm619_vm14, %v17402_v3 }
0x2a4b   : > { %v13342_v60 = vpop.f32.mrb[132].mxu0 }
0x2a4c   : > { %v17481_v63 = vsub.f32 %v17450_v42, %v13342_v60  ;;  %v8584_v10 = vpop.f32.mrb[133].mxu0  ;;  %v14986_v60 = vld [vmem:[%s15382_s20] sm:$0xff] }
0x2a4d   : > { %v17484_v56 = vsub.f32 %v17450_v42, %v8584_v10  ;;  %v5749_v10 = vsel %vm5748_vm15, %v14986_v60, 0.0 }
0x2a4e   : > { %18335 = vst [vmem:[#allocation5_spill] sm:$0xff] %v17481_v63  ;;  %v8632_v27 = vmul.f32 %v17481_v63, %v17481_v63 }
0x2a4f   : > { %18336 = vst [vmem:[#allocation36_spill] sm:$0xff] %v17484_v56  ;;  %v13345_v29 = vpop.f32.mrb[134].mxu0  ;;  %v8631_v6 = vmul.f32 %v17484_v56, %v17484_v56 }
0x2a50   : > { %v17491_v24 = vsub.f32 %v17450_v42, %v13345_v29  ;;  %v8594_v20 = vpop.f32.mrb[135].mxu0  ;;  %v8642_v26 = vsel %vm455_vm13, %v8632_v27, 0.0  ;;  %v14987_v29 = vld [vmem:[%s15382_s20 + $0x8] sm:$0xff]  ;;  %s15075_s20 = smov 3  }
0x2a51   : > { %v17495_v49 = vsub.f32 %v17450_v42, %v8594_v20  ;;  %8643 = vadd.xlane.f32.xlu0 %v8642_v26  ;;  %v8639_v11 = vsel %vm455_vm13, %v8631_v6, 0.0  ;;  %v11201_v6 = vsel %vm5748_vm15, %v14987_v29, 0.0  ;;  %v14988_v20 = vld [vmem:[%s15367_s12] sm:$0xff]  ;;  %v18343_v26 = vld [vmem:[#allocation27_spill] sm:$0xff] }
0x2a52   : > { %18337 = vst [vmem:[#allocation37_spill] sm:$0xff] %v17491_v24  ;;  %8640 = vadd.xlane.f32.xlu1 %v8639_v11  ;;  %v8634_v23 = vmul.f32 %v17491_v24, %v17491_v24  ;;  %v5589_v11 = vmul.f32 %v14988_v20, %v18343_v26 }
0x2a53   : > { %18338 = vst [vmem:[#allocation38_spill] sm:$0xff] %v17495_v49  ;;  %v13348_v12 = vpop.f32.mrb[136].mxu0  ;;  %v8633_v25 = vmul.f32 %v17495_v49, %v17495_v49 }
0x2a54   : > { %v8604_v62 = vpop.f32.mrb[137].mxu0  ;;  %v17503_v43 = vsub.f32 %v17450_v42, %v13348_v12  ;;  %v8648_v40 = vsel %vm455_vm13, %v8634_v23, 0.0  ;;  %v14989_v12 = vld [vmem:[%s15367_s12 + $0x10] sm:$0xff]  ;;  %v14990_v23 = vld [vmem:[%s15367_s12 + $0x8] sm:$0xff] }
0x2a55   : > { %v17506_v61 = vsub.f32 %v17450_v42, %v8604_v62  ;;  %v8645_v57 = vsel %vm455_vm13, %v8633_v25, 0.0  ;;  %v18344_v25 = vld [vmem:[#allocation29_spill] sm:$0xff] }
0x2a56   : > { %18339 = vst [vmem:[#allocation39_spill] sm:$0xff] %v17503_v43  ;;  %8646 = vadd.xlane.f32.xlu0 %v8645_v57  ;;  %v8636_v5 = vmul.f32 %v17503_v43, %v17503_v43  ;;  %v5591_v62 = vmul.f32 %v14989_v12, %v18344_v25  ;;  %v18345_v57 = vld [vmem:[#allocation26_spill] sm:$0xff]  ;;  %v18349_v12 = vld [vmem:[#allocation19_spill] sm:$0xff] }
0x2a57   : > { %18340 = vst [vmem:[#allocation40_spill] sm:$0xff] %v17506_v61  ;;  %v13351_v9 = vpop.f32.mrb[138].mxu0  ;;  %v8635_v0 = vmul.f32 %v17506_v61, %v17506_v61  ;;  %v3211_v25 = vadd.f32 1e-08, %v18349_v12 }
0x2a58   : > { %v8614_v59 = vpop.f32.mrb[139].mxu0  ;;  %v17513_v35 = vsub.f32 %v17450_v42, %v13351_v9  ;;  %v8654_v54 = vsel %vm455_vm13, %v8636_v5, 0.0  ;;  %v5590_v9 = vmul.f32 %v14990_v23, %v18345_v57  ;;  %v18347_v5 = vld [vmem:[#allocation31_spill] sm:$0xff]  ;;  %v18351_v57 = vld [vmem:[#allocation20_spill] sm:$0xff] }
0x2a59   : > { %v17516_v50 = vsub.f32 %v17450_v42, %v8614_v59  ;;  %v8651_v1 = vsel %vm455_vm13, %v8635_v0, 0.0  ;;  %v14991_v0 = vld [vmem:[%s15367_s12 + $0x18] sm:$0xff] }
0x2a5a   : > { %18341 = vst [vmem:[#allocation41_spill] sm:$0xff] %v17513_v35  ;;  %8649 = vadd.xlane.f32.xlu0 %v8648_v40  ;;  %8652 = vadd.xlane.f32.xlu1 %v8651_v1  ;;  %v8638_v41 = vmul.f32 %v17513_v35, %v17513_v35  ;;  %v18346_v59 = vld [vmem:[#allocation28_spill] sm:$0xff]  ;;  %v14992_v1 = vld [vmem:[%s15367_s12 + $0x20] sm:$0xff] }
0x2a5b   : > { %18342 = vst [vmem:[#allocation42_spill] sm:$0xff] %v17516_v50  ;;  %v8855_v34 = vpop.f32.mrb[140].mxu0  ;;  %v8637_v52 = vmul.f32 %v17516_v50, %v17516_v50  ;;  %v5592_v40 = vmul.f32 %v14991_v0, %v18346_v59 }
0x2a5c   : > { %v13373_v53 = vpop.f32.mrb[141].mxu0  ;;  %13374 = vmatprep.subr.mxu1 %v8855_v34  ;;  %v8660_v27 = vsel %vm455_vm13, %v8638_v41, 0.0  ;;  %v8700_v41 = vld [vmem:[%s18247_s3 + $0x2e0] sm:$0xff] }
0x2a5d   : > { %13375 = vmatpush3.msra.mxu1 %v8855_v34  ;;  %v8657_v33 = vsel %vm455_vm13, %v8637_v52, 0.0  ;;  %v5593_v34 = vmul.f32 %v14992_v1, %v18347_v5  ;;  %v8697_v52 = vld [vmem:[%s18247_s3 + $0x2c8] sm:$0xff]  ;;  %v8698_v53 = vld [vmem:[%s18247_s3 + $0x2d0] sm:$0xff] }
0x2a5e   : > { %8655 = vadd.xlane.f32.xlu0 %v8654_v54  ;;  %13377 = vmatmul.mubr.msk.f32.vlgmr.msra.gmra.mrb[140].mxu1 %vm309_vm1, %v15192_v15  ;;  %v13947_v54 = vpack.c.bf16 %v8698_v53, %v8697_v52 }
0x2a5f   : > { %8658 = vadd.xlane.f32.xlu1 %v8657_v33  ;;  %13379 = vmatprep.mubr.msk.f32.mxu1 %vm309_vm1, %v15200_v16  ;;  %v8699_v33 = vld [vmem:[%s18247_s3 + $0x2d8] sm:$0xff] }
0x2a60   : > { %13955 = vmatprep.subr.bf16.mxu1 %v18299_v8  ;;  %13948 = vmatprep.subr.bf16.mxu0 %v13947_v54  ;;  %v13951_v60 = vpack.c.bf16 %v8700_v41, %v8699_v33 }
0x2a61   : > { %13950 = vmatpush3.bf16.msra.mxu0 %v13947_v54 }
0x2a62   : > { %8661 = vadd.xlane.f32.xlu0 %v8660_v27  ;;  %13380 = vmatmul.mubr.msk.f32.gmra.mrb[142].mxu1 %vm309_vm1, %v15207_v17 }
0x2a63   : > { %5750 = vadd.xlane.f32.xlu1 %v5749_v10  ;;  %13382 = vmatprep.mubr.msk.f32.mxu1 %vm309_vm1, %v15212_v18 }
0x2a64   : > { %13952 = vmatprep.subr.bf16.mxu0 %v13951_v60 }
0x2a65   : > { %13954 = vmatpush3.bf16.msra.mxu0 %v13951_v60  ;;  %v18355_v60 = vld [vmem:[#allocation10_spill] sm:$0xff] }
0x2a66   : > { %11202 = vadd.xlane.f32.xlu0 %v11201_v6  ;;  %13383 = vmatmul.mubr.msk.f32.gmra.mrb[144].mxu1 %vm309_vm1, %v15225_v21  ;;  %v18348_v6 = vld [vmem:[#allocation17_spill] sm:$0xff] }
0x2a67   : > { %13385 = vmatprep.mubr.msk.f32.mxu1 %vm309_vm1, %v15217_v19  ;;  %13967 = vmatprep.subr.bf16.mxu0 %v18299_v8  ;;  %v3210_v20 = vadd.f32 1e-08, %v18348_v6 }
0x2a69   : > { %14732 = vrsqrt.f32 %v3210_v20 }
0x2a6a   : > { %13386 = vmatmul.mubr.msk.f32.gmra.mrb[146].mxu1 %vm309_vm1, %v15230_v22  ;;  %14734 = vrsqrt.f32 %v3211_v25 }
0x2a6b   : > { %13416 = vmatprep.mubr.msk.f32.mxu1 %vm15072_vm11, %v18298_v30 }
0x2a73   : > { %v14733_v53 = vpop.eup %14732 }
0x2a74   : > { %5599 = vperm.xlu1 %14098, %v5589_v11   ;;  %v14735_v33 = vpop.eup %14734  ;;  %v3226_v6 = vmul.f32 %v14733_v53, %v18355_v60  ;;  %v18359_v60 = vld [vmem:[#allocation14_spill] sm:$0xff] }
0x2a78   : > { %5609 = vperm.xlu1 %14098, %v5591_v62   ;;  %v18350_v62 = vld [vmem:[#allocation18_spill] sm:$0xff] }
0x2a79   : > { %v3212_v23 = vadd.f32 1e-08, %v18350_v62  ;;  %v18356_v62 = vld [vmem:[#allocation12_spill] sm:$0xff] }
0x2a7b   : > { %14736 = vrsqrt.f32 %v3212_v23 }
0x2a7c   : > { %5614 = vperm.xlu1 %14098, %v5592_v40   ;;  %5604 = vperm.xlu0 %14099, %v5590_v9   ;;  %v3213_v9 = vadd.f32 1e-08, %v18351_v57  ;;  %v18352_v40 = vld [vmem:[#allocation22_spill] sm:$0xff]  ;;  %v18357_v57 = vld [vmem:[#allocation9_spill] sm:$0xff] }
0x2a7d   : > { %v3214_v1 = vadd.f32 1e-08, %v18352_v40 }
0x2a7e   : > { %14738 = vrsqrt.f32 %v3213_v9  ;;  %v3227_v9 = vmul.f32 %v14735_v33, %v18357_v57 }
0x2a7f   : > { %14740 = vrsqrt.f32 %v3214_v1  ;;  %v18358_v1 = vld [vmem:[#allocation11_spill] sm:$0xff] }
0x2a80   : > { %5619 = vperm.xlu1 %14098, %v5593_v34  }
0x2a85   : > { %v14737_v41 = vpop.eup %14736 }
0x2a86   : > { %v3228_v23 = vmul.f32 %v14737_v41, %v18356_v62 }
0x2a88   : > { %v14739_v12 = vpop.eup %14738 }
0x2a89   : > { %v14741_v42 = vpop.eup %14740  ;;  %v3229_v61 = vmul.f32 %v14739_v12, %v18358_v1 }
0x2a8a   : > { %v3230_v63 = vmul.f32 %v14741_v42, %v18359_v60 }
0x2ade   : > { %v17570_v10 = vpop.xlane.xlu0 %8643 }
0x2adf   : > { %v17572_v27 = vpop.xlane.xlu1 %8640 }
0x2ae3   : > { %v17574_v29 = vpop.xlane.xlu0 %8646 }
0x2ae7   : > { %v17577_v26 = vpop.xlane.xlu0 %8649  ;;  %v17579_v11 = vpop.xlane.xlu1 %8652 }
0x2aeb   : > { %v17584_v0 = vpop.xlane.xlu0 %8655 }
0x2aec   : > { %v17586_v59 = vpop.xlane.xlu1 %8658 }
0x2aef   : > { %v17591_v34 = vpop.xlane.xlu0 %8661 }
0x2af0   : > { %v17589_v5 = vpop.xlane.xlu1 %5750 }
0x2af1   : > { %18353 = vst [vmem:[#allocation27_spill] sm:$0xff] %v17589_v5 }
0x2af3   : > { %v17593_v54 = vpop.xlane.xlu0 %11202 }
0x2af4   : > { %v5600_v52 = vpop.permute.xlu1 %5599  ;;  %18354 = vst [vmem:[#allocation29_spill] sm:$0xff] %v17593_v54 }
0x2af5   : > { %v5637_v25 = vmul.f32 %v5600_v52, %v3226_v6 }
0x2af7   : > { %v5645_v49 = vsel %vm455_vm13, %v5637_v25, 0.0  ;;  %v11794_v25 = vld [vmem:[%s18247_s3 + $0x2c0] ss:$0 sm:$0xff] }
0x2af8   : > { %v5610_v20 = vpop.permute.xlu1 %5609 }
0x2af9   : > { %v5639_v35 = vmul.f32 %v5610_v20, %v3228_v23 }
0x2afb   : > { %v5605_v40 = vpop.permute.xlu0 %5604  ;;  %v5648_v52 = vsel %vm455_vm13, %v5639_v35, 0.0 }
0x2afc   : > { %v5638_v50 = vmul.f32 %v5605_v40, %v3227_v9  ;;  %v5615_v43 = vpop.permute.xlu1 %5614 }
0x2afd   : > { %v5640_v56 = vmul.f32 %v5615_v43, %v3229_v61 }
0x2afe   : > { %v5646_v24 = vsel %vm455_vm13, %v5638_v50, 0.0  ;;  %v8695_v50 = vld [vmem:[%s18247_s3 + $0x2b8] sm:$0x3] }
0x2aff   : > { %v5647_v53 = vadd.f32 %v5646_v24, %v5645_v49  ;;  %v5650_v62 = vsel %vm455_vm13, %v5640_v56, 0.0  ;;  %v8862_v24 = vrot.slane %v8695_v50, %v15394_v47  ;;  %v8874_v42 = vrot.slane %v8695_v50, %v15397_v48 }
0x2b00   : > { %v5620_v41 = vpop.permute.xlu1 %5619 }
0x2b01   : > { %v5649_v6 = vadd.f32 %v5648_v52, %v5647_v53  ;;  %v5641_v33 = vmul.f32 %v5620_v41, %v3230_v63  ;;  %v8864_v49 = vmul.f32 %v8862_v24, %v17570_v10  ;;  %v8863_v43 = vmul.f32 %v8862_v24, %v17572_v27 }
0x2b02   : > { %v8876_v63 = vmul.f32 %v8874_v42, %v16833_v31  ;;  %v8875_v56 = vmul.f32 %v8874_v42, %v16835_v46  ;;  %v8866_v35 = vmul.f32 %v8862_v24, %v17577_v26  ;;  %v8865_v40 = vmul.f32 %v8862_v24, %v17574_v29 }
0x2b03   : > { %v5651_v20 = vadd.f32 %v5650_v62, %v5649_v6  ;;  %v5652_v23 = vsel %vm455_vm13, %v5641_v33, 0.0  ;;  %v8878_v60 = vmul.f32 %v8874_v42, %v16837_v38  ;;  %v8877_v41 = vmul.f32 %v8874_v42, %v16839_v44 }
0x2b04   : > { %v8884_v61 = vadd.f32 %v8876_v63, %v8864_v49  ;;  %v8883_v9 = vadd.f32 %v8875_v56, %v8863_v43  ;;  %v8868_v62 = vmul.f32 %v8862_v24, %v17584_v0  ;;  %v8867_v49 = vmul.f32 %v8862_v24, %v17579_v11 }
0x2b05   : > { %v17605_v12 = vadd.f32 %v5652_v23, %v5651_v20  ;;  %v8886_v33 = vadd.f32 %v8878_v60, %v8866_v35  ;;  %v8885_v50 = vadd.f32 %v8877_v41, %v8865_v40  ;;  %v8879_v35 = vmul.f32 %v8874_v42, %v16846_v2 }
0x2b06   : > { %v8870_v40 = vmul.f32 %v8862_v24, %v17591_v34 }
0x2b07   : > { %18360 = vst [vmem:[#allocation26_spill] sm:$0xff] %v17605_v12  ;;  %v8882_v12 = vmul.f32 %v8874_v42, %v16870_v13 }
0x2b31   : > { %v13378_v57 = vpop.f32.mrb[140].mxu1 }
0x2b32   : > { %v8963_v1 = vadd.f32 %v13378_v57, %v8884_v61  ;;  %v8957_v53 = vpop.f32.mrb[141].mxu1  ;;  %v8880_v61 = vmul.f32 %v8874_v42, %v16852_v36 }
0x2b33   : > { %v8958_v52 = vadd.f32 %v8957_v53, %v8883_v9 }
0x2b34   : > { %v9001_v6 = vadd.f32 %v11794_v25, %v8963_v1  ;;  %v8888_v60 = vadd.f32 %v8880_v61, %v8868_v62  ;;  %v8881_v61 = vmul.f32 %v8874_v42, %v16856_v32 }
0x2b35   : > { %v9000_v20 = vadd.f32 %v11794_v25, %v8958_v52  ;;  %v13381_v23 = vpop.f32.mrb[142].mxu1 }
0x2b36   : > { %v17626_v43 = vadd.f32 %v9001_v6, %v17416_v58  ;;  %v8973_v63 = vadd.f32 %v13381_v23, %v8886_v33  ;;  %v8967_v56 = vpop.f32.mrb[143].mxu1  ;;  %v8887_v33 = vadd.f32 %v8879_v35, %v8867_v49  ;;  %v8869_v23 = vmul.f32 %v8862_v24, %v17586_v59 }
0x2b37   : > { %v17630_v57 = vadd.f32 %v9000_v20, %v17416_v58  ;;  %v8968_v9 = vadd.f32 %v8967_v56, %v8885_v50  ;;  %v8890_v49 = vadd.f32 %v8882_v12, %v8870_v40 }
0x2b38   : > { %v11796_v1 = vmul.f32 -1.442695, %v17626_v43  ;;  %v9003_v53 = vadd.f32 %v11794_v25, %v8973_v63  ;;  %v8889_v5 = vadd.f32 %v8881_v61, %v8869_v23 }
0x2b39   : > { %v11795_v52 = vmul.f32 -1.442695, %v17630_v57  ;;  %v9002_v41 = vadd.f32 %v11794_v25, %v8968_v9  ;;  %v13384_v6 = vpop.f32.mrb[144].mxu1 }
0x2b3a   : > { %14742 = vpow2.f32 %v11796_v1  ;;  %v17638_v20 = vadd.f32 %v9003_v53, %v17416_v58  ;;  %v8983_v50 = vadd.f32 %v13384_v6, %v8888_v60  ;;  %v8977_v56 = vpop.f32.mrb[145].mxu1 }
0x2b3b   : > { %14744 = vpow2.f32 %v11795_v52  ;;  %v9010_v62 = vadd.f32 %v9002_v41, %v17416_v58  ;;  %v8978_v63 = vadd.f32 %v8977_v56, %v8887_v33 }
0x2b3c   : > { %v11798_v9 = vmul.f32 -1.442695, %v17638_v20  ;;  %v9005_v54 = vadd.f32 %v11794_v25, %v8983_v50 }
0x2b3d   : > { %v11797_v35 = vmul.f32 -1.442695, %v9010_v62  ;;  %v9004_v24 = vadd.f32 %v11794_v25, %v8978_v63  ;;  %v13387_v1 = vpop.f32.mrb[146].mxu1 }
0x2b3e   : > { %14746 = vpow2.f32 %v11798_v9  ;;  %v9013_v53 = vadd.f32 %v9005_v54, %v17416_v58  ;;  %v8993_v60 = vadd.f32 %v13387_v1, %v8890_v49  ;;  %v8987_v6 = vpop.f32.mrb[147].mxu1 }
0x2b3f   : > { %14748 = vpow2.f32 %v11797_v35  ;;  %v9012_v52 = vadd.f32 %v9004_v24, %v17416_v58  ;;  %v8988_v41 = vadd.f32 %v8987_v6, %v8889_v5 }
0x2b40   : > { %v11800_v33 = vmul.f32 -1.442695, %v9013_v53  ;;  %v9007_v56 = vadd.f32 %v11794_v25, %v8993_v60 }
0x2b41   : > { %v11799_v42 = vmul.f32 -1.442695, %v9012_v52  ;;  %v9006_v32 = vadd.f32 %v11794_v25, %v8988_v41 }
0x2b42   : > { %14750 = vpow2.f32 %v11800_v33  ;;  %v9015_v12 = vadd.f32 %v9007_v56, %v17416_v58 }
0x2b43   : > { %14752 = vpow2.f32 %v11799_v42  ;;  %v9014_v40 = vadd.f32 %v9006_v32, %v17416_v58 }
0x2b44   : > { %v14743_v23 = vpop.eup %14742  ;;  %v11802_v50 = vmul.f32 -1.442695, %v9015_v12 }
0x2b45   : > { %v14745_v63 = vpop.eup %14744  ;;  %v9041_v54 = vadd.f32 1.0, %v14743_v23  ;;  %v11801_v61 = vmul.f32 -1.442695, %v9014_v40 }
0x2b46   : > { %v9040_v9 = vadd.f32 1.0, %v14745_v63  ;;  %14754 = vpow2.f32 %v11802_v50 }
0x2b47   : > { %14756 = vrcp.f32 %v9041_v54 }
0x2b48   : > { %v14747_v49 = vpop.eup %14746  ;;  %14758 = vrcp.f32 %v9040_v9 }
0x2b49   : > { %v14749_v5 = vpop.eup %14748  ;;  %v9043_v35 = vadd.f32 1.0, %v14747_v49  ;;  %14760 = vpow2.f32 %v11801_v61 }
0x2b4a   : > { %v9042_v25 = vadd.f32 1.0, %v14749_v5 }
0x2b4b   : > { %14762 = vrcp.f32 %v9043_v35 }
0x2b4c   : > { %v14751_v24 = vpop.eup %14750  ;;  %14764 = vrcp.f32 %v9042_v25 }
0x2b4d   : > { %v14753_v1 = vpop.eup %14752  ;;  %v9045_v60 = vadd.f32 1.0, %v14751_v24 }
0x2b4e   : > { %v9044_v32 = vadd.f32 1.0, %v14753_v1 }
0x2b4f   : > { %14766 = vrcp.f32 %v9045_v60  ;;  %v11803_v60 = vld [vmem:[%s18247_s3 + $0x2e8] ss:$0 sm:$0xff] }
0x2b50   : > { %v14755_v58 = vpop.eup %14754  ;;  %14768 = vrcp.f32 %v9044_v32 }
0x2b51   : > { %v14757_v6 = vpop.eup %14756  ;;  %v9047_v41 = vadd.f32 1.0, %v14755_v58 }
0x2b52   : > { %v14759_v33 = vpop.eup %14758  ;;  %v9065_v23 = vmul.f32 %v14757_v6, %v17626_v43 }
0x2b53   : > { %v14761_v56 = vpop.eup %14760  ;;  %v9064_v42 = vmul.f32 %v14759_v33, %v17630_v57  ;;  %14770 = vrcp.f32 %v9047_v41 }
0x2b54   : > { %v9046_v50 = vadd.f32 1.0, %v14761_v56 }
0x2b55   : > { %v14763_v63 = vpop.eup %14762  ;;  %13396 = vmatprep.mubr.msk.f32.mxu0 %vm619_vm14, %v9064_v42 }
0x2b56   : > { %v14765_v54 = vpop.eup %14764  ;;  %14772 = vrcp.f32 %v9046_v50  ;;  %13397 = vmatmul.mubr.msk.f32.vlgmr.msra.gmra.mrb[142].mxu0 %vm619_vm14, %v9065_v23  ;;  %v9067_v9 = vmul.f32 %v14763_v63, %v17638_v20  ;;  %v8706_v20 = vld [vmem:[%s18247_s3 + $0x310] sm:$0xff] }
0x2b57   : > { %v9066_v61 = vmul.f32 %v14765_v54, %v9010_v62  ;;  %v8707_v62 = vld [vmem:[%s18247_s3 + $0x318] sm:$0xff] }
0x2b59   : > { %v14767_v49 = vpop.eup %14766  ;;  %13399 = vmatprep.mubr.msk.f32.mxu0 %vm619_vm14, %v9066_v61 }
0x2b5a   : > { %v14769_v5 = vpop.eup %14768  ;;  %13400 = vmatmul.mubr.msk.f32.gmra.mrb[144].mxu0 %vm619_vm14, %v9067_v9  ;;  %v9069_v43 = vmul.f32 %v14767_v49, %v9013_v53  ;;  %v13956_v53 = vpack.c.bf16 %v8707_v62, %v8706_v20 }
0x2b5b   : > { %v9068_v57 = vmul.f32 %v14769_v5, %v9012_v52  ;;  %v8708_v52 = vld [vmem:[%s18247_s3 + $0x320] sm:$0xff] }
0x2b5c   : > { %13957 = vmatpush3.bf16.msra.mxu1 %v13956_v53 }
0x2b5d   : > { %13402 = vmatprep.mubr.msk.f32.mxu0 %vm619_vm14, %v9068_v57  ;;  %v14771_v35 = vpop.eup %14770  ;;  %13958 = vmatprep.subr.bf16.mxu1 %v18299_v8 }
0x2b5e   : > { %13403 = vmatmul.mubr.msk.f32.gmra.mrb[146].mxu0 %vm619_vm14, %v9069_v43  ;;  %v9071_v1 = vmul.f32 %v14771_v35, %v9015_v12  ;;  %v8709_v12 = vld [vmem:[%s18247_s3 + $0x328] sm:$0xff] }
0x2b60   : > { %v14773_v25 = vpop.eup %14772 }
0x2b61   : > { %v9070_v24 = vmul.f32 %v14773_v25, %v9014_v40  ;;  %v13959_v40 = vpack.c.bf16 %v8709_v12, %v8708_v52 }
0x2b63   : > { %13405 = vmatprep.mubr.msk.f32.mxu0 %vm619_vm14, %v9070_v24  ;;  %13960 = vmatpush3.bf16.msra.mxu1 %v13959_v40 }
0x2b64   : > { %13406 = vmatmul.mubr.msk.f32.gmra.mrb[148].mxu0 %vm619_vm14, %v9071_v1  ;;  %13961 = vmatprep.subr.bf16.mxu1 %v18299_v8 }
0x2b65   : > { %13438 = vmatprep.mubr.msk.f32.mxu0 %vm15072_vm11, %v18298_v30 }
0x2c29   : > { %v13398_v32 = vpop.f32.mrb[142].mxu0 }
0x2c2a   : > { %v9172_v58 = vadd.f32 %v13398_v32, %v11803_v60  ;;  %v9166_v6 = vpop.f32.mrb[143].mxu0 }
0x2c2b   : > { %v9167_v41 = vadd.f32 %v11803_v60, %v9166_v6 }
0x2c2c   : > { %v11813_v33 = vmul.f32 -1.442695, %v9172_v58 }
0x2c2d   : > { %v11812_v56 = vmul.f32 -1.442695, %v9167_v41  ;;  %v13401_v42 = vpop.f32.mrb[144].mxu0 }
0x2c2e   : > { %14774 = vpow2.f32 %v11813_v33  ;;  %v9182_v23 = vadd.f32 %v13401_v42, %v11803_v60  ;;  %v9176_v50 = vpop.f32.mrb[145].mxu0 }
0x2c2f   : > { %14776 = vpow2.f32 %v11812_v56  ;;  %v9177_v63 = vadd.f32 %v11803_v60, %v9176_v50 }
0x2c30   : > { %v11815_v54 = vmul.f32 -1.442695, %v9182_v23 }
0x2c31   : > { %v11814_v61 = vmul.f32 -1.442695, %v9177_v63  ;;  %v13404_v9 = vpop.f32.mrb[146].mxu0 }
0x2c32   : > { %14778 = vpow2.f32 %v11815_v54  ;;  %v9192_v49 = vadd.f32 %v13404_v9, %v11803_v60  ;;  %v9186_v5 = vpop.f32.mrb[147].mxu0 }
0x2c33   : > { %14780 = vpow2.f32 %v11814_v61  ;;  %v9187_v57 = vadd.f32 %v11803_v60, %v9186_v5 }
0x2c34   : > { %v11817_v43 = vmul.f32 -1.442695, %v9192_v49 }
0x2c35   : > { %v11816_v35 = vmul.f32 -1.442695, %v9187_v57 }
0x2c36   : > { %14782 = vpow2.f32 %v11817_v43 }
0x2c37   : > { %14784 = vpow2.f32 %v11816_v35  ;;  %v13407_v25 = vpop.f32.mrb[148].mxu0 }
0x2c38   : > { %v14775_v24 = vpop.eup %14774  ;;  %v9202_v1 = vadd.f32 %v13407_v25, %v11803_v60  ;;  %v9196_v20 = vpop.f32.mrb[149].mxu0 }
0x2c39   : > { %v14777_v62 = vpop.eup %14776  ;;  %v9230_v53 = vadd.f32 1.0, %v14775_v24  ;;  %v9197_v52 = vadd.f32 %v11803_v60, %v9196_v20 }
0x2c3a   : > { %v9229_v12 = vadd.f32 1.0, %v14777_v62  ;;  %v11819_v40 = vmul.f32 -1.442695, %v9202_v1 }
0x2c3b   : > { %14786 = vrcp.f32 %v9230_v53  ;;  %v11818_v32 = vmul.f32 -1.442695, %v9197_v52 }
0x2c3c   : > { %v14779_v6 = vpop.eup %14778  ;;  %14788 = vrcp.f32 %v9229_v12 }
0x2c3d   : > { %v14781_v33 = vpop.eup %14780  ;;  %v9232_v56 = vadd.f32 1.0, %v14779_v6  ;;  %14790 = vpow2.f32 %v11819_v40 }
0x2c3e   : > { %v9231_v42 = vadd.f32 1.0, %v14781_v33  ;;  %14792 = vpow2.f32 %v11818_v32 }
0x2c3f   : > { %14794 = vrcp.f32 %v9232_v56 }
0x2c40   : > { %v14783_v50 = vpop.eup %14782  ;;  %14796 = vrcp.f32 %v9231_v42 }
0x2c41   : > { %v14785_v54 = vpop.eup %14784  ;;  %v9234_v61 = vadd.f32 1.0, %v14783_v50 }
0x2c42   : > { %v9233_v9 = vadd.f32 1.0, %v14785_v54 }
0x2c43   : > { %14798 = vrcp.f32 %v9234_v61 }
0x2c44   : > { %14800 = vrcp.f32 %v9233_v9 }
0x2c45   : > { %v14787_v60 = vpop.eup %14786 }
0x2c46   : > { %v14789_v5 = vpop.eup %14788  ;;  %v9254_v43 = vmul.f32 %v14787_v60, %v9172_v58 }
0x2c47   : > { %v14791_v35 = vpop.eup %14790  ;;  %v9253_v25 = vmul.f32 %v14789_v5, %v9167_v41 }
0x2c48   : > { %v14793_v24 = vpop.eup %14792  ;;  %v9262_v20 = vmul.f32 %v9254_v43, %v16962_v28  ;;  %v9236_v62 = vadd.f32 1.0, %v14791_v35 }
0x2c49   : > { %v14795_v53 = vpop.eup %14794  ;;  %v9261_v12 = vmul.f32 %v9253_v25, %v16952_v55  ;;  %v9235_v40 = vadd.f32 1.0, %v14793_v24 }
0x2c4a   : > { %v14797_v32 = vpop.eup %14796  ;;  %v9270_v6 = vsel %vm619_vm14, %v9262_v20, 0.0  ;;  %v9256_v33 = vmul.f32 %v14795_v53, %v9182_v23  ;;  %14802 = vrcp.f32 %v9236_v62 }
0x2c4b   : > { %v9269_v56 = vsel %vm619_vm14, %v9261_v12, 0.0  ;;  %v9255_v42 = vmul.f32 %v14797_v32, %v9177_v63  ;;  %14804 = vrcp.f32 %v9235_v40 }
0x2c4c   : > { %v9271_v58 = vadd.f32 %v9270_v6, %v9269_v56  ;;  %v9264_v41 = vmul.f32 %v9256_v33, %v16964_v37  ;;  %v18361_v6 = vld [vmem:[#allocation35_spill] sm:$0xff] }
0x2c4d   : > { %v14799_v50 = vpop.eup %14798  ;;  %v9263_v54 = vmul.f32 %v9255_v42, %v16972_v4  ;;  %v8702_v56 = vld [vmem:[%s18247_s3 + $0x2f0] sm:$0xff]  ;;  %v8703_v42 = vld [vmem:[%s18247_s3 + $0x2f8] sm:$0xff] }
0x2c4e   : > { %v14801_v61 = vpop.eup %14800  ;;  %v9258_v9 = vmul.f32 %v14799_v50, %v9192_v49  ;;  %v9274_v35 = vsel %vm619_vm14, %v9264_v41, 0.0 }
0x2c4f   : > { %v9272_v60 = vsel %vm619_vm14, %v9263_v54, 0.0  ;;  %v9257_v5 = vmul.f32 %v14801_v61, %v9187_v57  ;;  %v8704_v54 = vld [vmem:[%s18247_s3 + $0x300] sm:$0xff]  ;;  %v8705_v61 = vld [vmem:[%s18247_s3 + $0x308] sm:$0xff] }
0x2c50   : > { %v9273_v43 = vadd.f32 %v9272_v60, %v9271_v58  ;;  %v9266_v23 = vmul.f32 %v9258_v9, %v16979_v7  ;;  %v13965_v9 = vpack.c.bf16 %v8705_v61, %v8704_v54  ;;  %v8711_v60 = vld [vmem:[%s18247_s3 + $0x338] sm:$0xff]  ;;  %v9520_v54 = vld [vmem:[%s18247_s3 + $0x370] sm:$0xff] }
0x2c51   : > { %v9265_v25 = vmul.f32 %v9257_v5, %v16968_v39  ;;  %v8712_v5 = vld [vmem:[%s18247_s3 + $0x340] sm:$0xff]  ;;  %v9521_v61 = vld [vmem:[%s18247_s3 + $0x378] sm:$0xff] }
0x2c52   : > { %v9275_v63 = vadd.f32 %v9274_v35, %v9273_v43  ;;  %v9278_v12 = vsel %vm619_vm14, %v9266_v23, 0.0  ;;  %v13968_v43 = vpack.c.bf16 %v8712_v5, %v8711_v60  ;;  %v8713_v35 = vld [vmem:[%s18247_s3 + $0x348] sm:$0xff]  ;;  %v8714_v23 = vld [vmem:[%s18247_s3 + $0x350] sm:$0xff]  ;;  %v13977_v60 = vpack.c.bf16 %v9521_v61, %v9520_v54  ;;  %v9525_v5 = vld [vmem:[%s18247_s3 + $0x398] sm:$0xff] }
0x2c53   : > { %v9276_v24 = vsel %vm619_vm14, %v9265_v25, 0.0  ;;  %v13971_v25 = vpack.c.bf16 %v8714_v23, %v8713_v35  ;;  %v11824_v35 = vld [vmem:[%s18247_s3 + $0x358] ss:$0 sm:$0xff] }
0x2c54   : > { %v14803_v20 = vpop.eup %14802  ;;  %v9277_v62 = vadd.f32 %v9276_v24, %v9275_v63  ;;  %13969 = vmatpush3.bf16.msra.mxu0 %v13968_v43 }
0x2c55   : > { %v14805_v53 = vpop.eup %14804  ;;  %v9260_v40 = vmul.f32 %v14803_v20, %v9202_v1  ;;  %v13962_v1 = vpack.c.bf16 %v8703_v42, %v8702_v56  ;;  %13970 = vmatprep.subr.bf16.mxu0 %v18299_v8  ;;  %v11822_v20 = vld [vmem:[%s18247_s3 + $0x330] ss:$0 sm:$0xff]  ;;  %v9518_v42 = vld [vmem:[%s18247_s3 + $0x360] sm:$0xff] }
0x2c56   : > { %v9259_v49 = vmul.f32 %v14805_v53, %v9197_v52  ;;  %v9279_v32 = vadd.f32 %v9278_v12, %v9277_v62 }
0x2c57   : > { %v9268_v57 = vmul.f32 %v9260_v40, %v16988_v51 }
0x2c58   : > { %v9267_v33 = vmul.f32 %v9259_v49, %v18361_v6  ;;  %13972 = vmatpush3.bf16.msra.mxu0 %v13971_v25 }
0x2c59   : > { %v9282_v41 = vsel %vm619_vm14, %v9268_v57, 0.0  ;;  %13979 = vmatprep.subr.bf16.mxu0 %v18299_v8 }
0x2c5a   : > { %v9280_v58 = vsel %vm619_vm14, %v9267_v33, 0.0 }
0x2c5b   : > { %v9281_v50 = vadd.f32 %v9280_v58, %v9279_v32  ;;  %v9519_v58 = vld [vmem:[%s18247_s3 + $0x368] sm:$0xff] }
0x2c5d   : > { %v9283_v52 = vadd.f32 %v9282_v41, %v9281_v50  ;;  %v9522_v50 = vld [vmem:[%s18247_s3 + $0x380] sm:$0xff]  ;;  %v13974_v41 = vpack.c.bf16 %v9519_v58, %v9518_v42 }
0x2c5e   : > { %v9526_v42 = vld [vmem:[%s18247_s3 + $0x3a0] sm:$0x3] }
0x2c5f   : > { %13417 = vmatmul.mubr.msk.f32.vlgmr.msra.gmra.mrb[148].mxu1 %vm619_vm14, %v9283_v52  ;;  %v9693_v58 = vrot.slane %v9526_v42, %v15394_v47 }
0x2c60   : > { %13963 = vmatpush3.bf16.msra.mxu1 %v13962_v1  ;;  %13427 = vmatprep.mubr.msk.f32.mxu1 %vm15072_vm11, %v18298_v30  ;;  %v9523_v1 = vld [vmem:[%s18247_s3 + $0x388] sm:$0xff] }
0x2c61   : > { %13964 = vmatprep.subr.bf16.mxu1 %v18299_v8  ;;  %v13980_v52 = vpack.c.bf16 %v9523_v1, %v9522_v50  ;;  %v9705_v50 = vrot.slane %v9526_v42, %v15397_v48  ;;  %v9694_v1 = vmul.f32 %v9693_v58, %v17572_v27 }
0x2c63   : > { %v9706_v54 = vmul.f32 %v9705_v50, %v16835_v46 }
0x2c64   : > { %13966 = vmatpush3.bf16.msra.mxu1 %v13965_v9  ;;  %v9524_v9 = vld [vmem:[%s18247_s3 + $0x390] sm:$0xff] }
0x2c65   : > { %13973 = vmatprep.subr.bf16.mxu1 %v18299_v8  ;;  %v13983_v43 = vpack.c.bf16 %v9525_v5, %v9524_v9  ;;  %v9697_v9 = vmul.f32 %v9693_v58, %v17577_v26 }
0x2c67   : > { %13428 = vmatmul.mubr.msk.f32.vlgmr.msra.gmra.mrb[150].mxu1 %vm619_vm14, %v17402_v3 }
0x2c68   : > { %13449 = vmatprep.mubr.msk.f32.mxu1 %vm15072_vm11, %v18298_v30  ;;  %13975 = vmatpush3.bf16.msra.mxu1 %v13974_v41  ;;  %v9695_v41 = vmul.f32 %v9693_v58, %v17570_v10 }
0x2c69   : > { %13976 = vmatprep.subr.bf16.mxu1 %v18299_v8 }
0x2c6c   : > { %13978 = vmatpush3.bf16.msra.mxu1 %v13977_v60  ;;  %v11836_v60 = vld [vmem:[%s18247_s3 + $0x3a8] ss:$0 sm:$0xff] }
0x2d32   : > { %v9353_v63 = vpop.f32.mrb[148].mxu1 }
0x2d33   : > { %v13418_v24 = vpop.f32.mrb[149].mxu1 }
0x2d3a   : > { %v9423_v62 = vpop.f32.mrb[150].mxu1 }
0x2d3b   : > { %v9424_v53 = vadd.f32 %v9423_v62, %v9353_v63  ;;  %v13429_v12 = vpop.f32.mrb[151].mxu1 }
0x2d3d   : > { %v9431_v40 = vadd.f32 %v11822_v20, %v9424_v53 }
0x2d3f   : > { %v11823_v49 = vmul.f32 -1.442695, %v9431_v40 }
0x2d41   : > { %14806 = vpow2.f32 %v11823_v49  ;;  %v9529_v49 = vld [vmem:[%s18247_s3 + $0x3b8] sm:$0xff] }
0x2d4b   : > { %v14807_v32 = vpop.eup %14806 }
0x2d4c   : > { %v9435_v57 = vadd.f32 1.0, %v14807_v32 }
0x2d4e   : > { %14808 = vrcp.f32 %v9435_v57  ;;  %v9530_v57 = vld [vmem:[%s18247_s3 + $0x3c0] sm:$0xff] }
0x2d58   : > { %v14809_v33 = vpop.eup %14808 }
0x2d59   : > { %v9438_v56 = vmul.f32 %v14809_v33, %v9431_v40  ;;  %v9531_v33 = vld [vmem:[%s18247_s3 + $0x3c8] sm:$0xff] }
0x2d5b   : > { %13439 = vmatmul.mubr.msk.f32.vlgmr.msra.gmra.mrb[150].mxu0 %vm619_vm14, %v9438_v56  ;;  %v13989_v56 = vpack.c.bf16 %v9531_v33, %v9530_v57  ;;  %v9698_v33 = vmul.f32 %v9693_v58, %v17579_v11 }
0x2d5c   : > { %13460 = vmatprep.mubr.msk.f32.mxu0 %vm15072_vm11, %v18298_v30  ;;  %13981 = vmatpush3.bf16.msra.mxu0 %v13980_v52  ;;  %v9707_v52 = vmul.f32 %v9705_v50, %v16833_v31 }
0x2d5d   : > { %13982 = vmatprep.subr.bf16.mxu0 %v18299_v8 }
0x2d5e   : > { %v9715_v61 = vadd.f32 %v9707_v52, %v9695_v41 }
0x2d60   : > { %13984 = vmatpush3.bf16.msra.mxu0 %v13983_v43  ;;  %v9714_v43 = vadd.f32 %v9706_v54, %v9694_v1  ;;  %v9711_v1 = vmul.f32 %v9705_v50, %v16852_v36 }
0x2e2e   : > { %v9512_v23 = vpop.f32.mrb[150].mxu0 }
0x2e2f   : > { %v9513_v25 = vadd.f32 %v11824_v35, %v9512_v23  ;;  %v13440_v63 = vpop.f32.mrb[151].mxu0  ;;  %v9696_v35 = vmul.f32 %v9693_v58, %v17574_v29 }
0x2e30   : > { %v9709_v63 = vmul.f32 %v9705_v50, %v16837_v38 }
0x2e31   : > { %v9516_v24 = vadd.f32 %v9513_v25, %v17402_v3  ;;  %v9528_v3 = vld [vmem:[%s18247_s3 + $0x3b0] sm:$0xff] }
0x2e32   : > { %v13985_v32 = vpack.c.bf16 %v9529_v49, %v9528_v3  ;;  %v9699_v3 = vmul.f32 %v9693_v58, %v17584_v0 }
0x2e33   : > { %v17766_v20 = vmul.f32 %v9516_v24, %v17050_v45 }
0x2e34   : > { %13986 = vmatprep.subr.bf16.mxu0 %v13985_v32 }
0x2e35   : > { %13450 = vmatmul.mubr.msk.f32.vlgmr.msra.gmra.mrb[152].mxu1 %vm619_vm14, %v17766_v20  ;;  %13461 = vmatmul.mubr.msk.f32.vlgmr.msra.gmra.mrb[152].mxu0 %vm619_vm14, %v17766_v20 }
0x2e36   : > { %13465 = vmatprep.mubr.msk.f32.mxu1 %vm309_vm1, %v15185_v14  ;;  %13988 = vmatpush3.bf16.msra.mxu0 %v13985_v32 }
0x2e37   : > { %13990 = vmatprep.subr.bf16.mxu0 %v13989_v56 }
0x2e3a   : > { %13992 = vmatpush3.bf16.msra.mxu0 %v13989_v56 }
0x2e3b   : > { %13999 = vmatprep.subr.bf16.mxu0 %v18299_v8 }
0x2f08   : > { %v17774_v62 = vpop.f32.mrb[152].mxu1  ;;  %v9686_v53 = vpop.f32.mrb[152].mxu0 }
0x2f09   : > { %v13451_v12 = vpop.f32.mrb[153].mxu1  ;;  %v13462_v40 = vpop.f32.mrb[153].mxu0  ;;  %13463 = vmatprep.subr.mxu1 %v9686_v53 }
0x2f0a   : > { %13464 = vmatpush3.msra.mxu1 %v9686_v53  ;;  %v9708_v53 = vmul.f32 %v9705_v50, %v16839_v44  ;;  %v9717_v40 = vadd.f32 %v9709_v63, %v9697_v9 }
0x2f0b   : > { %13466 = vmatmul.mubr.msk.f32.vlgmr.msra.gmra.mrb[154].mxu1 %vm309_vm1, %v15192_v15  ;;  %13993 = vmatprep.subr.bf16.mxu1 %v18299_v8 }
0x2f0c   : > { %13468 = vmatprep.mubr.msk.f32.mxu1 %vm309_vm1, %v15200_v16  ;;  %v9716_v57 = vadd.f32 %v9708_v53, %v9696_v35  ;;  %v9701_v35 = vmul.f32 %v9693_v58, %v17591_v34  ;;  %v9700_v53 = vmul.f32 %v9693_v58, %v17586_v59 }
0x2f0f   : > { %13469 = vmatmul.mubr.msk.f32.gmra.mrb[156].mxu1 %vm309_vm1, %v15207_v17 }
0x2f10   : > { %13471 = vmatprep.mubr.msk.f32.mxu1 %vm309_vm1, %v15212_v18 }
0x2f13   : > { %13472 = vmatmul.mubr.msk.f32.gmra.mrb[158].mxu1 %vm309_vm1, %v15225_v21 }
0x2f14   : > { %13474 = vmatprep.mubr.msk.f32.mxu1 %vm309_vm1, %v15217_v19 }
0x2f17   : > { %13475 = vmatmul.mubr.msk.f32.gmra.mrb[160].mxu1 %vm309_vm1, %v15230_v22 }
0x2f18   : > { %13505 = vmatprep.mubr.msk.f32.mxu1 %vm15072_vm11, %v18298_v30 }
0x2fde   : > { %v13467_v5 = vpop.f32.mrb[154].mxu1 }
0x2fdf   : > { %v9794_v23 = vadd.f32 %v13467_v5, %v9715_v61  ;;  %v9788_v25 = vpop.f32.mrb[155].mxu1  ;;  %v9710_v61 = vmul.f32 %v9705_v50, %v16846_v2 }
0x2fe0   : > { %v9789_v24 = vadd.f32 %v9788_v25, %v9714_v43  ;;  %v9719_v43 = vadd.f32 %v9711_v1, %v9699_v3 }
0x2fe1   : > { %v9832_v12 = vadd.f32 %v11836_v60, %v9794_v23 }
0x2fe2   : > { %v9831_v49 = vadd.f32 %v11836_v60, %v9789_v24  ;;  %v13470_v32 = vpop.f32.mrb[156].mxu1  ;;  %v9718_v24 = vadd.f32 %v9710_v61, %v9698_v33 }
0x2fe3   : > { %v17825_v56 = vadd.f32 %v9832_v12, %v17774_v62  ;;  %v9804_v42 = vadd.f32 %v13470_v32, %v9717_v40  ;;  %v9798_v41 = vpop.f32.mrb[157].mxu1  ;;  %v9713_v32 = vmul.f32 %v9705_v50, %v16870_v13 }
0x2fe4   : > { %v17829_v52 = vadd.f32 %v9831_v49, %v17774_v62  ;;  %v9799_v54 = vadd.f32 %v9798_v41, %v9716_v57 }
0x2fe5   : > { %v11838_v9 = vmul.f32 -1.442695, %v17825_v56  ;;  %v9834_v5 = vadd.f32 %v11836_v60, %v9804_v42  ;;  %v18362_v42 = vld [vmem:[#allocation34_spill] sm:$0xff] }
0x2fe6   : > { %v11837_v23 = vmul.f32 -1.442695, %v17829_v52  ;;  %v9833_v25 = vadd.f32 %v11836_v60, %v9799_v54  ;;  %v13473_v63 = vpop.f32.mrb[158].mxu1  ;;  %v9712_v41 = vmul.f32 %v9705_v50, %v18362_v42  ;;  %v9721_v54 = vadd.f32 %v9713_v32, %v9701_v35 }
0x2fe7   : > { %14810 = vpow2.f32 %v11838_v9  ;;  %v17837_v12 = vadd.f32 %v9834_v5, %v17774_v62  ;;  %v9814_v40 = vadd.f32 %v13473_v63, %v9719_v43  ;;  %v9808_v49 = vpop.f32.mrb[159].mxu1 }
0x2fe8   : > { %14812 = vpow2.f32 %v11837_v23  ;;  %v17841_v3 = vadd.f32 %v9833_v25, %v17774_v62  ;;  %v9809_v57 = vadd.f32 %v9808_v49, %v9718_v24  ;;  %v9720_v5 = vadd.f32 %v9712_v41, %v9700_v53 }
0x2fe9   : > { %v11840_v1 = vmul.f32 -1.442695, %v17837_v12  ;;  %v9836_v33 = vadd.f32 %v11836_v60, %v9814_v40 }
0x2fea   : > { %v11839_v58 = vmul.f32 -1.442695, %v17841_v3  ;;  %v9835_v61 = vadd.f32 %v11836_v60, %v9809_v57  ;;  %v13476_v9 = vpop.f32.mrb[160].mxu1 }
0x2feb   : > { %14814 = vpow2.f32 %v11840_v1  ;;  %v17847_v43 = vadd.f32 %v9836_v33, %v17774_v62  ;;  %v9824_v23 = vadd.f32 %v13476_v9, %v9721_v54  ;;  %v9818_v63 = vpop.f32.mrb[161].mxu1 }
0x2fec   : > { %14816 = vpow2.f32 %v11839_v58  ;;  %v9843_v25 = vadd.f32 %v9835_v61, %v17774_v62  ;;  %v9819_v24 = vadd.f32 %v9818_v63, %v9720_v5 }
0x2fed   : > { %v11842_v50 = vmul.f32 -1.442695, %v17847_v43  ;;  %v9838_v49 = vadd.f32 %v11836_v60, %v9824_v23 }
0x2fee   : > { %v11841_v40 = vmul.f32 -1.442695, %v9843_v25  ;;  %v9837_v35 = vadd.f32 %v11836_v60, %v9819_v24 }
0x2fef   : > { %14818 = vpow2.f32 %v11842_v50  ;;  %v9846_v32 = vadd.f32 %v9838_v49, %v17774_v62  ;;  %v9533_v49 = vld [vmem:[%s18247_s3 + $0x3d8] sm:$0xff] }
0x2ff0   : > { %14820 = vpow2.f32 %v11841_v40  ;;  %v9845_v53 = vadd.f32 %v9837_v35, %v17774_v62  ;;  %v9534_v40 = vld [vmem:[%s18247_s3 + $0x3e0] sm:$0xff] }
0x2ff1   : > { %v14811_v57 = vpop.eup %14810  ;;  %v11844_v41 = vmul.f32 -1.442695, %v9846_v32 }
0x2ff2   : > { %v14813_v1 = vpop.eup %14812  ;;  %v9872_v33 = vadd.f32 1.0, %v14811_v57  ;;  %v11843_v54 = vmul.f32 -1.442695, %v9845_v53 }
0x2ff3   : > { %v9871_v58 = vadd.f32 1.0, %v14813_v1  ;;  %14822 = vpow2.f32 %v11844_v41 }
0x2ff4   : > { %14824 = vrcp.f32 %v9872_v33 }
0x2ff5   : > { %v14815_v61 = vpop.eup %14814  ;;  %14826 = vrcp.f32 %v9871_v58 }
0x2ff6   : > { %v14817_v9 = vpop.eup %14816  ;;  %v9874_v5 = vadd.f32 1.0, %v14815_v61  ;;  %14828 = vpow2.f32 %v11843_v54  ;;  %v14000_v54 = vpack.c.bf16 %v9534_v40, %v9533_v49 }
0x2ff7   : > { %v9873_v60 = vadd.f32 1.0, %v14817_v9  ;;  %v9535_v9 = vld [vmem:[%s18247_s3 + $0x3e8] sm:$0xff] }
0x2ff8   : > { %14830 = vrcp.f32 %v9874_v5  ;;  %v9536_v5 = vld [vmem:[%s18247_s3 + $0x3f0] sm:$0xff] }
0x2ff9   : > { %v14819_v23 = vpop.eup %14818  ;;  %14832 = vrcp.f32 %v9873_v60 }
0x2ffa   : > { %v14821_v63 = vpop.eup %14820  ;;  %v9876_v24 = vadd.f32 1.0, %v14819_v23 }
0x2ffb   : > { %v9875_v62 = vadd.f32 1.0, %v14821_v63 }
0x2ffc   : > { %14834 = vrcp.f32 %v9876_v24 }
0x2ffd   : > { %v14823_v50 = vpop.eup %14822  ;;  %14836 = vrcp.f32 %v9875_v62 }
0x2ffe   : > { %v14825_v35 = vpop.eup %14824  ;;  %v9878_v57 = vadd.f32 1.0, %v14823_v50 }
0x2fff   : > { %v14827_v41 = vpop.eup %14826  ;;  %v9896_v58 = vmul.f32 %v14825_v35, %v17825_v56  ;;  %v14003_v56 = vpack.c.bf16 %v9536_v5, %v9535_v9 }
0x3000   : > { %v14829_v1 = vpop.eup %14828  ;;  %v9895_v33 = vmul.f32 %v14827_v41, %v17829_v52  ;;  %14838 = vrcp.f32 %v9878_v57  ;;  %v9540_v57 = vld [vmem:[%s18247_s3 + $0x410] sm:$0xff] }
0x3001   : > { %v9877_v61 = vadd.f32 1.0, %v14829_v1  ;;  %v11845_v1 = vld [vmem:[%s18247_s3 + $0x3d0] ss:$0 sm:$0xff] }
0x3002   : > { %v14831_v60 = vpop.eup %14830  ;;  %13485 = vmatprep.mubr.msk.f32.mxu0 %vm619_vm14, %v9895_v33 }
0x3003   : > { %v14833_v23 = vpop.eup %14832  ;;  %14840 = vrcp.f32 %v9877_v61  ;;  %13486 = vmatmul.mubr.msk.f32.vlgmr.msra.gmra.mrb[154].mxu0 %vm619_vm14, %v9896_v58  ;;  %v9898_v63 = vmul.f32 %v14831_v60, %v17837_v12 }
0x3004   : > { %v9897_v52 = vmul.f32 %v14833_v23, %v17841_v3  ;;  %14001 = vmatpush3.bf16.msra.mxu0 %v14000_v54 }
0x3005   : > { %14002 = vmatprep.subr.bf16.mxu0 %v18299_v8 }
0x3006   : > { %v14835_v24 = vpop.eup %14834  ;;  %13488 = vmatprep.mubr.msk.f32.mxu0 %vm619_vm14, %v9897_v52 }
0x3007   : > { %v14837_v62 = vpop.eup %14836  ;;  %13489 = vmatmul.mubr.msk.f32.gmra.mrb[156].mxu0 %vm619_vm14, %v9898_v63  ;;  %v9900_v49 = vmul.f32 %v14835_v24, %v17847_v43  ;;  %v9537_v43 = vld [vmem:[%s18247_s3 + $0x3f8] sm:$0xff] }
0x3008   : > { %v9899_v50 = vmul.f32 %v14837_v62, %v9843_v25  ;;  %14004 = vmatpush3.bf16.msra.mxu0 %v14003_v56  ;;  %v9538_v25 = vld [vmem:[%s18247_s3 + $0x400] sm:$0xff] }
0x3009   : > { %14011 = vmatprep.subr.bf16.mxu0 %v18299_v8 }
0x300a   : > { %13491 = vmatprep.mubr.msk.f32.mxu0 %vm619_vm14, %v9899_v50  ;;  %v14839_v3 = vpop.eup %14838 }
0x300b   : > { %13492 = vmatmul.mubr.msk.f32.gmra.mrb[158].mxu0 %vm619_vm14, %v9900_v49  ;;  %v9902_v35 = vmul.f32 %v14839_v3, %v9846_v32  ;;  %v13994_v32 = vpack.c.bf16 %v9538_v25, %v9537_v43 }
0x300d   : > { %v14841_v12 = vpop.eup %14840  ;;  %13995 = vmatpush3.bf16.msra.mxu1 %v13994_v32 }
0x300e   : > { %v9901_v40 = vmul.f32 %v14841_v12, %v9845_v53  ;;  %13996 = vmatprep.subr.bf16.mxu1 %v18299_v8  ;;  %v9539_v53 = vld [vmem:[%s18247_s3 + $0x408] sm:$0xff] }
0x300f   : > { %v13997_v41 = vpack.c.bf16 %v9540_v57, %v9539_v53 }
0x3010   : > { %13494 = vmatprep.mubr.msk.f32.mxu0 %vm619_vm14, %v9901_v40 }
0x3011   : > { %13495 = vmatmul.mubr.msk.f32.gmra.mrb[160].mxu0 %vm619_vm14, %v9902_v35  ;;  %13998 = vmatpush3.bf16.msra.mxu1 %v13997_v41 }
0x3012   : > { %13516 = vmatprep.mubr.msk.f32.mxu0 %vm15072_vm11, %v18298_v30  ;;  %14005 = vmatprep.subr.bf16.mxu1 %v18299_v8 }
0x3015   : > { %13517 = vmatmul.mubr.msk.f32.vlgmr.msra.gmra.mrb[162].mxu0 %vm619_vm14, %v17766_v20 }
0x3016   : > { %13538 = vmatprep.mubr.msk.f32.mxu0 %vm15072_vm11, %v18298_v30 }
0x30d6   : > { %v13487_v33 = vpop.f32.mrb[154].mxu0 }
0x30d7   : > { %v10003_v54 = vadd.f32 %v13487_v33, %v11845_v1  ;;  %v9997_v58 = vpop.f32.mrb[155].mxu0 }
0x30d8   : > { %v9998_v61 = vadd.f32 %v11845_v1, %v9997_v58 }
0x30d9   : > { %v11855_v9 = vmul.f32 -1.442695, %v10003_v54 }
0x30da   : > { %v11854_v5 = vmul.f32 -1.442695, %v9998_v61  ;;  %v13490_v60 = vpop.f32.mrb[156].mxu0 }
0x30db   : > { %14842 = vpow2.f32 %v11855_v9  ;;  %v10013_v23 = vadd.f32 %v13490_v60, %v11845_v1  ;;  %v10007_v52 = vpop.f32.mrb[157].mxu0 }
0x30dc   : > { %14844 = vpow2.f32 %v11854_v5  ;;  %v10008_v56 = vadd.f32 %v11845_v1, %v10007_v52 }
0x30dd   : > { %v11857_v63 = vmul.f32 -1.442695, %v10013_v23 }
0x30de   : > { %v11856_v24 = vmul.f32 -1.442695, %v10008_v56  ;;  %v13493_v62 = vpop.f32.mrb[158].mxu0 }
0x30df   : > { %14846 = vpow2.f32 %v11857_v63  ;;  %v10023_v50 = vadd.f32 %v13493_v62, %v11845_v1  ;;  %v10017_v49 = vpop.f32.mrb[159].mxu0 }
0x30e0   : > { %14848 = vpow2.f32 %v11856_v24  ;;  %v10018_v3 = vadd.f32 %v11845_v1, %v10017_v49 }
0x30e1   : > { %v11859_v12 = vmul.f32 -1.442695, %v10023_v50 }
0x30e2   : > { %v11858_v40 = vmul.f32 -1.442695, %v10018_v3 }
0x30e3   : > { %14850 = vpow2.f32 %v11859_v12 }
0x30e4   : > { %14852 = vpow2.f32 %v11858_v40  ;;  %v13496_v35 = vpop.f32.mrb[160].mxu0 }
0x30e5   : > { %v14843_v43 = vpop.eup %14842  ;;  %v10033_v25 = vadd.f32 %v13496_v35, %v11845_v1  ;;  %v10027_v32 = vpop.f32.mrb[161].mxu0 }
0x30e6   : > { %v14845_v53 = vpop.eup %14844  ;;  %v10061_v57 = vadd.f32 1.0, %v14843_v43  ;;  %v10028_v41 = vadd.f32 %v11845_v1, %v10027_v32 }
0x30e7   : > { %v10060_v33 = vadd.f32 1.0, %v14845_v53  ;;  %v11861_v58 = vmul.f32 -1.442695, %v10033_v25 }
0x30e8   : > { %14854 = vrcp.f32 %v10061_v57  ;;  %v11860_v9 = vmul.f32 -1.442695, %v10028_v41  ;;  %v17903_v5 = vpop.f32.mrb[162].mxu0 }
0x30e9   : > { %v14847_v60 = vpop.eup %14846  ;;  %14856 = vrcp.f32 %v10060_v33  ;;  %v13518_v52 = vpop.f32.mrb[163].mxu0 }
0x30ea   : > { %v14849_v63 = vpop.eup %14848  ;;  %v10063_v24 = vadd.f32 1.0, %v14847_v60  ;;  %14858 = vpow2.f32 %v11861_v58 }
0x30eb   : > { %v10062_v62 = vadd.f32 1.0, %v14849_v63  ;;  %14860 = vpow2.f32 %v11860_v9 }
0x30ec   : > { %14862 = vrcp.f32 %v10063_v24 }
0x30ed   : > { %v14851_v49 = vpop.eup %14850  ;;  %14864 = vrcp.f32 %v10062_v62 }
0x30ee   : > { %v14853_v12 = vpop.eup %14852  ;;  %v10065_v40 = vadd.f32 1.0, %v14851_v49 }
0x30ef   : > { %v10064_v1 = vadd.f32 1.0, %v14853_v12 }
0x30f0   : > { %14866 = vrcp.f32 %v10065_v40 }
0x30f1   : > { %14868 = vrcp.f32 %v10064_v1 }
0x30f2   : > { %v14855_v35 = vpop.eup %14854 }
0x30f3   : > { %v14857_v43 = vpop.eup %14856  ;;  %v10085_v32 = vmul.f32 %v14855_v35, %v10003_v54 }
0x30f4   : > { %v14859_v53 = vpop.eup %14858  ;;  %v10084_v57 = vmul.f32 %v14857_v43, %v9998_v61 }
0x30f5   : > { %v14861_v33 = vpop.eup %14860  ;;  %v10093_v52 = vmul.f32 %v10085_v32, %v16962_v28  ;;  %v10067_v60 = vadd.f32 1.0, %v14859_v53 }
0x30f6   : > { %v14863_v58 = vpop.eup %14862  ;;  %v10092_v9 = vmul.f32 %v10084_v57, %v16952_v55  ;;  %v10066_v63 = vadd.f32 1.0, %v14861_v33 }
0x30f7   : > { %v14865_v24 = vpop.eup %14864  ;;  %v10101_v62 = vsel %vm619_vm14, %v10093_v52, 0.0  ;;  %v10087_v49 = vmul.f32 %v14863_v58, %v10013_v23  ;;  %14870 = vrcp.f32 %v10067_v60 }
0x30f8   : > { %v10100_v12 = vsel %vm619_vm14, %v10092_v9, 0.0  ;;  %v10086_v40 = vmul.f32 %v14865_v24, %v10008_v56  ;;  %14872 = vrcp.f32 %v10066_v63 }
0x30f9   : > { %v10102_v54 = vadd.f32 %v10101_v62, %v10100_v12  ;;  %v10095_v61 = vmul.f32 %v10087_v49, %v16964_v37  ;;  %v9545_v12 = vld [vmem:[%s18247_s3 + $0x438] sm:$0xff] }
0x30fa   : > { %v14867_v1 = vpop.eup %14866  ;;  %v10094_v28 = vmul.f32 %v10086_v40, %v16972_v4 }
0x30fb   : > { %v14869_v35 = vpop.eup %14868  ;;  %v10089_v43 = vmul.f32 %v14867_v1, %v10023_v50  ;;  %v10105_v57 = vsel %vm619_vm14, %v10095_v61, 0.0 }
0x30fc   : > { %v10103_v55 = vsel %vm619_vm14, %v10094_v28, 0.0  ;;  %v10088_v32 = vmul.f32 %v14869_v35, %v10018_v3 }
0x30fd   : > { %v10104_v53 = vadd.f32 %v10103_v55, %v10102_v54  ;;  %v10097_v23 = vmul.f32 %v10089_v43, %v16979_v7  ;;  %v11864_v54 = vld [vmem:[%s18247_s3 + $0x418] ss:$0 sm:$0xff] }
0x30fe   : > { %v10096_v33 = vmul.f32 %v10088_v32, %v16968_v39 }
0x30ff   : > { %v10106_v56 = vadd.f32 %v10105_v57, %v10104_v53  ;;  %v10109_v4 = vsel %vm619_vm14, %v10097_v23, 0.0  ;;  %v10349_v23 = vld [vmem:[%s18247_s3 + $0x448] sm:$0xff] }
0x3100   : > { %v10107_v52 = vsel %vm619_vm14, %v10096_v33, 0.0  ;;  %v10353_v33 = vld [vmem:[%s18247_s3 + $0x468] sm:$0xff] }
0x3101   : > { %v14871_v60 = vpop.eup %14870  ;;  %v10108_v58 = vadd.f32 %v10107_v52, %v10106_v56  ;;  %v10354_v52 = vld [vmem:[%s18247_s3 + $0x470] sm:$0xff] }
0x3102   : > { %v14873_v37 = vpop.eup %14872  ;;  %v10091_v9 = vmul.f32 %v14871_v60, %v10033_v25  ;;  %v9542_v25 = vld [vmem:[%s18247_s3 + $0x420] sm:$0xff]  ;;  %v14018_v60 = vpack.c.bf16 %v10354_v52, %v10353_v33 }
0x3103   : > { %v10090_v50 = vmul.f32 %v14873_v37, %v10028_v41  ;;  %v10110_v63 = vadd.f32 %v10109_v4, %v10108_v58  ;;  %v9544_v41 = vld [vmem:[%s18247_s3 + $0x430] sm:$0xff]  ;;  %v10351_v58 = vld [vmem:[%s18247_s3 + $0x458] sm:$0xff]  ;;  %v10352_v37 = vld [vmem:[%s18247_s3 + $0x460] sm:$0xff] }
0x3104   : > { %v10099_v3 = vmul.f32 %v10091_v9, %v16988_v51  ;;  %v9543_v51 = vld [vmem:[%s18247_s3 + $0x428] sm:$0xff]  ;;  %v14009_v40 = vpack.c.bf16 %v9545_v12, %v9544_v41  ;;  %v10355_v4 = vld [vmem:[%s18247_s3 + $0x478] sm:$0xff]  ;;  %v14015_v9 = vpack.c.bf16 %v10352_v37, %v10351_v58 }
0x3105   : > { %v10098_v24 = vmul.f32 %v10090_v50, %v18361_v6  ;;  %v14006_v6 = vpack.c.bf16 %v9543_v51, %v9542_v25  ;;  %v10356_v50 = vld [vmem:[%s18247_s3 + $0x480] sm:$0xff] }
0x3106   : > { %v10113_v39 = vsel %vm619_vm14, %v10099_v3, 0.0  ;;  %v11866_v3 = vld [vmem:[%s18247_s3 + $0x440] ss:$0 sm:$0xff] }
0x3107   : > { %v10111_v62 = vsel %vm619_vm14, %v10098_v24, 0.0 }
0x3108   : > { %v10112_v7 = vadd.f32 %v10111_v62, %v10110_v63  ;;  %v14021_v63 = vpack.c.bf16 %v10356_v50, %v10355_v4 }
0x310a   : > { %v10114_v49 = vadd.f32 %v10113_v39, %v10112_v7 }
0x310c   : > { %13506 = vmatmul.mubr.msk.f32.vlgmr.msra.gmra.mrb[162].mxu1 %vm619_vm14, %v10114_v49 }
0x310d   : > { %13527 = vmatprep.mubr.msk.f32.mxu1 %vm15072_vm11, %v18298_v30  ;;  %14007 = vmatpush3.bf16.msra.mxu1 %v14006_v6 }
0x310e   : > { %14008 = vmatprep.subr.bf16.mxu1 %v18299_v8 }
0x3111   : > { %14010 = vmatpush3.bf16.msra.mxu1 %v14009_v40 }
0x3112   : > { %14017 = vmatprep.subr.bf16.mxu1 %v18299_v8 }
0x31df   : > { %v10184_v1 = vpop.f32.mrb[162].mxu1 }
0x31e0   : > { %v10255_v61 = vadd.f32 %v17903_v5, %v10184_v1  ;;  %v13507_v28 = vpop.f32.mrb[163].mxu1  ;;  %v10350_v5 = vld [vmem:[%s18247_s3 + $0x450] sm:$0xff] }
0x31e1   : > { %v14012_v56 = vpack.c.bf16 %v10350_v5, %v10349_v23 }
0x31e2   : > { %v10262_v35 = vadd.f32 %v11864_v54, %v10255_v61 }
0x31e3   : > { %14013 = vmatpush3.bf16.msra.mxu0 %v14012_v56 }
0x31e4   : > { %v11865_v43 = vmul.f32 -1.442695, %v10262_v35  ;;  %14014 = vmatprep.subr.bf16.mxu0 %v18299_v8 }
0x31e6   : > { %14874 = vpow2.f32 %v11865_v43 }
0x31e7   : > { %14016 = vmatpush3.bf16.msra.mxu0 %v14015_v9 }
0x31f0   : > { %v14875_v55 = vpop.eup %14874 }
0x31f1   : > { %v10266_v32 = vadd.f32 1.0, %v14875_v55 }
0x31f3   : > { %14876 = vrcp.f32 %v10266_v32 }
0x31fd   : > { %v14877_v53 = vpop.eup %14876 }
0x31fe   : > { %v10269_v57 = vmul.f32 %v14877_v53, %v10262_v35  ;;  %v11878_v35 = vld [vmem:[%s18247_s3 + $0x490] ss:$0 sm:$0xff] }
0x3200   : > { %13528 = vmatmul.mubr.msk.f32.vlgmr.msra.gmra.mrb[164].mxu1 %vm619_vm14, %v10269_v57 }
0x3201   : > { %13549 = vmatprep.mubr.msk.f32.mxu1 %vm15072_vm11, %v18298_v30  ;;  %14019 = vmatpush3.bf16.msra.mxu1 %v14018_v60 }
0x3202   : > { %14020 = vmatprep.subr.bf16.mxu1 %v18299_v8 }
0x3205   : > { %14022 = vmatpush3.bf16.msra.mxu1 %v14021_v63 }
0x32d3   : > { %v10343_v24 = vpop.f32.mrb[164].mxu1 }
0x32d4   : > { %v10344_v62 = vadd.f32 %v11866_v3, %v10343_v24  ;;  %v13529_v7 = vpop.f32.mrb[165].mxu1 }
0x32d6   : > { %v10347_v39 = vadd.f32 %v10344_v62, %v17766_v20 }
0x32d8   : > { %v17976_v49 = vmul.f32 %v10347_v39, %v17050_v45 }
0x32da   : > { %13539 = vmatmul.mubr.msk.f32.vlgmr.msra.gmra.mrb[164].mxu0 %vm619_vm14, %v17976_v49  ;;  %13550 = vmatmul.mubr.msk.f32.vlgmr.msra.gmra.mrb[166].mxu1 %vm619_vm14, %v17976_v49 }
0x32db   : > { %13554 = vmatprep.mubr.msk.f32.mxu0 %vm309_vm1, %v15185_v14  ;;  %v10359_v14 = vld [vmem:[%s18247_s3 + $0x498] sm:$0xff] }
0x33ad   : > { %v17984_v25 = vpop.f32.mrb[164].mxu0  ;;  %v10507_v51 = vpop.f32.mrb[166].mxu1 }
0x33ae   : > { %v13540_v6 = vpop.f32.mrb[165].mxu0  ;;  %v13551_v41 = vpop.f32.mrb[167].mxu1  ;;  %13552 = vmatprep.subr.mxu0 %v10507_v51 }
0x33af   : > { %13553 = vmatpush3.msra.mxu0 %v10507_v51 }
0x33b0   : > { %13555 = vmatmul.mubr.msk.f32.vlgmr.msra.gmra.mrb[166].mxu0 %vm309_vm1, %v15192_v15  ;;  %v10360_v15 = vld [vmem:[%s18247_s3 + $0x4a0] sm:$0xff] }
0x33b1   : > { %13557 = vmatprep.mubr.msk.f32.mxu0 %vm309_vm1, %v15200_v16  ;;  %v14023_v16 = vpack.c.bf16 %v10360_v15, %v10359_v14 }
0x33b3   : > { %14024 = vmatprep.subr.bf16.mxu1 %v14023_v16 }
0x33b4   : > { %13558 = vmatmul.mubr.msk.f32.gmra.mrb[168].mxu0 %vm309_vm1, %v15207_v17  ;;  %14026 = vmatpush3.bf16.msra.mxu1 %v14023_v16  ;;  %v10361_v17 = vld [vmem:[%s18247_s3 + $0x4a8] sm:$0xff] }
0x33b5   : > { %13560 = vmatprep.mubr.msk.f32.mxu0 %vm309_vm1, %v15212_v18  ;;  %v10362_v18 = vld [vmem:[%s18247_s3 + $0x4b0] sm:$0xff] }
0x33b8   : > { %13561 = vmatmul.mubr.msk.f32.gmra.mrb[170].mxu0 %vm309_vm1, %v15225_v21  ;;  %v10357_v21 = vld [vmem:[%s18247_s3 + $0x488] sm:$0x3] }
0x33b9   : > { %13563 = vmatprep.mubr.msk.f32.mxu0 %vm309_vm1, %v15217_v19  ;;  %v14027_v19 = vpack.c.bf16 %v10362_v18, %v10361_v17  ;;  %v10526_v20 = vrot.slane %v10357_v21, %v15397_v48 }
0x33bb   : > { %14028 = vmatprep.subr.bf16.mxu1 %v14027_v19  ;;  %v10528_v54 = vmul.f32 %v10526_v20, %v16833_v31  ;;  %v10527_v1 = vmul.f32 %v10526_v20, %v16835_v46  ;;  %v10530_v53 = vmul.f32 %v10526_v20, %v16837_v38  ;;  %v10529_v31 = vmul.f32 %v10526_v20, %v16839_v44 }
0x33bc   : > { %13564 = vmatmul.mubr.msk.f32.gmra.mrb[172].mxu0 %vm309_vm1, %v15230_v22  ;;  %14030 = vmatpush3.bf16.msra.mxu1 %v14027_v19  ;;  %v10514_v22 = vrot.slane %v10357_v21, %v15394_v47  ;;  %v10532_v9 = vmul.f32 %v10526_v20, %v16852_v36  ;;  %v10531_v50 = vmul.f32 %v10526_v20, %v16846_v2  ;;  %vm5776_vm1 = vcmask 64536  }
0x33bd   : > { %14039 = vmatprep.subr.bf16.mxu1 %v18299_v8  ;;  %v10534_v2 = vmul.f32 %v10526_v20, %v16870_v13  ;;  %v10533_v18 = vmul.f32 %v10526_v20, %v18362_v42 }
0x33be   : > { %v10516_v12 = vmul.f32 %v10514_v22, %v17570_v10  ;;  %v10515_v40 = vmul.f32 %v10514_v22, %v17572_v27  ;;  %v10518_v28 = vmul.f32 %v10514_v22, %v17577_v26  ;;  %v10517_v47 = vmul.f32 %v10514_v22, %v17574_v29 }
0x33bf   : > { %v10520_v5 = vmul.f32 %v10514_v22, %v17584_v0  ;;  %v10519_v60 = vmul.f32 %v10514_v22, %v17579_v11  ;;  %v10522_v62 = vmul.f32 %v10514_v22, %v17591_v34  ;;  %v10521_v41 = vmul.f32 %v10514_v22, %v17586_v59 }
0x33c0   : > { %v10536_v61 = vadd.f32 %v10528_v54, %v10516_v12  ;;  %v10535_v55 = vadd.f32 %v10527_v1, %v10515_v40  ;;  %v10538_v46 = vadd.f32 %v10530_v53, %v10518_v28  ;;  %v10537_v52 = vadd.f32 %v10529_v31, %v10517_v47 }
0x33c1   : > { %v10540_v24 = vadd.f32 %v10532_v9, %v10520_v5  ;;  %v10539_v6 = vadd.f32 %v10531_v50, %v10519_v60  ;;  %v10542_v12 = vadd.f32 %v10534_v2, %v10522_v62  ;;  %v10541_v1 = vadd.f32 %v10533_v18, %v10521_v41  ;;  %v11116_v50 = vld [vmem:[%s18247_s3 + $0x4e0] sm:$0xff] }
0x3483   : > { %v13556_v43 = vpop.f32.mrb[166].mxu0 }
0x3484   : > { %v10615_v48 = vadd.f32 %v13556_v43, %v10536_v61  ;;  %v10609_v32 = vpop.f32.mrb[167].mxu0 }
0x3485   : > { %v10610_v57 = vadd.f32 %v10609_v32, %v10535_v55 }
0x3486   : > { %v10653_v23 = vadd.f32 %v11878_v35, %v10615_v48 }
0x3487   : > { %v10652_v33 = vadd.f32 %v11878_v35, %v10610_v57  ;;  %v13559_v56 = vpop.f32.mrb[168].mxu0 }
0x3488   : > { %v18032_v58 = vadd.f32 %v10653_v23, %v17984_v25  ;;  %v10625_v37 = vadd.f32 %v13559_v56, %v10538_v46  ;;  %v10619_v4 = vpop.f32.mrb[169].mxu0 }
0x3489   : > { %v18036_v38 = vadd.f32 %v10652_v33, %v17984_v25  ;;  %v10620_v44 = vadd.f32 %v10619_v4, %v10537_v52 }
0x348a   : > { %v11880_v63 = vmul.f32 -1.442695, %v18032_v58  ;;  %v10655_v3 = vadd.f32 %v11878_v35, %v10625_v37 }
0x348b   : > { %v11879_v7 = vmul.f32 -1.442695, %v18036_v38  ;;  %v10654_v39 = vadd.f32 %v11878_v35, %v10620_v44  ;;  %v13562_v51 = vpop.f32.mrb[170].mxu0 }
0x348c   : > { %14878 = vpow2.f32 %v11880_v63  ;;  %v18044_v36 = vadd.f32 %v10655_v3, %v17984_v25  ;;  %v10635_v14 = vadd.f32 %v13562_v51, %v10540_v24  ;;  %v10629_v15 = vpop.f32.mrb[171].mxu0  ;;  %v11117_v63 = vld [vmem:[%s18247_s3 + $0x4e8] sm:$0xff] }
0x348d   : > { %14880 = vpow2.f32 %v11879_v7  ;;  %v18048_v16 = vadd.f32 %v10654_v39, %v17984_v25  ;;  %v10630_v17 = vadd.f32 %v10629_v15, %v10539_v6  ;;  %v14040_v51 = vpack.c.bf16 %v11117_v63, %v11116_v50  ;;  %v11119_v15 = vld [vmem:[%s18247_s3 + $0x4f8] sm:$0xff] }
0x348e   : > { %v11882_v19 = vmul.f32 -1.442695, %v18044_v36  ;;  %v10657_v21 = vadd.f32 %v11878_v35, %v10635_v14  ;;  %v11118_v14 = vld [vmem:[%s18247_s3 + $0x4f0] sm:$0xff] }
0x348f   : > { %v11881_v22 = vmul.f32 -1.442695, %v18048_v16  ;;  %v10656_v40 = vadd.f32 %v11878_v35, %v10630_v17  ;;  %v13565_v54 = vpop.f32.mrb[172].mxu0 }
0x3490   : > { %14882 = vpow2.f32 %v11882_v19  ;;  %v18054_v61 = vadd.f32 %v10657_v21, %v17984_v25  ;;  %v10645_v13 = vadd.f32 %v13565_v54, %v10542_v12  ;;  %v10639_v28 = vpop.f32.mrb[173].mxu0 }
0x3491   : > { %14884 = vpow2.f32 %v11881_v22  ;;  %v10664_v43 = vadd.f32 %v10656_v40, %v17984_v25  ;;  %v10640_v55 = vadd.f32 %v10639_v28, %v10541_v1  ;;  %v10364_v1 = vld [vmem:[%s18247_s3 + $0x4c0] sm:$0xff] }
0x3492   : > { %v11884_v42 = vmul.f32 -1.442695, %v18054_v61  ;;  %v10659_v20 = vadd.f32 %v11878_v35, %v10645_v13 }
0x3493   : > { %v11883_v47 = vmul.f32 -1.442695, %v10664_v43  ;;  %v10658_v48 = vadd.f32 %v11878_v35, %v10640_v55 }
0x3494   : > { %14886 = vpow2.f32 %v11884_v42  ;;  %v10667_v32 = vadd.f32 %v10659_v20, %v17984_v25 }
0x3495   : > { %14888 = vpow2.f32 %v11883_v47  ;;  %v10666_v53 = vadd.f32 %v10658_v48, %v17984_v25 }
0x3496   : > { %v14879_v57 = vpop.eup %14878  ;;  %v11886_v31 = vmul.f32 -1.442695, %v10667_v32 }
0x3497   : > { %v14881_v23 = vpop.eup %14880  ;;  %v10693_v46 = vadd.f32 1.0, %v14879_v57  ;;  %v11885_v5 = vmul.f32 -1.442695, %v10666_v53 }
0x3498   : > { %v10692_v33 = vadd.f32 1.0, %v14881_v23  ;;  %14890 = vpow2.f32 %v11886_v31 }
0x3499   : > { %14892 = vrcp.f32 %v10693_v46 }
0x349a   : > { %v14883_v56 = vpop.eup %14882  ;;  %14894 = vrcp.f32 %v10692_v33 }
0x349b   : > { %v14885_v52 = vpop.eup %14884  ;;  %v10695_v60 = vadd.f32 1.0, %v14883_v56  ;;  %14896 = vpow2.f32 %v11885_v5 }
0x349c   : > { %v10694_v35 = vadd.f32 1.0, %v14885_v52 }
0x349d   : > { %14898 = vrcp.f32 %v10695_v60 }
0x349e   : > { %v14887_v37 = vpop.eup %14886  ;;  %14900 = vrcp.f32 %v10694_v35 }
0x349f   : > { %v14889_v4 = vpop.eup %14888  ;;  %v10697_v9 = vadd.f32 1.0, %v14887_v37 }
0x34a0   : > { %v10696_v25 = vadd.f32 1.0, %v14889_v4 }
0x34a1   : > { %14902 = vrcp.f32 %v10697_v9 }
0x34a2   : > { %v14891_v44 = vpop.eup %14890  ;;  %14904 = vrcp.f32 %v10696_v25 }
0x34a3   : > { %v14893_v3 = vpop.eup %14892  ;;  %v10699_v24 = vadd.f32 1.0, %v14891_v44 }
0x34a4   : > { %v14895_v62 = vpop.eup %14894  ;;  %v10717_v6 = vmul.f32 %v14893_v3, %v18032_v58  ;;  %v14043_v58 = vpack.c.bf16 %v11119_v15, %v11118_v14 }
0x34a5   : > { %v14897_v7 = vpop.eup %14896  ;;  %v10716_v39 = vmul.f32 %v14895_v62, %v18036_v38  ;;  %14906 = vrcp.f32 %v10699_v24 }
0x34a6   : > { %v10698_v41 = vadd.f32 1.0, %v14897_v7 }
0x34a7   : > { %v14899_v2 = vpop.eup %14898  ;;  %13574 = vmatprep.mubr.msk.f32.mxu1 %vm619_vm14, %v10716_v39 }
0x34a8   : > { %v14901_v17 = vpop.eup %14900  ;;  %14908 = vrcp.f32 %v10698_v41  ;;  %13575 = vmatmul.mubr.msk.f32.vlgmr.msra.gmra.mrb[168].mxu1 %vm619_vm14, %v10717_v6  ;;  %v10719_v18 = vmul.f32 %v14899_v2, %v18044_v36 }
0x34a9   : > { %v10718_v38 = vmul.f32 %v14901_v17, %v18048_v16  ;;  %14041 = vmatpush3.bf16.msra.mxu1 %v14040_v51 }
0x34aa   : > { %14042 = vmatprep.subr.bf16.mxu1 %v18299_v8  ;;  %v11115_v8 = vmul.f32 %v17976_v49, %v17050_v45  ;;  %v10367_v49 = vld [vmem:[%s18247_s3 + $0x4d8] sm:$0xff] }
0x34ab   : > { %v14903_v19 = vpop.eup %14902  ;;  %13577 = vmatprep.mubr.msk.f32.mxu1 %vm619_vm14, %v10718_v38 }
0x34ac   : > { %v14905_v21 = vpop.eup %14904  ;;  %13578 = vmatmul.mubr.msk.f32.gmra.mrb[170].mxu1 %vm619_vm14, %v10719_v18  ;;  %v10721_v22 = vmul.f32 %v14903_v19, %v18054_v61  ;;  %v10365_v61 = vld [vmem:[%s18247_s3 + $0x4c8] sm:$0xff] }
0x34ad   : > { %v10720_v12 = vmul.f32 %v14905_v21, %v10664_v43  ;;  %14044 = vmatpush3.bf16.msra.mxu1 %v14043_v58  ;;  %v14031_v13 = vpack.c.bf16 %v10365_v61, %v10364_v1  ;;  %v11887_v43 = vld [vmem:[%s18247_s3 + $0x4b8] ss:$0 sm:$0xff] }
0x34af   : > { %13580 = vmatprep.mubr.msk.f32.mxu1 %vm619_vm14, %v10720_v12  ;;  %v14907_v16 = vpop.eup %14906  ;;  %14032 = vmatprep.subr.bf16.mxu0 %v14031_v13 }
0x34b0   : > { %13581 = vmatmul.mubr.msk.f32.gmra.mrb[172].mxu1 %vm619_vm14, %v10721_v22  ;;  %v10723_v36 = vmul.f32 %v14907_v16, %v10667_v32  ;;  %14034 = vmatpush3.bf16.msra.mxu0 %v14031_v13 }
0x34b2   : > { %v14909_v40 = vpop.eup %14908 }
0x34b3   : > { %v10722_v54 = vmul.f32 %v14909_v40, %v10666_v53 }
0x34b5   : > { %13583 = vmatprep.mubr.msk.f32.mxu1 %vm619_vm14, %v10722_v54 }
0x34b6   : > { %13584 = vmatmul.mubr.msk.f32.gmra.mrb[174].mxu1 %vm619_vm14, %v10723_v36 }
0x34b7   : > { %13614 = vmatprep.mubr.msk.f32.mxu1 %vm15072_vm11, %v18298_v30  ;;  %v10366_v30 = vld [vmem:[%s18247_s3 + $0x4d0] sm:$0xff] }
0x34b8   : > { %v14035_v28 = vpack.c.bf16 %v10367_v49, %v10366_v30 }
0x34ba   : > { %13615 = vmatmul.mubr.msk.f32.vlgmr.msra.gmra.mrb[176].mxu1 %vm619_vm14, %v11115_v8  ;;  %14036 = vmatprep.subr.bf16.mxu0 %v14035_v28 }
0x34bb   : > { %14038 = vmatpush3.bf16.msra.mxu0 %v14035_v28 }
0x357b   : > { %v13576_v55 = vpop.f32.mrb[168].mxu1 }
0x357c   : > { %v10824_v42 = vadd.f32 %v13576_v55, %v11887_v43  ;;  %v10818_v20 = vpop.f32.mrb[169].mxu1 }
0x357d   : > { %v10819_v47 = vadd.f32 %v11887_v43, %v10818_v20 }
0x357e   : > { %v11897_v48 = vmul.f32 -1.442695, %v10824_v42 }
0x357f   : > { %v11896_v32 = vmul.f32 -1.442695, %v10819_v47  ;;  %v13579_v53 = vpop.f32.mrb[170].mxu1 }
0x3580   : > { %14910 = vpow2.f32 %v11897_v48  ;;  %v10834_v57 = vadd.f32 %v13579_v53, %v11887_v43  ;;  %v10828_v31 = vpop.f32.mrb[171].mxu1 }
0x3581   : > { %14912 = vpow2.f32 %v11896_v32  ;;  %v10829_v23 = vadd.f32 %v11887_v43, %v10828_v31  ;;  %v18364_v32 = vld [vmem:[#allocation29_spill] sm:$0xff] }
0x3582   : > { %v11899_v46 = vmul.f32 -1.442695, %v10834_v57  ;;  %v11204_v53 = vrot.slane %v18364_v32, 4 }
0x3583   : > { %v11898_v5 = vmul.f32 -1.442695, %v10829_v23  ;;  %v13582_v33 = vpop.f32.mrb[172].mxu1 }
0x3584   : > { %14914 = vpow2.f32 %v11899_v46  ;;  %v10844_v56 = vadd.f32 %v13582_v33, %v11887_v43  ;;  %v10838_v52 = vpop.f32.mrb[173].mxu1  ;;  %v11205_v31 = vadd.f32 %v11204_v53, %v18364_v32  ;;  %v8663_v32 = vadd.f32 1e-08, %v17572_v27  ;;  %v18370_v53 = vld [vmem:[#allocation21_spill] sm:$0xff] }
0x3585   : > { %14916 = vpow2.f32 %v11898_v5  ;;  %v10839_v60 = vadd.f32 %v11887_v43, %v10838_v52  ;;  %v8668_v27 = vadd.f32 1e-08, %v17584_v0  ;;  %v8670_v0 = vadd.f32 1e-08, %v17591_v34 }
0x3586   : > { %v11901_v35 = vmul.f32 -1.442695, %v10844_v56  ;;  %v11206_v46 = vrot.slane %v11205_v31, 2 }
0x3587   : > { %v11900_v37 = vmul.f32 -1.442695, %v10839_v60 }
0x3588   : > { %14918 = vpow2.f32 %v11901_v35  ;;  %v11207_v33 = vadd.f32 %v11206_v46, %v11205_v31  ;;  %v8665_v31 = vadd.f32 1e-08, %v17574_v29  ;;  %v18373_v29 = vld [vmem:[#allocation5_spill] sm:$0xff] }
0x3589   : > { %14920 = vpow2.f32 %v11900_v37  ;;  %v13585_v4 = vpop.f32.mrb[174].mxu1 }
0x358a   : > { %v14911_v9 = vpop.eup %14910  ;;  %v10854_v25 = vadd.f32 %v13585_v4, %v11887_v43  ;;  %v10848_v44 = vpop.f32.mrb[175].mxu1  ;;  %v11208_v52 = vrot.slane %v11207_v33, 1  ;;  %v14993_v4 = vld [vmem:[%s15367_s12 + $0x48] sm:$0xff] }
0x358b   : > { %v14913_v50 = vpop.eup %14912  ;;  %v10882_v63 = vadd.f32 1.0, %v14911_v9  ;;  %v10849_v3 = vadd.f32 %v11887_v43, %v10848_v44 }
0x358c   : > { %v10881_v24 = vadd.f32 1.0, %v14913_v50  ;;  %v11903_v62 = vmul.f32 -1.442695, %v10854_v25  ;;  %v11209_v35 = vadd.f32 %v11208_v52, %v11207_v33  ;;  %v14994_v50 = vld [vmem:[%s15367_s12 + $0x40] sm:$0xff] }
0x358d   : > { %14922 = vrcp.f32 %v10882_v63  ;;  %v11902_v7 = vmul.f32 -1.442695, %v10849_v3  ;;  %v18106_v39 = vpop.f32.mrb[176].mxu1 }
0x358e   : > { %v14915_v51 = vpop.eup %14914  ;;  %14924 = vrcp.f32 %v10881_v24  ;;  %v13616_v6 = vpop.f32.mrb[177].mxu1 }
0x358f   : > { %v14917_v41 = vpop.eup %14916  ;;  %v10884_v14 = vadd.f32 1.0, %v14915_v51  ;;  %14926 = vpow2.f32 %v11903_v62  ;;  %v14996_v51 = vld [vmem:[%s15367_s12 + $0x28] sm:$0xff] }
0x3590   : > { %v10883_v15 = vadd.f32 1.0, %v14917_v41  ;;  %14928 = vpow2.f32 %v11902_v7  ;;  %v18365_v6 = vld [vmem:[#allocation30_spill] sm:$0xff] }
0x3591   : > { %14930 = vrcp.f32 %v10884_v14  ;;  %v5594_v41 = vmul.f32 %v14996_v51, %v18365_v6  ;;  %v14997_v14 = vld [vmem:[%s15367_s12 + $0x50] sm:$0xff]  ;;  %v18376_v51 = vld [vmem:[#allocation37_spill] sm:$0xff] }
0x3592   : > { %v14919_v2 = vpop.eup %14918  ;;  %14932 = vrcp.f32 %v10883_v15 }
0x3593   : > { %v14921_v17 = vpop.eup %14920  ;;  %v10886_v38 = vadd.f32 1.0, %v14919_v2 }
0x3594   : > { %v10885_v58 = vadd.f32 1.0, %v14921_v17  ;;  %v14998_v17 = vld [vmem:[%s15367_s12 + $0x30] sm:$0xff] }
0x3595   : > { %14934 = vrcp.f32 %v10886_v38  ;;  %v18366_v38 = vld [vmem:[#allocation33_spill] sm:$0xff] }
0x3596   : > { %14936 = vrcp.f32 %v10885_v58  ;;  %v5595_v58 = vmul.f32 %v14998_v17, %v18366_v38 }
0x3597   : > { %v14923_v18 = vpop.eup %14922 }
0x3598   : > { %v14925_v19 = vpop.eup %14924  ;;  %v10906_v16 = vmul.f32 %v14923_v18, %v10824_v42  ;;  %v14999_v18 = vld [vmem:[%s15367_s12 + $0x68] sm:$0xff] }
0x3599   : > { %v14927_v21 = vpop.eup %14926  ;;  %v10905_v12 = vmul.f32 %v14925_v19, %v10819_v47  ;;  %v18363_v47 = vld [vmem:[#allocation27_spill] sm:$0xff] }
0x359a   : > { %v14929_v22 = vpop.eup %14928  ;;  %v10888_v40 = vadd.f32 1.0, %v14927_v21  ;;  %v5752_v48 = vrot.slane %v18363_v47, 4  ;;  %v11625_v21 = vld [vmem:[%s18247_s3 + $0x500] ss:$0 sm:$0xff] }
0x359b   : > { %v14931_v54 = vpop.eup %14930  ;;  %v10887_v36 = vadd.f32 1.0, %v14929_v22  ;;  %13594 = vmatprep.mubr.msk.f32.mxu0 %vm619_vm14, %v10905_v12 }
0x359c   : > { %v14933_v8 = vpop.eup %14932  ;;  %14938 = vrcp.f32 %v10888_v40  ;;  %13595 = vmatmul.mubr.msk.f32.vlgmr.msra.gmra.mrb[174].mxu0 %vm619_vm14, %v10906_v16  ;;  %v10908_v61 = vmul.f32 %v14931_v54, %v10834_v57  ;;  %v5753_v57 = vadd.f32 %v5752_v48, %v18363_v47  ;;  %v18367_v16 = vld [vmem:[#allocation6_spill] sm:$0xff]  ;;  %v15000_v54 = vld [vmem:[%s15367_s12 + $0x38] sm:$0xff]  ;;  %v8664_v48 = vadd.f32 1e-08, %v17570_v10 }
0x359d   : > { %v10907_v1 = vmul.f32 %v14933_v8, %v10829_v23  ;;  %14940 = vrcp.f32 %v10887_v36  ;;  %v5742_v40 = vadd.f32 %v11625_v21, %v18367_v16  ;;  %v18368_v36 = vld [vmem:[#allocation32_spill] sm:$0xff] }
0x359e   : > { %v5754_v23 = vrot.slane %v5753_v57, 2  ;;  %v5596_v8 = vmul.f32 %v15000_v54, %v18368_v36  ;;  %14942 = vrsqrt.f32 %v8664_v48  ;;  %v18378_v16 = vld [vmem:[#allocation16_spill] sm:$0xff] }
0x359f   : > { %v14935_v13 = vpop.eup %14934  ;;  %13597 = vmatprep.mubr.msk.f32.mxu0 %vm619_vm14, %v10907_v1  ;;  %v15001_v1 = vld [vmem:[%s15367_s12 + $0x60] sm:$0xff]  ;;  %14944 = vrsqrt.f32 %v8663_v32  ;;  %v18382_v32 = vld [vmem:[#allocation15_spill] sm:$0xff] }
0x35a0   : > { %v14937_v30 = vpop.eup %14936  ;;  %13598 = vmatmul.mubr.msk.f32.gmra.mrb[176].mxu0 %vm619_vm14, %v10908_v61  ;;  %v10910_v28 = vmul.f32 %v14935_v13, %v10844_v56  ;;  %v5755_v5 = vadd.f32 %v5754_v23, %v5753_v57  ;;  %v18369_v13 = vld [vmem:[#allocation7_spill] sm:$0xff]  ;;  %v3215_v57 = vadd.f32 1e-08, %v18370_v53  ;;  %v8666_v23 = vadd.f32 1e-08, %v17577_v26 }
0x35a1   : > { %v10909_v49 = vmul.f32 %v14937_v30, %v10839_v60  ;;  %v5745_v30 = vmul.f32 %v5742_v40, %v18369_v13 }
0x35a2   : > { %v5756_v56 = vrot.slane %v5755_v5, 1  ;;  %14946 = vrsqrt.f32 %v3215_v57 }
0x35a3   : > { %13600 = vmatprep.mubr.msk.f32.mxu0 %vm619_vm14, %v10909_v49  ;;  %v15002_v49 = vld [vmem:[%s15367_s12 + $0x70] sm:$0xff]  ;;  %14948 = vrsqrt.f32 %v8665_v31 }
0x35a4   : > { %13601 = vmatmul.mubr.msk.f32.gmra.mrb[178].mxu0 %vm619_vm14, %v10910_v28  ;;  %v5757_v60 = vadd.f32 %v5756_v56, %v5755_v5  ;;  %14950 = vrsqrt.f32 %v8666_v23  ;;  %v18372_v5 = vld [vmem:[#allocation23_spill] sm:$0xff]  ;;  %v8667_v56 = vadd.f32 1e-08, %v17579_v11 }
0x35a5   : > { %v3217_v33 = vadd.f32 1e-08, %v18372_v5 }
0x35a6   : > { %v14939_v43 = vpop.eup %14938  ;;  %14047 = vpush %v5757_v60 }
0x35a7   : > { %v14941_v55 = vpop.eup %14940  ;;  %v10912_v20 = vmul.f32 %v14939_v43, %v10854_v25  ;;  %14049 = vpush %v11209_v35  ;;  %v11912_v43 = vld [vmem:[%s18247_s3 + $0x500] ss:$0 sm:$0xff] }
0x35a8   : > { %v10911_v42 = vmul.f32 %v14941_v55, %v10849_v3  ;;  %v14995_v3 = vld [vmem:[%s15367_s12 + $0x58] sm:$0xff]  ;;  %v11195_v55 = vadd.f32 %v11912_v43, %v18106_v39  ;;  %v14943_v10 = vpop.eup %14942 }
0x35a9   : > { %v18371_v39 = vld [vmem:[#allocation24_spill] sm:$0xff]  ;;  %v14945_v52 = vpop.eup %14944  ;;  %v8680_v35 = vmul.f32 %v14943_v10, %v18373_v29 }
0x35aa   : > { %13603 = vmatprep.mubr.msk.f32.mxu0 %vm619_vm14, %v10911_v42  ;;  %v15003_v42 = vld [vmem:[%s15367_s12 + $0x78] sm:$0xff]  ;;  %v11198_v47 = vmul.f32 %v11195_v55, %v17050_v45  ;;  %v3216_v46 = vadd.f32 1e-08, %v18371_v39  ;;  %v18380_v55 = vld [vmem:[#allocation39_spill] sm:$0xff] }
0x35ab   : > { %13604 = vmatmul.mubr.msk.f32.gmra.mrb[180].mxu0 %vm619_vm14, %v10912_v20 }
0x35ac   : > { %14952 = vrsqrt.f32 %v3216_v46  ;;  %v14947_v26 = vpop.eup %14946 }
0x35ad   : > { %14954 = vrsqrt.f32 %v3217_v33 }
0x35ae   : > { %14956 = vrsqrt.f32 %v8667_v56 }
0x35af   : > { %14958 = vrsqrt.f32 %v8668_v27  ;;  %v18383_v27 = vld [vmem:[#allocation42_spill] sm:$0xff] }
0x35d7   : > { %s14048_s12 = spop %14047 }
0x35d8   : > { %s14050_s11 = spop %14049 }
0x366f   : > { %v13596_v37 = vpop.f32.mrb[174].mxu0 }
0x3670   : > { %v11043_v9 = vmul.f32 %v14993_v4, %v13596_v37  ;;  %v11003_v25 = vpop.f32.mrb[175].mxu0  ;;  %v8669_v37 = vadd.f32 1e-08, %v17586_v59  ;;  %v14949_v4 = vpop.eup %14948  ;;  %v18377_v59 = vld [vmem:[#allocation38_spill] sm:$0xff] }
0x3671   : > { %v11042_v63 = vmul.f32 %v14994_v50, %v11003_v25  ;;  %v18374_v25 = vld [vmem:[#allocation36_spill] sm:$0xff]  ;;  %v14951_v50 = vpop.eup %14950 }
0x3672   : > { %11057 = vperm.xlu1 %14098, %v11043_v9   ;;  %14960 = vrsqrt.f32 %v8669_v37  ;;  %v8682_v6 = vmul.f32 %v14951_v50, %v18376_v51 }
0x3673   : > { %v13599_v44 = vpop.f32.mrb[176].mxu0  ;;  %14962 = vrsqrt.f32 %v8670_v0 }
0x3674   : > { %v11045_v24 = vmul.f32 %v14995_v3, %v13599_v44  ;;  %v11013_v62 = vpop.f32.mrb[177].mxu0  ;;  %v8679_v44 = vmul.f32 %v14945_v52, %v18374_v25 }
0x3675   : > { %v11044_v15 = vmul.f32 %v14997_v14, %v11013_v62  ;;  %v8681_v14 = vmul.f32 %v14949_v4, %v18377_v59 }
0x3676   : > { %11052 = vperm.xlu1 %14098, %v11042_v63   ;;  %11067 = vperm.xlu0 %14099, %v11045_v24   ;;  %v18375_v24 = vld [vmem:[#allocation13_spill] sm:$0xff] }
0x3677   : > { %v13602_v7 = vpop.f32.mrb[178].mxu0  ;;  %v3231_v62 = vmul.f32 %v14947_v26, %v18375_v24 }
0x3678   : > { %v11023_v2 = vpop.f32.mrb[179].mxu0  ;;  %v11047_v19 = vmul.f32 %v14999_v18, %v13602_v7 }
0x3679   : > { %v11046_v61 = vmul.f32 %v15001_v1, %v11023_v2 }
0x367a   : > { %5624 = vperm.xlu1 %14098, %v5594_v41   ;;  %11062 = vperm.xlu0 %14099, %v11044_v15   ;;  %v14953_v15 = vpop.eup %14952 }
0x367b   : > { %v14955_v21 = vpop.eup %14954  ;;  %v3232_v40 = vmul.f32 %v14953_v15, %v18378_v16  ;;  %v11218_v16 = vstv %s14050_s11 }
0x367c   : > { %v14957_v34 = vpop.eup %14956  ;;  %v3233_v53 = vmul.f32 %v14955_v21, %v18382_v32 }
0x367d   : > { %v14959_v54 = vpop.eup %14958 }
0x367e   : > { %v13605_v12 = vpop.f32.mrb[180].mxu0  ;;  %5629 = vperm.xlu1 %14098, %v5595_v58   ;;  %11077 = vperm.xlu0 %14099, %v11047_v19   ;;  %v14961_v57 = vpop.eup %14960 }
0x367f   : > { %v11033_v22 = vpop.f32.mrb[181].mxu0  ;;  %v11049_v20 = vmul.f32 %v15003_v42, %v13605_v12  ;;  %v8684_v42 = vmul.f32 %v14959_v54, %v18380_v55  ;;  %v8685_v52 = vmul.f32 %v14961_v57, %v18383_v27 }
0x3680   : > { %v11048_v28 = vmul.f32 %v15002_v49, %v11033_v22 }
0x3682   : > { %5634 = vperm.xlu1 %14098, %v5596_v8   ;;  %11072 = vperm.xlu0 %14099, %v11046_v61   ;;  %v18379_v8 = vld [vmem:[#allocation26_spill] sm:$0xff] }
0x3686   : > { %5773 = vrot.lane.b32.xlu1 %v5745_v30, %s15075_s20  ;;  %11082 = vperm.xlu0 %14099, %v11048_v28  }
0x368a   : > { %11087 = vperm.xlu0 %14099, %v11049_v20  }
0x368e   : > { %11226 = vrot.lane.b32.xlu0 %v11198_v47, %s15075_s20  ;;  %v18381_v47 = vld [vmem:[#allocation40_spill] sm:$0xff] }
0x368f   : > { %v8683_v48 = vmul.f32 %v14957_v34, %v18381_v47 }
0x36f1   : > { %v11058_v60 = vpop.permute.xlu1 %11057 }
0x36f2   : > { %v11091_v9 = vmul.f32 %v11058_v60, %v8680_v35  ;;  %v14963_v60 = vpop.eup %14962 }
0x36f4   : > { %v11099_v7 = vsel %vm455_vm13, %v11091_v9, 0.0  ;;  %v18384_v9 = vld [vmem:[#allocation8_spill] sm:$0xff] }
0x36f5   : > { %v11068_v11 = vpop.permute.xlu0 %11067  ;;  %v11053_v63 = vpop.permute.xlu1 %11052 }
0x36f6   : > { %v11090_v3 = vmul.f32 %v11053_v63, %v8679_v44  ;;  %v11093_v58 = vmul.f32 %v11068_v11, %v8682_v6  ;;  %v18385_v11 = vld [vmem:[#allocation41_spill] sm:$0xff] }
0x36f7   : > { %v8686_v63 = vmul.f32 %v14963_v60, %v18385_v11 }
0x36f8   : > { %v11098_v41 = vsel %vm455_vm13, %v11090_v3, 0.0  ;;  %v11103_v49 = vsel %vm455_vm13, %v11093_v58, 0.0 }
0x36f9   : > { %v11100_v2 = vadd.f32 %v11099_v7, %v11098_v41  ;;  %v11063_v17 = vpop.permute.xlu0 %11062  ;;  %v5625_v38 = vpop.permute.xlu1 %5624  ;;  %v15004_v7 = vld [vmem:[%s15166_s5] sm:$0xff]  ;;  %v5766_v41 = vstv %s14048_s12 }
0x36fa   : > { %v11092_v18 = vmul.f32 %v11063_v17, %v8681_v14  ;;  %v5642_v19 = vmul.f32 %v5625_v38, %v3231_v62  ;;  %14964 = vrcp.f32 %v5766_v41 }
0x36fb   : > { %14966 = vrcp.f32 %v11218_v16 }
0x36fc   : > { %v11101_v12 = vsel %vm455_vm13, %v11092_v18, 0.0  ;;  %v5654_v22 = vsel %vm455_vm13, %v5642_v19, 0.0  ;;  %v15005_v19 = vld [vmem:[%s15166_s5 + $0x8] sm:$0xff]  ;;  %s11334_s5 = sshll.u32 %s223_s13, 4 }
0x36fd   : > { %v11102_v36 = vadd.f32 %v11101_v12, %v11100_v2  ;;  %v5655_v1 = vadd.f32 %v5654_v22, %v18379_v8  ;;  %v11078_v61 = vpop.permute.xlu0 %11077  ;;  %v5630_v30 = vpop.permute.xlu1 %5629  ;;  %v18386_v2 = vld [vmem:[#allocation25_spill] sm:$0xff]  ;;  %s225_s6 = scalar_lea.vmem [#allocation2], %s11334_s5 }
0x36fe   : > { %v5643_v28 = vmul.f32 %v5630_v30, %v3232_v40  ;;  %v11095_v39 = vmul.f32 %v11078_v61, %v8684_v42  ;;  %s11244_s27 = sshll.u32 %s225_s6, 4  ;;  %s18199_s27 = int_to_ptr.vmem [resolvable:$true] %s11244_s27 }
0x36ff   : > { %v11104_v43 = vadd.f32 %v11103_v49, %v11102_v36  ;;  %s15006_s29 = scalar_lea.vmem %s18199_s27, 256  ;;  %p15013_p0 = scmp.lt.s32.totalorder %s18199_s27, %s15011_s7 }
0x3700   : > { %v5656_v20 = vsel %vm455_vm13, %v5643_v28, 0.0  ;;  %v11107_v37 = vsel %vm455_vm13, %v11095_v39, 0.0  ;;  %p15007_p11 = scmp.ne.s32.totalorder %s18199_s27, %s15006_s29  ;;  %p15014_p1 = scmp.lt.s32.totalorder %s15012_s8, %s15006_s29 }
0x3701   : > { %v11073_v31 = vpop.permute.xlu0 %11072  ;;  %v5635_v23 = vpop.permute.xlu1 %5634  ;;  %v5657_v33 = vadd.f32 %v5656_v20, %v5655_v1 }
0x3702   : > { %v11094_v46 = vmul.f32 %v11073_v31, %v8683_v48  ;;  %v5644_v5 = vmul.f32 %v5635_v23, %v3233_v53  ;;  %p15008_p12 = pnand %p15007_p11, %p15142_p5  ;;  %p15015_p2 = por %p15014_p1, %p15013_p0 }
0x3704   : > { %v11105_v56 = vsel %vm455_vm13, %v11094_v46, 0.0  ;;  %v5658_v10 = vsel %vm455_vm13, %v5644_v5, 0.0  ;;  %v14965_v8 = vpop.eup %14964  ;;  %p15009_p13 = pneg %p15008_p12 }
0x3705   : > { %v11106_v29 = vadd.f32 %v11105_v56, %v11104_v43  ;;  %v5659_v35 = vadd.f32 %v5658_v10, %v5657_v33  ;;  %v11083_v26 = vpop.permute.xlu0 %11082  ;;  %v5774_v20 = vpop.permute.xlu1 %5773 }
0x3706   : > { %v11096_v4 = vmul.f32 %v11083_v26, %v8685_v52  ;;  %v14967_v48 = vpop.eup %14966  ;;  %p15016_p3 = pnand %p15015_p2, %p15009_p13 }
0x3707   : > { %v5660_v25 = vadd.f32 %v5659_v35, %v18384_v9  ;;  %v11108_v44 = vadd.f32 %v11107_v37, %v11106_v29 }
0x3708   : > { %v11109_v50 = vsel %vm455_vm13, %v11096_v4, 0.0 }
0x3709   : > { %v5661_v3 = vmul.f32 %v5660_v25, %v18369_v13  ;;  %v11110_v0 = vadd.f32 %v11109_v50, %v11108_v44  ;;  %v11088_v24 = vpop.permute.xlu0 %11087 }
0x370a   : > { %v11097_v62 = vmul.f32 %v11088_v24, %v8686_v63 }
0x370b   : > { %v5746_v51 = vsub.f32 %v5661_v3, %v15004_v7 }
0x370c   : > { %v11111_v6 = vsel %vm455_vm13, %v11097_v62, 0.0 }
0x370d   : > { %v5747_v59 = vmul.f32 %v5746_v51, %v18369_v13  ;;  %v11112_v14 = vadd.f32 %v11111_v6, %v11110_v0 }
0x370f   : > { %v5759_v15 = vsel %vm455_vm13, %v5747_v59, 0.0  ;;  %v11113_v17 = vadd.f32 %v11112_v14, %v18386_v2 }
0x3710   : > { %v5760_v38 = vrot.slane %v5759_v15, 4 }
0x3711   : > { %v11114_v58 = vmul.f32 %v11113_v17, %v17050_v45 }
0x3712   : > { %v5761_v18 = vadd.f32 %v5760_v38, %v5759_v15 }
0x3713   : > { %v11199_v21 = vsub.f32 %v11114_v58, %v15005_v19 }
0x3714   : > { %v5762_v34 = vrot.slane %v5761_v18, 2 }
0x3715   : > { %v11200_v12 = vmul.f32 %v11199_v21, %v17050_v45 }
0x3716   : > { %v5763_v22 = vadd.f32 %v5762_v34, %v5761_v18 }
0x3717   : > { %v11211_v40 = vsel %vm455_vm13, %v11200_v12, 0.0 }
0x3718   : > { %v11212_v54 = vrot.slane %v11211_v40, 4  ;;  %v5764_v36 = vrot.slane %v5763_v22, 1 }
0x371a   : > { %v11213_v1 = vadd.f32 %v11212_v54, %v11211_v40  ;;  %v5765_v61 = vadd.f32 %v5764_v36, %v5763_v22 }
0x371c   : > { %v11214_v30 = vrot.slane %v11213_v1, 2  ;;  %v5768_v49 = vmul.f32 %v14965_v8, %v5765_v61 }
0x371e   : > { %v5769_v28 = vmul.f32 %v5768_v49, %v18369_v13  ;;  %v11215_v43 = vadd.f32 %v11214_v30, %v11213_v1  ;;  %v11227_v13 = vpop.permute.xlu0 %11226 }
0x3720   : > { %v5770_v55 = vsub.f32 %v5747_v59, %v5769_v28  ;;  %v11216_v42 = vrot.slane %v11215_v43, 1 }
0x3722   : > { %v11217_v47 = vadd.f32 %v11216_v42, %v11215_v43  ;;  %5771 = vst.msk [vmem:[%s225_s6] sm:$0xff] %vm455_vm13, %v5770_v55 }
0x3723   : > { %5777 = vst.msk [vmem:[%s225_s6] sm:$0xff] %vm5776_vm1, %v5774_v20 }
0x3724   : > { %v11220_v32 = vmul.f32 %v14967_v48, %v11217_v47 }
0x3726   : > { %v11221_v53 = vmul.f32 %v11220_v32, %v17050_v45 }
0x3728   : > { %v11222_v57 = vsub.f32 %v11200_v12, %v11221_v53 }
0x372a   : > { %11914 = vst.msk [vmem:[%s225_s6 + $0x8] sm:$0xff] %vm455_vm13, %v11222_v57 }
0x372b   : > { %11915 = vst.msk [vmem:[%s225_s6 + $0x8] sm:$0xff] %vm5776_vm1, %v11227_v13 }
0x372c   : > { %15019 = shalt.err (!%p15016_p3)
}
0x372d   : > { %s15020_s9 = scalar_lea.hbm %s18197_s23, 256  ;;  %s15024_s12 = scalar_lea.hbm %s18248_s4, 512 }
0x372e   : > { %p15021_p4 = scmp.ne.s32.totalorder %s18197_s23, %s15020_s9  ;;  %p15025_p9 = scmp.lt.u32.totalorder %s18197_s23, %s18248_s4 }
0x372f   : > { %p15026_p10 = scmp.lt.u32.totalorder %s15024_s12, %s15020_s9  ;;  %p15028_p12 = scmp.lt.u32.totalorder %s15020_s9, %s18197_s23 }
0x3730   : > { %p15022_p7 = pnand %p15021_p4, %p15142_p5 }
0x3731   : > { %p15027_p11 = por %p15026_p10, %p15025_p9 }
0x3732   : > { %p15023_p8 = pneg %p15022_p7 }
0x3733   : > { %p15029_p13 = por %p15028_p12, %p15027_p11 }
0x3735   : > { %p15030_p0 = pnand %p15029_p13, %p15023_p8 }
0x3737   : > { %15033 = shalt.err (!%p15030_p0)
}
0x3738   : > { %s15077_s5 = smov 128   ;;  %s15078_s6 = smov 8  }
0x3739   : > { %14051 = dma.vmem_to_hbm [thread:$0]  (%p15142_p5), %s18199_s27, 256, %s18197_s23, %s18203_s19, %s15077_s5, %s15077_s5, %s15078_s6  }
0x373a PF: > { %p14057_p1 = scmp.ge.s32.totalorder %s15068_s18, 2  ;;  %s11259_s14 = sand.u32 1, %s15056_s15  }
0x373b   : > { %s11260_s28 = scalar_lea.sflag [#allocation3], %s11259_s14 }
0x373c   : > { %p14054_p2 = pnand %p14057_p1, %p15146_p6 }
0x373e   : > { %15051 = dma.done.wait (!%p14054_p2), %s11260_s28, 256  }
0x373f   : > { %15053 = vsyncadd (!%p14054_p2), %s11260_s28, 4294967040  ;;  %p14_p3 = scmp.ge.s32.totalorder %s15129_s21, 4   ;;  %s18387_s15 = smov %s15060_s16 }
0x3740   : > { %s18388_s16 = smov %s15064_s17  ;;  %s18389_s17 = smov %s15140_s24 }
0x3741   : > { %s18390_s18 = smov %s15129_s21  ;;  %16 = sbr.rel (!%p14_p3) target bundleno = 3 (0x3), region = 81 }
0x3748   :  { %11265 = vsyncpa [#allocation3], 1 }
0x3749   :  { %11267 = vsyncpa [#allocation3 + $0x1], 1 }

</bundles_post_ra>
